<compile_context>
chip_gen: v7x
topology: tpu7x:2x2x1
jax: 0.10.0
libtpu: 0.0.40
codegen_flags: <defaults>
</compile_context>

<pallas_src>
import jax
import jax.numpy as jnp
from jax.experimental import pallas as pl
from jax.experimental.pallas import tpu as pltpu

KH, KW = 5, 5
PAD = 2
BN_EPS = 1e-3  # matches BatchNorm2d(eps=0.001)


def dwconv_bn_kernel(x_ref, w_ref, gamma_ref, beta_ref, o_ref, xpad_ref, acc_ref):
    """One channel tile: depthwise 5x5 conv (stride 1, pad 2) + train-mode BN.

    x_ref:     (N, H, W, Ct)        input tile (auto-pipelined VMEM block)
    w_ref:     (KH*KW, Ct)          depthwise taps for this channel tile
    gamma_ref: (1, Ct)              BN scale
    beta_ref:  (1, Ct)              BN shift
    o_ref:     (N, H, W, Ct)        output tile
    xpad_ref:  (N, H+4, W+4, Ct)    zero-padded staging scratch (input dtype)
    acc_ref:   (N, H, W, Ct) f32    conv output staged once before BN pass
    """
    N, H, W, Ct = x_ref.shape
    HP, WP = H + 2 * PAD, W + 2 * PAD

    # ---- fused zero padding: zero only the halo, stage the interior ----
    zrow = jnp.zeros((N, PAD, WP, Ct), xpad_ref.dtype)
    xpad_ref[:, 0:PAD, :, :] = zrow
    xpad_ref[:, PAD + H:HP, :, :] = zrow
    zcol = jnp.zeros((N, H, PAD, Ct), xpad_ref.dtype)
    xpad_ref[:, PAD:PAD + H, 0:PAD, :] = zcol
    xpad_ref[:, PAD:PAD + H, PAD + W:WP, :] = zcol
    xpad_ref[:, PAD:PAD + H, PAD:PAD + W, :] = x_ref[...]

    # Taps hoisted out of the row loop: 25 lane vectors (Ct,).
    taps = [w_ref[k, :].astype(jnp.float32) for k in range(KH * KW)]

    # Running BN sums accumulated on the fly (one fused pass, stays in vregs).
    s_acc = jnp.zeros((N, W, Ct), jnp.float32)
    sq_acc = jnp.zeros((N, W, Ct), jnp.float32)

    # Row-blocked conv: static unroll (H is small and known at trace time).
    for h in range(H):
        rows = xpad_ref[:, h:h + KH, :, :].astype(jnp.float32)   # (N, KH, WP, Ct)
        row_acc = jnp.zeros((N, W, Ct), jnp.float32)
        for kw in range(KW):
            win = rows[:, :, kw:kw + W, :]                        # (N, KH, W, Ct)
            for kh in range(KH):
                row_acc = row_acc + win[:, kh, :, :] * taps[kh * KW + kw]
        s_acc = s_acc + row_acc
        sq_acc = sq_acc + row_acc * row_acc
        acc_ref[:, h:h + 1, :, :] = row_acc.reshape(N, 1, W, Ct)  # 1 write per row

    # ---- batchnorm (batch statistics, biased variance) -> one scale+bias pass ----
    count = N * H * W
    inv_count = 1.0 / count
    s = jnp.sum(s_acc, axis=(0, 1))                               # (Ct,)
    sq = jnp.sum(sq_acc, axis=(0, 1))                             # (Ct,)
    mean = s * inv_count
    var = jnp.maximum(sq * inv_count - mean * mean, 0.0)
    inv_std = jax.lax.rsqrt(var + BN_EPS)

    gamma = gamma_ref[0, :].astype(jnp.float32)
    beta = beta_ref[0, :].astype(jnp.float32)
    scale = (gamma * inv_std).reshape(1, 1, 1, Ct)
    bias = (beta - mean * gamma * inv_std).reshape(1, 1, 1, Ct)

    o_ref[...] = (acc_ref[...] * scale + bias).astype(o_ref.dtype)


def _pick_c_tile(C, max_tile=384):
    """Largest multiple-of-128 divisor of C that is <= max_tile, preferring an
    even grid-step count (>= 2 steps per TensorCore for v7x megacore)."""
    if C <= 128 or C % 128 != 0:
        return C
    cands = [t for t in range(128, min(max_tile, C) + 1, 128) if C % t == 0]
    if not cands:
        return C
    even = [t for t in cands if (C // t) % 2 == 0]
    return max(even) if even else max(cands)


def _vmem_estimate_bytes(N, H, W, c_tile, in_bytes, out_bytes):
    """Rough per-step VMEM budget: scratch + double-buffered in/out blocks."""
    HP, WP = H + 2 * PAD, W + 2 * PAD
    xpad = N * HP * WP * c_tile * in_bytes
    acc = N * H * W * c_tile * 4
    io = 2 * N * H * W * c_tile * (in_bytes + out_bytes)
    small = 4 * (KH * KW + 2) * c_tile * 4
    return xpad + acc + io + small


def dwconv_bn_nhwc(x_nhwc, weight, gamma, beta, c_tile=None):
    """Native NHWC entry point. x_nhwc: (N,H,W,C); weight: (C,1,KH,KW)."""
    N, H, W, C = x_nhwc.shape
    if c_tile is None:
        c_tile = _pick_c_tile(C)
    assert C % c_tile == 0, (C, c_tile)
    n_tiles = C // c_tile

    # (C, 1, KH, KW) -> (KH*KW, C): each tap is a lane vector.
    w_taps = jnp.transpose(weight[:, 0, :, :], (1, 2, 0)).reshape(KH * KW, C)

    in_b = jnp.dtype(x_nhwc.dtype).itemsize
    vmem_bytes = _vmem_estimate_bytes(N, H, W, c_tile, in_b, in_b)
    # Raise the scoped VMEM limit only when the default (32 MiB) would be tight;
    # keep headroom under v7x's 64 MiB physical VMEM.
    vmem_limit = None
    if vmem_bytes > (24 << 20):
        vmem_limit = int(min(vmem_bytes * 3 // 2 + (1 << 20), 100 << 20))

    cost = pl.CostEstimate(
        flops=2 * KH * KW * N * H * W * C,
        transcendentals=C,
        bytes_accessed=2 * N * H * W * C * in_b + KH * KW * C * 4 + 2 * C * 4,
    )

    return pl.pallas_call(
        dwconv_bn_kernel,
        out_shape=jax.ShapeDtypeStruct((N, H, W, C), x_nhwc.dtype),
        grid=(n_tiles,),
        in_specs=[
            pl.BlockSpec((N, H, W, c_tile), lambda c: (0, 0, 0, c)),
            pl.BlockSpec((KH * KW, c_tile), lambda c: (0, c)),
            pl.BlockSpec((1, c_tile), lambda c: (0, c)),
            pl.BlockSpec((1, c_tile), lambda c: (0, c)),
        ],
        out_specs=pl.BlockSpec((N, H, W, c_tile), lambda c: (0, 0, 0, c)),
        scratch_shapes=[
            pltpu.VMEM((N, H + 2 * PAD, W + 2 * PAD, c_tile), x_nhwc.dtype),
            pltpu.VMEM((N, H, W, c_tile), jnp.float32),
        ],
        compiler_params=pltpu.CompilerParams(
            dimension_semantics=("parallel",),
            vmem_limit_bytes=vmem_limit,
        ),
        cost_estimate=cost,
    )(x_nhwc, w_taps, gamma.reshape(1, C), beta.reshape(1, C))


def dwconv_bn(x_nchw, weight, gamma, beta, c_tile=None):
    """NCHW boundary wrapper matching the PyTorch module interface.
    (Prefer dwconv_bn_nhwc in NHWC-friendly production paths: these two
    transposes are full HBM round trips emitted by XLA.)"""
    out_nhwc = dwconv_bn_nhwc(
        jnp.transpose(x_nchw, (0, 2, 3, 1)), weight, gamma, beta, c_tile)
    return jnp.transpose(out_nhwc, (0, 3, 1, 2))


def _reference(x_nchw, weight, gamma, beta):
    """Pure-JAX reference (depthwise conv + train-mode BN)."""
    N, C, H, W = x_nchw.shape
    x_nhwc = jnp.transpose(x_nchw, (0, 2, 3, 1))
    rhs = jnp.transpose(weight, (2, 3, 1, 0))  # (KH, KW, 1, C) HWIO
    y = jax.lax.conv_general_dilated(
        x_nhwc, rhs, window_strides=(1, 1), padding=((PAD, PAD), (PAD, PAD)),
        dimension_numbers=("NHWC", "HWIO", "NHWC"), feature_group_count=C)
    mean = jnp.mean(y, axis=(0, 1, 2), keepdims=True)
    var = jnp.mean((y - mean) ** 2, axis=(0, 1, 2), keepdims=True)
    y = (y - mean) * jax.lax.rsqrt(var + BN_EPS) * gamma + beta
    return jnp.transpose(y, (0, 3, 1, 2))


if __name__ == "__main__":
    key = jax.random.PRNGKey(0)
    kx, kw_, kg, kb = jax.random.split(key, 4)

    # Small shapes consistent with the module (original: N=1, C=2304, H=W=7).
    N, C, H, W = 2, 256, 8, 8
    x = jax.random.normal(kx, (N, C, H, W), dtype=jnp.float32)
    weight = jax.random.normal(kw_, (C, 1, KH, KW), dtype=jnp.float32) * 0.1
    gamma = 1.0 + 0.1 * jax.random.normal(kg, (C,), dtype=jnp.float32)
    beta = 0.1 * jax.random.normal(kb, (C,), dtype=jnp.float32)

    out = jax.block_until_ready(dwconv_bn(x, weight, gamma, beta, c_tile=128))
    ref = _reference(x, weight, gamma, beta)
    assert out.shape == (N, C, H, W)
    assert jnp.allclose(out, ref, rtol=2e-3, atol=2e-3)

    # Odd 7x7 spatial size, N=1, auto-picked tile.
    N2, C2, H2, W2 = 1, 256, 7, 7
    x2 = jax.random.normal(kx, (N2, C2, H2, W2), dtype=jnp.float32)
    w2 = jax.random.normal(kw_, (C2, 1, KH, KW), dtype=jnp.float32) * 0.1
    g2 = 1.0 + 0.1 * jax.random.normal(kg, (C2,), dtype=jnp.float32)
    b2 = 0.1 * jax.random.normal(kb, (C2,), dtype=jnp.float32)
    out2 = jax.block_until_ready(dwconv_bn(x2, w2, g2, b2))
    ref2 = _reference(x2, w2, g2, b2)
    assert jnp.allclose(out2, ref2, rtol=2e-3, atol=2e-3)

    # Full module configuration (still tiny): N=1, C=2304, 7x7 -> 6 even grid steps.
    N3, C3, H3, W3 = 1, 2304, 7, 7
    x3 = jax.random.normal(kx, (N3, C3, H3, W3), dtype=jnp.float32)
    w3 = jax.random.normal(kw_, (C3, 1, KH, KW), dtype=jnp.float32) * 0.1
    g3 = 1.0 + 0.1 * jax.random.normal(kg, (C3,), dtype=jnp.float32)
    b3 = 0.1 * jax.random.normal(kb, (C3,), dtype=jnp.float32)
    out3 = jax.block_until_ready(dwconv_bn(x3, w3, g3, b3))
    ref3 = _reference(x3, w3, g3, b3)
    assert out3.shape == (N3, C3, H3, W3)
    assert jnp.allclose(out3, ref3, rtol=2e-3, atol=2e-3)

    print("KERNEL_OK")
</pallas_src>

<mosaic_0001>
module attributes {stable_mosaic.version = 11 : i64} {
  func.func @dwconv_bn_kernel(%arg0: i32, %arg1: memref<2x8x8x128xf32, #tpu.memory_space<vmem>>, %arg2: memref<25x128xf32, #tpu.memory_space<vmem>>, %arg3: memref<1x128xf32, #tpu.memory_space<vmem>>, %arg4: memref<1x128xf32, #tpu.memory_space<vmem>>, %arg5: memref<2x8x8x128xf32, #tpu.memory_space<vmem>>, %arg6: memref<2x12x12x128xf32, #tpu.memory_space<vmem>>, %arg7: memref<2x8x8x128xf32, #tpu.memory_space<vmem>>) attributes {dimension_semantics = [#tpu.dimension_semantics<parallel>], iteration_bounds = array<i64: 2>, scalar_prefetch = 0 : i64, scratch_operands = 2 : i64, tpu.core_type = #tpu.core_type<tc>, window_params = [{transform_indices = @transform_0, window_bounds = array<i64: 2, 8, 8, 128>}, {transform_indices = @transform_1, window_bounds = array<i64: 25, 128>}, {transform_indices = @transform_2, window_bounds = array<i64: 1, 128>}, {transform_indices = @transform_3, window_bounds = array<i64: 1, 128>}, {transform_indices = @transform_4, window_bounds = array<i64: 2, 8, 8, 128>}]} {
    %cst = arith.constant 0.000000e+00 : f32
    %0 = vector.broadcast %cst : f32 to vector<2x2x12x128xf32>
    %c0 = arith.constant 0 : index
    %c0_0 = arith.constant 0 : index
    %c0_1 = arith.constant 0 : index
    %c0_2 = arith.constant 0 : index
    %1 = vector.load %arg6[%c0, %c0_0, %c0_1, %c0_2] : memref<2x12x12x128xf32, #tpu.memory_space<vmem>>, vector<2x2x12x128xf32>
    tpu.vector_store %arg6[%c0, %c0_0, %c0_1, %c0_2], %0 {strides = array<i32>} : memref<2x12x12x128xf32, #tpu.memory_space<vmem>>, vector<2x2x12x128xf32>,
    %c0_3 = arith.constant 0 : index
    %c10 = arith.constant 10 : index
    %c0_4 = arith.constant 0 : index
    %c0_5 = arith.constant 0 : index
    %2 = vector.load %arg6[%c0_3, %c10, %c0_4, %c0_5] : memref<2x12x12x128xf32, #tpu.memory_space<vmem>>, vector<2x2x12x128xf32>
    tpu.vector_store %arg6[%c0_3, %c10, %c0_4, %c0_5], %0 {strides = array<i32>} : memref<2x12x12x128xf32, #tpu.memory_space<vmem>>, vector<2x2x12x128xf32>,
    %cst_6 = arith.constant 0.000000e+00 : f32
    %3 = vector.broadcast %cst_6 : f32 to vector<2x8x2x128xf32>
    %c0_7 = arith.constant 0 : index
    %c2 = arith.constant 2 : index
    %c0_8 = arith.constant 0 : index
    %c0_9 = arith.constant 0 : index
    %4 = vector.load %arg6[%c0_7, %c2, %c0_8, %c0_9] : memref<2x12x12x128xf32, #tpu.memory_space<vmem>>, vector<2x8x2x128xf32>
    tpu.vector_store %arg6[%c0_7, %c2, %c0_8, %c0_9], %3 {strides = array<i32>} : memref<2x12x12x128xf32, #tpu.memory_space<vmem>>, vector<2x8x2x128xf32>,
    %c0_10 = arith.constant 0 : index
    %c2_11 = arith.constant 2 : index
    %c10_12 = arith.constant 10 : index
    %c0_13 = arith.constant 0 : index
    %5 = vector.load %arg6[%c0_10, %c2_11, %c10_12, %c0_13] : memref<2x12x12x128xf32, #tpu.memory_space<vmem>>, vector<2x8x2x128xf32>
    tpu.vector_store %arg6[%c0_10, %c2_11, %c10_12, %c0_13], %3 {strides = array<i32>} : memref<2x12x12x128xf32, #tpu.memory_space<vmem>>, vector<2x8x2x128xf32>,
    %c0_14 = arith.constant 0 : index
    %c0_15 = arith.constant 0 : index
    %c0_16 = arith.constant 0 : index
    %c0_17 = arith.constant 0 : index
    %6 = vector.load %arg1[%c0_14, %c0_15, %c0_16, %c0_17] : memref<2x8x8x128xf32, #tpu.memory_space<vmem>>, vector<2x8x8x128xf32>
    %c0_18 = arith.constant 0 : index
    %c2_19 = arith.constant 2 : index
    %c2_20 = arith.constant 2 : index
    %c0_21 = arith.constant 0 : index
    %7 = vector.load %arg6[%c0_18, %c2_19, %c2_20, %c0_21] : memref<2x12x12x128xf32, #tpu.memory_space<vmem>>, vector<2x8x8x128xf32>
    tpu.vector_store %arg6[%c0_18, %c2_19, %c2_20, %c0_21], %6 {strides = array<i32>} : memref<2x12x12x128xf32, #tpu.memory_space<vmem>>, vector<2x8x8x128xf32>,
    %c0_22 = arith.constant 0 : index
    %c0_23 = arith.constant 0 : index
    %8 = vector.load %arg2[%c0_22, %c0_23] : memref<25x128xf32, #tpu.memory_space<vmem>>, vector<1x128xf32>
    %9 = vector.shape_cast %8 : vector<1x128xf32> to vector<128xf32>
    %c1 = arith.constant 1 : index
    %c0_24 = arith.constant 0 : index
    %10 = vector.load %arg2[%c1, %c0_24] : memref<25x128xf32, #tpu.memory_space<vmem>>, vector<1x128xf32>
    %11 = vector.shape_cast %10 : vector<1x128xf32> to vector<128xf32>
    %c2_25 = arith.constant 2 : index
    %c0_26 = arith.constant 0 : index
    %12 = vector.load %arg2[%c2_25, %c0_26] : memref<25x128xf32, #tpu.memory_space<vmem>>, vector<1x128xf32>
    %13 = vector.shape_cast %12 : vector<1x128xf32> to vector<128xf32>
    %c3 = arith.constant 3 : index
    %c0_27 = arith.constant 0 : index
    %14 = vector.load %arg2[%c3, %c0_27] : memref<25x128xf32, #tpu.memory_space<vmem>>, vector<1x128xf32>
    %15 = vector.shape_cast %14 : vector<1x128xf32> to vector<128xf32>
    %c4 = arith.constant 4 : index
    %c0_28 = arith.constant 0 : index
    %16 = vector.load %arg2[%c4, %c0_28] : memref<25x128xf32, #tpu.memory_space<vmem>>, vector<1x128xf32>
    %17 = vector.shape_cast %16 : vector<1x128xf32> to vector<128xf32>
    %c5 = arith.constant 5 : index
    %c0_29 = arith.constant 0 : index
    %18 = vector.load %arg2[%c5, %c0_29] : memref<25x128xf32, #tpu.memory_space<vmem>>, vector<1x128xf32>
    %19 = vector.shape_cast %18 : vector<1x128xf32> to vector<128xf32>
    %c6 = arith.constant 6 : index
    %c0_30 = arith.constant 0 : index
    %20 = vector.load %arg2[%c6, %c0_30] : memref<25x128xf32, #tpu.memory_space<vmem>>, vector<1x128xf32>
    %21 = vector.shape_cast %20 : vector<1x128xf32> to vector<128xf32>
    %c7 = arith.constant 7 : index
    %c0_31 = arith.constant 0 : index
    %22 = vector.load %arg2[%c7, %c0_31] : memref<25x128xf32, #tpu.memory_space<vmem>>, vector<1x128xf32>
    %23 = vector.shape_cast %22 : vector<1x128xf32> to vector<128xf32>
    %c8 = arith.constant 8 : index
    %c0_32 = arith.constant 0 : index
    %24 = vector.load %arg2[%c8, %c0_32] : memref<25x128xf32, #tpu.memory_space<vmem>>, vector<1x128xf32>
    %25 = vector.shape_cast %24 : vector<1x128xf32> to vector<128xf32>
    %c9 = arith.constant 9 : index
    %c0_33 = arith.constant 0 : index
    %26 = vector.load %arg2[%c9, %c0_33] : memref<25x128xf32, #tpu.memory_space<vmem>>, vector<1x128xf32>
    %27 = vector.shape_cast %26 : vector<1x128xf32> to vector<128xf32>
    %c10_34 = arith.constant 10 : index
    %c0_35 = arith.constant 0 : index
    %28 = vector.load %arg2[%c10_34, %c0_35] : memref<25x128xf32, #tpu.memory_space<vmem>>, vector<1x128xf32>
    %29 = vector.shape_cast %28 : vector<1x128xf32> to vector<128xf32>
    %c11 = arith.constant 11 : index
    %c0_36 = arith.constant 0 : index
    %30 = vector.load %arg2[%c11, %c0_36] : memref<25x128xf32, #tpu.memory_space<vmem>>, vector<1x128xf32>
    %31 = vector.shape_cast %30 : vector<1x128xf32> to vector<128xf32>
    %c12 = arith.constant 12 : index
    %c0_37 = arith.constant 0 : index
    %32 = vector.load %arg2[%c12, %c0_37] : memref<25x128xf32, #tpu.memory_space<vmem>>, vector<1x128xf32>
    %33 = vector.shape_cast %32 : vector<1x128xf32> to vector<128xf32>
    %c13 = arith.constant 13 : index
    %c0_38 = arith.constant 0 : index
    %34 = vector.load %arg2[%c13, %c0_38] : memref<25x128xf32, #tpu.memory_space<vmem>>, vector<1x128xf32>
    %35 = vector.shape_cast %34 : vector<1x128xf32> to vector<128xf32>
    %c14 = arith.constant 14 : index
    %c0_39 = arith.constant 0 : index
    %36 = vector.load %arg2[%c14, %c0_39] : memref<25x128xf32, #tpu.memory_space<vmem>>, vector<1x128xf32>
    %37 = vector.shape_cast %36 : vector<1x128xf32> to vector<128xf32>
    %c15 = arith.constant 15 : index
    %c0_40 = arith.constant 0 : index
    %38 = vector.load %arg2[%c15, %c0_40] : memref<25x128xf32, #tpu.memory_space<vmem>>, vector<1x128xf32>
    %39 = vector.shape_cast %38 : vector<1x128xf32> to vector<128xf32>
    %c16 = arith.constant 16 : index
    %c0_41 = arith.constant 0 : index
    %40 = vector.load %arg2[%c16, %c0_41] : memref<25x128xf32, #tpu.memory_space<vmem>>, vector<1x128xf32>
    %41 = vector.shape_cast %40 : vector<1x128xf32> to vector<128xf32>
    %c17 = arith.constant 17 : index
    %c0_42 = arith.constant 0 : index
    %42 = vector.load %arg2[%c17, %c0_42] : memref<25x128xf32, #tpu.memory_space<vmem>>, vector<1x128xf32>
    %43 = vector.shape_cast %42 : vector<1x128xf32> to vector<128xf32>
    %c18 = arith.constant 18 : index
    %c0_43 = arith.constant 0 : index
    %44 = vector.load %arg2[%c18, %c0_43] : memref<25x128xf32, #tpu.memory_space<vmem>>, vector<1x128xf32>
    %45 = vector.shape_cast %44 : vector<1x128xf32> to vector<128xf32>
    %c19 = arith.constant 19 : index
    %c0_44 = arith.constant 0 : index
    %46 = vector.load %arg2[%c19, %c0_44] : memref<25x128xf32, #tpu.memory_space<vmem>>, vector<1x128xf32>
    %47 = vector.shape_cast %46 : vector<1x128xf32> to vector<128xf32>
    %c20 = arith.constant 20 : index
    %c0_45 = arith.constant 0 : index
    %48 = vector.load %arg2[%c20, %c0_45] : memref<25x128xf32, #tpu.memory_space<vmem>>, vector<1x128xf32>
    %49 = vector.shape_cast %48 : vector<1x128xf32> to vector<128xf32>
    %c21 = arith.constant 21 : index
    %c0_46 = arith.constant 0 : index
    %50 = vector.load %arg2[%c21, %c0_46] : memref<25x128xf32, #tpu.memory_space<vmem>>, vector<1x128xf32>
    %51 = vector.shape_cast %50 : vector<1x128xf32> to vector<128xf32>
    %c22 = arith.constant 22 : index
    %c0_47 = arith.constant 0 : index
    %52 = vector.load %arg2[%c22, %c0_47] : memref<25x128xf32, #tpu.memory_space<vmem>>, vector<1x128xf32>
    %53 = vector.shape_cast %52 : vector<1x128xf32> to vector<128xf32>
    %c23 = arith.constant 23 : index
    %c0_48 = arith.constant 0 : index
    %54 = vector.load %arg2[%c23, %c0_48] : memref<25x128xf32, #tpu.memory_space<vmem>>, vector<1x128xf32>
    %55 = vector.shape_cast %54 : vector<1x128xf32> to vector<128xf32>
    %c24 = arith.constant 24 : index
    %c0_49 = arith.constant 0 : index
    %56 = vector.load %arg2[%c24, %c0_49] : memref<25x128xf32, #tpu.memory_space<vmem>>, vector<1x128xf32>
    %57 = vector.shape_cast %56 : vector<1x128xf32> to vector<128xf32>
    %cst_50 = arith.constant 0.000000e+00 : f32
    %58 = vector.broadcast %cst_50 : f32 to vector<2x8x128xf32>
    %cst_51 = arith.constant 0.000000e+00 : f32
    %59 = vector.broadcast %cst_51 : f32 to vector<2x8x128xf32>
    %c0_52 = arith.constant 0 : index
    %c0_53 = arith.constant 0 : index
    %c0_54 = arith.constant 0 : index
    %c0_55 = arith.constant 0 : index
    %60 = vector.load %arg6[%c0_52, %c0_53, %c0_54, %c0_55] : memref<2x12x12x128xf32, #tpu.memory_space<vmem>>, vector<2x5x12x128xf32>
    %cst_56 = arith.constant 0.000000e+00 : f32
    %61 = vector.broadcast %cst_56 : f32 to vector<2x8x128xf32>
    %62 = vector.extract_strided_slice %60 {offsets = [0, 0, 0, 0], sizes = [2, 5, 8, 128], strides = [1, 1, 1, 1]} : vector<2x5x12x128xf32> to vector<2x5x8x128xf32>
    %63 = vector.extract_strided_slice %62 {offsets = [0, 0, 0, 0], sizes = [2, 1, 8, 128], strides = [1, 1, 1, 1]} : vector<2x5x8x128xf32> to vector<2x1x8x128xf32>
    %64 = vector.shape_cast %63 : vector<2x1x8x128xf32> to vector<2x8x128xf32>
    %65 = vector.shape_cast %9 : vector<128xf32> to vector<1x1x128xf32>
    %66 = vector.broadcast %65 : vector<1x1x128xf32> to vector<2x8x128xf32>
    %67 = arith.mulf %64, %66 : vector<2x8x128xf32>
    %68 = arith.addf %61, %67 : vector<2x8x128xf32>
    %69 = vector.extract_strided_slice %62 {offsets = [0, 1, 0, 0], sizes = [2, 1, 8, 128], strides = [1, 1, 1, 1]} : vector<2x5x8x128xf32> to vector<2x1x8x128xf32>
    %70 = vector.shape_cast %69 : vector<2x1x8x128xf32> to vector<2x8x128xf32>
    %71 = vector.shape_cast %19 : vector<128xf32> to vector<1x1x128xf32>
    %72 = vector.broadcast %71 : vector<1x1x128xf32> to vector<2x8x128xf32>
    %73 = arith.mulf %70, %72 : vector<2x8x128xf32>
    %74 = arith.addf %68, %73 : vector<2x8x128xf32>
    %75 = vector.extract_strided_slice %62 {offsets = [0, 2, 0, 0], sizes = [2, 1, 8, 128], strides = [1, 1, 1, 1]} : vector<2x5x8x128xf32> to vector<2x1x8x128xf32>
    %76 = vector.shape_cast %75 : vector<2x1x8x128xf32> to vector<2x8x128xf32>
    %77 = vector.shape_cast %29 : vector<128xf32> to vector<1x1x128xf32>
    %78 = vector.broadcast %77 : vector<1x1x128xf32> to vector<2x8x128xf32>
    %79 = arith.mulf %76, %78 : vector<2x8x128xf32>
    %80 = arith.addf %74, %79 : vector<2x8x128xf32>
    %81 = vector.extract_strided_slice %62 {offsets = [0, 3, 0, 0], sizes = [2, 1, 8, 128], strides = [1, 1, 1, 1]} : vector<2x5x8x128xf32> to vector<2x1x8x128xf32>
    %82 = vector.shape_cast %81 : vector<2x1x8x128xf32> to vector<2x8x128xf32>
    %83 = vector.shape_cast %39 : vector<128xf32> to vector<1x1x128xf32>
    %84 = vector.broadcast %83 : vector<1x1x128xf32> to vector<2x8x128xf32>
    %85 = arith.mulf %82, %84 : vector<2x8x128xf32>
    %86 = arith.addf %80, %85 : vector<2x8x128xf32>
    %87 = vector.extract_strided_slice %62 {offsets = [0, 4, 0, 0], sizes = [2, 1, 8, 128], strides = [1, 1, 1, 1]} : vector<2x5x8x128xf32> to vector<2x1x8x128xf32>
    %88 = vector.shape_cast %87 : vector<2x1x8x128xf32> to vector<2x8x128xf32>
    %89 = vector.shape_cast %49 : vector<128xf32> to vector<1x1x128xf32>
    %90 = vector.broadcast %89 : vector<1x1x128xf32> to vector<2x8x128xf32>
    %91 = arith.mulf %88, %90 : vector<2x8x128xf32>
    %92 = arith.addf %86, %91 : vector<2x8x128xf32>
    %93 = vector.extract_strided_slice %60 {offsets = [0, 0, 1, 0], sizes = [2, 5, 8, 128], strides = [1, 1, 1, 1]} : vector<2x5x12x128xf32> to vector<2x5x8x128xf32>
    %94 = vector.extract_strided_slice %93 {offsets = [0, 0, 0, 0], sizes = [2, 1, 8, 128], strides = [1, 1, 1, 1]} : vector<2x5x8x128xf32> to vector<2x1x8x128xf32>
    %95 = vector.shape_cast %94 : vector<2x1x8x128xf32> to vector<2x8x128xf32>
    %96 = vector.shape_cast %11 : vector<128xf32> to vector<1x1x128xf32>
    %97 = vector.broadcast %96 : vector<1x1x128xf32> to vector<2x8x128xf32>
    %98 = arith.mulf %95, %97 : vector<2x8x128xf32>
    %99 = arith.addf %92, %98 : vector<2x8x128xf32>
    %100 = vector.extract_strided_slice %93 {offsets = [0, 1, 0, 0], sizes = [2, 1, 8, 128], strides = [1, 1, 1, 1]} : vector<2x5x8x128xf32> to vector<2x1x8x128xf32>
    %101 = vector.shape_cast %100 : vector<2x1x8x128xf32> to vector<2x8x128xf32>
    %102 = vector.shape_cast %21 : vector<128xf32> to vector<1x1x128xf32>
    %103 = vector.broadcast %102 : vector<1x1x128xf32> to vector<2x8x128xf32>
    %104 = arith.mulf %101, %103 : vector<2x8x128xf32>
    %105 = arith.addf %99, %104 : vector<2x8x128xf32>
    %106 = vector.extract_strided_slice %93 {offsets = [0, 2, 0, 0], sizes = [2, 1, 8, 128], strides = [1, 1, 1, 1]} : vector<2x5x8x128xf32> to vector<2x1x8x128xf32>
    %107 = vector.shape_cast %106 : vector<2x1x8x128xf32> to vector<2x8x128xf32>
    %108 = vector.shape_cast %31 : vector<128xf32> to vector<1x1x128xf32>
    %109 = vector.broadcast %108 : vector<1x1x128xf32> to vector<2x8x128xf32>
    %110 = arith.mulf %107, %109 : vector<2x8x128xf32>
    %111 = arith.addf %105, %110 : vector<2x8x128xf32>
    %112 = vector.extract_strided_slice %93 {offsets = [0, 3, 0, 0], sizes = [2, 1, 8, 128], strides = [1, 1, 1, 1]} : vector<2x5x8x128xf32> to vector<2x1x8x128xf32>
    %113 = vector.shape_cast %112 : vector<2x1x8x128xf32> to vector<2x8x128xf32>
    %114 = vector.shape_cast %41 : vector<128xf32> to vector<1x1x128xf32>
    %115 = vector.broadcast %114 : vector<1x1x128xf32> to vector<2x8x128xf32>
    %116 = arith.mulf %113, %115 : vector<2x8x128xf32>
    %117 = arith.addf %111, %116 : vector<2x8x128xf32>
    %118 = vector.extract_strided_slice %93 {offsets = [0, 4, 0, 0], sizes = [2, 1, 8, 128], strides = [1, 1, 1, 1]} : vector<2x5x8x128xf32> to vector<2x1x8x128xf32>
    %119 = vector.shape_cast %118 : vector<2x1x8x128xf32> to vector<2x8x128xf32>
    %120 = vector.shape_cast %51 : vector<128xf32> to vector<1x1x128xf32>
    %121 = vector.broadcast %120 : vector<1x1x128xf32> to vector<2x8x128xf32>
    %122 = arith.mulf %119, %121 : vector<2x8x128xf32>
    %123 = arith.addf %117, %122 : vector<2x8x128xf32>
    %124 = vector.extract_strided_slice %60 {offsets = [0, 0, 2, 0], sizes = [2, 5, 8, 128], strides = [1, 1, 1, 1]} : vector<2x5x12x128xf32> to vector<2x5x8x128xf32>
    %125 = vector.extract_strided_slice %124 {offsets = [0, 0, 0, 0], sizes = [2, 1, 8, 128], strides = [1, 1, 1, 1]} : vector<2x5x8x128xf32> to vector<2x1x8x128xf32>
    %126 = vector.shape_cast %125 : vector<2x1x8x128xf32> to vector<2x8x128xf32>
    %127 = vector.shape_cast %13 : vector<128xf32> to vector<1x1x128xf32>
    %128 = vector.broadcast %127 : vector<1x1x128xf32> to vector<2x8x128xf32>
    %129 = arith.mulf %126, %128 : vector<2x8x128xf32>
    %130 = arith.addf %123, %129 : vector<2x8x128xf32>
    %131 = vector.extract_strided_slice %124 {offsets = [0, 1, 0, 0], sizes = [2, 1, 8, 128], strides = [1, 1, 1, 1]} : vector<2x5x8x128xf32> to vector<2x1x8x128xf32>
    %132 = vector.shape_cast %131 : vector<2x1x8x128xf32> to vector<2x8x128xf32>
    %133 = vector.shape_cast %23 : vector<128xf32> to vector<1x1x128xf32>
    %134 = vector.broadcast %133 : vector<1x1x128xf32> to vector<2x8x128xf32>
    %135 = arith.mulf %132, %134 : vector<2x8x128xf32>
    %136 = arith.addf %130, %135 : vector<2x8x128xf32>
    %137 = vector.extract_strided_slice %124 {offsets = [0, 2, 0, 0], sizes = [2, 1, 8, 128], strides = [1, 1, 1, 1]} : vector<2x5x8x128xf32> to vector<2x1x8x128xf32>
    %138 = vector.shape_cast %137 : vector<2x1x8x128xf32> to vector<2x8x128xf32>
    %139 = vector.shape_cast %33 : vector<128xf32> to vector<1x1x128xf32>
    %140 = vector.broadcast %139 : vector<1x1x128xf32> to vector<2x8x128xf32>
    %141 = arith.mulf %138, %140 : vector<2x8x128xf32>
    %142 = arith.addf %136, %141 : vector<2x8x128xf32>
    %143 = vector.extract_strided_slice %124 {offsets = [0, 3, 0, 0], sizes = [2, 1, 8, 128], strides = [1, 1, 1, 1]} : vector<2x5x8x128xf32> to vector<2x1x8x128xf32>
    %144 = vector.shape_cast %143 : vector<2x1x8x128xf32> to vector<2x8x128xf32>
    %145 = vector.shape_cast %43 : vector<128xf32> to vector<1x1x128xf32>
    %146 = vector.broadcast %145 : vector<1x1x128xf32> to vector<2x8x128xf32>
    %147 = arith.mulf %144, %146 : vector<2x8x128xf32>
    %148 = arith.addf %142, %147 : vector<2x8x128xf32>
    %149 = vector.extract_strided_slice %124 {offsets = [0, 4, 0, 0], sizes = [2, 1, 8, 128], strides = [1, 1, 1, 1]} : vector<2x5x8x128xf32> to vector<2x1x8x128xf32>
    %150 = vector.shape_cast %149 : vector<2x1x8x128xf32> to vector<2x8x128xf32>
    %151 = vector.shape_cast %53 : vector<128xf32> to vector<1x1x128xf32>
    %152 = vector.broadcast %151 : vector<1x1x128xf32> to vector<2x8x128xf32>
    %153 = arith.mulf %150, %152 : vector<2x8x128xf32>
    %154 = arith.addf %148, %153 : vector<2x8x128xf32>
    %155 = vector.extract_strided_slice %60 {offsets = [0, 0, 3, 0], sizes = [2, 5, 8, 128], strides = [1, 1, 1, 1]} : vector<2x5x12x128xf32> to vector<2x5x8x128xf32>
    %156 = vector.extract_strided_slice %155 {offsets = [0, 0, 0, 0], sizes = [2, 1, 8, 128], strides = [1, 1, 1, 1]} : vector<2x5x8x128xf32> to vector<2x1x8x128xf32>
    %157 = vector.shape_cast %156 : vector<2x1x8x128xf32> to vector<2x8x128xf32>
    %158 = vector.shape_cast %15 : vector<128xf32> to vector<1x1x128xf32>
    %159 = vector.broadcast %158 : vector<1x1x128xf32> to vector<2x8x128xf32>
    %160 = arith.mulf %157, %159 : vector<2x8x128xf32>
    %161 = arith.addf %154, %160 : vector<2x8x128xf32>
    %162 = vector.extract_strided_slice %155 {offsets = [0, 1, 0, 0], sizes = [2, 1, 8, 128], strides = [1, 1, 1, 1]} : vector<2x5x8x128xf32> to vector<2x1x8x128xf32>
    %163 = vector.shape_cast %162 : vector<2x1x8x128xf32> to vector<2x8x128xf32>
    %164 = vector.shape_cast %25 : vector<128xf32> to vector<1x1x128xf32>
    %165 = vector.broadcast %164 : vector<1x1x128xf32> to vector<2x8x128xf32>
    %166 = arith.mulf %163, %165 : vector<2x8x128xf32>
    %167 = arith.addf %161, %166 : vector<2x8x128xf32>
    %168 = vector.extract_strided_slice %155 {offsets = [0, 2, 0, 0], sizes = [2, 1, 8, 128], strides = [1, 1, 1, 1]} : vector<2x5x8x128xf32> to vector<2x1x8x128xf32>
    %169 = vector.shape_cast %168 : vector<2x1x8x128xf32> to vector<2x8x128xf32>
    %170 = vector.shape_cast %35 : vector<128xf32> to vector<1x1x128xf32>
    %171 = vector.broadcast %170 : vector<1x1x128xf32> to vector<2x8x128xf32>
    %172 = arith.mulf %169, %171 : vector<2x8x128xf32>
    %173 = arith.addf %167, %172 : vector<2x8x128xf32>
    %174 = vector.extract_strided_slice %155 {offsets = [0, 3, 0, 0], sizes = [2, 1, 8, 128], strides = [1, 1, 1, 1]} : vector<2x5x8x128xf32> to vector<2x1x8x128xf32>
    %175 = vector.shape_cast %174 : vector<2x1x8x128xf32> to vector<2x8x128xf32>
    %176 = vector.shape_cast %45 : vector<128xf32> to vector<1x1x128xf32>
    %177 = vector.broadcast %176 : vector<1x1x128xf32> to vector<2x8x128xf32>
    %178 = arith.mulf %175, %177 : vector<2x8x128xf32>
    %179 = arith.addf %173, %178 : vector<2x8x128xf32>
    %180 = vector.extract_strided_slice %155 {offsets = [0, 4, 0, 0], sizes = [2, 1, 8, 128], strides = [1, 1, 1, 1]} : vector<2x5x8x128xf32> to vector<2x1x8x128xf32>
    %181 = vector.shape_cast %180 : vector<2x1x8x128xf32> to vector<2x8x128xf32>
    %182 = vector.shape_cast %55 : vector<128xf32> to vector<1x1x128xf32>
    %183 = vector.broadcast %182 : vector<1x1x128xf32> to vector<2x8x128xf32>
    %184 = arith.mulf %181, %183 : vector<2x8x128xf32>
    %185 = arith.addf %179, %184 : vector<2x8x128xf32>
    %186 = vector.extract_strided_slice %60 {offsets = [0, 0, 4, 0], sizes = [2, 5, 8, 128], strides = [1, 1, 1, 1]} : vector<2x5x12x128xf32> to vector<2x5x8x128xf32>
    %187 = vector.extract_strided_slice %186 {offsets = [0, 0, 0, 0], sizes = [2, 1, 8, 128], strides = [1, 1, 1, 1]} : vector<2x5x8x128xf32> to vector<2x1x8x128xf32>
    %188 = vector.shape_cast %187 : vector<2x1x8x128xf32> to vector<2x8x128xf32>
    %189 = vector.shape_cast %17 : vector<128xf32> to vector<1x1x128xf32>
    %190 = vector.broadcast %189 : vector<1x1x128xf32> to vector<2x8x128xf32>
    %191 = arith.mulf %188, %190 : vector<2x8x128xf32>
    %192 = arith.addf %185, %191 : vector<2x8x128xf32>
    %193 = vector.extract_strided_slice %186 {offsets = [0, 1, 0, 0], sizes = [2, 1, 8, 128], strides = [1, 1, 1, 1]} : vector<2x5x8x128xf32> to vector<2x1x8x128xf32>
    %194 = vector.shape_cast %193 : vector<2x1x8x128xf32> to vector<2x8x128xf32>
    %195 = vector.shape_cast %27 : vector<128xf32> to vector<1x1x128xf32>
    %196 = vector.broadcast %195 : vector<1x1x128xf32> to vector<2x8x128xf32>
    %197 = arith.mulf %194, %196 : vector<2x8x128xf32>
    %198 = arith.addf %192, %197 : vector<2x8x128xf32>
    %199 = vector.extract_strided_slice %186 {offsets = [0, 2, 0, 0], sizes = [2, 1, 8, 128], strides = [1, 1, 1, 1]} : vector<2x5x8x128xf32> to vector<2x1x8x128xf32>
    %200 = vector.shape_cast %199 : vector<2x1x8x128xf32> to vector<2x8x128xf32>
    %201 = vector.shape_cast %37 : vector<128xf32> to vector<1x1x128xf32>
    %202 = vector.broadcast %201 : vector<1x1x128xf32> to vector<2x8x128xf32>
    %203 = arith.mulf %200, %202 : vector<2x8x128xf32>
    %204 = arith.addf %198, %203 : vector<2x8x128xf32>
    %205 = vector.extract_strided_slice %186 {offsets = [0, 3, 0, 0], sizes = [2, 1, 8, 128], strides = [1, 1, 1, 1]} : vector<2x5x8x128xf32> to vector<2x1x8x128xf32>
    %206 = vector.shape_cast %205 : vector<2x1x8x128xf32> to vector<2x8x128xf32>
    %207 = vector.shape_cast %47 : vector<128xf32> to vector<1x1x128xf32>
    %208 = vector.broadcast %207 : vector<1x1x128xf32> to vector<2x8x128xf32>
    %209 = arith.mulf %206, %208 : vector<2x8x128xf32>
    %210 = arith.addf %204, %209 : vector<2x8x128xf32>
    %211 = vector.extract_strided_slice %186 {offsets = [0, 4, 0, 0], sizes = [2, 1, 8, 128], strides = [1, 1, 1, 1]} : vector<2x5x8x128xf32> to vector<2x1x8x128xf32>
    %212 = vector.shape_cast %211 : vector<2x1x8x128xf32> to vector<2x8x128xf32>
    %213 = vector.shape_cast %57 : vector<128xf32> to vector<1x1x128xf32>
    %214 = vector.broadcast %213 : vector<1x1x128xf32> to vector<2x8x128xf32>
    %215 = arith.mulf %212, %214 : vector<2x8x128xf32>
    %216 = arith.addf %210, %215 : vector<2x8x128xf32>
    %217 = arith.addf %58, %216 : vector<2x8x128xf32>
    %218 = arith.mulf %216, %216 : vector<2x8x128xf32>
    %219 = arith.addf %59, %218 : vector<2x8x128xf32>
    %220 = vector.shape_cast %216 : vector<2x8x128xf32> to vector<2x1x8x128xf32>
    %c0_57 = arith.constant 0 : index
    %c0_58 = arith.constant 0 : index
    %c0_59 = arith.constant 0 : index
    %c0_60 = arith.constant 0 : index
    %221 = vector.load %arg7[%c0_57, %c0_58, %c0_59, %c0_60] : memref<2x8x8x128xf32, #tpu.memory_space<vmem>>, vector<2x1x8x128xf32>
    tpu.vector_store %arg7[%c0_57, %c0_58, %c0_59, %c0_60], %220 {strides = array<i32>} : memref<2x8x8x128xf32, #tpu.memory_space<vmem>>, vector<2x1x8x128xf32>,
    %c0_61 = arith.constant 0 : index
    %c1_62 = arith.constant 1 : index
    %c0_63 = arith.constant 0 : index
    %c0_64 = arith.constant 0 : index
    %222 = vector.load %arg6[%c0_61, %c1_62, %c0_63, %c0_64] : memref<2x12x12x128xf32, #tpu.memory_space<vmem>>, vector<2x5x12x128xf32>
    %cst_65 = arith.constant 0.000000e+00 : f32
    %223 = vector.broadcast %cst_65 : f32 to vector<2x8x128xf32>
    %224 = vector.extract_strided_slice %222 {offsets = [0, 0, 0, 0], sizes = [2, 5, 8, 128], strides = [1, 1, 1, 1]} : vector<2x5x12x128xf32> to vector<2x5x8x128xf32>
    %225 = vector.extract_strided_slice %224 {offsets = [0, 0, 0, 0], sizes = [2, 1, 8, 128], strides = [1, 1, 1, 1]} : vector<2x5x8x128xf32> to vector<2x1x8x128xf32>
    %226 = vector.shape_cast %225 : vector<2x1x8x128xf32> to vector<2x8x128xf32>
    %227 = vector.shape_cast %9 : vector<128xf32> to vector<1x1x128xf32>
    %228 = vector.broadcast %227 : vector<1x1x128xf32> to vector<2x8x128xf32>
    %229 = arith.mulf %226, %228 : vector<2x8x128xf32>
    %230 = arith.addf %223, %229 : vector<2x8x128xf32>
    %231 = vector.extract_strided_slice %224 {offsets = [0, 1, 0, 0], sizes = [2, 1, 8, 128], strides = [1, 1, 1, 1]} : vector<2x5x8x128xf32> to vector<2x1x8x128xf32>
    %232 = vector.shape_cast %231 : vector<2x1x8x128xf32> to vector<2x8x128xf32>
    %233 = vector.shape_cast %19 : vector<128xf32> to vector<1x1x128xf32>
    %234 = vector.broadcast %233 : vector<1x1x128xf32> to vector<2x8x128xf32>
    %235 = arith.mulf %232, %234 : vector<2x8x128xf32>
    %236 = arith.addf %230, %235 : vector<2x8x128xf32>
    %237 = vector.extract_strided_slice %224 {offsets = [0, 2, 0, 0], sizes = [2, 1, 8, 128], strides = [1, 1, 1, 1]} : vector<2x5x8x128xf32> to vector<2x1x8x128xf32>
    %238 = vector.shape_cast %237 : vector<2x1x8x128xf32> to vector<2x8x128xf32>
    %239 = vector.shape_cast %29 : vector<128xf32> to vector<1x1x128xf32>
    %240 = vector.broadcast %239 : vector<1x1x128xf32> to vector<2x8x128xf32>
    %241 = arith.mulf %238, %240 : vector<2x8x128xf32>
    %242 = arith.addf %236, %241 : vector<2x8x128xf32>
    %243 = vector.extract_strided_slice %224 {offsets = [0, 3, 0, 0], sizes = [2, 1, 8, 128], strides = [1, 1, 1, 1]} : vector<2x5x8x128xf32> to vector<2x1x8x128xf32>
    %244 = vector.shape_cast %243 : vector<2x1x8x128xf32> to vector<2x8x128xf32>
    %245 = vector.shape_cast %39 : vector<128xf32> to vector<1x1x128xf32>
    %246 = vector.broadcast %245 : vector<1x1x128xf32> to vector<2x8x128xf32>
    %247 = arith.mulf %244, %246 : vector<2x8x128xf32>
    %248 = arith.addf %242, %247 : vector<2x8x128xf32>
    %249 = vector.extract_strided_slice %224 {offsets = [0, 4, 0, 0], sizes = [2, 1, 8, 128], strides = [1, 1, 1, 1]} : vector<2x5x8x128xf32> to vector<2x1x8x128xf32>
    %250 = vector.shape_cast %249 : vector<2x1x8x128xf32> to vector<2x8x128xf32>
    %251 = vector.shape_cast %49 : vector<128xf32> to vector<1x1x128xf32>
    %252 = vector.broadcast %251 : vector<1x1x128xf32> to vector<2x8x128xf32>
    %253 = arith.mulf %250, %252 : vector<2x8x128xf32>
    %254 = arith.addf %248, %253 : vector<2x8x128xf32>
    %255 = vector.extract_strided_slice %222 {offsets = [0, 0, 1, 0], sizes = [2, 5, 8, 128], strides = [1, 1, 1, 1]} : vector<2x5x12x128xf32> to vector<2x5x8x128xf32>
    %256 = vector.extract_strided_slice %255 {offsets = [0, 0, 0, 0], sizes = [2, 1, 8, 128], strides = [1, 1, 1, 1]} : vector<2x5x8x128xf32> to vector<2x1x8x128xf32>
    %257 = vector.shape_cast %256 : vector<2x1x8x128xf32> to vector<2x8x128xf32>
    %258 = vector.shape_cast %11 : vector<128xf32> to vector<1x1x128xf32>
    %259 = vector.broadcast %258 : vector<1x1x128xf32> to vector<2x8x128xf32>
    %260 = arith.mulf %257, %259 : vector<2x8x128xf32>
    %261 = arith.addf %254, %260 : vector<2x8x128xf32>
    %262 = vector.extract_strided_slice %255 {offsets = [0, 1, 0, 0], sizes = [2, 1, 8, 128], strides = [1, 1, 1, 1]} : vector<2x5x8x128xf32> to vector<2x1x8x128xf32>
    %263 = vector.shape_cast %262 : vector<2x1x8x128xf32> to vector<2x8x128xf32>
    %264 = vector.shape_cast %21 : vector<128xf32> to vector<1x1x128xf32>
    %265 = vector.broadcast %264 : vector<1x1x128xf32> to vector<2x8x128xf32>
    %266 = arith.mulf %263, %265 : vector<2x8x128xf32>
    %267 = arith.addf %261, %266 : vector<2x8x128xf32>
    %268 = vector.extract_strided_slice %255 {offsets = [0, 2, 0, 0], sizes = [2, 1, 8, 128], strides = [1, 1, 1, 1]} : vector<2x5x8x128xf32> to vector<2x1x8x128xf32>
    %269 = vector.shape_cast %268 : vector<2x1x8x128xf32> to vector<2x8x128xf32>
    %270 = vector.shape_cast %31 : vector<128xf32> to vector<1x1x128xf32>
    %271 = vector.broadcast %270 : vector<1x1x128xf32> to vector<2x8x128xf32>
    %272 = arith.mulf %269, %271 : vector<2x8x128xf32>
    %273 = arith.addf %267, %272 : vector<2x8x128xf32>
    %274 = vector.extract_strided_slice %255 {offsets = [0, 3, 0, 0], sizes = [2, 1, 8, 128], strides = [1, 1, 1, 1]} : vector<2x5x8x128xf32> to vector<2x1x8x128xf32>
    %275 = vector.shape_cast %274 : vector<2x1x8x128xf32> to vector<2x8x128xf32>
    %276 = vector.shape_cast %41 : vector<128xf32> to vector<1x1x128xf32>
    %277 = vector.broadcast %276 : vector<1x1x128xf32> to vector<2x8x128xf32>
    %278 = arith.mulf %275, %277 : vector<2x8x128xf32>
    %279 = arith.addf %273, %278 : vector<2x8x128xf32>
    %280 = vector.extract_strided_slice %255 {offsets = [0, 4, 0, 0], sizes = [2, 1, 8, 128], strides = [1, 1, 1, 1]} : vector<2x5x8x128xf32> to vector<2x1x8x128xf32>
    %281 = vector.shape_cast %280 : vector<2x1x8x128xf32> to vector<2x8x128xf32>
    %282 = vector.shape_cast %51 : vector<128xf32> to vector<1x1x128xf32>
    %283 = vector.broadcast %282 : vector<1x1x128xf32> to vector<2x8x128xf32>
    %284 = arith.mulf %281, %283 : vector<2x8x128xf32>
    %285 = arith.addf %279, %284 : vector<2x8x128xf32>
    %286 = vector.extract_strided_slice %222 {offsets = [0, 0, 2, 0], sizes = [2, 5, 8, 128], strides = [1, 1, 1, 1]} : vector<2x5x12x128xf32> to vector<2x5x8x128xf32>
    %287 = vector.extract_strided_slice %286 {offsets = [0, 0, 0, 0], sizes = [2, 1, 8, 128], strides = [1, 1, 1, 1]} : vector<2x5x8x128xf32> to vector<2x1x8x128xf32>
    %288 = vector.shape_cast %287 : vector<2x1x8x128xf32> to vector<2x8x128xf32>
    %289 = vector.shape_cast %13 : vector<128xf32> to vector<1x1x128xf32>
    %290 = vector.broadcast %289 : vector<1x1x128xf32> to vector<2x8x128xf32>
    %291 = arith.mulf %288, %290 : vector<2x8x128xf32>
    %292 = arith.addf %285, %291 : vector<2x8x128xf32>
    %293 = vector.extract_strided_slice %286 {offsets = [0, 1, 0, 0], sizes = [2, 1, 8, 128], strides = [1, 1, 1, 1]} : vector<2x5x8x128xf32> to vector<2x1x8x128xf32>
    %294 = vector.shape_cast %293 : vector<2x1x8x128xf32> to vector<2x8x128xf32>
    %295 = vector.shape_cast %23 : vector<128xf32> to vector<1x1x128xf32>
    %296 = vector.broadcast %295 : vector<1x1x128xf32> to vector<2x8x128xf32>
    %297 = arith.mulf %294, %296 : vector<2x8x128xf32>
    %298 = arith.addf %292, %297 : vector<2x8x128xf32>
    %299 = vector.extract_strided_slice %286 {offsets = [0, 2, 0, 0], sizes = [2, 1, 8, 128], strides = [1, 1, 1, 1]} : vector<2x5x8x128xf32> to vector<2x1x8x128xf32>
    %300 = vector.shape_cast %299 : vector<2x1x8x128xf32> to vector<2x8x128xf32>
    %301 = vector.shape_cast %33 : vector<128xf32> to vector<1x1x128xf32>
    %302 = vector.broadcast %301 : vector<1x1x128xf32> to vector<2x8x128xf32>
    %303 = arith.mulf %300, %302 : vector<2x8x128xf32>
    %304 = arith.addf %298, %303 : vector<2x8x128xf32>
    %305 = vector.extract_strided_slice %286 {offsets = [0, 3, 0, 0], sizes = [2, 1, 8, 128], strides = [1, 1, 1, 1]} : vector<2x5x8x128xf32> to vector<2x1x8x128xf32>
    %306 = vector.shape_cast %305 : vector<2x1x8x128xf32> to vector<2x8x128xf32>
    %307 = vector.shape_cast %43 : vector<128xf32> to vector<1x1x128xf32>
    %308 = vector.broadcast %307 : vector<1x1x128xf32> to vector<2x8x128xf32>
    %309 = arith.mulf %306, %308 : vector<2x8x128xf32>
    %310 = arith.addf %304, %309 : vector<2x8x128xf32>
    %311 = vector.extract_strided_slice %286 {offsets = [0, 4, 0, 0], sizes = [2, 1, 8, 128], strides = [1, 1, 1, 1]} : vector<2x5x8x128xf32> to vector<2x1x8x128xf32>
    %312 = vector.shape_cast %311 : vector<2x1x8x128xf32> to vector<2x8x128xf32>
    %313 = vector.shape_cast %53 : vector<128xf32> to vector<1x1x128xf32>
    %314 = vector.broadcast %313 : vector<1x1x128xf32> to vector<2x8x128xf32>
    %315 = arith.mulf %312, %314 : vector<2x8x128xf32>
    %316 = arith.addf %310, %315 : vector<2x8x128xf32>
    %317 = vector.extract_strided_slice %222 {offsets = [0, 0, 3, 0], sizes = [2, 5, 8, 128], strides = [1, 1, 1, 1]} : vector<2x5x12x128xf32> to vector<2x5x8x128xf32>
    %318 = vector.extract_strided_slice %317 {offsets = [0, 0, 0, 0], sizes = [2, 1, 8, 128], strides = [1, 1, 1, 1]} : vector<2x5x8x128xf32> to vector<2x1x8x128xf32>
    %319 = vector.shape_cast %318 : vector<2x1x8x128xf32> to vector<2x8x128xf32>
    %320 = vector.shape_cast %15 : vector<128xf32> to vector<1x1x128xf32>
    %321 = vector.broadcast %320 : vector<1x1x128xf32> to vector<2x8x128xf32>
    %322 = arith.mulf %319, %321 : vector<2x8x128xf32>
    %323 = arith.addf %316, %322 : vector<2x8x128xf32>
    %324 = vector.extract_strided_slice %317 {offsets = [0, 1, 0, 0], sizes = [2, 1, 8, 128], strides = [1, 1, 1, 1]} : vector<2x5x8x128xf32> to vector<2x1x8x128xf32>
    %325 = vector.shape_cast %324 : vector<2x1x8x128xf32> to vector<2x8x128xf32>
    %326 = vector.shape_cast %25 : vector<128xf32> to vector<1x1x128xf32>
    %327 = vector.broadcast %326 : vector<1x1x128xf32> to vector<2x8x128xf32>
    %328 = arith.mulf %325, %327 : vector<2x8x128xf32>
    %329 = arith.addf %323, %328 : vector<2x8x128xf32>
    %330 = vector.extract_strided_slice %317 {offsets = [0, 2, 0, 0], sizes = [2, 1, 8, 128], strides = [1, 1, 1, 1]} : vector<2x5x8x128xf32> to vector<2x1x8x128xf32>
    %331 = vector.shape_cast %330 : vector<2x1x8x128xf32> to vector<2x8x128xf32>
    %332 = vector.shape_cast %35 : vector<128xf32> to vector<1x1x128xf32>
    %333 = vector.broadcast %332 : vector<1x1x128xf32> to vector<2x8x128xf32>
    %334 = arith.mulf %331, %333 : vector<2x8x128xf32>
    %335 = arith.addf %329, %334 : vector<2x8x128xf32>
    %336 = vector.extract_strided_slice %317 {offsets = [0, 3, 0, 0], sizes = [2, 1, 8, 128], strides = [1, 1, 1, 1]} : vector<2x5x8x128xf32> to vector<2x1x8x128xf32>
    %337 = vector.shape_cast %336 : vector<2x1x8x128xf32> to vector<2x8x128xf32>
    %338 = vector.shape_cast %45 : vector<128xf32> to vector<1x1x128xf32>
    %339 = vector.broadcast %338 : vector<1x1x128xf32> to vector<2x8x128xf32>
    %340 = arith.mulf %337, %339 : vector<2x8x128xf32>
    %341 = arith.addf %335, %340 : vector<2x8x128xf32>
    %342 = vector.extract_strided_slice %317 {offsets = [0, 4, 0, 0], sizes = [2, 1, 8, 128], strides = [1, 1, 1, 1]} : vector<2x5x8x128xf32> to vector<2x1x8x128xf32>
    %343 = vector.shape_cast %342 : vector<2x1x8x128xf32> to vector<2x8x128xf32>
    %344 = vector.shape_cast %55 : vector<128xf32> to vector<1x1x128xf32>
    %345 = vector.broadcast %344 : vector<1x1x128xf32> to vector<2x8x128xf32>
    %346 = arith.mulf %343, %345 : vector<2x8x128xf32>
    %347 = arith.addf %341, %346 : vector<2x8x128xf32>
    %348 = vector.extract_strided_slice %222 {offsets = [0, 0, 4, 0], sizes = [2, 5, 8, 128], strides = [1, 1, 1, 1]} : vector<2x5x12x128xf32> to vector<2x5x8x128xf32>
    %349 = vector.extract_strided_slice %348 {offsets = [0, 0, 0, 0], sizes = [2, 1, 8, 128], strides = [1, 1, 1, 1]} : vector<2x5x8x128xf32> to vector<2x1x8x128xf32>
    %350 = vector.shape_cast %349 : vector<2x1x8x128xf32> to vector<2x8x128xf32>
    %351 = vector.shape_cast %17 : vector<128xf32> to vector<1x1x128xf32>
    %352 = vector.broadcast %351 : vector<1x1x128xf32> to vector<2x8x128xf32>
    %353 = arith.mulf %350, %352 : vector<2x8x128xf32>
    %354 = arith.addf %347, %353 : vector<2x8x128xf32>
    %355 = vector.extract_strided_slice %348 {offsets = [0, 1, 0, 0], sizes = [2, 1, 8, 128], strides = [1, 1, 1, 1]} : vector<2x5x8x128xf32> to vector<2x1x8x128xf32>
    %356 = vector.shape_cast %355 : vector<2x1x8x128xf32> to vector<2x8x128xf32>
    %357 = vector.shape_cast %27 : vector<128xf32> to vector<1x1x128xf32>
    %358 = vector.broadcast %357 : vector<1x1x128xf32> to vector<2x8x128xf32>
    %359 = arith.mulf %356, %358 : vector<2x8x128xf32>
    %360 = arith.addf %354, %359 : vector<2x8x128xf32>
    %361 = vector.extract_strided_slice %348 {offsets = [0, 2, 0, 0], sizes = [2, 1, 8, 128], strides = [1, 1, 1, 1]} : vector<2x5x8x128xf32> to vector<2x1x8x128xf32>
    %362 = vector.shape_cast %361 : vector<2x1x8x128xf32> to vector<2x8x128xf32>
    %363 = vector.shape_cast %37 : vector<128xf32> to vector<1x1x128xf32>
    %364 = vector.broadcast %363 : vector<1x1x128xf32> to vector<2x8x128xf32>
    %365 = arith.mulf %362, %364 : vector<2x8x128xf32>
    %366 = arith.addf %360, %365 : vector<2x8x128xf32>
    %367 = vector.extract_strided_slice %348 {offsets = [0, 3, 0, 0], sizes = [2, 1, 8, 128], strides = [1, 1, 1, 1]} : vector<2x5x8x128xf32> to vector<2x1x8x128xf32>
    %368 = vector.shape_cast %367 : vector<2x1x8x128xf32> to vector<2x8x128xf32>
    %369 = vector.shape_cast %47 : vector<128xf32> to vector<1x1x128xf32>
    %370 = vector.broadcast %369 : vector<1x1x128xf32> to vector<2x8x128xf32>
    %371 = arith.mulf %368, %370 : vector<2x8x128xf32>
    %372 = arith.addf %366, %371 : vector<2x8x128xf32>
    %373 = vector.extract_strided_slice %348 {offsets = [0, 4, 0, 0], sizes = [2, 1, 8, 128], strides = [1, 1, 1, 1]} : vector<2x5x8x128xf32> to vector<2x1x8x128xf32>
    %374 = vector.shape_cast %373 : vector<2x1x8x128xf32> to vector<2x8x128xf32>
    %375 = vector.shape_cast %57 : vector<128xf32> to vector<1x1x128xf32>
    %376 = vector.broadcast %375 : vector<1x1x128xf32> to vector<2x8x128xf32>
    %377 = arith.mulf %374, %376 : vector<2x8x128xf32>
    %378 = arith.addf %372, %377 : vector<2x8x128xf32>
    %379 = arith.addf %217, %378 : vector<2x8x128xf32>
    %380 = arith.mulf %378, %378 : vector<2x8x128xf32>
    %381 = arith.addf %219, %380 : vector<2x8x128xf32>
    %382 = vector.shape_cast %378 : vector<2x8x128xf32> to vector<2x1x8x128xf32>
    %c0_66 = arith.constant 0 : index
    %c1_67 = arith.constant 1 : index
    %c0_68 = arith.constant 0 : index
    %c0_69 = arith.constant 0 : index
    %383 = vector.load %arg7[%c0_66, %c1_67, %c0_68, %c0_69] : memref<2x8x8x128xf32, #tpu.memory_space<vmem>>, vector<2x1x8x128xf32>
    tpu.vector_store %arg7[%c0_66, %c1_67, %c0_68, %c0_69], %382 {strides = array<i32>} : memref<2x8x8x128xf32, #tpu.memory_space<vmem>>, vector<2x1x8x128xf32>,
    %c0_70 = arith.constant 0 : index
    %c2_71 = arith.constant 2 : index
    %c0_72 = arith.constant 0 : index
    %c0_73 = arith.constant 0 : index
    %384 = vector.load %arg6[%c0_70, %c2_71, %c0_72, %c0_73] : memref<2x12x12x128xf32, #tpu.memory_space<vmem>>, vector<2x5x12x128xf32>
    %cst_74 = arith.constant 0.000000e+00 : f32
    %385 = vector.broadcast %cst_74 : f32 to vector<2x8x128xf32>
    %386 = vector.extract_strided_slice %384 {offsets = [0, 0, 0, 0], sizes = [2, 5, 8, 128], strides = [1, 1, 1, 1]} : vector<2x5x12x128xf32> to vector<2x5x8x128xf32>
    %387 = vector.extract_strided_slice %386 {offsets = [0, 0, 0, 0], sizes = [2, 1, 8, 128], strides = [1, 1, 1, 1]} : vector<2x5x8x128xf32> to vector<2x1x8x128xf32>
    %388 = vector.shape_cast %387 : vector<2x1x8x128xf32> to vector<2x8x128xf32>
    %389 = vector.shape_cast %9 : vector<128xf32> to vector<1x1x128xf32>
    %390 = vector.broadcast %389 : vector<1x1x128xf32> to vector<2x8x128xf32>
    %391 = arith.mulf %388, %390 : vector<2x8x128xf32>
    %392 = arith.addf %385, %391 : vector<2x8x128xf32>
    %393 = vector.extract_strided_slice %386 {offsets = [0, 1, 0, 0], sizes = [2, 1, 8, 128], strides = [1, 1, 1, 1]} : vector<2x5x8x128xf32> to vector<2x1x8x128xf32>
    %394 = vector.shape_cast %393 : vector<2x1x8x128xf32> to vector<2x8x128xf32>
    %395 = vector.shape_cast %19 : vector<128xf32> to vector<1x1x128xf32>
    %396 = vector.broadcast %395 : vector<1x1x128xf32> to vector<2x8x128xf32>
    %397 = arith.mulf %394, %396 : vector<2x8x128xf32>
    %398 = arith.addf %392, %397 : vector<2x8x128xf32>
    %399 = vector.extract_strided_slice %386 {offsets = [0, 2, 0, 0], sizes = [2, 1, 8, 128], strides = [1, 1, 1, 1]} : vector<2x5x8x128xf32> to vector<2x1x8x128xf32>
    %400 = vector.shape_cast %399 : vector<2x1x8x128xf32> to vector<2x8x128xf32>
    %401 = vector.shape_cast %29 : vector<128xf32> to vector<1x1x128xf32>
    %402 = vector.broadcast %401 : vector<1x1x128xf32> to vector<2x8x128xf32>
    %403 = arith.mulf %400, %402 : vector<2x8x128xf32>
    %404 = arith.addf %398, %403 : vector<2x8x128xf32>
    %405 = vector.extract_strided_slice %386 {offsets = [0, 3, 0, 0], sizes = [2, 1, 8, 128], strides = [1, 1, 1, 1]} : vector<2x5x8x128xf32> to vector<2x1x8x128xf32>
    %406 = vector.shape_cast %405 : vector<2x1x8x128xf32> to vector<2x8x128xf32>
    %407 = vector.shape_cast %39 : vector<128xf32> to vector<1x1x128xf32>
    %408 = vector.broadcast %407 : vector<1x1x128xf32> to vector<2x8x128xf32>
    %409 = arith.mulf %406, %408 : vector<2x8x128xf32>
    %410 = arith.addf %404, %409 : vector<2x8x128xf32>
    %411 = vector.extract_strided_slice %386 {offsets = [0, 4, 0, 0], sizes = [2, 1, 8, 128], strides = [1, 1, 1, 1]} : vector<2x5x8x128xf32> to vector<2x1x8x128xf32>
    %412 = vector.shape_cast %411 : vector<2x1x8x128xf32> to vector<2x8x128xf32>
    %413 = vector.shape_cast %49 : vector<128xf32> to vector<1x1x128xf32>
    %414 = vector.broadcast %413 : vector<1x1x128xf32> to vector<2x8x128xf32>
    %415 = arith.mulf %412, %414 : vector<2x8x128xf32>
    %416 = arith.addf %410, %415 : vector<2x8x128xf32>
    %417 = vector.extract_strided_slice %384 {offsets = [0, 0, 1, 0], sizes = [2, 5, 8, 128], strides = [1, 1, 1, 1]} : vector<2x5x12x128xf32> to vector<2x5x8x128xf32>
    %418 = vector.extract_strided_slice %417 {offsets = [0, 0, 0, 0], sizes = [2, 1, 8, 128], strides = [1, 1, 1, 1]} : vector<2x5x8x128xf32> to vector<2x1x8x128xf32>
    %419 = vector.shape_cast %418 : vector<2x1x8x128xf32> to vector<2x8x128xf32>
    %420 = vector.shape_cast %11 : vector<128xf32> to vector<1x1x128xf32>
    %421 = vector.broadcast %420 : vector<1x1x128xf32> to vector<2x8x128xf32>
    %422 = arith.mulf %419, %421 : vector<2x8x128xf32>
    %423 = arith.addf %416, %422 : vector<2x8x128xf32>
    %424 = vector.extract_strided_slice %417 {offsets = [0, 1, 0, 0], sizes = [2, 1, 8, 128], strides = [1, 1, 1, 1]} : vector<2x5x8x128xf32> to vector<2x1x8x128xf32>
    %425 = vector.shape_cast %424 : vector<2x1x8x128xf32> to vector<2x8x128xf32>
    %426 = vector.shape_cast %21 : vector<128xf32> to vector<1x1x128xf32>
    %427 = vector.broadcast %426 : vector<1x1x128xf32> to vector<2x8x128xf32>
    %428 = arith.mulf %425, %427 : vector<2x8x128xf32>
    %429 = arith.addf %423, %428 : vector<2x8x128xf32>
    %430 = vector.extract_strided_slice %417 {offsets = [0, 2, 0, 0], sizes = [2, 1, 8, 128], strides = [1, 1, 1, 1]} : vector<2x5x8x128xf32> to vector<2x1x8x128xf32>
    %431 = vector.shape_cast %430 : vector<2x1x8x128xf32> to vector<2x8x128xf32>
    %432 = vector.shape_cast %31 : vector<128xf32> to vector<1x1x128xf32>
    %433 = vector.broadcast %432 : vector<1x1x128xf32> to vector<2x8x128xf32>
    %434 = arith.mulf %431, %433 : vector<2x8x128xf32>
    %435 = arith.addf %429, %434 : vector<2x8x128xf32>
    %436 = vector.extract_strided_slice %417 {offsets = [0, 3, 0, 0], sizes = [2, 1, 8, 128], strides = [1, 1, 1, 1]} : vector<2x5x8x128xf32> to vector<2x1x8x128xf32>
    %437 = vector.shape_cast %436 : vector<2x1x8x128xf32> to vector<2x8x128xf32>
    %438 = vector.shape_cast %41 : vector<128xf32> to vector<1x1x128xf32>
    %439 = vector.broadcast %438 : vector<1x1x128xf32> to vector<2x8x128xf32>
    %440 = arith.mulf %437, %439 : vector<2x8x128xf32>
    %441 = arith.addf %435, %440 : vector<2x8x128xf32>
    %442 = vector.extract_strided_slice %417 {offsets = [0, 4, 0, 0], sizes = [2, 1, 8, 128], strides = [1, 1, 1, 1]} : vector<2x5x8x128xf32> to vector<2x1x8x128xf32>
    %443 = vector.shape_cast %442 : vector<2x1x8x128xf32> to vector<2x8x128xf32>
    %444 = vector.shape_cast %51 : vector<128xf32> to vector<1x1x128xf32>
    %445 = vector.broadcast %444 : vector<1x1x128xf32> to vector<2x8x128xf32>
    %446 = arith.mulf %443, %445 : vector<2x8x128xf32>
    %447 = arith.addf %441, %446 : vector<2x8x128xf32>
    %448 = vector.extract_strided_slice %384 {offsets = [0, 0, 2, 0], sizes = [2, 5, 8, 128], strides = [1, 1, 1, 1]} : vector<2x5x12x128xf32> to vector<2x5x8x128xf32>
    %449 = vector.extract_strided_slice %448 {offsets = [0, 0, 0, 0], sizes = [2, 1, 8, 128], strides = [1, 1, 1, 1]} : vector<2x5x8x128xf32> to vector<2x1x8x128xf32>
    %450 = vector.shape_cast %449 : vector<2x1x8x128xf32> to vector<2x8x128xf32>
    %451 = vector.shape_cast %13 : vector<128xf32> to vector<1x1x128xf32>
    %452 = vector.broadcast %451 : vector<1x1x128xf32> to vector<2x8x128xf32>
    %453 = arith.mulf %450, %452 : vector<2x8x128xf32>
    %454 = arith.addf %447, %453 : vector<2x8x128xf32>
    %455 = vector.extract_strided_slice %448 {offsets = [0, 1, 0, 0], sizes = [2, 1, 8, 128], strides = [1, 1, 1, 1]} : vector<2x5x8x128xf32> to vector<2x1x8x128xf32>
    %456 = vector.shape_cast %455 : vector<2x1x8x128xf32> to vector<2x8x128xf32>
    %457 = vector.shape_cast %23 : vector<128xf32> to vector<1x1x128xf32>
    %458 = vector.broadcast %457 : vector<1x1x128xf32> to vector<2x8x128xf32>
    %459 = arith.mulf %456, %458 : vector<2x8x128xf32>
    %460 = arith.addf %454, %459 : vector<2x8x128xf32>
    %461 = vector.extract_strided_slice %448 {offsets = [0, 2, 0, 0], sizes = [2, 1, 8, 128], strides = [1, 1, 1, 1]} : vector<2x5x8x128xf32> to vector<2x1x8x128xf32>
    %462 = vector.shape_cast %461 : vector<2x1x8x128xf32> to vector<2x8x128xf32>
    %463 = vector.shape_cast %33 : vector<128xf32> to vector<1x1x128xf32>
    %464 = vector.broadcast %463 : vector<1x1x128xf32> to vector<2x8x128xf32>
    %465 = arith.mulf %462, %464 : vector<2x8x128xf32>
    %466 = arith.addf %460, %465 : vector<2x8x128xf32>
    %467 = vector.extract_strided_slice %448 {offsets = [0, 3, 0, 0], sizes = [2, 1, 8, 128], strides = [1, 1, 1, 1]} : vector<2x5x8x128xf32> to vector<2x1x8x128xf32>
    %468 = vector.shape_cast %467 : vector<2x1x8x128xf32> to vector<2x8x128xf32>
    %469 = vector.shape_cast %43 : vector<128xf32> to vector<1x1x128xf32>
    %470 = vector.broadcast %469 : vector<1x1x128xf32> to vector<2x8x128xf32>
    %471 = arith.mulf %468, %470 : vector<2x8x128xf32>
    %472 = arith.addf %466, %471 : vector<2x8x128xf32>
    %473 = vector.extract_strided_slice %448 {offsets = [0, 4, 0, 0], sizes = [2, 1, 8, 128], strides = [1, 1, 1, 1]} : vector<2x5x8x128xf32> to vector<2x1x8x128xf32>
    %474 = vector.shape_cast %473 : vector<2x1x8x128xf32> to vector<2x8x128xf32>
    %475 = vector.shape_cast %53 : vector<128xf32> to vector<1x1x128xf32>
    %476 = vector.broadcast %475 : vector<1x1x128xf32> to vector<2x8x128xf32>
    %477 = arith.mulf %474, %476 : vector<2x8x128xf32>
    %478 = arith.addf %472, %477 : vector<2x8x128xf32>
    %479 = vector.extract_strided_slice %384 {offsets = [0, 0, 3, 0], sizes = [2, 5, 8, 128], strides = [1, 1, 1, 1]} : vector<2x5x12x128xf32> to vector<2x5x8x128xf32>
    %480 = vector.extract_strided_slice %479 {offsets = [0, 0, 0, 0], sizes = [2, 1, 8, 128], strides = [1, 1, 1, 1]} : vector<2x5x8x128xf32> to vector<2x1x8x128xf32>
    %481 = vector.shape_cast %480 : vector<2x1x8x128xf32> to vector<2x8x128xf32>
    %482 = vector.shape_cast %15 : vector<128xf32> to vector<1x1x128xf32>
    %483 = vector.broadcast %482 : vector<1x1x128xf32> to vector<2x8x128xf32>
    %484 = arith.mulf %481, %483 : vector<2x8x128xf32>
    %485 = arith.addf %478, %484 : vector<2x8x128xf32>
    %486 = vector.extract_strided_slice %479 {offsets = [0, 1, 0, 0], sizes = [2, 1, 8, 128], strides = [1, 1, 1, 1]} : vector<2x5x8x128xf32> to vector<2x1x8x128xf32>
    %487 = vector.shape_cast %486 : vector<2x1x8x128xf32> to vector<2x8x128xf32>
    %488 = vector.shape_cast %25 : vector<128xf32> to vector<1x1x128xf32>
    %489 = vector.broadcast %488 : vector<1x1x128xf32> to vector<2x8x128xf32>
    %490 = arith.mulf %487, %489 : vector<2x8x128xf32>
    %491 = arith.addf %485, %490 : vector<2x8x128xf32>
    %492 = vector.extract_strided_slice %479 {offsets = [0, 2, 0, 0], sizes = [2, 1, 8, 128], strides = [1, 1, 1, 1]} : vector<2x5x8x128xf32> to vector<2x1x8x128xf32>
    %493 = vector.shape_cast %492 : vector<2x1x8x128xf32> to vector<2x8x128xf32>
    %494 = vector.shape_cast %35 : vector<128xf32> to vector<1x1x128xf32>
    %495 = vector.broadcast %494 : vector<1x1x128xf32> to vector<2x8x128xf32>
    %496 = arith.mulf %493, %495 : vector<2x8x128xf32>
    %497 = arith.addf %491, %496 : vector<2x8x128xf32>
    %498 = vector.extract_strided_slice %479 {offsets = [0, 3, 0, 0], sizes = [2, 1, 8, 128], strides = [1, 1, 1, 1]} : vector<2x5x8x128xf32> to vector<2x1x8x128xf32>
    %499 = vector.shape_cast %498 : vector<2x1x8x128xf32> to vector<2x8x128xf32>
    %500 = vector.shape_cast %45 : vector<128xf32> to vector<1x1x128xf32>
    %501 = vector.broadcast %500 : vector<1x1x128xf32> to vector<2x8x128xf32>
    %502 = arith.mulf %499, %501 : vector<2x8x128xf32>
    %503 = arith.addf %497, %502 : vector<2x8x128xf32>
    %504 = vector.extract_strided_slice %479 {offsets = [0, 4, 0, 0], sizes = [2, 1, 8, 128], strides = [1, 1, 1, 1]} : vector<2x5x8x128xf32> to vector<2x1x8x128xf32>
    %505 = vector.shape_cast %504 : vector<2x1x8x128xf32> to vector<2x8x128xf32>
    %506 = vector.shape_cast %55 : vector<128xf32> to vector<1x1x128xf32>
    %507 = vector.broadcast %506 : vector<1x1x128xf32> to vector<2x8x128xf32>
    %508 = arith.mulf %505, %507 : vector<2x8x128xf32>
    %509 = arith.addf %503, %508 : vector<2x8x128xf32>
    %510 = vector.extract_strided_slice %384 {offsets = [0, 0, 4, 0], sizes = [2, 5, 8, 128], strides = [1, 1, 1, 1]} : vector<2x5x12x128xf32> to vector<2x5x8x128xf32>
    %511 = vector.extract_strided_slice %510 {offsets = [0, 0, 0, 0], sizes = [2, 1, 8, 128], strides = [1, 1, 1, 1]} : vector<2x5x8x128xf32> to vector<2x1x8x128xf32>
    %512 = vector.shape_cast %511 : vector<2x1x8x128xf32> to vector<2x8x128xf32>
    %513 = vector.shape_cast %17 : vector<128xf32> to vector<1x1x128xf32>
    %514 = vector.broadcast %513 : vector<1x1x128xf32> to vector<2x8x128xf32>
    %515 = arith.mulf %512, %514 : vector<2x8x128xf32>
    %516 = arith.addf %509, %515 : vector<2x8x128xf32>
    %517 = vector.extract_strided_slice %510 {offsets = [0, 1, 0, 0], sizes = [2, 1, 8, 128], strides = [1, 1, 1, 1]} : vector<2x5x8x128xf32> to vector<2x1x8x128xf32>
    %518 = vector.shape_cast %517 : vector<2x1x8x128xf32> to vector<2x8x128xf32>
    %519 = vector.shape_cast %27 : vector<128xf32> to vector<1x1x128xf32>
    %520 = vector.broadcast %519 : vector<1x1x128xf32> to vector<2x8x128xf32>
    %521 = arith.mulf %518, %520 : vector<2x8x128xf32>
    %522 = arith.addf %516, %521 : vector<2x8x128xf32>
    %523 = vector.extract_strided_slice %510 {offsets = [0, 2, 0, 0], sizes = [2, 1, 8, 128], strides = [1, 1, 1, 1]} : vector<2x5x8x128xf32> to vector<2x1x8x128xf32>
    %524 = vector.shape_cast %523 : vector<2x1x8x128xf32> to vector<2x8x128xf32>
    %525 = vector.shape_cast %37 : vector<128xf32> to vector<1x1x128xf32>
    %526 = vector.broadcast %525 : vector<1x1x128xf32> to vector<2x8x128xf32>
    %527 = arith.mulf %524, %526 : vector<2x8x128xf32>
    %528 = arith.addf %522, %527 : vector<2x8x128xf32>
    %529 = vector.extract_strided_slice %510 {offsets = [0, 3, 0, 0], sizes = [2, 1, 8, 128], strides = [1, 1, 1, 1]} : vector<2x5x8x128xf32> to vector<2x1x8x128xf32>
    %530 = vector.shape_cast %529 : vector<2x1x8x128xf32> to vector<2x8x128xf32>
    %531 = vector.shape_cast %47 : vector<128xf32> to vector<1x1x128xf32>
    %532 = vector.broadcast %531 : vector<1x1x128xf32> to vector<2x8x128xf32>
    %533 = arith.mulf %530, %532 : vector<2x8x128xf32>
    %534 = arith.addf %528, %533 : vector<2x8x128xf32>
    %535 = vector.extract_strided_slice %510 {offsets = [0, 4, 0, 0], sizes = [2, 1, 8, 128], strides = [1, 1, 1, 1]} : vector<2x5x8x128xf32> to vector<2x1x8x128xf32>
    %536 = vector.shape_cast %535 : vector<2x1x8x128xf32> to vector<2x8x128xf32>
    %537 = vector.shape_cast %57 : vector<128xf32> to vector<1x1x128xf32>
    %538 = vector.broadcast %537 : vector<1x1x128xf32> to vector<2x8x128xf32>
    %539 = arith.mulf %536, %538 : vector<2x8x128xf32>
    %540 = arith.addf %534, %539 : vector<2x8x128xf32>
    %541 = arith.addf %379, %540 : vector<2x8x128xf32>
    %542 = arith.mulf %540, %540 : vector<2x8x128xf32>
    %543 = arith.addf %381, %542 : vector<2x8x128xf32>
    %544 = vector.shape_cast %540 : vector<2x8x128xf32> to vector<2x1x8x128xf32>
    %c0_75 = arith.constant 0 : index
    %c2_76 = arith.constant 2 : index
    %c0_77 = arith.constant 0 : index
    %c0_78 = arith.constant 0 : index
    %545 = vector.load %arg7[%c0_75, %c2_76, %c0_77, %c0_78] : memref<2x8x8x128xf32, #tpu.memory_space<vmem>>, vector<2x1x8x128xf32>
    tpu.vector_store %arg7[%c0_75, %c2_76, %c0_77, %c0_78], %544 {strides = array<i32>} : memref<2x8x8x128xf32, #tpu.memory_space<vmem>>, vector<2x1x8x128xf32>,
    %c0_79 = arith.constant 0 : index
    %c3_80 = arith.constant 3 : index
    %c0_81 = arith.constant 0 : index
    %c0_82 = arith.constant 0 : index
    %546 = vector.load %arg6[%c0_79, %c3_80, %c0_81, %c0_82] : memref<2x12x12x128xf32, #tpu.memory_space<vmem>>, vector<2x5x12x128xf32>
    %cst_83 = arith.constant 0.000000e+00 : f32
    %547 = vector.broadcast %cst_83 : f32 to vector<2x8x128xf32>
    %548 = vector.extract_strided_slice %546 {offsets = [0, 0, 0, 0], sizes = [2, 5, 8, 128], strides = [1, 1, 1, 1]} : vector<2x5x12x128xf32> to vector<2x5x8x128xf32>
    %549 = vector.extract_strided_slice %548 {offsets = [0, 0, 0, 0], sizes = [2, 1, 8, 128], strides = [1, 1, 1, 1]} : vector<2x5x8x128xf32> to vector<2x1x8x128xf32>
    %550 = vector.shape_cast %549 : vector<2x1x8x128xf32> to vector<2x8x128xf32>
    %551 = vector.shape_cast %9 : vector<128xf32> to vector<1x1x128xf32>
    %552 = vector.broadcast %551 : vector<1x1x128xf32> to vector<2x8x128xf32>
    %553 = arith.mulf %550, %552 : vector<2x8x128xf32>
    %554 = arith.addf %547, %553 : vector<2x8x128xf32>
    %555 = vector.extract_strided_slice %548 {offsets = [0, 1, 0, 0], sizes = [2, 1, 8, 128], strides = [1, 1, 1, 1]} : vector<2x5x8x128xf32> to vector<2x1x8x128xf32>
    %556 = vector.shape_cast %555 : vector<2x1x8x128xf32> to vector<2x8x128xf32>
    %557 = vector.shape_cast %19 : vector<128xf32> to vector<1x1x128xf32>
    %558 = vector.broadcast %557 : vector<1x1x128xf32> to vector<2x8x128xf32>
    %559 = arith.mulf %556, %558 : vector<2x8x128xf32>
    %560 = arith.addf %554, %559 : vector<2x8x128xf32>
    %561 = vector.extract_strided_slice %548 {offsets = [0, 2, 0, 0], sizes = [2, 1, 8, 128], strides = [1, 1, 1, 1]} : vector<2x5x8x128xf32> to vector<2x1x8x128xf32>
    %562 = vector.shape_cast %561 : vector<2x1x8x128xf32> to vector<2x8x128xf32>
    %563 = vector.shape_cast %29 : vector<128xf32> to vector<1x1x128xf32>
    %564 = vector.broadcast %563 : vector<1x1x128xf32> to vector<2x8x128xf32>
    %565 = arith.mulf %562, %564 : vector<2x8x128xf32>
    %566 = arith.addf %560, %565 : vector<2x8x128xf32>
    %567 = vector.extract_strided_slice %548 {offsets = [0, 3, 0, 0], sizes = [2, 1, 8, 128], strides = [1, 1, 1, 1]} : vector<2x5x8x128xf32> to vector<2x1x8x128xf32>
    %568 = vector.shape_cast %567 : vector<2x1x8x128xf32> to vector<2x8x128xf32>
    %569 = vector.shape_cast %39 : vector<128xf32> to vector<1x1x128xf32>
    %570 = vector.broadcast %569 : vector<1x1x128xf32> to vector<2x8x128xf32>
    %571 = arith.mulf %568, %570 : vector<2x8x128xf32>
    %572 = arith.addf %566, %571 : vector<2x8x128xf32>
    %573 = vector.extract_strided_slice %548 {offsets = [0, 4, 0, 0], sizes = [2, 1, 8, 128], strides = [1, 1, 1, 1]} : vector<2x5x8x128xf32> to vector<2x1x8x128xf32>
    %574 = vector.shape_cast %573 : vector<2x1x8x128xf32> to vector<2x8x128xf32>
    %575 = vector.shape_cast %49 : vector<128xf32> to vector<1x1x128xf32>
    %576 = vector.broadcast %575 : vector<1x1x128xf32> to vector<2x8x128xf32>
    %577 = arith.mulf %574, %576 : vector<2x8x128xf32>
    %578 = arith.addf %572, %577 : vector<2x8x128xf32>
    %579 = vector.extract_strided_slice %546 {offsets = [0, 0, 1, 0], sizes = [2, 5, 8, 128], strides = [1, 1, 1, 1]} : vector<2x5x12x128xf32> to vector<2x5x8x128xf32>
    %580 = vector.extract_strided_slice %579 {offsets = [0, 0, 0, 0], sizes = [2, 1, 8, 128], strides = [1, 1, 1, 1]} : vector<2x5x8x128xf32> to vector<2x1x8x128xf32>
    %581 = vector.shape_cast %580 : vector<2x1x8x128xf32> to vector<2x8x128xf32>
    %582 = vector.shape_cast %11 : vector<128xf32> to vector<1x1x128xf32>
    %583 = vector.broadcast %582 : vector<1x1x128xf32> to vector<2x8x128xf32>
    %584 = arith.mulf %581, %583 : vector<2x8x128xf32>
    %585 = arith.addf %578, %584 : vector<2x8x128xf32>
    %586 = vector.extract_strided_slice %579 {offsets = [0, 1, 0, 0], sizes = [2, 1, 8, 128], strides = [1, 1, 1, 1]} : vector<2x5x8x128xf32> to vector<2x1x8x128xf32>
    %587 = vector.shape_cast %586 : vector<2x1x8x128xf32> to vector<2x8x128xf32>
    %588 = vector.shape_cast %21 : vector<128xf32> to vector<1x1x128xf32>
    %589 = vector.broadcast %588 : vector<1x1x128xf32> to vector<2x8x128xf32>
    %590 = arith.mulf %587, %589 : vector<2x8x128xf32>
    %591 = arith.addf %585, %590 : vector<2x8x128xf32>
    %592 = vector.extract_strided_slice %579 {offsets = [0, 2, 0, 0], sizes = [2, 1, 8, 128], strides = [1, 1, 1, 1]} : vector<2x5x8x128xf32> to vector<2x1x8x128xf32>
    %593 = vector.shape_cast %592 : vector<2x1x8x128xf32> to vector<2x8x128xf32>
    %594 = vector.shape_cast %31 : vector<128xf32> to vector<1x1x128xf32>
    %595 = vector.broadcast %594 : vector<1x1x128xf32> to vector<2x8x128xf32>
    %596 = arith.mulf %593, %595 : vector<2x8x128xf32>
    %597 = arith.addf %591, %596 : vector<2x8x128xf32>
    %598 = vector.extract_strided_slice %579 {offsets = [0, 3, 0, 0], sizes = [2, 1, 8, 128], strides = [1, 1, 1, 1]} : vector<2x5x8x128xf32> to vector<2x1x8x128xf32>
    %599 = vector.shape_cast %598 : vector<2x1x8x128xf32> to vector<2x8x128xf32>
    %600 = vector.shape_cast %41 : vector<128xf32> to vector<1x1x128xf32>
    %601 = vector.broadcast %600 : vector<1x1x128xf32> to vector<2x8x128xf32>
    %602 = arith.mulf %599, %601 : vector<2x8x128xf32>
    %603 = arith.addf %597, %602 : vector<2x8x128xf32>
    %604 = vector.extract_strided_slice %579 {offsets = [0, 4, 0, 0], sizes = [2, 1, 8, 128], strides = [1, 1, 1, 1]} : vector<2x5x8x128xf32> to vector<2x1x8x128xf32>
    %605 = vector.shape_cast %604 : vector<2x1x8x128xf32> to vector<2x8x128xf32>
    %606 = vector.shape_cast %51 : vector<128xf32> to vector<1x1x128xf32>
    %607 = vector.broadcast %606 : vector<1x1x128xf32> to vector<2x8x128xf32>
    %608 = arith.mulf %605, %607 : vector<2x8x128xf32>
    %609 = arith.addf %603, %608 : vector<2x8x128xf32>
    %610 = vector.extract_strided_slice %546 {offsets = [0, 0, 2, 0], sizes = [2, 5, 8, 128], strides = [1, 1, 1, 1]} : vector<2x5x12x128xf32> to vector<2x5x8x128xf32>
    %611 = vector.extract_strided_slice %610 {offsets = [0, 0, 0, 0], sizes = [2, 1, 8, 128], strides = [1, 1, 1, 1]} : vector<2x5x8x128xf32> to vector<2x1x8x128xf32>
    %612 = vector.shape_cast %611 : vector<2x1x8x128xf32> to vector<2x8x128xf32>
    %613 = vector.shape_cast %13 : vector<128xf32> to vector<1x1x128xf32>
    %614 = vector.broadcast %613 : vector<1x1x128xf32> to vector<2x8x128xf32>
    %615 = arith.mulf %612, %614 : vector<2x8x128xf32>
    %616 = arith.addf %609, %615 : vector<2x8x128xf32>
    %617 = vector.extract_strided_slice %610 {offsets = [0, 1, 0, 0], sizes = [2, 1, 8, 128], strides = [1, 1, 1, 1]} : vector<2x5x8x128xf32> to vector<2x1x8x128xf32>
    %618 = vector.shape_cast %617 : vector<2x1x8x128xf32> to vector<2x8x128xf32>
    %619 = vector.shape_cast %23 : vector<128xf32> to vector<1x1x128xf32>
    %620 = vector.broadcast %619 : vector<1x1x128xf32> to vector<2x8x128xf32>
    %621 = arith.mulf %618, %620 : vector<2x8x128xf32>
    %622 = arith.addf %616, %621 : vector<2x8x128xf32>
    %623 = vector.extract_strided_slice %610 {offsets = [0, 2, 0, 0], sizes = [2, 1, 8, 128], strides = [1, 1, 1, 1]} : vector<2x5x8x128xf32> to vector<2x1x8x128xf32>
    %624 = vector.shape_cast %623 : vector<2x1x8x128xf32> to vector<2x8x128xf32>
    %625 = vector.shape_cast %33 : vector<128xf32> to vector<1x1x128xf32>
    %626 = vector.broadcast %625 : vector<1x1x128xf32> to vector<2x8x128xf32>
    %627 = arith.mulf %624, %626 : vector<2x8x128xf32>
    %628 = arith.addf %622, %627 : vector<2x8x128xf32>
    %629 = vector.extract_strided_slice %610 {offsets = [0, 3, 0, 0], sizes = [2, 1, 8, 128], strides = [1, 1, 1, 1]} : vector<2x5x8x128xf32> to vector<2x1x8x128xf32>
    %630 = vector.shape_cast %629 : vector<2x1x8x128xf32> to vector<2x8x128xf32>
    %631 = vector.shape_cast %43 : vector<128xf32> to vector<1x1x128xf32>
    %632 = vector.broadcast %631 : vector<1x1x128xf32> to vector<2x8x128xf32>
    %633 = arith.mulf %630, %632 : vector<2x8x128xf32>
    %634 = arith.addf %628, %633 : vector<2x8x128xf32>
    %635 = vector.extract_strided_slice %610 {offsets = [0, 4, 0, 0], sizes = [2, 1, 8, 128], strides = [1, 1, 1, 1]} : vector<2x5x8x128xf32> to vector<2x1x8x128xf32>
    %636 = vector.shape_cast %635 : vector<2x1x8x128xf32> to vector<2x8x128xf32>
    %637 = vector.shape_cast %53 : vector<128xf32> to vector<1x1x128xf32>
    %638 = vector.broadcast %637 : vector<1x1x128xf32> to vector<2x8x128xf32>
    %639 = arith.mulf %636, %638 : vector<2x8x128xf32>
    %640 = arith.addf %634, %639 : vector<2x8x128xf32>
    %641 = vector.extract_strided_slice %546 {offsets = [0, 0, 3, 0], sizes = [2, 5, 8, 128], strides = [1, 1, 1, 1]} : vector<2x5x12x128xf32> to vector<2x5x8x128xf32>
    %642 = vector.extract_strided_slice %641 {offsets = [0, 0, 0, 0], sizes = [2, 1, 8, 128], strides = [1, 1, 1, 1]} : vector<2x5x8x128xf32> to vector<2x1x8x128xf32>
    %643 = vector.shape_cast %642 : vector<2x1x8x128xf32> to vector<2x8x128xf32>
    %644 = vector.shape_cast %15 : vector<128xf32> to vector<1x1x128xf32>
    %645 = vector.broadcast %644 : vector<1x1x128xf32> to vector<2x8x128xf32>
    %646 = arith.mulf %643, %645 : vector<2x8x128xf32>
    %647 = arith.addf %640, %646 : vector<2x8x128xf32>
    %648 = vector.extract_strided_slice %641 {offsets = [0, 1, 0, 0], sizes = [2, 1, 8, 128], strides = [1, 1, 1, 1]} : vector<2x5x8x128xf32> to vector<2x1x8x128xf32>
    %649 = vector.shape_cast %648 : vector<2x1x8x128xf32> to vector<2x8x128xf32>
    %650 = vector.shape_cast %25 : vector<128xf32> to vector<1x1x128xf32>
    %651 = vector.broadcast %650 : vector<1x1x128xf32> to vector<2x8x128xf32>
    %652 = arith.mulf %649, %651 : vector<2x8x128xf32>
    %653 = arith.addf %647, %652 : vector<2x8x128xf32>
    %654 = vector.extract_strided_slice %641 {offsets = [0, 2, 0, 0], sizes = [2, 1, 8, 128], strides = [1, 1, 1, 1]} : vector<2x5x8x128xf32> to vector<2x1x8x128xf32>
    %655 = vector.shape_cast %654 : vector<2x1x8x128xf32> to vector<2x8x128xf32>
    %656 = vector.shape_cast %35 : vector<128xf32> to vector<1x1x128xf32>
    %657 = vector.broadcast %656 : vector<1x1x128xf32> to vector<2x8x128xf32>
    %658 = arith.mulf %655, %657 : vector<2x8x128xf32>
    %659 = arith.addf %653, %658 : vector<2x8x128xf32>
    %660 = vector.extract_strided_slice %641 {offsets = [0, 3, 0, 0], sizes = [2, 1, 8, 128], strides = [1, 1, 1, 1]} : vector<2x5x8x128xf32> to vector<2x1x8x128xf32>
    %661 = vector.shape_cast %660 : vector<2x1x8x128xf32> to vector<2x8x128xf32>
    %662 = vector.shape_cast %45 : vector<128xf32> to vector<1x1x128xf32>
    %663 = vector.broadcast %662 : vector<1x1x128xf32> to vector<2x8x128xf32>
    %664 = arith.mulf %661, %663 : vector<2x8x128xf32>
    %665 = arith.addf %659, %664 : vector<2x8x128xf32>
    %666 = vector.extract_strided_slice %641 {offsets = [0, 4, 0, 0], sizes = [2, 1, 8, 128], strides = [1, 1, 1, 1]} : vector<2x5x8x128xf32> to vector<2x1x8x128xf32>
    %667 = vector.shape_cast %666 : vector<2x1x8x128xf32> to vector<2x8x128xf32>
    %668 = vector.shape_cast %55 : vector<128xf32> to vector<1x1x128xf32>
    %669 = vector.broadcast %668 : vector<1x1x128xf32> to vector<2x8x128xf32>
    %670 = arith.mulf %667, %669 : vector<2x8x128xf32>
    %671 = arith.addf %665, %670 : vector<2x8x128xf32>
    %672 = vector.extract_strided_slice %546 {offsets = [0, 0, 4, 0], sizes = [2, 5, 8, 128], strides = [1, 1, 1, 1]} : vector<2x5x12x128xf32> to vector<2x5x8x128xf32>
    %673 = vector.extract_strided_slice %672 {offsets = [0, 0, 0, 0], sizes = [2, 1, 8, 128], strides = [1, 1, 1, 1]} : vector<2x5x8x128xf32> to vector<2x1x8x128xf32>
    %674 = vector.shape_cast %673 : vector<2x1x8x128xf32> to vector<2x8x128xf32>
    %675 = vector.shape_cast %17 : vector<128xf32> to vector<1x1x128xf32>
    %676 = vector.broadcast %675 : vector<1x1x128xf32> to vector<2x8x128xf32>
    %677 = arith.mulf %674, %676 : vector<2x8x128xf32>
    %678 = arith.addf %671, %677 : vector<2x8x128xf32>
    %679 = vector.extract_strided_slice %672 {offsets = [0, 1, 0, 0], sizes = [2, 1, 8, 128], strides = [1, 1, 1, 1]} : vector<2x5x8x128xf32> to vector<2x1x8x128xf32>
    %680 = vector.shape_cast %679 : vector<2x1x8x128xf32> to vector<2x8x128xf32>
    %681 = vector.shape_cast %27 : vector<128xf32> to vector<1x1x128xf32>
    %682 = vector.broadcast %681 : vector<1x1x128xf32> to vector<2x8x128xf32>
    %683 = arith.mulf %680, %682 : vector<2x8x128xf32>
    %684 = arith.addf %678, %683 : vector<2x8x128xf32>
    %685 = vector.extract_strided_slice %672 {offsets = [0, 2, 0, 0], sizes = [2, 1, 8, 128], strides = [1, 1, 1, 1]} : vector<2x5x8x128xf32> to vector<2x1x8x128xf32>
    %686 = vector.shape_cast %685 : vector<2x1x8x128xf32> to vector<2x8x128xf32>
    %687 = vector.shape_cast %37 : vector<128xf32> to vector<1x1x128xf32>
    %688 = vector.broadcast %687 : vector<1x1x128xf32> to vector<2x8x128xf32>
    %689 = arith.mulf %686, %688 : vector<2x8x128xf32>
    %690 = arith.addf %684, %689 : vector<2x8x128xf32>
    %691 = vector.extract_strided_slice %672 {offsets = [0, 3, 0, 0], sizes = [2, 1, 8, 128], strides = [1, 1, 1, 1]} : vector<2x5x8x128xf32> to vector<2x1x8x128xf32>
    %692 = vector.shape_cast %691 : vector<2x1x8x128xf32> to vector<2x8x128xf32>
    %693 = vector.shape_cast %47 : vector<128xf32> to vector<1x1x128xf32>
    %694 = vector.broadcast %693 : vector<1x1x128xf32> to vector<2x8x128xf32>
    %695 = arith.mulf %692, %694 : vector<2x8x128xf32>
    %696 = arith.addf %690, %695 : vector<2x8x128xf32>
    %697 = vector.extract_strided_slice %672 {offsets = [0, 4, 0, 0], sizes = [2, 1, 8, 128], strides = [1, 1, 1, 1]} : vector<2x5x8x128xf32> to vector<2x1x8x128xf32>
    %698 = vector.shape_cast %697 : vector<2x1x8x128xf32> to vector<2x8x128xf32>
    %699 = vector.shape_cast %57 : vector<128xf32> to vector<1x1x128xf32>
    %700 = vector.broadcast %699 : vector<1x1x128xf32> to vector<2x8x128xf32>
    %701 = arith.mulf %698, %700 : vector<2x8x128xf32>
    %702 = arith.addf %696, %701 : vector<2x8x128xf32>
    %703 = arith.addf %541, %702 : vector<2x8x128xf32>
    %704 = arith.mulf %702, %702 : vector<2x8x128xf32>
    %705 = arith.addf %543, %704 : vector<2x8x128xf32>
    %706 = vector.shape_cast %702 : vector<2x8x128xf32> to vector<2x1x8x128xf32>
    %c0_84 = arith.constant 0 : index
    %c3_85 = arith.constant 3 : index
    %c0_86 = arith.constant 0 : index
    %c0_87 = arith.constant 0 : index
    %707 = vector.load %arg7[%c0_84, %c3_85, %c0_86, %c0_87] : memref<2x8x8x128xf32, #tpu.memory_space<vmem>>, vector<2x1x8x128xf32>
    tpu.vector_store %arg7[%c0_84, %c3_85, %c0_86, %c0_87], %706 {strides = array<i32>} : memref<2x8x8x128xf32, #tpu.memory_space<vmem>>, vector<2x1x8x128xf32>,
    %c0_88 = arith.constant 0 : index
    %c4_89 = arith.constant 4 : index
    %c0_90 = arith.constant 0 : index
    %c0_91 = arith.constant 0 : index
    %708 = vector.load %arg6[%c0_88, %c4_89, %c0_90, %c0_91] : memref<2x12x12x128xf32, #tpu.memory_space<vmem>>, vector<2x5x12x128xf32>
    %cst_92 = arith.constant 0.000000e+00 : f32
    %709 = vector.broadcast %cst_92 : f32 to vector<2x8x128xf32>
    %710 = vector.extract_strided_slice %708 {offsets = [0, 0, 0, 0], sizes = [2, 5, 8, 128], strides = [1, 1, 1, 1]} : vector<2x5x12x128xf32> to vector<2x5x8x128xf32>
    %711 = vector.extract_strided_slice %710 {offsets = [0, 0, 0, 0], sizes = [2, 1, 8, 128], strides = [1, 1, 1, 1]} : vector<2x5x8x128xf32> to vector<2x1x8x128xf32>
    %712 = vector.shape_cast %711 : vector<2x1x8x128xf32> to vector<2x8x128xf32>
    %713 = vector.shape_cast %9 : vector<128xf32> to vector<1x1x128xf32>
    %714 = vector.broadcast %713 : vector<1x1x128xf32> to vector<2x8x128xf32>
    %715 = arith.mulf %712, %714 : vector<2x8x128xf32>
    %716 = arith.addf %709, %715 : vector<2x8x128xf32>
    %717 = vector.extract_strided_slice %710 {offsets = [0, 1, 0, 0], sizes = [2, 1, 8, 128], strides = [1, 1, 1, 1]} : vector<2x5x8x128xf32> to vector<2x1x8x128xf32>
    %718 = vector.shape_cast %717 : vector<2x1x8x128xf32> to vector<2x8x128xf32>
    %719 = vector.shape_cast %19 : vector<128xf32> to vector<1x1x128xf32>
    %720 = vector.broadcast %719 : vector<1x1x128xf32> to vector<2x8x128xf32>
    %721 = arith.mulf %718, %720 : vector<2x8x128xf32>
    %722 = arith.addf %716, %721 : vector<2x8x128xf32>
    %723 = vector.extract_strided_slice %710 {offsets = [0, 2, 0, 0], sizes = [2, 1, 8, 128], strides = [1, 1, 1, 1]} : vector<2x5x8x128xf32> to vector<2x1x8x128xf32>
    %724 = vector.shape_cast %723 : vector<2x1x8x128xf32> to vector<2x8x128xf32>
    %725 = vector.shape_cast %29 : vector<128xf32> to vector<1x1x128xf32>
    %726 = vector.broadcast %725 : vector<1x1x128xf32> to vector<2x8x128xf32>
    %727 = arith.mulf %724, %726 : vector<2x8x128xf32>
    %728 = arith.addf %722, %727 : vector<2x8x128xf32>
    %729 = vector.extract_strided_slice %710 {offsets = [0, 3, 0, 0], sizes = [2, 1, 8, 128], strides = [1, 1, 1, 1]} : vector<2x5x8x128xf32> to vector<2x1x8x128xf32>
    %730 = vector.shape_cast %729 : vector<2x1x8x128xf32> to vector<2x8x128xf32>
    %731 = vector.shape_cast %39 : vector<128xf32> to vector<1x1x128xf32>
    %732 = vector.broadcast %731 : vector<1x1x128xf32> to vector<2x8x128xf32>
    %733 = arith.mulf %730, %732 : vector<2x8x128xf32>
    %734 = arith.addf %728, %733 : vector<2x8x128xf32>
    %735 = vector.extract_strided_slice %710 {offsets = [0, 4, 0, 0], sizes = [2, 1, 8, 128], strides = [1, 1, 1, 1]} : vector<2x5x8x128xf32> to vector<2x1x8x128xf32>
    %736 = vector.shape_cast %735 : vector<2x1x8x128xf32> to vector<2x8x128xf32>
    %737 = vector.shape_cast %49 : vector<128xf32> to vector<1x1x128xf32>
    %738 = vector.broadcast %737 : vector<1x1x128xf32> to vector<2x8x128xf32>
    %739 = arith.mulf %736, %738 : vector<2x8x128xf32>
    %740 = arith.addf %734, %739 : vector<2x8x128xf32>
    %741 = vector.extract_strided_slice %708 {offsets = [0, 0, 1, 0], sizes = [2, 5, 8, 128], strides = [1, 1, 1, 1]} : vector<2x5x12x128xf32> to vector<2x5x8x128xf32>
    %742 = vector.extract_strided_slice %741 {offsets = [0, 0, 0, 0], sizes = [2, 1, 8, 128], strides = [1, 1, 1, 1]} : vector<2x5x8x128xf32> to vector<2x1x8x128xf32>
    %743 = vector.shape_cast %742 : vector<2x1x8x128xf32> to vector<2x8x128xf32>
    %744 = vector.shape_cast %11 : vector<128xf32> to vector<1x1x128xf32>
    %745 = vector.broadcast %744 : vector<1x1x128xf32> to vector<2x8x128xf32>
    %746 = arith.mulf %743, %745 : vector<2x8x128xf32>
    %747 = arith.addf %740, %746 : vector<2x8x128xf32>
    %748 = vector.extract_strided_slice %741 {offsets = [0, 1, 0, 0], sizes = [2, 1, 8, 128], strides = [1, 1, 1, 1]} : vector<2x5x8x128xf32> to vector<2x1x8x128xf32>
    %749 = vector.shape_cast %748 : vector<2x1x8x128xf32> to vector<2x8x128xf32>
    %750 = vector.shape_cast %21 : vector<128xf32> to vector<1x1x128xf32>
    %751 = vector.broadcast %750 : vector<1x1x128xf32> to vector<2x8x128xf32>
    %752 = arith.mulf %749, %751 : vector<2x8x128xf32>
    %753 = arith.addf %747, %752 : vector<2x8x128xf32>
    %754 = vector.extract_strided_slice %741 {offsets = [0, 2, 0, 0], sizes = [2, 1, 8, 128], strides = [1, 1, 1, 1]} : vector<2x5x8x128xf32> to vector<2x1x8x128xf32>
    %755 = vector.shape_cast %754 : vector<2x1x8x128xf32> to vector<2x8x128xf32>
    %756 = vector.shape_cast %31 : vector<128xf32> to vector<1x1x128xf32>
    %757 = vector.broadcast %756 : vector<1x1x128xf32> to vector<2x8x128xf32>
    %758 = arith.mulf %755, %757 : vector<2x8x128xf32>
    %759 = arith.addf %753, %758 : vector<2x8x128xf32>
    %760 = vector.extract_strided_slice %741 {offsets = [0, 3, 0, 0], sizes = [2, 1, 8, 128], strides = [1, 1, 1, 1]} : vector<2x5x8x128xf32> to vector<2x1x8x128xf32>
    %761 = vector.shape_cast %760 : vector<2x1x8x128xf32> to vector<2x8x128xf32>
    %762 = vector.shape_cast %41 : vector<128xf32> to vector<1x1x128xf32>
    %763 = vector.broadcast %762 : vector<1x1x128xf32> to vector<2x8x128xf32>
    %764 = arith.mulf %761, %763 : vector<2x8x128xf32>
    %765 = arith.addf %759, %764 : vector<2x8x128xf32>
    %766 = vector.extract_strided_slice %741 {offsets = [0, 4, 0, 0], sizes = [2, 1, 8, 128], strides = [1, 1, 1, 1]} : vector<2x5x8x128xf32> to vector<2x1x8x128xf32>
    %767 = vector.shape_cast %766 : vector<2x1x8x128xf32> to vector<2x8x128xf32>
    %768 = vector.shape_cast %51 : vector<128xf32> to vector<1x1x128xf32>
    %769 = vector.broadcast %768 : vector<1x1x128xf32> to vector<2x8x128xf32>
    %770 = arith.mulf %767, %769 : vector<2x8x128xf32>
    %771 = arith.addf %765, %770 : vector<2x8x128xf32>
    %772 = vector.extract_strided_slice %708 {offsets = [0, 0, 2, 0], sizes = [2, 5, 8, 128], strides = [1, 1, 1, 1]} : vector<2x5x12x128xf32> to vector<2x5x8x128xf32>
    %773 = vector.extract_strided_slice %772 {offsets = [0, 0, 0, 0], sizes = [2, 1, 8, 128], strides = [1, 1, 1, 1]} : vector<2x5x8x128xf32> to vector<2x1x8x128xf32>
    %774 = vector.shape_cast %773 : vector<2x1x8x128xf32> to vector<2x8x128xf32>
    %775 = vector.shape_cast %13 : vector<128xf32> to vector<1x1x128xf32>
    %776 = vector.broadcast %775 : vector<1x1x128xf32> to vector<2x8x128xf32>
    %777 = arith.mulf %774, %776 : vector<2x8x128xf32>
    %778 = arith.addf %771, %777 : vector<2x8x128xf32>
    %779 = vector.extract_strided_slice %772 {offsets = [0, 1, 0, 0], sizes = [2, 1, 8, 128], strides = [1, 1, 1, 1]} : vector<2x5x8x128xf32> to vector<2x1x8x128xf32>
    %780 = vector.shape_cast %779 : vector<2x1x8x128xf32> to vector<2x8x128xf32>
    %781 = vector.shape_cast %23 : vector<128xf32> to vector<1x1x128xf32>
    %782 = vector.broadcast %781 : vector<1x1x128xf32> to vector<2x8x128xf32>
    %783 = arith.mulf %780, %782 : vector<2x8x128xf32>
    %784 = arith.addf %778, %783 : vector<2x8x128xf32>
    %785 = vector.extract_strided_slice %772 {offsets = [0, 2, 0, 0], sizes = [2, 1, 8, 128], strides = [1, 1, 1, 1]} : vector<2x5x8x128xf32> to vector<2x1x8x128xf32>
    %786 = vector.shape_cast %785 : vector<2x1x8x128xf32> to vector<2x8x128xf32>
    %787 = vector.shape_cast %33 : vector<128xf32> to vector<1x1x128xf32>
    %788 = vector.broadcast %787 : vector<1x1x128xf32> to vector<2x8x128xf32>
    %789 = arith.mulf %786, %788 : vector<2x8x128xf32>
    %790 = arith.addf %784, %789 : vector<2x8x128xf32>
    %791 = vector.extract_strided_slice %772 {offsets = [0, 3, 0, 0], sizes = [2, 1, 8, 128], strides = [1, 1, 1, 1]} : vector<2x5x8x128xf32> to vector<2x1x8x128xf32>
    %792 = vector.shape_cast %791 : vector<2x1x8x128xf32> to vector<2x8x128xf32>
    %793 = vector.shape_cast %43 : vector<128xf32> to vector<1x1x128xf32>
    %794 = vector.broadcast %793 : vector<1x1x128xf32> to vector<2x8x128xf32>
    %795 = arith.mulf %792, %794 : vector<2x8x128xf32>
    %796 = arith.addf %790, %795 : vector<2x8x128xf32>
    %797 = vector.extract_strided_slice %772 {offsets = [0, 4, 0, 0], sizes = [2, 1, 8, 128], strides = [1, 1, 1, 1]} : vector<2x5x8x128xf32> to vector<2x1x8x128xf32>
    %798 = vector.shape_cast %797 : vector<2x1x8x128xf32> to vector<2x8x128xf32>
    %799 = vector.shape_cast %53 : vector<128xf32> to vector<1x1x128xf32>
    %800 = vector.broadcast %799 : vector<1x1x128xf32> to vector<2x8x128xf32>
    %801 = arith.mulf %798, %800 : vector<2x8x128xf32>
    %802 = arith.addf %796, %801 : vector<2x8x128xf32>
    %803 = vector.extract_strided_slice %708 {offsets = [0, 0, 3, 0], sizes = [2, 5, 8, 128], strides = [1, 1, 1, 1]} : vector<2x5x12x128xf32> to vector<2x5x8x128xf32>
    %804 = vector.extract_strided_slice %803 {offsets = [0, 0, 0, 0], sizes = [2, 1, 8, 128], strides = [1, 1, 1, 1]} : vector<2x5x8x128xf32> to vector<2x1x8x128xf32>
    %805 = vector.shape_cast %804 : vector<2x1x8x128xf32> to vector<2x8x128xf32>
    %806 = vector.shape_cast %15 : vector<128xf32> to vector<1x1x128xf32>
    %807 = vector.broadcast %806 : vector<1x1x128xf32> to vector<2x8x128xf32>
    %808 = arith.mulf %805, %807 : vector<2x8x128xf32>
    %809 = arith.addf %802, %808 : vector<2x8x128xf32>
    %810 = vector.extract_strided_slice %803 {offsets = [0, 1, 0, 0], sizes = [2, 1, 8, 128], strides = [1, 1, 1, 1]} : vector<2x5x8x128xf32> to vector<2x1x8x128xf32>
    %811 = vector.shape_cast %810 : vector<2x1x8x128xf32> to vector<2x8x128xf32>
    %812 = vector.shape_cast %25 : vector<128xf32> to vector<1x1x128xf32>
    %813 = vector.broadcast %812 : vector<1x1x128xf32> to vector<2x8x128xf32>
    %814 = arith.mulf %811, %813 : vector<2x8x128xf32>
    %815 = arith.addf %809, %814 : vector<2x8x128xf32>
    %816 = vector.extract_strided_slice %803 {offsets = [0, 2, 0, 0], sizes = [2, 1, 8, 128], strides = [1, 1, 1, 1]} : vector<2x5x8x128xf32> to vector<2x1x8x128xf32>
    %817 = vector.shape_cast %816 : vector<2x1x8x128xf32> to vector<2x8x128xf32>
    %818 = vector.shape_cast %35 : vector<128xf32> to vector<1x1x128xf32>
    %819 = vector.broadcast %818 : vector<1x1x128xf32> to vector<2x8x128xf32>
    %820 = arith.mulf %817, %819 : vector<2x8x128xf32>
    %821 = arith.addf %815, %820 : vector<2x8x128xf32>
    %822 = vector.extract_strided_slice %803 {offsets = [0, 3, 0, 0], sizes = [2, 1, 8, 128], strides = [1, 1, 1, 1]} : vector<2x5x8x128xf32> to vector<2x1x8x128xf32>
    %823 = vector.shape_cast %822 : vector<2x1x8x128xf32> to vector<2x8x128xf32>
    %824 = vector.shape_cast %45 : vector<128xf32> to vector<1x1x128xf32>
    %825 = vector.broadcast %824 : vector<1x1x128xf32> to vector<2x8x128xf32>
    %826 = arith.mulf %823, %825 : vector<2x8x128xf32>
    %827 = arith.addf %821, %826 : vector<2x8x128xf32>
    %828 = vector.extract_strided_slice %803 {offsets = [0, 4, 0, 0], sizes = [2, 1, 8, 128], strides = [1, 1, 1, 1]} : vector<2x5x8x128xf32> to vector<2x1x8x128xf32>
    %829 = vector.shape_cast %828 : vector<2x1x8x128xf32> to vector<2x8x128xf32>
    %830 = vector.shape_cast %55 : vector<128xf32> to vector<1x1x128xf32>
    %831 = vector.broadcast %830 : vector<1x1x128xf32> to vector<2x8x128xf32>
    %832 = arith.mulf %829, %831 : vector<2x8x128xf32>
    %833 = arith.addf %827, %832 : vector<2x8x128xf32>
    %834 = vector.extract_strided_slice %708 {offsets = [0, 0, 4, 0], sizes = [2, 5, 8, 128], strides = [1, 1, 1, 1]} : vector<2x5x12x128xf32> to vector<2x5x8x128xf32>
    %835 = vector.extract_strided_slice %834 {offsets = [0, 0, 0, 0], sizes = [2, 1, 8, 128], strides = [1, 1, 1, 1]} : vector<2x5x8x128xf32> to vector<2x1x8x128xf32>
    %836 = vector.shape_cast %835 : vector<2x1x8x128xf32> to vector<2x8x128xf32>
    %837 = vector.shape_cast %17 : vector<128xf32> to vector<1x1x128xf32>
    %838 = vector.broadcast %837 : vector<1x1x128xf32> to vector<2x8x128xf32>
    %839 = arith.mulf %836, %838 : vector<2x8x128xf32>
    %840 = arith.addf %833, %839 : vector<2x8x128xf32>
    %841 = vector.extract_strided_slice %834 {offsets = [0, 1, 0, 0], sizes = [2, 1, 8, 128], strides = [1, 1, 1, 1]} : vector<2x5x8x128xf32> to vector<2x1x8x128xf32>
    %842 = vector.shape_cast %841 : vector<2x1x8x128xf32> to vector<2x8x128xf32>
    %843 = vector.shape_cast %27 : vector<128xf32> to vector<1x1x128xf32>
    %844 = vector.broadcast %843 : vector<1x1x128xf32> to vector<2x8x128xf32>
    %845 = arith.mulf %842, %844 : vector<2x8x128xf32>
    %846 = arith.addf %840, %845 : vector<2x8x128xf32>
    %847 = vector.extract_strided_slice %834 {offsets = [0, 2, 0, 0], sizes = [2, 1, 8, 128], strides = [1, 1, 1, 1]} : vector<2x5x8x128xf32> to vector<2x1x8x128xf32>
    %848 = vector.shape_cast %847 : vector<2x1x8x128xf32> to vector<2x8x128xf32>
    %849 = vector.shape_cast %37 : vector<128xf32> to vector<1x1x128xf32>
    %850 = vector.broadcast %849 : vector<1x1x128xf32> to vector<2x8x128xf32>
    %851 = arith.mulf %848, %850 : vector<2x8x128xf32>
    %852 = arith.addf %846, %851 : vector<2x8x128xf32>
    %853 = vector.extract_strided_slice %834 {offsets = [0, 3, 0, 0], sizes = [2, 1, 8, 128], strides = [1, 1, 1, 1]} : vector<2x5x8x128xf32> to vector<2x1x8x128xf32>
    %854 = vector.shape_cast %853 : vector<2x1x8x128xf32> to vector<2x8x128xf32>
    %855 = vector.shape_cast %47 : vector<128xf32> to vector<1x1x128xf32>
    %856 = vector.broadcast %855 : vector<1x1x128xf32> to vector<2x8x128xf32>
    %857 = arith.mulf %854, %856 : vector<2x8x128xf32>
    %858 = arith.addf %852, %857 : vector<2x8x128xf32>
    %859 = vector.extract_strided_slice %834 {offsets = [0, 4, 0, 0], sizes = [2, 1, 8, 128], strides = [1, 1, 1, 1]} : vector<2x5x8x128xf32> to vector<2x1x8x128xf32>
    %860 = vector.shape_cast %859 : vector<2x1x8x128xf32> to vector<2x8x128xf32>
    %861 = vector.shape_cast %57 : vector<128xf32> to vector<1x1x128xf32>
    %862 = vector.broadcast %861 : vector<1x1x128xf32> to vector<2x8x128xf32>
    %863 = arith.mulf %860, %862 : vector<2x8x128xf32>
    %864 = arith.addf %858, %863 : vector<2x8x128xf32>
    %865 = arith.addf %703, %864 : vector<2x8x128xf32>
    %866 = arith.mulf %864, %864 : vector<2x8x128xf32>
    %867 = arith.addf %705, %866 : vector<2x8x128xf32>
    %868 = vector.shape_cast %864 : vector<2x8x128xf32> to vector<2x1x8x128xf32>
    %c0_93 = arith.constant 0 : index
    %c4_94 = arith.constant 4 : index
    %c0_95 = arith.constant 0 : index
    %c0_96 = arith.constant 0 : index
    %869 = vector.load %arg7[%c0_93, %c4_94, %c0_95, %c0_96] : memref<2x8x8x128xf32, #tpu.memory_space<vmem>>, vector<2x1x8x128xf32>
    tpu.vector_store %arg7[%c0_93, %c4_94, %c0_95, %c0_96], %868 {strides = array<i32>} : memref<2x8x8x128xf32, #tpu.memory_space<vmem>>, vector<2x1x8x128xf32>,
    %c0_97 = arith.constant 0 : index
    %c5_98 = arith.constant 5 : index
    %c0_99 = arith.constant 0 : index
    %c0_100 = arith.constant 0 : index
    %870 = vector.load %arg6[%c0_97, %c5_98, %c0_99, %c0_100] : memref<2x12x12x128xf32, #tpu.memory_space<vmem>>, vector<2x5x12x128xf32>
    %cst_101 = arith.constant 0.000000e+00 : f32
    %871 = vector.broadcast %cst_101 : f32 to vector<2x8x128xf32>
    %872 = vector.extract_strided_slice %870 {offsets = [0, 0, 0, 0], sizes = [2, 5, 8, 128], strides = [1, 1, 1, 1]} : vector<2x5x12x128xf32> to vector<2x5x8x128xf32>
    %873 = vector.extract_strided_slice %872 {offsets = [0, 0, 0, 0], sizes = [2, 1, 8, 128], strides = [1, 1, 1, 1]} : vector<2x5x8x128xf32> to vector<2x1x8x128xf32>
    %874 = vector.shape_cast %873 : vector<2x1x8x128xf32> to vector<2x8x128xf32>
    %875 = vector.shape_cast %9 : vector<128xf32> to vector<1x1x128xf32>
    %876 = vector.broadcast %875 : vector<1x1x128xf32> to vector<2x8x128xf32>
    %877 = arith.mulf %874, %876 : vector<2x8x128xf32>
    %878 = arith.addf %871, %877 : vector<2x8x128xf32>
    %879 = vector.extract_strided_slice %872 {offsets = [0, 1, 0, 0], sizes = [2, 1, 8, 128], strides = [1, 1, 1, 1]} : vector<2x5x8x128xf32> to vector<2x1x8x128xf32>
    %880 = vector.shape_cast %879 : vector<2x1x8x128xf32> to vector<2x8x128xf32>
    %881 = vector.shape_cast %19 : vector<128xf32> to vector<1x1x128xf32>
    %882 = vector.broadcast %881 : vector<1x1x128xf32> to vector<2x8x128xf32>
    %883 = arith.mulf %880, %882 : vector<2x8x128xf32>
    %884 = arith.addf %878, %883 : vector<2x8x128xf32>
    %885 = vector.extract_strided_slice %872 {offsets = [0, 2, 0, 0], sizes = [2, 1, 8, 128], strides = [1, 1, 1, 1]} : vector<2x5x8x128xf32> to vector<2x1x8x128xf32>
    %886 = vector.shape_cast %885 : vector<2x1x8x128xf32> to vector<2x8x128xf32>
    %887 = vector.shape_cast %29 : vector<128xf32> to vector<1x1x128xf32>
    %888 = vector.broadcast %887 : vector<1x1x128xf32> to vector<2x8x128xf32>
    %889 = arith.mulf %886, %888 : vector<2x8x128xf32>
    %890 = arith.addf %884, %889 : vector<2x8x128xf32>
    %891 = vector.extract_strided_slice %872 {offsets = [0, 3, 0, 0], sizes = [2, 1, 8, 128], strides = [1, 1, 1, 1]} : vector<2x5x8x128xf32> to vector<2x1x8x128xf32>
    %892 = vector.shape_cast %891 : vector<2x1x8x128xf32> to vector<2x8x128xf32>
    %893 = vector.shape_cast %39 : vector<128xf32> to vector<1x1x128xf32>
    %894 = vector.broadcast %893 : vector<1x1x128xf32> to vector<2x8x128xf32>
    %895 = arith.mulf %892, %894 : vector<2x8x128xf32>
    %896 = arith.addf %890, %895 : vector<2x8x128xf32>
    %897 = vector.extract_strided_slice %872 {offsets = [0, 4, 0, 0], sizes = [2, 1, 8, 128], strides = [1, 1, 1, 1]} : vector<2x5x8x128xf32> to vector<2x1x8x128xf32>
    %898 = vector.shape_cast %897 : vector<2x1x8x128xf32> to vector<2x8x128xf32>
    %899 = vector.shape_cast %49 : vector<128xf32> to vector<1x1x128xf32>
    %900 = vector.broadcast %899 : vector<1x1x128xf32> to vector<2x8x128xf32>
    %901 = arith.mulf %898, %900 : vector<2x8x128xf32>
    %902 = arith.addf %896, %901 : vector<2x8x128xf32>
    %903 = vector.extract_strided_slice %870 {offsets = [0, 0, 1, 0], sizes = [2, 5, 8, 128], strides = [1, 1, 1, 1]} : vector<2x5x12x128xf32> to vector<2x5x8x128xf32>
    %904 = vector.extract_strided_slice %903 {offsets = [0, 0, 0, 0], sizes = [2, 1, 8, 128], strides = [1, 1, 1, 1]} : vector<2x5x8x128xf32> to vector<2x1x8x128xf32>
    %905 = vector.shape_cast %904 : vector<2x1x8x128xf32> to vector<2x8x128xf32>
    %906 = vector.shape_cast %11 : vector<128xf32> to vector<1x1x128xf32>
    %907 = vector.broadcast %906 : vector<1x1x128xf32> to vector<2x8x128xf32>
    %908 = arith.mulf %905, %907 : vector<2x8x128xf32>
    %909 = arith.addf %902, %908 : vector<2x8x128xf32>
    %910 = vector.extract_strided_slice %903 {offsets = [0, 1, 0, 0], sizes = [2, 1, 8, 128], strides = [1, 1, 1, 1]} : vector<2x5x8x128xf32> to vector<2x1x8x128xf32>
    %911 = vector.shape_cast %910 : vector<2x1x8x128xf32> to vector<2x8x128xf32>
    %912 = vector.shape_cast %21 : vector<128xf32> to vector<1x1x128xf32>
    %913 = vector.broadcast %912 : vector<1x1x128xf32> to vector<2x8x128xf32>
    %914 = arith.mulf %911, %913 : vector<2x8x128xf32>
    %915 = arith.addf %909, %914 : vector<2x8x128xf32>
    %916 = vector.extract_strided_slice %903 {offsets = [0, 2, 0, 0], sizes = [2, 1, 8, 128], strides = [1, 1, 1, 1]} : vector<2x5x8x128xf32> to vector<2x1x8x128xf32>
    %917 = vector.shape_cast %916 : vector<2x1x8x128xf32> to vector<2x8x128xf32>
    %918 = vector.shape_cast %31 : vector<128xf32> to vector<1x1x128xf32>
    %919 = vector.broadcast %918 : vector<1x1x128xf32> to vector<2x8x128xf32>
    %920 = arith.mulf %917, %919 : vector<2x8x128xf32>
    %921 = arith.addf %915, %920 : vector<2x8x128xf32>
    %922 = vector.extract_strided_slice %903 {offsets = [0, 3, 0, 0], sizes = [2, 1, 8, 128], strides = [1, 1, 1, 1]} : vector<2x5x8x128xf32> to vector<2x1x8x128xf32>
    %923 = vector.shape_cast %922 : vector<2x1x8x128xf32> to vector<2x8x128xf32>
    %924 = vector.shape_cast %41 : vector<128xf32> to vector<1x1x128xf32>
    %925 = vector.broadcast %924 : vector<1x1x128xf32> to vector<2x8x128xf32>
    %926 = arith.mulf %923, %925 : vector<2x8x128xf32>
    %927 = arith.addf %921, %926 : vector<2x8x128xf32>
    %928 = vector.extract_strided_slice %903 {offsets = [0, 4, 0, 0], sizes = [2, 1, 8, 128], strides = [1, 1, 1, 1]} : vector<2x5x8x128xf32> to vector<2x1x8x128xf32>
    %929 = vector.shape_cast %928 : vector<2x1x8x128xf32> to vector<2x8x128xf32>
    %930 = vector.shape_cast %51 : vector<128xf32> to vector<1x1x128xf32>
    %931 = vector.broadcast %930 : vector<1x1x128xf32> to vector<2x8x128xf32>
    %932 = arith.mulf %929, %931 : vector<2x8x128xf32>
    %933 = arith.addf %927, %932 : vector<2x8x128xf32>
    %934 = vector.extract_strided_slice %870 {offsets = [0, 0, 2, 0], sizes = [2, 5, 8, 128], strides = [1, 1, 1, 1]} : vector<2x5x12x128xf32> to vector<2x5x8x128xf32>
    %935 = vector.extract_strided_slice %934 {offsets = [0, 0, 0, 0], sizes = [2, 1, 8, 128], strides = [1, 1, 1, 1]} : vector<2x5x8x128xf32> to vector<2x1x8x128xf32>
    %936 = vector.shape_cast %935 : vector<2x1x8x128xf32> to vector<2x8x128xf32>
    %937 = vector.shape_cast %13 : vector<128xf32> to vector<1x1x128xf32>
    %938 = vector.broadcast %937 : vector<1x1x128xf32> to vector<2x8x128xf32>
    %939 = arith.mulf %936, %938 : vector<2x8x128xf32>
    %940 = arith.addf %933, %939 : vector<2x8x128xf32>
    %941 = vector.extract_strided_slice %934 {offsets = [0, 1, 0, 0], sizes = [2, 1, 8, 128], strides = [1, 1, 1, 1]} : vector<2x5x8x128xf32> to vector<2x1x8x128xf32>
    %942 = vector.shape_cast %941 : vector<2x1x8x128xf32> to vector<2x8x128xf32>
    %943 = vector.shape_cast %23 : vector<128xf32> to vector<1x1x128xf32>
    %944 = vector.broadcast %943 : vector<1x1x128xf32> to vector<2x8x128xf32>
    %945 = arith.mulf %942, %944 : vector<2x8x128xf32>
    %946 = arith.addf %940, %945 : vector<2x8x128xf32>
    %947 = vector.extract_strided_slice %934 {offsets = [0, 2, 0, 0], sizes = [2, 1, 8, 128], strides = [1, 1, 1, 1]} : vector<2x5x8x128xf32> to vector<2x1x8x128xf32>
    %948 = vector.shape_cast %947 : vector<2x1x8x128xf32> to vector<2x8x128xf32>
    %949 = vector.shape_cast %33 : vector<128xf32> to vector<1x1x128xf32>
    %950 = vector.broadcast %949 : vector<1x1x128xf32> to vector<2x8x128xf32>
    %951 = arith.mulf %948, %950 : vector<2x8x128xf32>
    %952 = arith.addf %946, %951 : vector<2x8x128xf32>
    %953 = vector.extract_strided_slice %934 {offsets = [0, 3, 0, 0], sizes = [2, 1, 8, 128], strides = [1, 1, 1, 1]} : vector<2x5x8x128xf32> to vector<2x1x8x128xf32>
    %954 = vector.shape_cast %953 : vector<2x1x8x128xf32> to vector<2x8x128xf32>
    %955 = vector.shape_cast %43 : vector<128xf32> to vector<1x1x128xf32>
    %956 = vector.broadcast %955 : vector<1x1x128xf32> to vector<2x8x128xf32>
    %957 = arith.mulf %954, %956 : vector<2x8x128xf32>
    %958 = arith.addf %952, %957 : vector<2x8x128xf32>
    %959 = vector.extract_strided_slice %934 {offsets = [0, 4, 0, 0], sizes = [2, 1, 8, 128], strides = [1, 1, 1, 1]} : vector<2x5x8x128xf32> to vector<2x1x8x128xf32>
    %960 = vector.shape_cast %959 : vector<2x1x8x128xf32> to vector<2x8x128xf32>
    %961 = vector.shape_cast %53 : vector<128xf32> to vector<1x1x128xf32>
    %962 = vector.broadcast %961 : vector<1x1x128xf32> to vector<2x8x128xf32>
    %963 = arith.mulf %960, %962 : vector<2x8x128xf32>
    %964 = arith.addf %958, %963 : vector<2x8x128xf32>
    %965 = vector.extract_strided_slice %870 {offsets = [0, 0, 3, 0], sizes = [2, 5, 8, 128], strides = [1, 1, 1, 1]} : vector<2x5x12x128xf32> to vector<2x5x8x128xf32>
    %966 = vector.extract_strided_slice %965 {offsets = [0, 0, 0, 0], sizes = [2, 1, 8, 128], strides = [1, 1, 1, 1]} : vector<2x5x8x128xf32> to vector<2x1x8x128xf32>
    %967 = vector.shape_cast %966 : vector<2x1x8x128xf32> to vector<2x8x128xf32>
    %968 = vector.shape_cast %15 : vector<128xf32> to vector<1x1x128xf32>
    %969 = vector.broadcast %968 : vector<1x1x128xf32> to vector<2x8x128xf32>
    %970 = arith.mulf %967, %969 : vector<2x8x128xf32>
    %971 = arith.addf %964, %970 : vector<2x8x128xf32>
    %972 = vector.extract_strided_slice %965 {offsets = [0, 1, 0, 0], sizes = [2, 1, 8, 128], strides = [1, 1, 1, 1]} : vector<2x5x8x128xf32> to vector<2x1x8x128xf32>
    %973 = vector.shape_cast %972 : vector<2x1x8x128xf32> to vector<2x8x128xf32>
    %974 = vector.shape_cast %25 : vector<128xf32> to vector<1x1x128xf32>
    %975 = vector.broadcast %974 : vector<1x1x128xf32> to vector<2x8x128xf32>
    %976 = arith.mulf %973, %975 : vector<2x8x128xf32>
    %977 = arith.addf %971, %976 : vector<2x8x128xf32>
    %978 = vector.extract_strided_slice %965 {offsets = [0, 2, 0, 0], sizes = [2, 1, 8, 128], strides = [1, 1, 1, 1]} : vector<2x5x8x128xf32> to vector<2x1x8x128xf32>
    %979 = vector.shape_cast %978 : vector<2x1x8x128xf32> to vector<2x8x128xf32>
    %980 = vector.shape_cast %35 : vector<128xf32> to vector<1x1x128xf32>
    %981 = vector.broadcast %980 : vector<1x1x128xf32> to vector<2x8x128xf32>
    %982 = arith.mulf %979, %981 : vector<2x8x128xf32>
    %983 = arith.addf %977, %982 : vector<2x8x128xf32>
    %984 = vector.extract_strided_slice %965 {offsets = [0, 3, 0, 0], sizes = [2, 1, 8, 128], strides = [1, 1, 1, 1]} : vector<2x5x8x128xf32> to vector<2x1x8x128xf32>
    %985 = vector.shape_cast %984 : vector<2x1x8x128xf32> to vector<2x8x128xf32>
    %986 = vector.shape_cast %45 : vector<128xf32> to vector<1x1x128xf32>
    %987 = vector.broadcast %986 : vector<1x1x128xf32> to vector<2x8x128xf32>
    %988 = arith.mulf %985, %987 : vector<2x8x128xf32>
    %989 = arith.addf %983, %988 : vector<2x8x128xf32>
    %990 = vector.extract_strided_slice %965 {offsets = [0, 4, 0, 0], sizes = [2, 1, 8, 128], strides = [1, 1, 1, 1]} : vector<2x5x8x128xf32> to vector<2x1x8x128xf32>
    %991 = vector.shape_cast %990 : vector<2x1x8x128xf32> to vector<2x8x128xf32>
    %992 = vector.shape_cast %55 : vector<128xf32> to vector<1x1x128xf32>
    %993 = vector.broadcast %992 : vector<1x1x128xf32> to vector<2x8x128xf32>
    %994 = arith.mulf %991, %993 : vector<2x8x128xf32>
    %995 = arith.addf %989, %994 : vector<2x8x128xf32>
    %996 = vector.extract_strided_slice %870 {offsets = [0, 0, 4, 0], sizes = [2, 5, 8, 128], strides = [1, 1, 1, 1]} : vector<2x5x12x128xf32> to vector<2x5x8x128xf32>
    %997 = vector.extract_strided_slice %996 {offsets = [0, 0, 0, 0], sizes = [2, 1, 8, 128], strides = [1, 1, 1, 1]} : vector<2x5x8x128xf32> to vector<2x1x8x128xf32>
    %998 = vector.shape_cast %997 : vector<2x1x8x128xf32> to vector<2x8x128xf32>
    %999 = vector.shape_cast %17 : vector<128xf32> to vector<1x1x128xf32>
    %1000 = vector.broadcast %999 : vector<1x1x128xf32> to vector<2x8x128xf32>
    %1001 = arith.mulf %998, %1000 : vector<2x8x128xf32>
    %1002 = arith.addf %995, %1001 : vector<2x8x128xf32>
    %1003 = vector.extract_strided_slice %996 {offsets = [0, 1, 0, 0], sizes = [2, 1, 8, 128], strides = [1, 1, 1, 1]} : vector<2x5x8x128xf32> to vector<2x1x8x128xf32>
    %1004 = vector.shape_cast %1003 : vector<2x1x8x128xf32> to vector<2x8x128xf32>
    %1005 = vector.shape_cast %27 : vector<128xf32> to vector<1x1x128xf32>
    %1006 = vector.broadcast %1005 : vector<1x1x128xf32> to vector<2x8x128xf32>
    %1007 = arith.mulf %1004, %1006 : vector<2x8x128xf32>
    %1008 = arith.addf %1002, %1007 : vector<2x8x128xf32>
    %1009 = vector.extract_strided_slice %996 {offsets = [0, 2, 0, 0], sizes = [2, 1, 8, 128], strides = [1, 1, 1, 1]} : vector<2x5x8x128xf32> to vector<2x1x8x128xf32>
    %1010 = vector.shape_cast %1009 : vector<2x1x8x128xf32> to vector<2x8x128xf32>
    %1011 = vector.shape_cast %37 : vector<128xf32> to vector<1x1x128xf32>
    %1012 = vector.broadcast %1011 : vector<1x1x128xf32> to vector<2x8x128xf32>
    %1013 = arith.mulf %1010, %1012 : vector<2x8x128xf32>
    %1014 = arith.addf %1008, %1013 : vector<2x8x128xf32>
    %1015 = vector.extract_strided_slice %996 {offsets = [0, 3, 0, 0], sizes = [2, 1, 8, 128], strides = [1, 1, 1, 1]} : vector<2x5x8x128xf32> to vector<2x1x8x128xf32>
    %1016 = vector.shape_cast %1015 : vector<2x1x8x128xf32> to vector<2x8x128xf32>
    %1017 = vector.shape_cast %47 : vector<128xf32> to vector<1x1x128xf32>
    %1018 = vector.broadcast %1017 : vector<1x1x128xf32> to vector<2x8x128xf32>
    %1019 = arith.mulf %1016, %1018 : vector<2x8x128xf32>
    %1020 = arith.addf %1014, %1019 : vector<2x8x128xf32>
    %1021 = vector.extract_strided_slice %996 {offsets = [0, 4, 0, 0], sizes = [2, 1, 8, 128], strides = [1, 1, 1, 1]} : vector<2x5x8x128xf32> to vector<2x1x8x128xf32>
    %1022 = vector.shape_cast %1021 : vector<2x1x8x128xf32> to vector<2x8x128xf32>
    %1023 = vector.shape_cast %57 : vector<128xf32> to vector<1x1x128xf32>
    %1024 = vector.broadcast %1023 : vector<1x1x128xf32> to vector<2x8x128xf32>
    %1025 = arith.mulf %1022, %1024 : vector<2x8x128xf32>
    %1026 = arith.addf %1020, %1025 : vector<2x8x128xf32>
    %1027 = arith.addf %865, %1026 : vector<2x8x128xf32>
    %1028 = arith.mulf %1026, %1026 : vector<2x8x128xf32>
    %1029 = arith.addf %867, %1028 : vector<2x8x128xf32>
    %1030 = vector.shape_cast %1026 : vector<2x8x128xf32> to vector<2x1x8x128xf32>
    %c0_102 = arith.constant 0 : index
    %c5_103 = arith.constant 5 : index
    %c0_104 = arith.constant 0 : index
    %c0_105 = arith.constant 0 : index
    %1031 = vector.load %arg7[%c0_102, %c5_103, %c0_104, %c0_105] : memref<2x8x8x128xf32, #tpu.memory_space<vmem>>, vector<2x1x8x128xf32>
    tpu.vector_store %arg7[%c0_102, %c5_103, %c0_104, %c0_105], %1030 {strides = array<i32>} : memref<2x8x8x128xf32, #tpu.memory_space<vmem>>, vector<2x1x8x128xf32>,
    %c0_106 = arith.constant 0 : index
    %c6_107 = arith.constant 6 : index
    %c0_108 = arith.constant 0 : index
    %c0_109 = arith.constant 0 : index
    %1032 = vector.load %arg6[%c0_106, %c6_107, %c0_108, %c0_109] : memref<2x12x12x128xf32, #tpu.memory_space<vmem>>, vector<2x5x12x128xf32>
    %cst_110 = arith.constant 0.000000e+00 : f32
    %1033 = vector.broadcast %cst_110 : f32 to vector<2x8x128xf32>
    %1034 = vector.extract_strided_slice %1032 {offsets = [0, 0, 0, 0], sizes = [2, 5, 8, 128], strides = [1, 1, 1, 1]} : vector<2x5x12x128xf32> to vector<2x5x8x128xf32>
    %1035 = vector.extract_strided_slice %1034 {offsets = [0, 0, 0, 0], sizes = [2, 1, 8, 128], strides = [1, 1, 1, 1]} : vector<2x5x8x128xf32> to vector<2x1x8x128xf32>
    %1036 = vector.shape_cast %1035 : vector<2x1x8x128xf32> to vector<2x8x128xf32>
    %1037 = vector.shape_cast %9 : vector<128xf32> to vector<1x1x128xf32>
    %1038 = vector.broadcast %1037 : vector<1x1x128xf32> to vector<2x8x128xf32>
    %1039 = arith.mulf %1036, %1038 : vector<2x8x128xf32>
    %1040 = arith.addf %1033, %1039 : vector<2x8x128xf32>
    %1041 = vector.extract_strided_slice %1034 {offsets = [0, 1, 0, 0], sizes = [2, 1, 8, 128], strides = [1, 1, 1, 1]} : vector<2x5x8x128xf32> to vector<2x1x8x128xf32>
    %1042 = vector.shape_cast %1041 : vector<2x1x8x128xf32> to vector<2x8x128xf32>
    %1043 = vector.shape_cast %19 : vector<128xf32> to vector<1x1x128xf32>
    %1044 = vector.broadcast %1043 : vector<1x1x128xf32> to vector<2x8x128xf32>
    %1045 = arith.mulf %1042, %1044 : vector<2x8x128xf32>
    %1046 = arith.addf %1040, %1045 : vector<2x8x128xf32>
    %1047 = vector.extract_strided_slice %1034 {offsets = [0, 2, 0, 0], sizes = [2, 1, 8, 128], strides = [1, 1, 1, 1]} : vector<2x5x8x128xf32> to vector<2x1x8x128xf32>
    %1048 = vector.shape_cast %1047 : vector<2x1x8x128xf32> to vector<2x8x128xf32>
    %1049 = vector.shape_cast %29 : vector<128xf32> to vector<1x1x128xf32>
    %1050 = vector.broadcast %1049 : vector<1x1x128xf32> to vector<2x8x128xf32>
    %1051 = arith.mulf %1048, %1050 : vector<2x8x128xf32>
    %1052 = arith.addf %1046, %1051 : vector<2x8x128xf32>
    %1053 = vector.extract_strided_slice %1034 {offsets = [0, 3, 0, 0], sizes = [2, 1, 8, 128], strides = [1, 1, 1, 1]} : vector<2x5x8x128xf32> to vector<2x1x8x128xf32>
    %1054 = vector.shape_cast %1053 : vector<2x1x8x128xf32> to vector<2x8x128xf32>
    %1055 = vector.shape_cast %39 : vector<128xf32> to vector<1x1x128xf32>
    %1056 = vector.broadcast %1055 : vector<1x1x128xf32> to vector<2x8x128xf32>
    %1057 = arith.mulf %1054, %1056 : vector<2x8x128xf32>
    %1058 = arith.addf %1052, %1057 : vector<2x8x128xf32>
    %1059 = vector.extract_strided_slice %1034 {offsets = [0, 4, 0, 0], sizes = [2, 1, 8, 128], strides = [1, 1, 1, 1]} : vector<2x5x8x128xf32> to vector<2x1x8x128xf32>
    %1060 = vector.shape_cast %1059 : vector<2x1x8x128xf32> to vector<2x8x128xf32>
    %1061 = vector.shape_cast %49 : vector<128xf32> to vector<1x1x128xf32>
    %1062 = vector.broadcast %1061 : vector<1x1x128xf32> to vector<2x8x128xf32>
    %1063 = arith.mulf %1060, %1062 : vector<2x8x128xf32>
    %1064 = arith.addf %1058, %1063 : vector<2x8x128xf32>
    %1065 = vector.extract_strided_slice %1032 {offsets = [0, 0, 1, 0], sizes = [2, 5, 8, 128], strides = [1, 1, 1, 1]} : vector<2x5x12x128xf32> to vector<2x5x8x128xf32>
    %1066 = vector.extract_strided_slice %1065 {offsets = [0, 0, 0, 0], sizes = [2, 1, 8, 128], strides = [1, 1, 1, 1]} : vector<2x5x8x128xf32> to vector<2x1x8x128xf32>
    %1067 = vector.shape_cast %1066 : vector<2x1x8x128xf32> to vector<2x8x128xf32>
    %1068 = vector.shape_cast %11 : vector<128xf32> to vector<1x1x128xf32>
    %1069 = vector.broadcast %1068 : vector<1x1x128xf32> to vector<2x8x128xf32>
    %1070 = arith.mulf %1067, %1069 : vector<2x8x128xf32>
    %1071 = arith.addf %1064, %1070 : vector<2x8x128xf32>
    %1072 = vector.extract_strided_slice %1065 {offsets = [0, 1, 0, 0], sizes = [2, 1, 8, 128], strides = [1, 1, 1, 1]} : vector<2x5x8x128xf32> to vector<2x1x8x128xf32>
    %1073 = vector.shape_cast %1072 : vector<2x1x8x128xf32> to vector<2x8x128xf32>
    %1074 = vector.shape_cast %21 : vector<128xf32> to vector<1x1x128xf32>
    %1075 = vector.broadcast %1074 : vector<1x1x128xf32> to vector<2x8x128xf32>
    %1076 = arith.mulf %1073, %1075 : vector<2x8x128xf32>
    %1077 = arith.addf %1071, %1076 : vector<2x8x128xf32>
    %1078 = vector.extract_strided_slice %1065 {offsets = [0, 2, 0, 0], sizes = [2, 1, 8, 128], strides = [1, 1, 1, 1]} : vector<2x5x8x128xf32> to vector<2x1x8x128xf32>
    %1079 = vector.shape_cast %1078 : vector<2x1x8x128xf32> to vector<2x8x128xf32>
    %1080 = vector.shape_cast %31 : vector<128xf32> to vector<1x1x128xf32>
    %1081 = vector.broadcast %1080 : vector<1x1x128xf32> to vector<2x8x128xf32>
    %1082 = arith.mulf %1079, %1081 : vector<2x8x128xf32>
    %1083 = arith.addf %1077, %1082 : vector<2x8x128xf32>
    %1084 = vector.extract_strided_slice %1065 {offsets = [0, 3, 0, 0], sizes = [2, 1, 8, 128], strides = [1, 1, 1, 1]} : vector<2x5x8x128xf32> to vector<2x1x8x128xf32>
    %1085 = vector.shape_cast %1084 : vector<2x1x8x128xf32> to vector<2x8x128xf32>
    %1086 = vector.shape_cast %41 : vector<128xf32> to vector<1x1x128xf32>
    %1087 = vector.broadcast %1086 : vector<1x1x128xf32> to vector<2x8x128xf32>
    %1088 = arith.mulf %1085, %1087 : vector<2x8x128xf32>
    %1089 = arith.addf %1083, %1088 : vector<2x8x128xf32>
    %1090 = vector.extract_strided_slice %1065 {offsets = [0, 4, 0, 0], sizes = [2, 1, 8, 128], strides = [1, 1, 1, 1]} : vector<2x5x8x128xf32> to vector<2x1x8x128xf32>
    %1091 = vector.shape_cast %1090 : vector<2x1x8x128xf32> to vector<2x8x128xf32>
    %1092 = vector.shape_cast %51 : vector<128xf32> to vector<1x1x128xf32>
    %1093 = vector.broadcast %1092 : vector<1x1x128xf32> to vector<2x8x128xf32>
    %1094 = arith.mulf %1091, %1093 : vector<2x8x128xf32>
    %1095 = arith.addf %1089, %1094 : vector<2x8x128xf32>
    %1096 = vector.extract_strided_slice %1032 {offsets = [0, 0, 2, 0], sizes = [2, 5, 8, 128], strides = [1, 1, 1, 1]} : vector<2x5x12x128xf32> to vector<2x5x8x128xf32>
    %1097 = vector.extract_strided_slice %1096 {offsets = [0, 0, 0, 0], sizes = [2, 1, 8, 128], strides = [1, 1, 1, 1]} : vector<2x5x8x128xf32> to vector<2x1x8x128xf32>
    %1098 = vector.shape_cast %1097 : vector<2x1x8x128xf32> to vector<2x8x128xf32>
    %1099 = vector.shape_cast %13 : vector<128xf32> to vector<1x1x128xf32>
    %1100 = vector.broadcast %1099 : vector<1x1x128xf32> to vector<2x8x128xf32>
    %1101 = arith.mulf %1098, %1100 : vector<2x8x128xf32>
    %1102 = arith.addf %1095, %1101 : vector<2x8x128xf32>
    %1103 = vector.extract_strided_slice %1096 {offsets = [0, 1, 0, 0], sizes = [2, 1, 8, 128], strides = [1, 1, 1, 1]} : vector<2x5x8x128xf32> to vector<2x1x8x128xf32>
    %1104 = vector.shape_cast %1103 : vector<2x1x8x128xf32> to vector<2x8x128xf32>
    %1105 = vector.shape_cast %23 : vector<128xf32> to vector<1x1x128xf32>
    %1106 = vector.broadcast %1105 : vector<1x1x128xf32> to vector<2x8x128xf32>
    %1107 = arith.mulf %1104, %1106 : vector<2x8x128xf32>
    %1108 = arith.addf %1102, %1107 : vector<2x8x128xf32>
    %1109 = vector.extract_strided_slice %1096 {offsets = [0, 2, 0, 0], sizes = [2, 1, 8, 128], strides = [1, 1, 1, 1]} : vector<2x5x8x128xf32> to vector<2x1x8x128xf32>
    %1110 = vector.shape_cast %1109 : vector<2x1x8x128xf32> to vector<2x8x128xf32>
    %1111 = vector.shape_cast %33 : vector<128xf32> to vector<1x1x128xf32>
    %1112 = vector.broadcast %1111 : vector<1x1x128xf32> to vector<2x8x128xf32>
    %1113 = arith.mulf %1110, %1112 : vector<2x8x128xf32>
    %1114 = arith.addf %1108, %1113 : vector<2x8x128xf32>
    %1115 = vector.extract_strided_slice %1096 {offsets = [0, 3, 0, 0], sizes = [2, 1, 8, 128], strides = [1, 1, 1, 1]} : vector<2x5x8x128xf32> to vector<2x1x8x128xf32>
    %1116 = vector.shape_cast %1115 : vector<2x1x8x128xf32> to vector<2x8x128xf32>
    %1117 = vector.shape_cast %43 : vector<128xf32> to vector<1x1x128xf32>
    %1118 = vector.broadcast %1117 : vector<1x1x128xf32> to vector<2x8x128xf32>
    %1119 = arith.mulf %1116, %1118 : vector<2x8x128xf32>
    %1120 = arith.addf %1114, %1119 : vector<2x8x128xf32>
    %1121 = vector.extract_strided_slice %1096 {offsets = [0, 4, 0, 0], sizes = [2, 1, 8, 128], strides = [1, 1, 1, 1]} : vector<2x5x8x128xf32> to vector<2x1x8x128xf32>
    %1122 = vector.shape_cast %1121 : vector<2x1x8x128xf32> to vector<2x8x128xf32>
    %1123 = vector.shape_cast %53 : vector<128xf32> to vector<1x1x128xf32>
    %1124 = vector.broadcast %1123 : vector<1x1x128xf32> to vector<2x8x128xf32>
    %1125 = arith.mulf %1122, %1124 : vector<2x8x128xf32>
    %1126 = arith.addf %1120, %1125 : vector<2x8x128xf32>
    %1127 = vector.extract_strided_slice %1032 {offsets = [0, 0, 3, 0], sizes = [2, 5, 8, 128], strides = [1, 1, 1, 1]} : vector<2x5x12x128xf32> to vector<2x5x8x128xf32>
    %1128 = vector.extract_strided_slice %1127 {offsets = [0, 0, 0, 0], sizes = [2, 1, 8, 128], strides = [1, 1, 1, 1]} : vector<2x5x8x128xf32> to vector<2x1x8x128xf32>
    %1129 = vector.shape_cast %1128 : vector<2x1x8x128xf32> to vector<2x8x128xf32>
    %1130 = vector.shape_cast %15 : vector<128xf32> to vector<1x1x128xf32>
    %1131 = vector.broadcast %1130 : vector<1x1x128xf32> to vector<2x8x128xf32>
    %1132 = arith.mulf %1129, %1131 : vector<2x8x128xf32>
    %1133 = arith.addf %1126, %1132 : vector<2x8x128xf32>
    %1134 = vector.extract_strided_slice %1127 {offsets = [0, 1, 0, 0], sizes = [2, 1, 8, 128], strides = [1, 1, 1, 1]} : vector<2x5x8x128xf32> to vector<2x1x8x128xf32>
    %1135 = vector.shape_cast %1134 : vector<2x1x8x128xf32> to vector<2x8x128xf32>
    %1136 = vector.shape_cast %25 : vector<128xf32> to vector<1x1x128xf32>
    %1137 = vector.broadcast %1136 : vector<1x1x128xf32> to vector<2x8x128xf32>
    %1138 = arith.mulf %1135, %1137 : vector<2x8x128xf32>
    %1139 = arith.addf %1133, %1138 : vector<2x8x128xf32>
    %1140 = vector.extract_strided_slice %1127 {offsets = [0, 2, 0, 0], sizes = [2, 1, 8, 128], strides = [1, 1, 1, 1]} : vector<2x5x8x128xf32> to vector<2x1x8x128xf32>
    %1141 = vector.shape_cast %1140 : vector<2x1x8x128xf32> to vector<2x8x128xf32>
    %1142 = vector.shape_cast %35 : vector<128xf32> to vector<1x1x128xf32>
    %1143 = vector.broadcast %1142 : vector<1x1x128xf32> to vector<2x8x128xf32>
    %1144 = arith.mulf %1141, %1143 : vector<2x8x128xf32>
    %1145 = arith.addf %1139, %1144 : vector<2x8x128xf32>
    %1146 = vector.extract_strided_slice %1127 {offsets = [0, 3, 0, 0], sizes = [2, 1, 8, 128], strides = [1, 1, 1, 1]} : vector<2x5x8x128xf32> to vector<2x1x8x128xf32>
    %1147 = vector.shape_cast %1146 : vector<2x1x8x128xf32> to vector<2x8x128xf32>
    %1148 = vector.shape_cast %45 : vector<128xf32> to vector<1x1x128xf32>
    %1149 = vector.broadcast %1148 : vector<1x1x128xf32> to vector<2x8x128xf32>
    %1150 = arith.mulf %1147, %1149 : vector<2x8x128xf32>
    %1151 = arith.addf %1145, %1150 : vector<2x8x128xf32>
    %1152 = vector.extract_strided_slice %1127 {offsets = [0, 4, 0, 0], sizes = [2, 1, 8, 128], strides = [1, 1, 1, 1]} : vector<2x5x8x128xf32> to vector<2x1x8x128xf32>
    %1153 = vector.shape_cast %1152 : vector<2x1x8x128xf32> to vector<2x8x128xf32>
    %1154 = vector.shape_cast %55 : vector<128xf32> to vector<1x1x128xf32>
    %1155 = vector.broadcast %1154 : vector<1x1x128xf32> to vector<2x8x128xf32>
    %1156 = arith.mulf %1153, %1155 : vector<2x8x128xf32>
    %1157 = arith.addf %1151, %1156 : vector<2x8x128xf32>
    %1158 = vector.extract_strided_slice %1032 {offsets = [0, 0, 4, 0], sizes = [2, 5, 8, 128], strides = [1, 1, 1, 1]} : vector<2x5x12x128xf32> to vector<2x5x8x128xf32>
    %1159 = vector.extract_strided_slice %1158 {offsets = [0, 0, 0, 0], sizes = [2, 1, 8, 128], strides = [1, 1, 1, 1]} : vector<2x5x8x128xf32> to vector<2x1x8x128xf32>
    %1160 = vector.shape_cast %1159 : vector<2x1x8x128xf32> to vector<2x8x128xf32>
    %1161 = vector.shape_cast %17 : vector<128xf32> to vector<1x1x128xf32>
    %1162 = vector.broadcast %1161 : vector<1x1x128xf32> to vector<2x8x128xf32>
    %1163 = arith.mulf %1160, %1162 : vector<2x8x128xf32>
    %1164 = arith.addf %1157, %1163 : vector<2x8x128xf32>
    %1165 = vector.extract_strided_slice %1158 {offsets = [0, 1, 0, 0], sizes = [2, 1, 8, 128], strides = [1, 1, 1, 1]} : vector<2x5x8x128xf32> to vector<2x1x8x128xf32>
    %1166 = vector.shape_cast %1165 : vector<2x1x8x128xf32> to vector<2x8x128xf32>
    %1167 = vector.shape_cast %27 : vector<128xf32> to vector<1x1x128xf32>
    %1168 = vector.broadcast %1167 : vector<1x1x128xf32> to vector<2x8x128xf32>
    %1169 = arith.mulf %1166, %1168 : vector<2x8x128xf32>
    %1170 = arith.addf %1164, %1169 : vector<2x8x128xf32>
    %1171 = vector.extract_strided_slice %1158 {offsets = [0, 2, 0, 0], sizes = [2, 1, 8, 128], strides = [1, 1, 1, 1]} : vector<2x5x8x128xf32> to vector<2x1x8x128xf32>
    %1172 = vector.shape_cast %1171 : vector<2x1x8x128xf32> to vector<2x8x128xf32>
    %1173 = vector.shape_cast %37 : vector<128xf32> to vector<1x1x128xf32>
    %1174 = vector.broadcast %1173 : vector<1x1x128xf32> to vector<2x8x128xf32>
    %1175 = arith.mulf %1172, %1174 : vector<2x8x128xf32>
    %1176 = arith.addf %1170, %1175 : vector<2x8x128xf32>
    %1177 = vector.extract_strided_slice %1158 {offsets = [0, 3, 0, 0], sizes = [2, 1, 8, 128], strides = [1, 1, 1, 1]} : vector<2x5x8x128xf32> to vector<2x1x8x128xf32>
    %1178 = vector.shape_cast %1177 : vector<2x1x8x128xf32> to vector<2x8x128xf32>
    %1179 = vector.shape_cast %47 : vector<128xf32> to vector<1x1x128xf32>
    %1180 = vector.broadcast %1179 : vector<1x1x128xf32> to vector<2x8x128xf32>
    %1181 = arith.mulf %1178, %1180 : vector<2x8x128xf32>
    %1182 = arith.addf %1176, %1181 : vector<2x8x128xf32>
    %1183 = vector.extract_strided_slice %1158 {offsets = [0, 4, 0, 0], sizes = [2, 1, 8, 128], strides = [1, 1, 1, 1]} : vector<2x5x8x128xf32> to vector<2x1x8x128xf32>
    %1184 = vector.shape_cast %1183 : vector<2x1x8x128xf32> to vector<2x8x128xf32>
    %1185 = vector.shape_cast %57 : vector<128xf32> to vector<1x1x128xf32>
    %1186 = vector.broadcast %1185 : vector<1x1x128xf32> to vector<2x8x128xf32>
    %1187 = arith.mulf %1184, %1186 : vector<2x8x128xf32>
    %1188 = arith.addf %1182, %1187 : vector<2x8x128xf32>
    %1189 = arith.addf %1027, %1188 : vector<2x8x128xf32>
    %1190 = arith.mulf %1188, %1188 : vector<2x8x128xf32>
    %1191 = arith.addf %1029, %1190 : vector<2x8x128xf32>
    %1192 = vector.shape_cast %1188 : vector<2x8x128xf32> to vector<2x1x8x128xf32>
    %c0_111 = arith.constant 0 : index
    %c6_112 = arith.constant 6 : index
    %c0_113 = arith.constant 0 : index
    %c0_114 = arith.constant 0 : index
    %1193 = vector.load %arg7[%c0_111, %c6_112, %c0_113, %c0_114] : memref<2x8x8x128xf32, #tpu.memory_space<vmem>>, vector<2x1x8x128xf32>
    tpu.vector_store %arg7[%c0_111, %c6_112, %c0_113, %c0_114], %1192 {strides = array<i32>} : memref<2x8x8x128xf32, #tpu.memory_space<vmem>>, vector<2x1x8x128xf32>,
    %c0_115 = arith.constant 0 : index
    %c7_116 = arith.constant 7 : index
    %c0_117 = arith.constant 0 : index
    %c0_118 = arith.constant 0 : index
    %1194 = vector.load %arg6[%c0_115, %c7_116, %c0_117, %c0_118] : memref<2x12x12x128xf32, #tpu.memory_space<vmem>>, vector<2x5x12x128xf32>
    %cst_119 = arith.constant 0.000000e+00 : f32
    %1195 = vector.broadcast %cst_119 : f32 to vector<2x8x128xf32>
    %1196 = vector.extract_strided_slice %1194 {offsets = [0, 0, 0, 0], sizes = [2, 5, 8, 128], strides = [1, 1, 1, 1]} : vector<2x5x12x128xf32> to vector<2x5x8x128xf32>
    %1197 = vector.extract_strided_slice %1196 {offsets = [0, 0, 0, 0], sizes = [2, 1, 8, 128], strides = [1, 1, 1, 1]} : vector<2x5x8x128xf32> to vector<2x1x8x128xf32>
    %1198 = vector.shape_cast %1197 : vector<2x1x8x128xf32> to vector<2x8x128xf32>
    %1199 = vector.shape_cast %9 : vector<128xf32> to vector<1x1x128xf32>
    %1200 = vector.broadcast %1199 : vector<1x1x128xf32> to vector<2x8x128xf32>
    %1201 = arith.mulf %1198, %1200 : vector<2x8x128xf32>
    %1202 = arith.addf %1195, %1201 : vector<2x8x128xf32>
    %1203 = vector.extract_strided_slice %1196 {offsets = [0, 1, 0, 0], sizes = [2, 1, 8, 128], strides = [1, 1, 1, 1]} : vector<2x5x8x128xf32> to vector<2x1x8x128xf32>
    %1204 = vector.shape_cast %1203 : vector<2x1x8x128xf32> to vector<2x8x128xf32>
    %1205 = vector.shape_cast %19 : vector<128xf32> to vector<1x1x128xf32>
    %1206 = vector.broadcast %1205 : vector<1x1x128xf32> to vector<2x8x128xf32>
    %1207 = arith.mulf %1204, %1206 : vector<2x8x128xf32>
    %1208 = arith.addf %1202, %1207 : vector<2x8x128xf32>
    %1209 = vector.extract_strided_slice %1196 {offsets = [0, 2, 0, 0], sizes = [2, 1, 8, 128], strides = [1, 1, 1, 1]} : vector<2x5x8x128xf32> to vector<2x1x8x128xf32>
    %1210 = vector.shape_cast %1209 : vector<2x1x8x128xf32> to vector<2x8x128xf32>
    %1211 = vector.shape_cast %29 : vector<128xf32> to vector<1x1x128xf32>
    %1212 = vector.broadcast %1211 : vector<1x1x128xf32> to vector<2x8x128xf32>
    %1213 = arith.mulf %1210, %1212 : vector<2x8x128xf32>
    %1214 = arith.addf %1208, %1213 : vector<2x8x128xf32>
    %1215 = vector.extract_strided_slice %1196 {offsets = [0, 3, 0, 0], sizes = [2, 1, 8, 128], strides = [1, 1, 1, 1]} : vector<2x5x8x128xf32> to vector<2x1x8x128xf32>
    %1216 = vector.shape_cast %1215 : vector<2x1x8x128xf32> to vector<2x8x128xf32>
    %1217 = vector.shape_cast %39 : vector<128xf32> to vector<1x1x128xf32>
    %1218 = vector.broadcast %1217 : vector<1x1x128xf32> to vector<2x8x128xf32>
    %1219 = arith.mulf %1216, %1218 : vector<2x8x128xf32>
    %1220 = arith.addf %1214, %1219 : vector<2x8x128xf32>
    %1221 = vector.extract_strided_slice %1196 {offsets = [0, 4, 0, 0], sizes = [2, 1, 8, 128], strides = [1, 1, 1, 1]} : vector<2x5x8x128xf32> to vector<2x1x8x128xf32>
    %1222 = vector.shape_cast %1221 : vector<2x1x8x128xf32> to vector<2x8x128xf32>
    %1223 = vector.shape_cast %49 : vector<128xf32> to vector<1x1x128xf32>
    %1224 = vector.broadcast %1223 : vector<1x1x128xf32> to vector<2x8x128xf32>
    %1225 = arith.mulf %1222, %1224 : vector<2x8x128xf32>
    %1226 = arith.addf %1220, %1225 : vector<2x8x128xf32>
    %1227 = vector.extract_strided_slice %1194 {offsets = [0, 0, 1, 0], sizes = [2, 5, 8, 128], strides = [1, 1, 1, 1]} : vector<2x5x12x128xf32> to vector<2x5x8x128xf32>
    %1228 = vector.extract_strided_slice %1227 {offsets = [0, 0, 0, 0], sizes = [2, 1, 8, 128], strides = [1, 1, 1, 1]} : vector<2x5x8x128xf32> to vector<2x1x8x128xf32>
    %1229 = vector.shape_cast %1228 : vector<2x1x8x128xf32> to vector<2x8x128xf32>
    %1230 = vector.shape_cast %11 : vector<128xf32> to vector<1x1x128xf32>
    %1231 = vector.broadcast %1230 : vector<1x1x128xf32> to vector<2x8x128xf32>
    %1232 = arith.mulf %1229, %1231 : vector<2x8x128xf32>
    %1233 = arith.addf %1226, %1232 : vector<2x8x128xf32>
    %1234 = vector.extract_strided_slice %1227 {offsets = [0, 1, 0, 0], sizes = [2, 1, 8, 128], strides = [1, 1, 1, 1]} : vector<2x5x8x128xf32> to vector<2x1x8x128xf32>
    %1235 = vector.shape_cast %1234 : vector<2x1x8x128xf32> to vector<2x8x128xf32>
    %1236 = vector.shape_cast %21 : vector<128xf32> to vector<1x1x128xf32>
    %1237 = vector.broadcast %1236 : vector<1x1x128xf32> to vector<2x8x128xf32>
    %1238 = arith.mulf %1235, %1237 : vector<2x8x128xf32>
    %1239 = arith.addf %1233, %1238 : vector<2x8x128xf32>
    %1240 = vector.extract_strided_slice %1227 {offsets = [0, 2, 0, 0], sizes = [2, 1, 8, 128], strides = [1, 1, 1, 1]} : vector<2x5x8x128xf32> to vector<2x1x8x128xf32>
    %1241 = vector.shape_cast %1240 : vector<2x1x8x128xf32> to vector<2x8x128xf32>
    %1242 = vector.shape_cast %31 : vector<128xf32> to vector<1x1x128xf32>
    %1243 = vector.broadcast %1242 : vector<1x1x128xf32> to vector<2x8x128xf32>
    %1244 = arith.mulf %1241, %1243 : vector<2x8x128xf32>
    %1245 = arith.addf %1239, %1244 : vector<2x8x128xf32>
    %1246 = vector.extract_strided_slice %1227 {offsets = [0, 3, 0, 0], sizes = [2, 1, 8, 128], strides = [1, 1, 1, 1]} : vector<2x5x8x128xf32> to vector<2x1x8x128xf32>
    %1247 = vector.shape_cast %1246 : vector<2x1x8x128xf32> to vector<2x8x128xf32>
    %1248 = vector.shape_cast %41 : vector<128xf32> to vector<1x1x128xf32>
    %1249 = vector.broadcast %1248 : vector<1x1x128xf32> to vector<2x8x128xf32>
    %1250 = arith.mulf %1247, %1249 : vector<2x8x128xf32>
    %1251 = arith.addf %1245, %1250 : vector<2x8x128xf32>
    %1252 = vector.extract_strided_slice %1227 {offsets = [0, 4, 0, 0], sizes = [2, 1, 8, 128], strides = [1, 1, 1, 1]} : vector<2x5x8x128xf32> to vector<2x1x8x128xf32>
    %1253 = vector.shape_cast %1252 : vector<2x1x8x128xf32> to vector<2x8x128xf32>
    %1254 = vector.shape_cast %51 : vector<128xf32> to vector<1x1x128xf32>
    %1255 = vector.broadcast %1254 : vector<1x1x128xf32> to vector<2x8x128xf32>
    %1256 = arith.mulf %1253, %1255 : vector<2x8x128xf32>
    %1257 = arith.addf %1251, %1256 : vector<2x8x128xf32>
    %1258 = vector.extract_strided_slice %1194 {offsets = [0, 0, 2, 0], sizes = [2, 5, 8, 128], strides = [1, 1, 1, 1]} : vector<2x5x12x128xf32> to vector<2x5x8x128xf32>
    %1259 = vector.extract_strided_slice %1258 {offsets = [0, 0, 0, 0], sizes = [2, 1, 8, 128], strides = [1, 1, 1, 1]} : vector<2x5x8x128xf32> to vector<2x1x8x128xf32>
    %1260 = vector.shape_cast %1259 : vector<2x1x8x128xf32> to vector<2x8x128xf32>
    %1261 = vector.shape_cast %13 : vector<128xf32> to vector<1x1x128xf32>
    %1262 = vector.broadcast %1261 : vector<1x1x128xf32> to vector<2x8x128xf32>
    %1263 = arith.mulf %1260, %1262 : vector<2x8x128xf32>
    %1264 = arith.addf %1257, %1263 : vector<2x8x128xf32>
    %1265 = vector.extract_strided_slice %1258 {offsets = [0, 1, 0, 0], sizes = [2, 1, 8, 128], strides = [1, 1, 1, 1]} : vector<2x5x8x128xf32> to vector<2x1x8x128xf32>
    %1266 = vector.shape_cast %1265 : vector<2x1x8x128xf32> to vector<2x8x128xf32>
    %1267 = vector.shape_cast %23 : vector<128xf32> to vector<1x1x128xf32>
    %1268 = vector.broadcast %1267 : vector<1x1x128xf32> to vector<2x8x128xf32>
    %1269 = arith.mulf %1266, %1268 : vector<2x8x128xf32>
    %1270 = arith.addf %1264, %1269 : vector<2x8x128xf32>
    %1271 = vector.extract_strided_slice %1258 {offsets = [0, 2, 0, 0], sizes = [2, 1, 8, 128], strides = [1, 1, 1, 1]} : vector<2x5x8x128xf32> to vector<2x1x8x128xf32>
    %1272 = vector.shape_cast %1271 : vector<2x1x8x128xf32> to vector<2x8x128xf32>
    %1273 = vector.shape_cast %33 : vector<128xf32> to vector<1x1x128xf32>
    %1274 = vector.broadcast %1273 : vector<1x1x128xf32> to vector<2x8x128xf32>
    %1275 = arith.mulf %1272, %1274 : vector<2x8x128xf32>
    %1276 = arith.addf %1270, %1275 : vector<2x8x128xf32>
    %1277 = vector.extract_strided_slice %1258 {offsets = [0, 3, 0, 0], sizes = [2, 1, 8, 128], strides = [1, 1, 1, 1]} : vector<2x5x8x128xf32> to vector<2x1x8x128xf32>
    %1278 = vector.shape_cast %1277 : vector<2x1x8x128xf32> to vector<2x8x128xf32>
    %1279 = vector.shape_cast %43 : vector<128xf32> to vector<1x1x128xf32>
    %1280 = vector.broadcast %1279 : vector<1x1x128xf32> to vector<2x8x128xf32>
    %1281 = arith.mulf %1278, %1280 : vector<2x8x128xf32>
    %1282 = arith.addf %1276, %1281 : vector<2x8x128xf32>
    %1283 = vector.extract_strided_slice %1258 {offsets = [0, 4, 0, 0], sizes = [2, 1, 8, 128], strides = [1, 1, 1, 1]} : vector<2x5x8x128xf32> to vector<2x1x8x128xf32>
    %1284 = vector.shape_cast %1283 : vector<2x1x8x128xf32> to vector<2x8x128xf32>
    %1285 = vector.shape_cast %53 : vector<128xf32> to vector<1x1x128xf32>
    %1286 = vector.broadcast %1285 : vector<1x1x128xf32> to vector<2x8x128xf32>
    %1287 = arith.mulf %1284, %1286 : vector<2x8x128xf32>
    %1288 = arith.addf %1282, %1287 : vector<2x8x128xf32>
    %1289 = vector.extract_strided_slice %1194 {offsets = [0, 0, 3, 0], sizes = [2, 5, 8, 128], strides = [1, 1, 1, 1]} : vector<2x5x12x128xf32> to vector<2x5x8x128xf32>
    %1290 = vector.extract_strided_slice %1289 {offsets = [0, 0, 0, 0], sizes = [2, 1, 8, 128], strides = [1, 1, 1, 1]} : vector<2x5x8x128xf32> to vector<2x1x8x128xf32>
    %1291 = vector.shape_cast %1290 : vector<2x1x8x128xf32> to vector<2x8x128xf32>
    %1292 = vector.shape_cast %15 : vector<128xf32> to vector<1x1x128xf32>
    %1293 = vector.broadcast %1292 : vector<1x1x128xf32> to vector<2x8x128xf32>
    %1294 = arith.mulf %1291, %1293 : vector<2x8x128xf32>
    %1295 = arith.addf %1288, %1294 : vector<2x8x128xf32>
    %1296 = vector.extract_strided_slice %1289 {offsets = [0, 1, 0, 0], sizes = [2, 1, 8, 128], strides = [1, 1, 1, 1]} : vector<2x5x8x128xf32> to vector<2x1x8x128xf32>
    %1297 = vector.shape_cast %1296 : vector<2x1x8x128xf32> to vector<2x8x128xf32>
    %1298 = vector.shape_cast %25 : vector<128xf32> to vector<1x1x128xf32>
    %1299 = vector.broadcast %1298 : vector<1x1x128xf32> to vector<2x8x128xf32>
    %1300 = arith.mulf %1297, %1299 : vector<2x8x128xf32>
    %1301 = arith.addf %1295, %1300 : vector<2x8x128xf32>
    %1302 = vector.extract_strided_slice %1289 {offsets = [0, 2, 0, 0], sizes = [2, 1, 8, 128], strides = [1, 1, 1, 1]} : vector<2x5x8x128xf32> to vector<2x1x8x128xf32>
    %1303 = vector.shape_cast %1302 : vector<2x1x8x128xf32> to vector<2x8x128xf32>
    %1304 = vector.shape_cast %35 : vector<128xf32> to vector<1x1x128xf32>
    %1305 = vector.broadcast %1304 : vector<1x1x128xf32> to vector<2x8x128xf32>
    %1306 = arith.mulf %1303, %1305 : vector<2x8x128xf32>
    %1307 = arith.addf %1301, %1306 : vector<2x8x128xf32>
    %1308 = vector.extract_strided_slice %1289 {offsets = [0, 3, 0, 0], sizes = [2, 1, 8, 128], strides = [1, 1, 1, 1]} : vector<2x5x8x128xf32> to vector<2x1x8x128xf32>
    %1309 = vector.shape_cast %1308 : vector<2x1x8x128xf32> to vector<2x8x128xf32>
    %1310 = vector.shape_cast %45 : vector<128xf32> to vector<1x1x128xf32>
    %1311 = vector.broadcast %1310 : vector<1x1x128xf32> to vector<2x8x128xf32>
    %1312 = arith.mulf %1309, %1311 : vector<2x8x128xf32>
    %1313 = arith.addf %1307, %1312 : vector<2x8x128xf32>
    %1314 = vector.extract_strided_slice %1289 {offsets = [0, 4, 0, 0], sizes = [2, 1, 8, 128], strides = [1, 1, 1, 1]} : vector<2x5x8x128xf32> to vector<2x1x8x128xf32>
    %1315 = vector.shape_cast %1314 : vector<2x1x8x128xf32> to vector<2x8x128xf32>
    %1316 = vector.shape_cast %55 : vector<128xf32> to vector<1x1x128xf32>
    %1317 = vector.broadcast %1316 : vector<1x1x128xf32> to vector<2x8x128xf32>
    %1318 = arith.mulf %1315, %1317 : vector<2x8x128xf32>
    %1319 = arith.addf %1313, %1318 : vector<2x8x128xf32>
    %1320 = vector.extract_strided_slice %1194 {offsets = [0, 0, 4, 0], sizes = [2, 5, 8, 128], strides = [1, 1, 1, 1]} : vector<2x5x12x128xf32> to vector<2x5x8x128xf32>
    %1321 = vector.extract_strided_slice %1320 {offsets = [0, 0, 0, 0], sizes = [2, 1, 8, 128], strides = [1, 1, 1, 1]} : vector<2x5x8x128xf32> to vector<2x1x8x128xf32>
    %1322 = vector.shape_cast %1321 : vector<2x1x8x128xf32> to vector<2x8x128xf32>
    %1323 = vector.shape_cast %17 : vector<128xf32> to vector<1x1x128xf32>
    %1324 = vector.broadcast %1323 : vector<1x1x128xf32> to vector<2x8x128xf32>
    %1325 = arith.mulf %1322, %1324 : vector<2x8x128xf32>
    %1326 = arith.addf %1319, %1325 : vector<2x8x128xf32>
    %1327 = vector.extract_strided_slice %1320 {offsets = [0, 1, 0, 0], sizes = [2, 1, 8, 128], strides = [1, 1, 1, 1]} : vector<2x5x8x128xf32> to vector<2x1x8x128xf32>
    %1328 = vector.shape_cast %1327 : vector<2x1x8x128xf32> to vector<2x8x128xf32>
    %1329 = vector.shape_cast %27 : vector<128xf32> to vector<1x1x128xf32>
    %1330 = vector.broadcast %1329 : vector<1x1x128xf32> to vector<2x8x128xf32>
    %1331 = arith.mulf %1328, %1330 : vector<2x8x128xf32>
    %1332 = arith.addf %1326, %1331 : vector<2x8x128xf32>
    %1333 = vector.extract_strided_slice %1320 {offsets = [0, 2, 0, 0], sizes = [2, 1, 8, 128], strides = [1, 1, 1, 1]} : vector<2x5x8x128xf32> to vector<2x1x8x128xf32>
    %1334 = vector.shape_cast %1333 : vector<2x1x8x128xf32> to vector<2x8x128xf32>
    %1335 = vector.shape_cast %37 : vector<128xf32> to vector<1x1x128xf32>
    %1336 = vector.broadcast %1335 : vector<1x1x128xf32> to vector<2x8x128xf32>
    %1337 = arith.mulf %1334, %1336 : vector<2x8x128xf32>
    %1338 = arith.addf %1332, %1337 : vector<2x8x128xf32>
    %1339 = vector.extract_strided_slice %1320 {offsets = [0, 3, 0, 0], sizes = [2, 1, 8, 128], strides = [1, 1, 1, 1]} : vector<2x5x8x128xf32> to vector<2x1x8x128xf32>
    %1340 = vector.shape_cast %1339 : vector<2x1x8x128xf32> to vector<2x8x128xf32>
    %1341 = vector.shape_cast %47 : vector<128xf32> to vector<1x1x128xf32>
    %1342 = vector.broadcast %1341 : vector<1x1x128xf32> to vector<2x8x128xf32>
    %1343 = arith.mulf %1340, %1342 : vector<2x8x128xf32>
    %1344 = arith.addf %1338, %1343 : vector<2x8x128xf32>
    %1345 = vector.extract_strided_slice %1320 {offsets = [0, 4, 0, 0], sizes = [2, 1, 8, 128], strides = [1, 1, 1, 1]} : vector<2x5x8x128xf32> to vector<2x1x8x128xf32>
    %1346 = vector.shape_cast %1345 : vector<2x1x8x128xf32> to vector<2x8x128xf32>
    %1347 = vector.shape_cast %57 : vector<128xf32> to vector<1x1x128xf32>
    %1348 = vector.broadcast %1347 : vector<1x1x128xf32> to vector<2x8x128xf32>
    %1349 = arith.mulf %1346, %1348 : vector<2x8x128xf32>
    %1350 = arith.addf %1344, %1349 : vector<2x8x128xf32>
    %1351 = arith.addf %1189, %1350 : vector<2x8x128xf32>
    %1352 = arith.mulf %1350, %1350 : vector<2x8x128xf32>
    %1353 = arith.addf %1191, %1352 : vector<2x8x128xf32>
    %1354 = vector.shape_cast %1350 : vector<2x8x128xf32> to vector<2x1x8x128xf32>
    %c0_120 = arith.constant 0 : index
    %c7_121 = arith.constant 7 : index
    %c0_122 = arith.constant 0 : index
    %c0_123 = arith.constant 0 : index
    %1355 = vector.load %arg7[%c0_120, %c7_121, %c0_122, %c0_123] : memref<2x8x8x128xf32, #tpu.memory_space<vmem>>, vector<2x1x8x128xf32>
    tpu.vector_store %arg7[%c0_120, %c7_121, %c0_122, %c0_123], %1354 {strides = array<i32>} : memref<2x8x8x128xf32, #tpu.memory_space<vmem>>, vector<2x1x8x128xf32>,
    %cst_124 = arith.constant dense<0.000000e+00> : vector<128xf32>
    %1356 = vector.multi_reduction <add>, %1351, %cst_124 [0, 1] : vector<2x8x128xf32> to vector<128xf32>
    %cst_125 = arith.constant dense<0.000000e+00> : vector<128xf32>
    %1357 = vector.multi_reduction <add>, %1353, %cst_125 [0, 1] : vector<2x8x128xf32> to vector<128xf32>
    %cst_126 = arith.constant 7.812500e-03 : f32
    %1358 = vector.broadcast %cst_126 : f32 to vector<128xf32>
    %1359 = arith.mulf %1356, %1358 : vector<128xf32>
    %cst_127 = arith.constant 7.812500e-03 : f32
    %1360 = vector.broadcast %cst_127 : f32 to vector<128xf32>
    %1361 = arith.mulf %1357, %1360 : vector<128xf32>
    %1362 = arith.mulf %1359, %1359 : vector<128xf32>
    %1363 = arith.subf %1361, %1362 : vector<128xf32>
    %cst_128 = arith.constant 0.000000e+00 : f32
    %1364 = vector.broadcast %cst_128 : f32 to vector<128xf32>
    %1365 = arith.maximumf %1363, %1364 : vector<128xf32>
    %cst_129 = arith.constant 1.000000e-03 : f32
    %1366 = vector.broadcast %cst_129 : f32 to vector<128xf32>
    %1367 = arith.addf %1365, %1366 : vector<128xf32>
    %1368 = math.rsqrt %1367 : vector<128xf32>
    %c0_130 = arith.constant 0 : index
    %c0_131 = arith.constant 0 : index
    %1369 = vector.load %arg3[%c0_130, %c0_131] : memref<1x128xf32, #tpu.memory_space<vmem>>, vector<1x128xf32>
    %1370 = vector.shape_cast %1369 : vector<1x128xf32> to vector<128xf32>
    %c0_132 = arith.constant 0 : index
    %c0_133 = arith.constant 0 : index
    %1371 = vector.load %arg4[%c0_132, %c0_133] : memref<1x128xf32, #tpu.memory_space<vmem>>, vector<1x128xf32>
    %1372 = vector.shape_cast %1371 : vector<1x128xf32> to vector<128xf32>
    %1373 = arith.mulf %1370, %1368 : vector<128xf32>
    %1374 = vector.shape_cast %1373 : vector<128xf32> to vector<1x1x1x128xf32>
    %1375 = arith.mulf %1359, %1370 : vector<128xf32>
    %1376 = arith.mulf %1375, %1368 : vector<128xf32>
    %1377 = arith.subf %1372, %1376 : vector<128xf32>
    %1378 = vector.shape_cast %1377 : vector<128xf32> to vector<1x1x1x128xf32>
    %c0_134 = arith.constant 0 : index
    %c0_135 = arith.constant 0 : index
    %c0_136 = arith.constant 0 : index
    %c0_137 = arith.constant 0 : index
    %1379 = vector.load %arg7[%c0_134, %c0_135, %c0_136, %c0_137] : memref<2x8x8x128xf32, #tpu.memory_space<vmem>>, vector<2x8x8x128xf32>
    %1380 = vector.broadcast %1374 : vector<1x1x1x128xf32> to vector<2x8x8x128xf32>
    %1381 = arith.mulf %1379, %1380 : vector<2x8x8x128xf32>
    %1382 = vector.broadcast %1378 : vector<1x1x1x128xf32> to vector<2x8x8x128xf32>
    %1383 = arith.addf %1381, %1382 : vector<2x8x8x128xf32>
    %c0_138 = arith.constant 0 : index
    %c0_139 = arith.constant 0 : index
    %c0_140 = arith.constant 0 : index
    %c0_141 = arith.constant 0 : index
    %1384 = vector.load %arg5[%c0_138, %c0_139, %c0_140, %c0_141] : memref<2x8x8x128xf32, #tpu.memory_space<vmem>>, vector<2x8x8x128xf32>
    tpu.vector_store %arg5[%c0_138, %c0_139, %c0_140, %c0_141], %1383 {strides = array<i32>} : memref<2x8x8x128xf32, #tpu.memory_space<vmem>>, vector<2x8x8x128xf32>,
    return
  }
  func.func @transform_0(%arg0: i32) -> (i32, i32, i32, i32) {
    %c0_i32 = arith.constant 0 : i32
    %c0_i32_0 = arith.constant 0 : i32
    %c0_i32_1 = arith.constant 0 : i32
    %c0_i32_2 = arith.constant 0 : i32
    return %c0_i32, %c0_i32_0, %c0_i32_1, %arg0 : i32, i32, i32, i32
  }
  func.func @transform_1(%arg0: i32) -> (i32, i32) {
    %c0_i32 = arith.constant 0 : i32
    %c0_i32_0 = arith.constant 0 : i32
    return %c0_i32, %arg0 : i32, i32
  }
  func.func @transform_2(%arg0: i32) -> (i32, i32) {
    %c0_i32 = arith.constant 0 : i32
    %c0_i32_0 = arith.constant 0 : i32
    return %c0_i32, %arg0 : i32, i32
  }
  func.func @transform_3(%arg0: i32) -> (i32, i32) {
    %c0_i32 = arith.constant 0 : i32
    %c0_i32_0 = arith.constant 0 : i32
    return %c0_i32, %arg0 : i32, i32
  }
  func.func @transform_4(%arg0: i32) -> (i32, i32, i32, i32) {
    %c0_i32 = arith.constant 0 : i32
    %c0_i32_0 = arith.constant 0 : i32
    %c0_i32_1 = arith.constant 0 : i32
    %c0_i32_2 = arith.constant 0 : i32
    return %c0_i32, %c0_i32_0, %c0_i32_1, %arg0 : i32, i32, i32, i32
  }
}

</mosaic_0001>

<bundles_post_ra>
// kernel: tpu_custom_call.1
= control target key start
LH: loop header
LB: loop body
LE: loop exit
PB: predicated region body
PF: predicated region fallthrough
CT: control target
= control target key end

     0   :  { %9 = vsyncpa [#allocation5], 0  ;;  %s9274_s0 = inlined_call_operand.hbm [shape: f32[2,8,8,256], index: 0, kind: input, shape index: {}]   ;;  %s9275_s1 = inlined_call_operand.hbm [shape: f32[25,256], index: 1, kind: input, shape index: {}]   ;;  %s9276_s2 = inlined_call_operand.vmem [shape: f32[1,256], index: 2, kind: input, shape index: {}]   ;;  %s9277_s3 = inlined_call_operand.vmem [shape: f32[1,256], index: 3, kind: input, shape index: {}]   ;;  %s9278_s4 = inlined_call_operand.hbm [shape: f32[2,8,8,256], index: 4, kind: output, shape index: {}]  }
   0x1   :  { %11 = vsyncpa [#allocation5 + $0x1], 0 }
   0x2   :  { %12 = vsyncpa [#allocation8], 0 }
   0x3   :  { %14 = vsyncpa [#allocation8 + $0x1], 0 }
   0x4   :  { %15 = vsyncpa [#allocation6], 0 }
   0x5   :  { %17 = vsyncpa [#allocation6 + $0x1], 0  ;;  %s4365_s15 = smov 0   ;;  %s4367_s16 = smov 0  }
   0x6   :  { %s4369_s17 = smov 0   ;;  %s4371_s18 = smov 0  }
   0x7 LB: > { %s4386_s19 = sadd.s32 4294967295, %s4328_s18   ;;  %s4000_s20 = sadd.s32 4294967294, %s4328_s18   ;;  %s4328_s18 = sphi %s4371_s18, %s11330_s18   ;;  %s4324_s17 = sphi %s4369_s17, %s11329_s17   ;;  %s4320_s16 = sphi %s4367_s16, %s11328_s16   ;;  %s4316_s15 = sphi %s4365_s15, %s11327_s15  }
   0x8   : > { %s4390_s21 = sadd.s32 1, %s4328_s18   ;;  %s30_s22 = sadd.s32 1, %s4324_s17 }
   0x9   : > { %s27_s23 = ssub.s32 %s4328_s18, %s4390_s21  ;;  %p37_p0 = scmp.ne.s32.totalorder %s4324_s17, %s4320_s16 }
   0xa   : > { %p28_p1 = scmp.eq.s32.totalorder %s27_s23, 0  ;;  %p38_p2 = scmp.eq.s32.totalorder %s4328_s18, 0 }
   0xb   : > { %p43_p3 = scmp.ne.s32.totalorder %s4320_s16, %s4316_s15  ;;  %p44_p4 = scmp.eq.s32.totalorder %s4386_s19, 0 }
   0xc   : > { %s4402_s24 = scalar_select %p28_p1, %s4324_s17, %s30_s22  }
   0xd   : > { %p4404_p5 = por %p38_p2, %p37_p0  ;;  %p4408_p6 = por %p44_p4, %p43_p3 }
   0xe   : > { %p145_p7 = scmp.eq.s32.totalorder %s4386_s19, 1  ;;  %p151_p8 = scmp.eq.s32.totalorder %s4000_s20, 1 }
   0xf   : > { %s9715_s26 = scalar_select %p4408_p6, 1, 0 }
  0x10   : > { %p4057_p10 = scmp.lt.s32.totalorder %s4328_s18, 2  ;;  %p4415_p11 = por %p145_p7, %p37_p0 }
  0x11   : > { %p4419_p12 = por %p151_p8, %p43_p3  ;;  %s4424_s29 = sand.u32 1, %s4324_s17  }
  0x12   : > { %s9716_s27 = scalar_select %p4415_p11, 1, 0 }
  0x13   : > { %s9717_s28 = scalar_select %p4419_p12, 1, 0 }
  0x14   : > { %s4004_s30 = sshll.u32 %s4328_s18, 7  ;;  %s4003_s5 = sshll.u32 %s4424_s29, 7 }
  0x15   : > { %s4433_s8 = scalar_lea.hbm %s9274_s0, %s4004_s30  ;;  %s175_s9 = scalar_lea.vmem [#allocation4], %s4003_s5 }
  0x16   : > { %s181_s10 = sshll.u32 %s175_s9, 4  ;;  %p4437_p13 = pnand %p4057_p10, %p4404_p5  ;;  %s4441_s10 = int_to_ptr.vmem [resolvable:$true] %s181_s10 }
  0x17   : > { %s172_s12 = scalar_lea.sflag [#allocation5], %s4424_s29  ;;  %s4198_s13 = scalar_lea.hbm %s4433_s8, 2048 }
  0x18   : > { %p4199_p1 = scmp.ne.s32.totalorder %s4433_s8, %s4198_s13  ;;  %p4200_p2 = pneg %p4437_p13 }
  0x19   : > { %s4203_s22 = scalar_lea.hbm %s9274_s0, 4096  ;;  %p4204_p5 = scmp.lt.u32.totalorder %s4433_s8, %s9274_s0 }
  0x1a   : > { %p4201_p3 = pnand %p4200_p2, %p4199_p1  ;;  %p4205_p7 = scmp.lt.u32.totalorder %s4203_s22, %s4198_s13 }
  0x1b   : > { %p4207_p10 = scmp.lt.u32.totalorder %s4198_s13, %s4433_s8 }
  0x1c   : > { %p4202_p4 = pneg %p4201_p3  ;;  %p4206_p8 = por %p4205_p7, %p4204_p5 }
  0x1e   : > { %p4208_p9 = por %p4207_p10, %p4206_p8 }
  0x20   : > { %p4209_p0 = pnand %p4208_p9, %p4202_p4 }
  0x22   : > { %4212 = shalt.err (!%p4209_p0)
}
  0x23   : > { %s4213_s5 = scalar_lea.vmem %s4441_s10, 2048  ;;  %s4330_s6 = smov [#allocation4]  }
  0x24   : > { %p4214_p1 = scmp.ne.s32.totalorder %s4441_s10, %s4213_s5  ;;  %s4218_s7 = sshll.u32 %s4330_s6, 4  ;;  %s4219_s7 = int_to_ptr.vmem [resolvable:$false] %s4218_s7 }
  0x25   : > { %s4220_s9 = scalar_lea.vmem %s4219_s7, 4096  ;;  %p4221_p11 = scmp.lt.s32.totalorder %s4441_s10, %s4219_s7 }
  0x26   : > { %p4216_p3 = pnand %p4214_p1, %p4200_p2  ;;  %p4222_p5 = scmp.lt.s32.totalorder %s4220_s9, %s4213_s5 }
  0x28   : > { %p4217_p12 = pneg %p4216_p3  ;;  %p4223_p7 = por %p4222_p5, %p4221_p11 }
  0x2a   : > { %p4224_p8 = pnand %p4223_p7, %p4217_p12 }
  0x2c   : > { %4227 = shalt.err (!%p4224_p8)
}
  0x2d   : > { %s9280_s13 = smov 256   ;;  %s4332_s14 = smov 128  }
  0x2e   : > { %s4333_s20 = smov 8   ;;  %p221_p9 = scmp.lt.s32.totalorder %s4328_s18, 3 }
  0x2f   : > { %4049 = dma.hbm_to_vmem [thread:$0]  (!%p4437_p13), %s4433_s8, 2048, %s4441_s10, %s172_s12, %s9280_s13, %s4332_s14, %s4333_s20  }
  0x30   : > { %s4005_s22 = sshll.u32 %s4424_s29, 5  ;;  %s4482_s5 = scalar_lea.hbm %s9275_s1, %s4004_s30 }
  0x31   : > { %p9719_p11 = scmp.ge.s32.totalorder %s4328_s18, 1  ;;  %s195_s7 = scalar_lea.vmem [#allocation7], %s4005_s22 }
  0x32   : > { %s201_s9 = sshll.u32 %s195_s7, 4  ;;  %s192_s8 = scalar_lea.sflag [#allocation8], %s4424_s29  ;;  %s4490_s9 = int_to_ptr.vmem [resolvable:$true] %s201_s9 }
  0x33   : > { %p4486_p12 = pnand %p9719_p11, %p221_p9  ;;  %s4228_s10 = scalar_lea.hbm %s4482_s5, 512 }
  0x34   : > { %p4229_p0 = scmp.ne.s32.totalorder %s4482_s5, %s4228_s10  ;;  %s4233_s23 = scalar_lea.hbm %s9275_s1, 1024 }
  0x35   : > { %p4234_p1 = scmp.lt.u32.totalorder %s4482_s5, %s9275_s1  ;;  %p4235_p3 = scmp.lt.u32.totalorder %s4233_s23, %s4228_s10 }
  0x36   : > { %p4231_p4 = pnand %p4229_p0, %p4200_p2  ;;  %p4237_p7 = scmp.lt.u32.totalorder %s4228_s10, %s4482_s5 }
  0x37   : > { %p4236_p5 = por %p4235_p3, %p4234_p1 }
  0x38   : > { %p4232_p10 = pneg %p4231_p4 }
  0x39   : > { %p4238_p8 = por %p4237_p7, %p4236_p5 }
  0x3b   : > { %p4239_p9 = pnand %p4238_p8, %p4232_p10 }
  0x3d   : > { %4242 = shalt.err (!%p4239_p9)
}
  0x3e   : > { %s4243_s22 = scalar_lea.vmem %s4490_s9, 512  ;;  %s4334_s7 = smov [#allocation7]  }
  0x3f   : > { %p4244_p11 = scmp.ne.s32.totalorder %s4490_s9, %s4243_s22  ;;  %s4248_s30 = sshll.u32 %s4334_s7, 4  ;;  %s4249_s30 = int_to_ptr.vmem [resolvable:$false] %s4248_s30 }
  0x40   : > { %s4250_s13 = scalar_lea.vmem %s4249_s30, 1024  ;;  %p4251_p6 = scmp.lt.s32.totalorder %s4490_s9, %s4249_s30 }
  0x41   : > { %p4246_p0 = pnand %p4244_p11, %p4200_p2  ;;  %p4252_p1 = scmp.lt.s32.totalorder %s4250_s13, %s4243_s22 }
  0x43   : > { %p4247_p4 = pneg %p4246_p0  ;;  %p4253_p3 = por %p4252_p1, %p4251_p6 }
  0x45   : > { %p4254_p5 = pnand %p4253_p3, %p4247_p4 }
  0x47   : > { %4257 = shalt.err (!%p4254_p5)
}
  0x48   : > { %s9721_s10 = smov 256   ;;  %225 = sbr.rel (%p4486_p12) target bundleno = 748 (0x2ec), region = 36 }
  0x49   : > { %4052 = dma.hbm_to_vmem [thread:$0]  (!%p4437_p13), %s4482_s5, 512, %s4490_s9, %s192_s8, %s9721_s10, %s4332_s14, %s4333_s20  }
  0x4f   : > { %s4524_s12 = sand.u32 1, %s4320_s16   ;;  %p9722_p6 = scmp.ne.s32.totalorder %s9715_s26, 0 }
  0x50   : > { %s4008_s23 = sshll.u32 %s4524_s12, 7  ;;  %s228_s11 = scalar_lea.sflag [#allocation5], %s4524_s12 }
  0x51   : > { %s4530_s25 = scalar_lea.vmem [#allocation4], %s4008_s23 }
  0x52   : > { %4303 = dma.done.wait (%p9722_p6), %s228_s11, 2048  }
  0x53   : > { %4305 = vsyncadd (%p9722_p6), %s228_s11, 4294965248  ;;  %s4009_s29 = sshll.u32 %s4524_s12, 5  ;;  %s237_s14 = scalar_lea.sflag [#allocation8], %s4524_s12 }
  0x54   : > { %s4538_s20 = scalar_lea.vmem [#allocation7], %s4009_s29 }
  0x55   : > { %4307 = dma.done.wait (%p9722_p6), %s237_s14, 512  }
  0x56   : > { %4309 = vsyncadd (%p9722_p6), %s237_s14, 4294966784  ;;  %v4335_v0 = vmov 0.0   ;;  %v4545_v1 = vld [vmem:[%s4538_s20] ss:$0 sm:$0xff]  ;;  %v4548_v2 = vld [vmem:[%s4538_s20 + $0x5] ss:$0 sm:$0xff] }
  0x57   : > { %282 = vst [vmem:[#allocation2] sm:$0xff] %v4335_v0  ;;  %283 = vst [vmem:[#allocation2 + $0x8] sm:$0xf] %v4335_v0  ;;  %v4551_v3 = vld [vmem:[%s4538_s20 + $0x1] ss:$0 sm:$0xff]  ;;  %v4561_v9 = vmul.f32 0.0, %v4545_v1 }
  0x58   : > { %285 = vst [vmem:[#allocation2 + $0x18] sm:$0xf] %v4335_v0  ;;  %287 = vst [vmem:[#allocation2 + $0xc8] sm:$0xf] %v4335_v0  ;;  %v4554_v4 = vld [vmem:[%s4538_s20 + $0x6] ss:$0 sm:$0xff] }
  0x59   : > { %289 = vst [vmem:[#allocation2 + $0xd8] sm:$0xf] %v4335_v0  ;;  %292 = vst [vmem:[#allocation2 + $0xa8] sm:$0xf] %v4335_v0  ;;  %v455_v7 = vmul.f32 0.0, %v4551_v3  ;;  %v422_v10 = vmul.f32 0.0, %v4548_v2 }
  0x5a   : > { %294 = vst [vmem:[#allocation2 + $0xb8] sm:$0xf] %v4335_v0  ;;  %296 = vst [vmem:[#allocation2 + $0x168] sm:$0xf] %v4335_v0  ;;  %v4558_v8 = vld [vmem:[%s4538_s20 + $0x2] ss:$0 sm:$0xff] }
  0x5b   : > { %298 = vst [vmem:[#allocation2 + $0x178] sm:$0xf] %v4335_v0  ;;  %300 = vst [vmem:[#allocation2 + $0x20] sm:$0x3] %v4335_v0  ;;  %v4566_v12 = vmul.f32 0.0, %v4554_v4  ;;  %v332_v13 = vld [vmem:[%s4530_s25] sm:$0xff]  ;;  %v4600_v30 = vadd.f32 %v422_v10, %v4561_v9 }
  0x5c   : > { %301 = vst [vmem:[#allocation2 + $0x30] sm:$0x3] %v4335_v0  ;;  %302 = vst [vmem:[#allocation2 + $0x40] sm:$0x3] %v4335_v0  ;;  %v4570_v14 = vld [vmem:[%s4538_s20 + $0x3] ss:$0 sm:$0xff] }
  0x5d   : > { %303 = vst [vmem:[#allocation2 + $0x50] sm:$0x3] %v4335_v0  ;;  %304 = vst [vmem:[#allocation2 + $0x60] sm:$0x3] %v4335_v0  ;;  %v4573_v15 = vld [vmem:[%s4538_s20 + $0x7] ss:$0 sm:$0xff] }
  0x5e   : > { %305 = vst [vmem:[#allocation2 + $0x70] sm:$0x3] %v4335_v0  ;;  %306 = vst [vmem:[#allocation2 + $0x80] sm:$0x3] %v4335_v0  ;;  %vm461_vm0 = vcmask 1046528   ;;  %v566_v17 = vmul.f32 0.0, %v4558_v8 }
  0x5f   : > { %307 = vst [vmem:[#allocation2 + $0x90] sm:$0x3] %v4335_v0  ;;  %308 = vst [vmem:[#allocation2 + $0xe0] sm:$0x3] %v4335_v0  ;;  %v400_v5 = vld [vmem:[#allocation2 + $0xc8] sm:$0xf] }
  0x60   : > { %309 = vst [vmem:[#allocation2 + $0xf0] sm:$0x3] %v4335_v0  ;;  %310 = vst [vmem:[#allocation2 + $0x100] sm:$0x3] %v4335_v0  ;;  %v402_v6 = vld [vmem:[#allocation2 + $0xd8] sm:$0xf]  ;;  %v456_v11 = vmul.f32 %v4551_v3, %v400_v5  ;;  %v567_v19 = vmul.f32 %v4558_v8, %v400_v5  ;;  %v678_v32 = vmul.f32 %v4570_v14, %v400_v5 }
  0x61   : > { %311 = vst [vmem:[#allocation2 + $0x110] sm:$0x3] %v4335_v0  ;;  %312 = vst [vmem:[#allocation2 + $0x120] sm:$0x3] %v4335_v0  ;;  %v4576_v16 = vmul.f32 %v4554_v4, %v402_v6  ;;  %v4580_v18 = vld [vmem:[%s4538_s20 + $0x4] ss:$0 sm:$0xff]  ;;  %v590_v26 = vmul.f32 %v4573_v15, %v402_v6 }
  0x62   : > { %313 = vst [vmem:[#allocation2 + $0x130] sm:$0x3] %v4335_v0  ;;  %314 = vst [vmem:[#allocation2 + $0x140] sm:$0x3] %v4335_v0  ;;  %vm572_vm1 = vcmask 1045504   ;;  %v589_v20 = vmul.f32 0.0, %v4573_v15  ;;  %v789_v38 = vmul.f32 %v4580_v18, %v400_v5 }
  0x63   : > { %315 = vst [vmem:[#allocation2 + $0x150] sm:$0x3] %v4335_v0  ;;  %316 = vst [vmem:[#allocation2 + $0x2a] sm:$0x3] %v4335_v0  ;;  %v677_v21 = vmul.f32 0.0, %v4570_v14  ;;  %v333_v22 = vld [vmem:[%s4530_s25 + $0x8] sm:$0xff] }
  0x64   : > { %317 = vst [vmem:[#allocation2 + $0x3a] sm:$0x3] %v4335_v0  ;;  %318 = vst [vmem:[#allocation2 + $0x4a] sm:$0x3] %v4335_v0  ;;  %v4587_v23 = vld [vmem:[%s4538_s20 + $0x8] ss:$0 sm:$0xff] }
  0x65   : > { %319 = vst [vmem:[#allocation2 + $0x5a] sm:$0x3] %v4335_v0  ;;  %320 = vst [vmem:[#allocation2 + $0x6a] sm:$0x3] %v4335_v0  ;;  %v4589_v24 = vrot.slane %v455_v7, 1  ;;  %v466_v25 = vrot.slane %v456_v11, 1  ;;  %v701_v37 = vmul.f32 %v4587_v23, %v402_v6 }
  0x66   : > { %321 = vst [vmem:[#allocation2 + $0x7a] sm:$0x3] %v4335_v0  ;;  %322 = vst [vmem:[#allocation2 + $0x8a] sm:$0x3] %v4335_v0  ;;  %vm683_vm2 = vcmask 1044480   ;;  %v4593_v27 = vmul.f32 0.0, %v4580_v18 }
  0x67   : > { %323 = vst [vmem:[#allocation2 + $0x9a] sm:$0x3] %v4335_v0  ;;  %324 = vst [vmem:[#allocation2 + $0xea] sm:$0x3] %v4335_v0  ;;  %v334_v28 = vld [vmem:[%s4530_s25 + $0x10] sm:$0xff]  ;;  %v487_v31 = vrot.slane %v4566_v12, 1  ;;  %v4616_v46 = vsel %vm461_vm0, %v4589_v24, %v466_v25 }
  0x68   : > { %325 = vst [vmem:[#allocation2 + $0xfa] sm:$0x3] %v4335_v0  ;;  %326 = vst [vmem:[#allocation2 + $0x10a] sm:$0x3] %v4335_v0  ;;  %v4597_v29 = vld [vmem:[%s4538_s20 + $0x9] ss:$0 sm:$0xff] }
  0x69   : > { %327 = vst [vmem:[#allocation2 + $0x11a] sm:$0x3] %v4335_v0  ;;  %328 = vst [vmem:[#allocation2 + $0x12a] sm:$0x3] %v4335_v0  ;;  %v700_v33 = vmul.f32 0.0, %v4587_v23  ;;  %vm794_vm3 = vcmask 1043456   ;;  %v812_v44 = vmul.f32 %v4597_v29, %v402_v6 }
  0x6a   : > { %329 = vst [vmem:[#allocation2 + $0x13a] sm:$0x3] %v4335_v0  ;;  %330 = vst [vmem:[#allocation2 + $0x14a] sm:$0x3] %v4335_v0  ;;  %v903_v34 = vld [vmem:[#allocation2 + $0x18] sm:$0xf] }
  0x6b   : > { %331 = vst [vmem:[#allocation2 + $0x15a] sm:$0x3] %v4335_v0  ;;  %9723 = vst [vmem:[#allocation13_spill] sm:$0xff] %v4548_v2  ;;  %v488_v35 = vrot.slane %v4576_v16, 1  ;;  %v4606_v36 = vrot.slane %v566_v17, 2  ;;  %v335_v40 = vld [vmem:[%s4530_s25 + $0x18] sm:$0xff]  ;;  %v943_v49 = vmul.f32 %v4551_v3, %v903_v34  ;;  %v1033_v54 = vmul.f32 %v4558_v8, %v903_v34 }
  0x6c   : > { %9724 = vst [vmem:[#allocation14_spill] sm:$0xff] %v4561_v9  ;;  %348 = vst [vmem:[#allocation2 + $0x22] sm:$0xff] %v332_v13  ;;  %v913_v39 = vld [vmem:[#allocation2 + $0xd8] sm:$0xf]  ;;  %v577_v41 = vrot.slane %v567_v19, 2  ;;  %v598_v42 = vrot.slane %v589_v20, 2  ;;  %v4645_v19 = vmul.f32 %v4570_v14, %v903_v34 }
  0x6d   : > { %349 = vst [vmem:[#allocation2 + $0x32] sm:$0xff] %v333_v22  ;;  %9725 = vst [vmem:[#allocation15_spill] sm:$0xff] %v4597_v29  ;;  %v811_v43 = vmul.f32 0.0, %v4597_v29  ;;  %v336_v45 = vld [vmem:[%s4530_s25 + $0x20] sm:$0xff]  ;;  %v599_v47 = vrot.slane %v590_v26, 2  ;;  %v4618_v48 = vrot.slane %v677_v21, 3  ;;  %v945_v53 = vmul.f32 %v4551_v3, %v913_v39 }
  0x6e   : > { %9726 = vst [vmem:[#allocation16_spill] sm:$0xff] %v4600_v30  ;;  %350 = vst [vmem:[#allocation2 + $0x42] sm:$0xff] %v334_v28  ;;  %v337_v50 = vld [vmem:[%s4530_s25 + $0x28] sm:$0xff]  ;;  %v688_v51 = vrot.slane %v678_v32, 3  ;;  %v709_v52 = vrot.slane %v700_v33, 3  ;;  %v338_v55 = vld [vmem:[%s4530_s25 + $0x30] sm:$0xff]  ;;  %v1035_v62 = vmul.f32 %v4558_v8, %v913_v39  ;;  %v1125_v63 = vmul.f32 %v4570_v14, %v913_v39 }
  0x6f   : > { %351 = vst [vmem:[#allocation2 + $0x52] sm:$0xff] %v335_v40  ;;  %9727 = vst [vmem:[#allocation17_spill] sm:$0xff] %v4616_v46  ;;  %v710_v56 = vrot.slane %v701_v37, 3  ;;  %v798_v57 = vrot.slane %v4593_v27, 4  ;;  %v799_v58 = vrot.slane %v789_v38, 4  ;;  %v820_v59 = vrot.slane %v811_v43, 4 }
  0x70   : > { %9728 = vst [vmem:[#allocation18_spill] sm:$0xff] %v4618_v48  ;;  %352 = vst [vmem:[#allocation2 + $0x62] sm:$0xff] %v336_v45  ;;  %v821_v60 = vrot.slane %v812_v44, 4  ;;  %v951_v61 = vrot.slane %v943_v49, 1  ;;  %v340_v6 = vld [vmem:[%s4530_s25 + $0x40] sm:$0xff]  ;;  %v4630_v7 = vsel %vm461_vm0, %v487_v31, %v488_v35  ;;  %v4634_v10 = vsel %vm572_vm1, %v4606_v36, %v577_v41  ;;  %v341_v20 = vld [vmem:[%s4530_s25 + $0x48] sm:$0xff] }
  0x71   : > { %353 = vst [vmem:[#allocation2 + $0x72] sm:$0xff] %v337_v50  ;;  %354 = vst [vmem:[#allocation2 + $0x82] sm:$0xff] %v338_v55  ;;  %v4637_v11 = vsel %vm572_vm1, %v598_v42, %v599_v47  ;;  %v1215_v12 = vmul.f32 %v4580_v18, %v913_v39  ;;  %v4642_v13 = vsel %vm683_vm2, %v4618_v48, %v688_v51  ;;  %v954_v16 = vrot.slane %v945_v53, 1  ;;  %v4772_v41 = vld [vmem:[%s4538_s20 + $0x10] ss:$0 sm:$0xff]  ;;  %p276_p13 = scmp.lt.s32.totalorder %s4386_s19, 1 }
  0x72   : > { %9729 = vst [vmem:[#allocation19_spill] sm:$0xff] %v4630_v7  ;;  %9730 = vst [vmem:[#allocation20_spill] sm:$0xff] %v4634_v10  ;;  %v1041_v17 = vrot.slane %v1033_v54, 2  ;;  %v4649_v21 = vsel %vm683_vm2, %v709_v52, %v710_v56  ;;  %v4652_v22 = vsel %vm794_vm3, %v798_v57, %v799_v58  ;;  %v4657_v27 = vsel %vm794_vm3, %v820_v59, %v821_v60  ;;  %s4037_s30 = sshll.u32 %s4386_s19, 7  ;;  %s9198_s13 = scalar_lea.vmem [#allocation9], %s4008_s23 }
  0x73   : > { %v904_v0 = vld [vmem:[#allocation2 + $0x20] sm:$0xff]  ;;  %v905_v5 = vld [vmem:[#allocation2 + $0x28] sm:$0xf]  ;;  %9731 = vst [vmem:[#allocation21_spill] sm:$0xff] %v4637_v11  ;;  %356 = vst [vmem:[#allocation2 + $0xe2] sm:$0xff] %v340_v6  ;;  %v4661_v28 = vsel %vm461_vm0, %v4589_v24, %v951_v61  ;;  %v1044_v31 = vrot.slane %v1035_v62, 2  ;;  %v4668_v39 = vsel %vm461_vm0, %v4589_v24, %v954_v16  ;;  %s9220_s11 = scalar_lea.hbm %s9278_s4, %s4037_s30 }
  0x74   : > { %9732 = vst [vmem:[#allocation22_spill] sm:$0xff] %v4642_v13  ;;  %9733 = vst [vmem:[#allocation23_spill] sm:$0xff] %v4645_v19  ;;  %v960_v25 = vmul.f32 %v4554_v4, %v904_v0  ;;  %v961_v26 = vmul.f32 %v4554_v4, %v905_v5  ;;  %v1134_v32 = vrot.slane %v1125_v63, 3  ;;  %v1312_v33 = vld [vmem:[#allocation2 + $0x28] sm:$0xf]  ;;  %v1224_v34 = vrot.slane %v1215_v12, 4 }
  0x75   : > { %9734 = vst [vmem:[#allocation24_spill] sm:$0xff] %v4649_v21  ;;  %9735 = vst [vmem:[#allocation25_spill] sm:$0xff] %v4652_v22  ;;  %v926_v35 = vmul.f32 %v4548_v2, %v904_v0  ;;  %v1050_v37 = vmul.f32 %v4573_v15, %v904_v0  ;;  %v1051_v38 = vmul.f32 %v4573_v15, %v905_v5  ;;  %v906_v60 = vld [vmem:[#allocation2 + $0x30] sm:$0xff]  ;;  %v4709_v6 = vld [vmem:[%s4538_s20 + $0xa] ss:$0 sm:$0xff]  ;;  %v4890_v7 = vmul.f32 0.0, %v4772_v41 }
  0x76   : > { %357 = vst [vmem:[#allocation2 + $0xf2] sm:$0xff] %v341_v20  ;;  %9736 = vst [vmem:[#allocation26_spill] sm:$0xff] %v4657_v27  ;;  %v4672_v40 = vsel %vm572_vm1, %v4606_v36, %v1041_v17  ;;  %v4676_v42 = vmul.f32 %v4587_v23, %v904_v0  ;;  %v968_v43 = vrot.slane %v960_v25, 1  ;;  %v969_v44 = vrot.slane %v961_v26, 1  ;;  %v4715_v17 = vld [vmem:[%s4538_s20 + $0xc] ss:$0 sm:$0xff] }
  0x77   : > { %9737 = vst [vmem:[#allocation27_spill] sm:$0xff] %v4668_v39  ;;  %9738 = vst [vmem:[#allocation28_spill] sm:$0xff] %v4672_v40  ;;  %v1351_v45 = vmul.f32 %v4551_v3, %v904_v0  ;;  %v1352_v47 = vmul.f32 %v4551_v3, %v1312_v33  ;;  %v4682_v49 = vsel %vm572_vm1, %v4606_v36, %v1044_v31  ;;  %v1058_v54 = vrot.slane %v1050_v37, 2  ;;  %v4718_v20 = vld [vmem:[%s4538_s20 + $0xd] ss:$0 sm:$0xff]  ;;  %s277_s26 = scalar_select %p276_p13, %s4386_s19, 1 }
  0x78   : > { %9739 = vst [vmem:[#allocation29_spill] sm:$0xff] %v4676_v42  ;;  %9740 = vst [vmem:[#allocation30_spill] sm:$0xff] %v4682_v49  ;;  %v4686_v24 = vsel %vm683_vm2, %v4618_v48, %v1134_v32  ;;  %v1441_v50 = vmul.f32 %v4558_v8, %v904_v0  ;;  %v1442_v51 = vmul.f32 %v4558_v8, %v1312_v33  ;;  %v1059_v36 = vrot.slane %v1051_v38, 2  ;;  %v907_v42 = vld [vmem:[#allocation2 + $0x38] sm:$0xf]  ;;  %s3886_s19 = sshll.u32 %s9198_s13, 4  ;;  %s9222_s19 = int_to_ptr.vmem [resolvable:$true] %s3886_s19 }
  0x79   : > { %9741 = vst [vmem:[#allocation31_spill] sm:$0xff] %v4686_v24  ;;  %v4691_v52 = vsel %vm794_vm3, %v798_v57, %v1224_v34  ;;  %v928_v53 = vadd.f32 %v926_v35, %v4561_v9  ;;  %v4695_v55 = vmul.f32 %v4587_v23, %v905_v5  ;;  %v1331_v58 = vmul.f32 %v4545_v1, %v904_v0  ;;  %v4712_v5 = vld [vmem:[%s4538_s20 + $0xb] ss:$0 sm:$0xff]  ;;  %v4766_v34 = vld [vmem:[%s4538_s20 + $0xf] ss:$0 sm:$0xff]  ;;  %s278_s9 = scalar_lea.vmem %s9276_s2, %s277_s26  ;;  %s281_s7 = scalar_lea.vmem %s9277_s3, %s277_s26 }
  0x7a   : > { %9742 = vst [vmem:[#allocation32_spill] sm:$0xff] %v4691_v52  ;;  %v4700_v59 = vmul.f32 %v4570_v14, %v904_v0  ;;  %v4703_v57 = vsel %vm461_vm0, %v968_v43, %v969_v44  ;;  %v1359_v61 = vrot.slane %v1351_v45, 1  ;;  %v1360_v62 = vrot.slane %v1352_v47, 1  ;;  %9746 = vst [vmem:[#allocation36_spill] sm:$0xff] %v4709_v6  ;;  %v1314_v27 = vld [vmem:[#allocation2 + $0x38] sm:$0xf] }
  0x7b   : > { %9743 = vst [vmem:[#allocation33_spill] sm:$0xff] %v4695_v55  ;;  %v4706_v63 = vmul.f32 %v4570_v14, %v1312_v33  ;;  %v1449_v12 = vrot.slane %v1441_v50, 2  ;;  %v1450_v16 = vrot.slane %v1442_v51, 2  ;;  %v930_v0 = vmul.f32 %v4709_v6, %v906_v60  ;;  %9759 = vst [vmem:[#allocation49_spill] sm:$0xff] %v4766_v34  ;;  %v4873_v21 = vld [vmem:[%s4538_s20 + $0x16] ss:$0 sm:$0xff] }
  0x7c   : > { %9744 = vst [vmem:[#allocation34_spill] sm:$0xff] %v4700_v59  ;;  %v4722_v25 = vmul.f32 %v4712_v5, %v906_v60  ;;  %v4725_v26 = vsel %vm572_vm1, %v1058_v54, %v1059_v36  ;;  %v4728_v31 = vmul.f32 %v4715_v17, %v906_v60  ;;  %v4731_v32 = vmul.f32 %v4718_v20, %v906_v60  ;;  %v4775_v54 = vld [vmem:[%s4538_s20 + $0x11] ss:$0 sm:$0xff]  ;;  %s4258_s29 = scalar_lea.vmem %s9222_s19, 2048  ;;  %p11324_p12 = scmp.ne.s32.totalorder %s9716_s27, 0 }
  0x7d   : > { %9745 = vst [vmem:[#allocation35_spill] sm:$0xff] %v4706_v63  ;;  %9748 = vst [vmem:[#allocation38_spill] sm:$0xff] %v4725_v26  ;;  %v1335_v33 = vmul.f32 %v4548_v2, %v906_v60  ;;  %v4737_v37 = vmul.f32 %v4554_v4, %v906_v60  ;;  %v4740_v38 = vmul.f32 %v4573_v15, %v906_v60  ;;  %v4887_v39 = vmul.f32 0.0, %v4766_v34  ;;  %p4259_p2 = scmp.ne.s32.totalorder %s9222_s19, %s4258_s29  ;;  %s4336_s14 = smov [#allocation9]  }
  0x7e   : > { %9747 = vst [vmem:[#allocation37_spill] sm:$0xff] %v4722_v25  ;;  %9749 = vst [vmem:[#allocation39_spill] sm:$0xff] %v4728_v31  ;;  %v4743_v43 = vsel %vm461_vm0, %v1359_v61, %v1360_v62  ;;  %v4747_v45 = vmul.f32 %v4587_v23, %v906_v60  ;;  %v4750_v47 = vmul.f32 %v4551_v3, %v906_v60  ;;  %v342_v61 = vld [vmem:[%s4530_s25 + $0x50] sm:$0xff]  ;;  %v4904_v30 = vmul.f32 0.0, %v4775_v54 }
  0x7f   : > { %9750 = vst [vmem:[#allocation40_spill] sm:$0xff] %v4731_v32  ;;  %9751 = vst [vmem:[#allocation41_spill] sm:$0xff] %v4737_v37  ;;  %v4753_v50 = vsel %vm572_vm1, %v1449_v12, %v1450_v16  ;;  %v932_v51 = vadd.f32 %v930_v0, %v928_v53  ;;  %v4757_v36 = vmul.f32 %v4558_v8, %v906_v60  ;;  %v908_v12 = vld [vmem:[#allocation2 + $0x40] sm:$0xff]  ;;  %p4260_p10 = pnand %p4259_p2, %p11324_p12 }
  0x80   : > { %9752 = vst [vmem:[#allocation42_spill] sm:$0xff] %v4740_v38  ;;  %9753 = vst [vmem:[#allocation43_spill] sm:$0xff] %v4743_v43  ;;  %v1337_v44 = vadd.f32 %v1335_v33, %v1331_v58  ;;  %v4763_v56 = vmul.f32 %v4570_v14, %v906_v60  ;;  %v1741_v0 = vmul.f32 %v4545_v1, %v906_v60 }
  0x81   : > { %9754 = vst [vmem:[#allocation44_spill] sm:$0xff] %v4747_v45  ;;  %9755 = vst [vmem:[#allocation45_spill] sm:$0xff] %v4750_v47  ;;  %v934_v35 = vmul.f32 %v4766_v34, %v908_v12  ;;  %v4781_v62 = vmul.f32 %v4772_v41, %v908_v12  ;;  %v1339_v60 = vmul.f32 %v4709_v6, %v908_v12  ;;  %p4261_p7 = pneg %p4260_p10 }
  0x82   : > { %9756 = vst [vmem:[#allocation46_spill] sm:$0xff] %v4753_v50  ;;  %9757 = vst [vmem:[#allocation47_spill] sm:$0xff] %v4757_v36  ;;  %v4789_v53 = vmul.f32 %v4712_v5, %v908_v12  ;;  %v4792_v50 = vmul.f32 %v4715_v17, %v908_v12  ;;  %v4796_v33 = vmul.f32 %v4718_v20, %v908_v12 }
  0x83   : > { %9758 = vst [vmem:[#allocation48_spill] sm:$0xff] %v4763_v56  ;;  %358 = vst [vmem:[#allocation2 + $0x102] sm:$0xff] %v342_v61  ;;  %v4784_v61 = vmul.f32 %v4775_v54, %v908_v12  ;;  %v1745_v45 = vmul.f32 %v4548_v2, %v908_v12  ;;  %v4800_v59 = vmul.f32 %v4554_v4, %v908_v12  ;;  %v1316_v56 = vld [vmem:[#allocation2 + $0x48] sm:$0xf] }
  0x84   : > { %9760 = vst [vmem:[#allocation50_spill] sm:$0xff] %v4781_v62  ;;  %9762 = vst [vmem:[#allocation52_spill] sm:$0xff] %v4789_v53  ;;  %v936_v63 = vadd.f32 %v934_v35, %v932_v51  ;;  %v4803_v16 = vmul.f32 %v4573_v15, %v908_v12  ;;  %v4806_v32 = vmul.f32 %v4587_v23, %v908_v12  ;;  %v1722_v62 = vld [vmem:[#allocation2 + $0x38] sm:$0xf] }
  0x85   : > { %9761 = vst [vmem:[#allocation51_spill] sm:$0xff] %v4784_v61  ;;  %9763 = vst [vmem:[#allocation53_spill] sm:$0xff] %v4792_v50  ;;  %v4809_v26 = vmul.f32 %v4551_v3, %v908_v12  ;;  %v4814_v40 = vmul.f32 %v4558_v8, %v908_v12  ;;  %v4817_v48 = vmul.f32 %v4570_v14, %v908_v12 }
  0x86   : > { %9764 = vst [vmem:[#allocation54_spill] sm:$0xff] %v4796_v33  ;;  %9765 = vst [vmem:[#allocation55_spill] sm:$0xff] %v4800_v59  ;;  %v1341_v35 = vadd.f32 %v1339_v60, %v1337_v44  ;;  %v4822_v52 = vmul.f32 %v4580_v18, %v908_v12  ;;  %v1747_v58 = vadd.f32 %v1745_v45, %v1741_v0  ;;  %v4843_v44 = vld [vmem:[#allocation2 + $0xa8] sm:$0xf]  ;;  %v4856_v45 = vld [vmem:[%s4538_s20 + $0x14] ss:$0 sm:$0xff] }
  0x87   : > { %9766 = vst [vmem:[#allocation56_spill] sm:$0xff] %v4803_v16  ;;  %9767 = vst [vmem:[#allocation57_spill] sm:$0xff] %v4806_v32  ;;  %v4827_v61 = vmul.f32 %v4545_v1, %v908_v12  ;;  %v4833_v51 = vmul.f32 %v4712_v5, %v907_v42  ;;  %v4838_v0 = vmul.f32 %v4715_v17, %v907_v42  ;;  %v910_v32 = vld [vmem:[#allocation2 + $0x50] sm:$0xff]  ;;  %v4858_v33 = vld [vmem:[#allocation2 + $0x168] sm:$0xf] }
  0x88   : > { %9768 = vst [vmem:[#allocation58_spill] sm:$0xff] %v4809_v26  ;;  %9769 = vst [vmem:[#allocation59_spill] sm:$0xff] %v4814_v40  ;;  %v4841_v12 = vmul.f32 %v4718_v20, %v907_v42  ;;  %v4847_v19 = vmul.f32 %v4554_v4, %v1314_v27  ;;  %v4850_v55 = vmul.f32 %v4573_v15, %v1314_v27 }
  0x89   : > { %9770 = vst [vmem:[#allocation60_spill] sm:$0xff] %v4817_v48  ;;  %9771 = vst [vmem:[#allocation61_spill] sm:$0xff] %v4822_v52  ;;  %v4853_v22 = vmul.f32 %v4587_v23, %v1314_v27  ;;  %v4861_v42 = vmul.f32 %v4551_v3, %v1722_v62  ;;  %v4864_v24 = vmul.f32 %v4558_v8, %v1722_v62  ;;  %v4870_v52 = vld [vmem:[%s4538_s20 + $0x15] ss:$0 sm:$0xff]  ;;  %v4911_v48 = vld [vmem:[%s4538_s20 + $0x12] ss:$0 sm:$0xff] }
  0x8a   : > { %9772 = vst [vmem:[#allocation62_spill] sm:$0xff] %v4841_v12  ;;  %9774 = vst [vmem:[#allocation64_spill] sm:$0xff] %v4856_v45  ;;  %v4867_v60 = vmul.f32 %v4570_v14, %v1722_v62  ;;  %v938_v27 = vmul.f32 %v4856_v45, %v910_v32  ;;  %v4877_v13 = vmul.f32 %v4580_v18, %v1722_v62  ;;  %v5017_v12 = vld [vmem:[#allocation2 + $0xb8] sm:$0xf] }
  0x8b   : > { %9773 = vst [vmem:[#allocation63_spill] sm:$0xff] %v4853_v22  ;;  %9775 = vst [vmem:[#allocation65_spill] sm:$0xff] %v4870_v52  ;;  %v4880_v49 = vmul.f32 %v4870_v52, %v910_v32  ;;  %v4883_v11 = vmul.f32 %v4873_v21, %v910_v32  ;;  %v1343_v10 = vmul.f32 %v4766_v34, %v910_v32  ;;  %v5037_v22 = vmul.f32 0.0, %v4870_v52 }
  0x8c   : > { %9776 = vst [vmem:[#allocation66_spill] sm:$0xff] %v4873_v21  ;;  %9777 = vst [vmem:[#allocation67_spill] sm:$0xff] %v4877_v13  ;;  %v4894_v46 = vmul.f32 %v4772_v41, %v4843_v44  ;;  %v4897_v62 = vmul.f32 %v4772_v41, %v910_v32  ;;  %v4901_v9 = vmul.f32 %v4772_v41, %v4858_v33 }
  0x8d   : > { %9778 = vst [vmem:[#allocation68_spill] sm:$0xff] %v4880_v49  ;;  %9779 = vst [vmem:[#allocation69_spill] sm:$0xff] %v4883_v11  ;;  %v940_v40 = vadd.f32 %v938_v27, %v936_v63  ;;  %v4915_v26 = vmul.f32 %v4775_v54, %v4858_v33  ;;  %v4918_v16 = vmul.f32 %v4775_v54, %v910_v32 }
  0x8e   : > { %9780 = vst [vmem:[#allocation70_spill] sm:$0xff] %v4887_v39  ;;  %9781 = vst [vmem:[#allocation71_spill] sm:$0xff] %v4897_v62  ;;  %v4908_v39 = vmul.f32 %v4775_v54, %v4843_v44  ;;  %v4921_v59 = vmul.f32 %v4911_v48, %v910_v32  ;;  %v1749_v50 = vmul.f32 %v4709_v6, %v910_v32 }
  0x8f   : > { %9782 = vst [vmem:[#allocation72_spill] sm:$0xff] %v4904_v30  ;;  %9784 = vst [vmem:[#allocation74_spill] sm:$0xff] %v4915_v26  ;;  %v4926_v36 = vadd.f32 %v1343_v10, %v1341_v35  ;;  %v4929_v63 = vmul.f32 %v4712_v5, %v910_v32  ;;  %v4933_v47 = vmul.f32 %v4715_v17, %v910_v32  ;;  %v5092_v30 = vmul.f32 0.0, %v4911_v48 }
  0x90   : > { %9783 = vst [vmem:[#allocation73_spill] sm:$0xff] %v4908_v39  ;;  %9785 = vst [vmem:[#allocation75_spill] sm:$0xff] %v4918_v16  ;;  %v4936_v38 = vmul.f32 %v4718_v20, %v910_v32  ;;  %v2155_v37 = vmul.f32 %v4548_v2, %v910_v32  ;;  %v958_v31 = vadd.f32 %v4661_v28, %v940_v40  ;;  %v9842_v39 = vld [vmem:[#allocation39_spill] sm:$0xff] }
  0x91   : > { %9786 = vst [vmem:[#allocation76_spill] sm:$0xff] %v4921_v59  ;;  %9787 = vst [vmem:[#allocation77_spill] sm:$0xff] %v4929_v63  ;;  %v4941_v53 = vmul.f32 %v4554_v4, %v910_v32  ;;  %v4944_v10 = vmul.f32 %v4573_v15, %v910_v32  ;;  %v4947_v35 = vmul.f32 %v4587_v23, %v910_v32  ;;  %v1724_v59 = vld [vmem:[#allocation2 + $0x48] sm:$0xf] }
  0x92   : > { %9788 = vst [vmem:[#allocation78_spill] sm:$0xff] %v4933_v47  ;;  %9789 = vst [vmem:[#allocation79_spill] sm:$0xff] %v4936_v38  ;;  %v4951_v11 = vadd.f32 %v1749_v50, %v1747_v58  ;;  %v4954_v49 = vmul.f32 %v4551_v3, %v910_v32  ;;  %v4958_v40 = vmul.f32 %v4558_v8, %v910_v32  ;;  %v4997_v50 = vld [vmem:[#allocation2 + $0xa8] sm:$0xf] }
  0x93   : > { %9790 = vst [vmem:[#allocation80_spill] sm:$0xff] %v4941_v53  ;;  %9791 = vst [vmem:[#allocation81_spill] sm:$0xff] %v4944_v10  ;;  %v4961_v62 = vmul.f32 %v4570_v14, %v910_v32  ;;  %v4964_v25 = vmul.f32 %v4580_v18, %v910_v32  ;;  %v4969_v58 = vadd.f32 %v2155_v37, %v4827_v61  ;;  %v4999_v38 = vld [vmem:[#allocation2 + $0x168] sm:$0xf]  ;;  %v1319_v10 = vld [vmem:[#allocation2 + $0x60] sm:$0xff] }
  0x94   : > { %9792 = vst [vmem:[#allocation82_spill] sm:$0xff] %v4947_v35  ;;  %9793 = vst [vmem:[#allocation83_spill] sm:$0xff] %v4954_v49  ;;  %v4972_v28 = vmul.f32 %v4545_v1, %v910_v32  ;;  %v4978_v29 = vadd.f32 %v4703_v57, %v958_v31  ;;  %v343_v32 = vld [vmem:[%s4530_s25 + $0x58] sm:$0xff]  ;;  %v2132_v57 = vld [vmem:[#allocation2 + $0x48] sm:$0xf]  ;;  %v4990_v31 = vmul.f32 %v4712_v5, %v1316_v56  ;;  %v5048_v49 = vmul.f32 0.0, %v4873_v21 }
  0x95   : > { %9794 = vst [vmem:[#allocation84_spill] sm:$0xff] %v4958_v40  ;;  %9795 = vst [vmem:[#allocation85_spill] sm:$0xff] %v4961_v62  ;;  %v4994_v37 = vmul.f32 %v4715_v17, %v1316_v56  ;;  %v5002_v16 = vmul.f32 %v4718_v20, %v1316_v56  ;;  %v5006_v63 = vmul.f32 %v4554_v4, %v1724_v59 }
  0x96   : > { %9796 = vst [vmem:[#allocation86_spill] sm:$0xff] %v4964_v25  ;;  %9797 = vst [vmem:[#allocation87_spill] sm:$0xff] %v4978_v29  ;;  %v5010_v27 = vmul.f32 %v4573_v15, %v1724_v59  ;;  %v5014_v61 = vmul.f32 %v4587_v23, %v1724_v59  ;;  %v5020_v56 = vmul.f32 %v4551_v3, %v2132_v57  ;;  %v5031_v25 = vld [vmem:[#allocation2 + $0x178] sm:$0xf]  ;;  %v5034_v59 = vmul.f32 0.0, %v4856_v45 }
  0x97   : > { %359 = vst [vmem:[#allocation2 + $0x112] sm:$0xff] %v343_v32  ;;  %9798 = vst [vmem:[#allocation88_spill] sm:$0xff] %v4997_v50  ;;  %v5023_v32 = vmul.f32 %v4558_v8, %v2132_v57  ;;  %v5026_v43 = vmul.f32 %v4570_v14, %v2132_v57  ;;  %v5029_v62 = vmul.f32 %v4580_v18, %v2132_v57 }
  0x98   : > { %9799 = vst [vmem:[#allocation89_spill] sm:$0xff] %v4999_v38  ;;  %9800 = vst [vmem:[#allocation90_spill] sm:$0xff] %v5002_v16  ;;  %v5041_v13 = vmul.f32 %v4870_v52, %v4997_v50  ;;  %v5045_v40 = vmul.f32 %v4870_v52, %v4999_v38  ;;  %v5052_v57 = vmul.f32 %v4873_v21, %v4997_v50 }
  0x99   : > { %9801 = vst [vmem:[#allocation91_spill] sm:$0xff] %v5014_v61  ;;  %9802 = vst [vmem:[#allocation92_spill] sm:$0xff] %v5017_v12  ;;  %v5063_v29 = vmul.f32 %v4870_v52, %v5017_v12  ;;  %v5068_v50 = vmul.f32 %v4870_v52, %v5031_v25  ;;  %v5075_v35 = vmul.f32 %v4873_v21, %v1319_v10 }
  0x9a   : > { %9803 = vst [vmem:[#allocation93_spill] sm:$0xff] %v5029_v62  ;;  %9804 = vst [vmem:[#allocation94_spill] sm:$0xff] %v5031_v25  ;;  %v5096_v47 = vmul.f32 %v4911_v48, %v4843_v44  ;;  %v5100_v53 = vmul.f32 %v4911_v48, %v4858_v33  ;;  %v5113_v44 = vmul.f32 %v4712_v5, %v1319_v10 }
  0x9b   : > { %9805 = vst [vmem:[#allocation95_spill] sm:$0xff] %v5034_v59  ;;  %9806 = vst [vmem:[#allocation96_spill] sm:$0xff] %v5041_v13  ;;  %v5056_v59 = vmul.f32 %v4873_v21, %v4999_v38  ;;  %v5089_v38 = vmul.f32 %v4873_v21, %v5031_v25  ;;  %v2565_v25 = vmul.f32 %v4548_v2, %v1319_v10  ;;  %v9833_v2 = vld [vmem:[#allocation43_spill] sm:$0xff] }
  0x9c   : > { %9807 = vst [vmem:[#allocation97_spill] sm:$0xff] %v5045_v40  ;;  %9808 = vst [vmem:[#allocation98_spill] sm:$0xff] %v5048_v49  ;;  %v1347_v49 = vmul.f32 %v4856_v45, %v1319_v10  ;;  %v5081_v45 = vmul.f32 %v4772_v41, %v1319_v10 }
  0x9d   : > { %9809 = vst [vmem:[#allocation99_spill] sm:$0xff] %v5052_v57  ;;  %9810 = vst [vmem:[#allocation100_spill] sm:$0xff] %v5056_v59  ;;  %v5072_v59 = vmul.f32 %v4870_v52, %v1319_v10 }
  0x9e   : > { %9811 = vst [vmem:[#allocation101_spill] sm:$0xff] %v5063_v29  ;;  %9812 = vst [vmem:[#allocation102_spill] sm:$0xff] %v5068_v50  ;;  %v1753_v29 = vmul.f32 %v4766_v34, %v1319_v10  ;;  %v5085_v50 = vmul.f32 %v4873_v21, %v5017_v12  ;;  %v1349_v26 = vadd.f32 %v1347_v49, %v4926_v36  ;;  %v9830_v49 = vld [vmem:[#allocation15_spill] sm:$0xff] }
  0x9f   : > { %9813 = vst [vmem:[#allocation103_spill] sm:$0xff] %v5072_v59  ;;  %9814 = vst [vmem:[#allocation104_spill] sm:$0xff] %v5075_v35  ;;  %v5104_v12 = vmul.f32 %v4775_v54, %v1319_v10  ;;  %v5120_v36 = vmul.f32 %v4715_v17, %v1319_v10  ;;  %v5130_v35 = vmul.f32 %v4573_v15, %v1319_v10 }
  0xa0   : > { %9815 = vst [vmem:[#allocation105_spill] sm:$0xff] %v5081_v45  ;;  %9816 = vst [vmem:[#allocation106_spill] sm:$0xff] %v5085_v50  ;;  %v5107_v50 = vmul.f32 %v4911_v48, %v1319_v10  ;;  %v5116_v33 = vadd.f32 %v1753_v29, %v4951_v11  ;;  %v5133_v59 = vmul.f32 %v4587_v23, %v1319_v10 }
  0xa1   : > { %9817 = vst [vmem:[#allocation107_spill] sm:$0xff] %v5089_v38  ;;  %9818 = vst [vmem:[#allocation108_spill] sm:$0xff] %v5092_v30  ;;  %v2159_v38 = vmul.f32 %v4709_v6, %v1319_v10  ;;  %v5127_v30 = vmul.f32 %v4554_v4, %v1319_v10  ;;  %v5138_v45 = vmul.f32 %v9830_v49, %v1319_v10 }
  0xa2   : > { %9819 = vst [vmem:[#allocation109_spill] sm:$0xff] %v5096_v47  ;;  %9820 = vst [vmem:[#allocation110_spill] sm:$0xff] %v5100_v53  ;;  %v5123_v53 = vmul.f32 %v4718_v20, %v1319_v10  ;;  %v5141_v6 = vmul.f32 %v4551_v3, %v1319_v10  ;;  %v5151_v34 = vmul.f32 %v4558_v8, %v1319_v10 }
  0xa3   : > { %9821 = vst [vmem:[#allocation111_spill] sm:$0xff] %v5104_v12  ;;  %9822 = vst [vmem:[#allocation112_spill] sm:$0xff] %v5107_v50  ;;  %v5147_v47 = vadd.f32 %v2159_v38, %v4969_v58  ;;  %v5156_v50 = vmul.f32 %v4570_v14, %v1319_v10  ;;  %v5159_v12 = vmul.f32 %v4580_v18, %v1319_v10  ;;  %v9841_v58 = vrot.slane %v4838_v0, 2  ;;  %v9869_v62 = vld [vmem:[#allocation98_spill] sm:$0xff] }
  0xa4   : > { %9823 = vst [vmem:[#allocation113_spill] sm:$0xff] %v5113_v44  ;;  %9824 = vst [vmem:[#allocation114_spill] sm:$0xff] %v5116_v33  ;;  %v5144_v33 = vadd.f32 %v9833_v2, %v1349_v26  ;;  %v1318_v2 = vld [vmem:[#allocation2 + $0x58] sm:$0xf]  ;;  %v5162_v26 = vadd.f32 %v2565_v25, %v4972_v28  ;;  %v5169_v11 = vmul.f32 %v4545_v1, %v1319_v10  ;;  %v9839_v44 = vld [vmem:[#allocation37_spill] sm:$0xff]  ;;  %v9845_v10 = vrot.slane %v4847_v19, 1 }
  0xa5   : > { %9825 = vst [vmem:[#allocation115_spill] sm:$0xff] %v5120_v36  ;;  %9826 = vst [vmem:[#allocation116_spill] sm:$0xff] %v5123_v53  ;;  %v9838_v36 = vrot.slane %v4833_v51, 1  ;;  %v1726_v28 = vld [vmem:[#allocation2 + $0x58] sm:$0xf]  ;;  %v9846_v53 = vld [vmem:[#allocation41_spill] sm:$0xff]  ;;  %v5198_v0 = vmul.f32 %v4772_v41, %v1318_v2 }
  0xa6   : > { %9827 = vst [vmem:[#allocation117_spill] sm:$0xff] %v5127_v30  ;;  %9828 = vst [vmem:[#allocation118_spill] sm:$0xff] %v5130_v35  ;;  %v9853_v38 = vrot.slane %v4861_v42, 1  ;;  %v5283_v61 = vrot.slane %v9869_v62, 2  ;;  %v9875_v35 = vrot.slane %v4901_v9, 1  ;;  %v9888_v30 = vld [vmem:[#allocation72_spill] sm:$0xff] }
  0xa7   : > { %9829 = vst [vmem:[#allocation119_spill] sm:$0xff] %v5133_v59  ;;  %9831 = vst [vmem:[#allocation15_spill] sm:$0xff] %v5138_v45  ;;  %v9843_v59 = vrot.slane %v9842_v39, 2  ;;  %v9847_v45 = vrot.slane %v9846_v53, 1  ;;  %v9848_v39 = vrot.slane %v4850_v55, 2  ;;  %v9854_v55 = vld [vmem:[#allocation45_spill] sm:$0xff] }
  0xa8   : > { %9832 = vst [vmem:[#allocation120_spill] sm:$0xff] %v5141_v6  ;;  %9834 = vst [vmem:[#allocation43_spill] sm:$0xff] %v5144_v33  ;;  %v9840_v33 = vrot.slane %v9839_v44, 1  ;;  %v2134_v53 = vld [vmem:[#allocation2 + $0x58] sm:$0xf]  ;;  %v9855_v44 = vrot.slane %v9854_v55, 1  ;;  %v5235_v55 = vmul.f32 %v4715_v17, %v1726_v28 }
  0xa9   : > { %9835 = vst [vmem:[#allocation121_spill] sm:$0xff] %v5151_v34  ;;  %9836 = vst [vmem:[#allocation122_spill] sm:$0xff] %v5156_v50  ;;  %v5185_v29 = vsel %vm572_vm1, %v9843_v59, %v9841_v58  ;;  %v5192_v51 = vsel %vm461_vm0, %v9847_v45, %v9845_v10  ;;  %v9849_v59 = vld [vmem:[#allocation42_spill] sm:$0xff]  ;;  %v5209_v10 = vmul.f32 %v4775_v54, %v1318_v2  ;;  %v9856_v45 = vrot.slane %v4864_v24, 2  ;;  %v9880_v50 = vld [vmem:[#allocation64_spill] sm:$0xff] }
  0xaa   : > { %9837 = vst [vmem:[#allocation123_spill] sm:$0xff] %v5159_v12  ;;  %v5177_v25 = vsel %vm461_vm0, %v9840_v33, %v9838_v36  ;;  %9844 = vst [vmem:[#allocation37_spill] sm:$0xff] %v5185_v29  ;;  %v9850_v58 = vrot.slane %v9849_v59, 2  ;;  %v5213_v36 = vmul.f32 %v4911_v48, %v1318_v2  ;;  %v5220_v59 = vsel %vm461_vm0, %v9855_v44, %v9853_v38  ;;  %v9857_v12 = vld [vmem:[#allocation47_spill] sm:$0xff]  ;;  %v2542_v2 = vld [vmem:[#allocation2 + $0x58] sm:$0xf] }
  0xab   : > { %v9860_v38 = vrot.slane %v4867_v60, 3  ;;  %v9861_v44 = vld [vmem:[#allocation48_spill] sm:$0xff]  ;;  %v344_v29 = vld [vmem:[%s4530_s25 + $0x60] sm:$0xff]  ;;  %v5255_v60 = vmul.f32 %v4573_v15, %v2134_v53  ;;  %v5266_v24 = vmul.f32 %v4551_v3, %v2542_v2  ;;  %v5269_v42 = vmul.f32 %v4558_v8, %v2542_v2  ;;  %9870 = vst [vmem:[#allocation98_spill] sm:$0xff] %v5283_v61 }
  0xac   : > { %v5205_v19 = vsel %vm572_vm1, %v9850_v58, %v9848_v39  ;;  %9852 = vst [vmem:[#allocation41_spill] sm:$0xff] %v5213_v36  ;;  %v5224_v58 = vmul.f32 %v4712_v5, %v1726_v28  ;;  %v9862_v39 = vrot.slane %v9861_v44, 3  ;;  %360 = vst [vmem:[#allocation2 + $0x122] sm:$0xff] %v344_v29  ;;  %v5272_v29 = vmul.f32 %v4570_v14, %v2542_v2 }
  0xad   : > { %9851 = vst [vmem:[#allocation39_spill] sm:$0xff] %v5205_v19  ;;  %v9858_v19 = vrot.slane %v9857_v12, 2  ;;  %v5247_v12 = vmul.f32 %v4718_v20, %v1726_v28  ;;  %v5263_v28 = vmul.f32 %v9830_v49, %v2134_v53  ;;  %v9872_v34 = vrot.slane %v4894_v46, 1 }
  0xae   : > { %v5242_v16 = vsel %vm683_vm2, %v9862_v39, %v9860_v38  ;;  %v5259_v38 = vmul.f32 %v4587_v23, %v2134_v53  ;;  %9866 = vst [vmem:[#allocation124_spill] sm:$0xff] %v5272_v29  ;;  %v5275_v39 = vmul.f32 %v4580_v18, %v2542_v2  ;;  %v9873_v6 = vrot.slane %v4890_v7, 1  ;;  %v9885_v7 = vld [vmem:[#allocation49_spill] sm:$0xff]  ;;  %v9905_v29 = vld [vmem:[#allocation36_spill] sm:$0xff] }
  0xaf   : > { %v5231_v33 = vsel %vm572_vm1, %v9858_v19, %v9856_v45  ;;  %9863 = vst [vmem:[#allocation45_spill] sm:$0xff] %v5242_v16  ;;  %9864 = vst [vmem:[#allocation47_spill] sm:$0xff] %v5247_v12  ;;  %v5251_v45 = vmul.f32 %v4554_v4, %v2134_v53  ;;  %v5278_v19 = vrot.slane %v5037_v22, 1  ;;  %v1729_v22 = vld [vmem:[#allocation2 + $0x70] sm:$0xff] }
  0xb0   : > { %9859 = vst [vmem:[#allocation42_spill] sm:$0xff] %v5231_v33  ;;  %9865 = vst [vmem:[#allocation48_spill] sm:$0xff] %v5263_v28  ;;  %v5292_v2 = vsel %vm461_vm0, %v9873_v6, %v9872_v34  ;;  %v9876_v44 = vmov %v9873_v6  ;;  %v5303_v16 = vld [vmem:[%s4538_s20 + $0x17] ss:$0 sm:$0xff]  ;;  %v1757_v33 = vmul.f32 %v9880_v50, %v1729_v22  ;;  %v5307_v46 = vmul.f32 %v4870_v52, %v1729_v22  ;;  %v9891_v50 = vld [vmem:[#allocation74_spill] sm:$0xff] }
  0xb1   : > { %9867 = vst [vmem:[#allocation125_spill] sm:$0xff] %v5275_v39  ;;  %9868 = vst [vmem:[#allocation126_spill] sm:$0xff] %v5278_v19  ;;  %v5299_v53 = vsel %vm461_vm0, %v9876_v44, %v9875_v35  ;;  %v5311_v34 = vmul.f32 %v4873_v21, %v1729_v22  ;;  %v5314_v9 = vmul.f32 %v5303_v16, %v1729_v22  ;;  %v9886_v44 = vld [vmem:[#allocation73_spill] sm:$0xff]  ;;  %v9892_v52 = vrot.slane %v9891_v50, 2  ;;  %v9895_v21 = vld [vmem:[#allocation106_spill] sm:$0xff] }
  0xb2   : > { %9874 = vst [vmem:[#allocation127_spill] sm:$0xff] %v5292_v2  ;;  %9877 = vst [vmem:[#allocation128_spill] sm:$0xff] %v5299_v53  ;;  %v2163_v35 = vmul.f32 %v9885_v7, %v1729_v22  ;;  %v9887_v53 = vrot.slane %v9886_v44, 2  ;;  %v9889_v2 = vrot.slane %v9888_v30, 2  ;;  %v2569_v61 = vmul.f32 %v9905_v29, %v1729_v22  ;;  %v9909_v30 = vld [vmem:[#allocation13_spill] sm:$0xff] }
  0xb3   : > { %9879 = vst [vmem:[#allocation129_spill] sm:$0xff] %v5303_v16  ;;  %9881 = vst [vmem:[#allocation130_spill] sm:$0xff] %v5307_v46  ;;  %v9896_v16 = vld [vmem:[#allocation107_spill] sm:$0xff]  ;;  %v5365_v7 = vmul.f32 %v4554_v4, %v1729_v22  ;;  %v5376_v46 = vmul.f32 %v9830_v49, %v1729_v22  ;;  %v5388_v29 = vmul.f32 %v4570_v14, %v1729_v22  ;;  %v1728_v19 = vld [vmem:[#allocation2 + $0x68] sm:$0xf] }
  0xb4   : > { %9883 = vst [vmem:[#allocation131_spill] sm:$0xff] %v5311_v34  ;;  %9884 = vst [vmem:[#allocation132_spill] sm:$0xff] %v5314_v9  ;;  %v5322_v62 = vsel %vm572_vm1, %v9889_v2, %v9887_v53  ;;  %v9893_v57 = vmov %v9889_v2  ;;  %v5337_v53 = vmul.f32 %v4772_v41, %v1729_v22  ;;  %v9901_v2 = vld [vmem:[#allocation114_spill] sm:$0xff]  ;;  %v5350_v44 = vadd.f32 %v2163_v35, %v5147_v47  ;;  %v9919_v9 = vld [vmem:[#allocation87_spill] sm:$0xff] }
  0xb5   : > { %9890 = vst [vmem:[#allocation73_spill] sm:$0xff] %v5322_v62  ;;  %v5329_v6 = vsel %vm572_vm1, %v9893_v57, %v9892_v52  ;;  %v1759_v50 = vadd.f32 %v1757_v33, %v9901_v2  ;;  %v5342_v52 = vmul.f32 %v4775_v54, %v1729_v22  ;;  %v5345_v57 = vmul.f32 %v4911_v48, %v1729_v22 }
  0xb6   : > { %9894 = vst [vmem:[#allocation72_spill] sm:$0xff] %v5329_v6  ;;  %9900 = vst [vmem:[#allocation74_spill] sm:$0xff] %v5337_v53  ;;  %v5354_v62 = vmul.f32 %v4712_v5, %v1729_v22  ;;  %v5357_v33 = vmul.f32 %v4715_v17, %v1729_v22  ;;  %v5360_v2 = vmul.f32 %v4718_v20, %v1729_v22 }
  0xb7   : > { %9902 = vst [vmem:[#allocation106_spill] sm:$0xff] %v5342_v52  ;;  %9903 = vst [vmem:[#allocation107_spill] sm:$0xff] %v5345_v57  ;;  %v2975_v6 = vmul.f32 %v9909_v30, %v1729_v22  ;;  %v5368_v47 = vmul.f32 %v4573_v15, %v1729_v22  ;;  %v5371_v35 = vmul.f32 %v4587_v23, %v1729_v22 }
  0xb8   : > { %9904 = vst [vmem:[#allocation114_spill] sm:$0xff] %v5350_v44  ;;  %9906 = vst [vmem:[#allocation133_spill] sm:$0xff] %v5354_v62  ;;  %v5379_v30 = vmul.f32 %v4551_v3, %v1729_v22  ;;  %v5382_v40 = vadd.f32 %v2569_v61, %v5162_v26  ;;  %v5385_v53 = vmul.f32 %v4558_v8, %v1729_v22  ;;  %v9923_v61 = vld [vmem:[#allocation52_spill] sm:$0xff]  ;;  %v9955_v28 = vld [vmem:[#allocation126_spill] sm:$0xff] }
  0xb9   : > { %9907 = vst [vmem:[#allocation134_spill] sm:$0xff] %v5357_v33  ;;  %9908 = vst [vmem:[#allocation135_spill] sm:$0xff] %v5360_v2  ;;  %v5391_v44 = vmul.f32 %v4580_v18, %v1729_v22  ;;  %v5397_v52 = vadd.f32 %v2975_v6, %v5169_v11  ;;  %v5403_v39 = vmul.f32 %v4545_v1, %v1729_v22  ;;  %v9921_v11 = vld [vmem:[#allocation43_spill] sm:$0xff]  ;;  %v9922_v22 = vrot.slane %v4990_v31, 1  ;;  %v5650_v2 = vld [vmem:[%s4538_s20 + $0x5] ss:$0 sm:$0xff] }
  0xba   : > { %9910 = vst [vmem:[#allocation13_spill] sm:$0xff] %v5365_v7  ;;  %9911 = vst [vmem:[#allocation136_spill] sm:$0xff] %v5368_v47  ;;  %v5409_v57 = vadd.f32 %v5177_v25, %v9919_v9  ;;  %v5413_v6 = vadd.f32 %v5192_v51, %v9921_v11  ;;  %v9924_v13 = vrot.slane %v9923_v61, 1  ;;  %v9925_v9 = vrot.slane %v4994_v37, 2  ;;  %v9926_v51 = vld [vmem:[#allocation53_spill] sm:$0xff]  ;;  %v9930_v61 = vld [vmem:[#allocation55_spill] sm:$0xff] }
  0xbb   : > { %9912 = vst [vmem:[#allocation137_spill] sm:$0xff] %v5371_v35  ;;  %9913 = vst [vmem:[#allocation138_spill] sm:$0xff] %v5376_v46  ;;  %v2136_v46 = vld [vmem:[#allocation2 + $0x68] sm:$0xf]  ;;  %v9927_v11 = vrot.slane %v9926_v51, 2  ;;  %v5436_v31 = vadd.f32 %v5220_v59, %v1759_v50  ;;  %v5447_v51 = vmul.f32 %v4772_v41, %v1728_v19  ;;  %v9940_v50 = vrot.slane %v5023_v32, 2 }
  0xbc   : > { %9914 = vst [vmem:[#allocation139_spill] sm:$0xff] %v5379_v30  ;;  %9915 = vst [vmem:[#allocation140_spill] sm:$0xff] %v5382_v40  ;;  %v5423_v34 = vsel %vm461_vm0, %v9924_v13, %v9922_v22  ;;  %v9929_v13 = vrot.slane %v5006_v63, 1  ;;  %v9931_v22 = vrot.slane %v9930_v61, 1  ;;  %v5458_v63 = vmul.f32 %v4775_v54, %v1728_v19  ;;  %v9938_v37 = vld [vmem:[#allocation58_spill] sm:$0xff] }
  0xbd   : > { %9916 = vst [vmem:[#allocation141_spill] sm:$0xff] %v5385_v53  ;;  %9917 = vst [vmem:[#allocation142_spill] sm:$0xff] %v5388_v29  ;;  %v5431_v26 = vsel %vm572_vm1, %v9927_v11, %v9925_v9  ;;  %v9932_v9 = vrot.slane %v5010_v27, 2  ;;  %v9933_v11 = vld [vmem:[#allocation56_spill] sm:$0xff]  ;;  %v5462_v61 = vmul.f32 %v4911_v48, %v1728_v19  ;;  %v9939_v27 = vrot.slane %v9938_v37, 1  ;;  %v9980_v53 = vld [vmem:[#allocation101_spill] sm:$0xff] }
  0xbe   : > { %9918 = vst [vmem:[#allocation143_spill] sm:$0xff] %v5391_v44  ;;  %9920 = vst [vmem:[#allocation87_spill] sm:$0xff] %v5409_v57  ;;  %v5443_v25 = vsel %vm461_vm0, %v9931_v22, %v9929_v13  ;;  %v9934_v40 = vrot.slane %v9933_v11, 2  ;;  %v2544_v13 = vld [vmem:[#allocation2 + $0x68] sm:$0xf]  ;;  %v9937_v22 = vrot.slane %v5020_v56, 1  ;;  %v5484_v37 = vmul.f32 %v4715_v17, %v2136_v46 }
  0xbf   : > { %9928 = vst [vmem:[#allocation43_spill] sm:$0xff] %v5431_v26  ;;  %9936 = vst [vmem:[#allocation53_spill] sm:$0xff] %v5462_v61  ;;  %v2952_v59 = vld [vmem:[#allocation2 + $0x68] sm:$0xf]  ;;  %v9941_v44 = vld [vmem:[#allocation59_spill] sm:$0xff]  ;;  %v5495_v32 = vmul.f32 %v4718_v20, %v2136_v46  ;;  %v5509_v26 = vmul.f32 %v4587_v23, %v2544_v13  ;;  %v9981_v30 = vrot.slane %v9980_v53, 1 }
  0xc0   : > { %v5454_v1 = vsel %vm572_vm1, %v9934_v40, %v9932_v9  ;;  %v5469_v11 = vsel %vm461_vm0, %v9939_v27, %v9937_v22  ;;  %v5473_v9 = vmul.f32 %v4712_v5, %v2136_v46  ;;  %v9942_v12 = vrot.slane %v9941_v44, 2  ;;  %v9945_v27 = vld [vmem:[#allocation60_spill] sm:$0xff]  ;;  %10017 = vst [vmem:[#allocation152_spill] sm:$0xff] %v5650_v2  ;;  %v5654_v62 = vld [vmem:[%s4538_s20 + $0x6] ss:$0 sm:$0xff] }
  0xc1   : > { %9935 = vst [vmem:[#allocation52_spill] sm:$0xff] %v5454_v1  ;;  %v9944_v22 = vrot.slane %v5026_v43, 3  ;;  %v9946_v40 = vrot.slane %v9945_v27, 3  ;;  %9948 = vst [vmem:[#allocation58_spill] sm:$0xff] %v5495_v32  ;;  %v5504_v43 = vmul.f32 %v4573_v15, %v2544_v13  ;;  %v9949_v27 = vld [vmem:[#allocation124_spill] sm:$0xff]  ;;  %v5516_v44 = vmul.f32 %v4551_v3, %v2952_v59  ;;  %v9963_v3 = vld [vmem:[#allocation98_spill] sm:$0xff] }
  0xc2   : > { %v5480_v19 = vsel %vm572_vm1, %v9942_v12, %v9940_v50  ;;  %v5500_v50 = vmul.f32 %v4554_v4, %v2544_v13  ;;  %v5513_v12 = vmul.f32 %v9830_v49, %v2544_v13  ;;  %v9953_v4 = vld [vmem:[#allocation96_spill] sm:$0xff]  ;;  %v9961_v13 = vld [vmem:[#allocation99_spill] sm:$0xff]  ;;  %10018 = vst [vmem:[#allocation153_spill] sm:$0xff] %v5654_v62 }
  0xc3   : > { %9943 = vst [vmem:[#allocation55_spill] sm:$0xff] %v5480_v19  ;;  %v5491_v36 = vsel %vm683_vm2, %v9946_v40, %v9944_v22  ;;  %v345_v22 = vld [vmem:[%s4530_s25 + $0x68] sm:$0xff]  ;;  %9952 = vst [vmem:[#allocation60_spill] sm:$0xff] %v5516_v44  ;;  %v9954_v56 = vrot.slane %v9953_v4, 1  ;;  %v9957_v40 = vld [vmem:[#allocation97_spill] sm:$0xff]  ;;  %v9962_v46 = vrot.slane %v9961_v13, 2 }
  0xc4   : > { %9947 = vst [vmem:[#allocation56_spill] sm:$0xff] %v5491_v36  ;;  %9951 = vst [vmem:[#allocation59_spill] sm:$0xff] %v5513_v12  ;;  %v9958_v57 = vrot.slane %v9957_v40, 1  ;;  %v5531_v36 = vmul.f32 %v4558_v8, %v2952_v59  ;;  %v2139_v4 = vld [vmem:[#allocation2 + $0x80] sm:$0xff]  ;;  %v9965_v19 = vld [vmem:[#allocation100_spill] sm:$0xff]  ;;  %v5546_v40 = vmul.f32 %v4570_v14, %v2952_v59 }
  0xc5   : > { %361 = vst [vmem:[#allocation2 + $0x132] sm:$0xff] %v345_v22  ;;  %v5522_v15 = vsel %vm461_vm0, %v9955_v28, %v9954_v56  ;;  %v5537_v22 = vsel %vm572_vm1, %v9963_v3, %v9962_v46  ;;  %v9966_v1 = vrot.slane %v9965_v19, 2  ;;  %v9970_v8 = vld [vmem:[#allocation129_spill] sm:$0xff]  ;;  %v9972_v13 = vld [vmem:[#allocation64_spill] sm:$0xff]  ;;  %v3385_v33 = vmul.f32 %v5650_v2, %v2139_v4 }
  0xc6   : > { %9956 = vst [vmem:[#allocation124_spill] sm:$0xff] %v5522_v15  ;;  %v5528_v23 = vsel %vm461_vm0, %v9955_v28, %v9958_v57  ;;  %9960 = vst [vmem:[#allocation126_spill] sm:$0xff] %v5531_v36  ;;  %v5548_v57 = vld [vmem:[#allocation2] sm:$0xff]  ;;  %v2167_v15 = vmul.f32 %v9972_v13, %v2139_v4  ;;  %v9973_v46 = vld [vmem:[#allocation88_spill] sm:$0xff] }
  0xc7   : > { %9959 = vst [vmem:[#allocation96_spill] sm:$0xff] %v5528_v23  ;;  %9964 = vst [vmem:[#allocation97_spill] sm:$0xff] %v5537_v22  ;;  %v5543_v56 = vsel %vm572_vm1, %v9963_v3, %v9966_v1  ;;  %v5552_v23 = vmul.f32 %v5548_v57, %v9970_v8  ;;  %v5557_v22 = vmul.f32 %v9970_v8, %v9973_v46  ;;  %v9975_v19 = vld [vmem:[#allocation89_spill] sm:$0xff]  ;;  %v9983_v13 = vld [vmem:[#allocation102_spill] sm:$0xff] }
  0xc8   : > { %9967 = vst [vmem:[#allocation99_spill] sm:$0xff] %v5543_v56  ;;  %9968 = vst [vmem:[#allocation98_spill] sm:$0xff] %v5546_v40  ;;  %v5561_v29 = vmul.f32 %v9970_v8, %v9975_v19  ;;  %v5564_v1 = vmul.f32 %v4580_v18, %v2952_v59  ;;  %v9978_v14 = vld [vmem:[#allocation65_spill] sm:$0xff]  ;;  %v9984_v35 = vrot.slane %v9983_v13, 1  ;;  %v9986_v19 = vrot.slane %v9895_v21, 2  ;;  %v9992_v13 = vld [vmem:[#allocation108_spill] sm:$0xff] }
  0xc9   : > { %9969 = vst [vmem:[#allocation100_spill] sm:$0xff] %v5548_v57  ;;  %9971 = vst [vmem:[#allocation129_spill] sm:$0xff] %v5552_v23  ;;  %v5567_v56 = vmul.f32 %v9978_v14, %v2139_v4  ;;  %v5573_v57 = vsel %vm461_vm0, %v9955_v28, %v9981_v30  ;;  %v9988_v59 = vrot.slane %v9896_v16, 2  ;;  %v9990_v30 = vld [vmem:[#allocation109_spill] sm:$0xff]  ;;  %v9993_v47 = vrot.slane %v9992_v13, 3  ;;  %v10094_v61 = vld [vmem:[#allocation16_spill] sm:$0xff] }
  0xca   : > { %9974 = vst [vmem:[#allocation64_spill] sm:$0xff] %v5557_v22  ;;  %9976 = vst [vmem:[#allocation88_spill] sm:$0xff] %v5561_v29  ;;  %v5579_v46 = vsel %vm461_vm0, %v9955_v28, %v9984_v35  ;;  %v5585_v18 = vsel %vm572_vm1, %v9963_v3, %v9986_v19  ;;  %v9995_v28 = vld [vmem:[#allocation110_spill] sm:$0xff]  ;;  %v5620_v13 = vmul.f32 %v9970_v8, %v2139_v4  ;;  %v10022_v22 = vld [vmem:[#allocation140_spill] sm:$0xff] }
  0xcb   : > { %9977 = vst [vmem:[#allocation89_spill] sm:$0xff] %v5564_v1  ;;  %9979 = vst [vmem:[#allocation65_spill] sm:$0xff] %v5567_v56  ;;  %v5591_v53 = vsel %vm572_vm1, %v9963_v3, %v9988_v59  ;;  %v9996_v35 = vrot.slane %v9995_v28, 3  ;;  %v9997_v21 = vmov %v9993_v47  ;;  %v10001_v3 = vld [vmem:[#allocation94_spill] sm:$0xff]  ;;  %v10007_v28 = vld [vmem:[#allocation49_spill] sm:$0xff]  ;;  %v5690_v36 = vadd.f32 %v3385_v33, %v5403_v39 }
  0xcc   : > { %9982 = vst [vmem:[#allocation101_spill] sm:$0xff] %v5573_v57  ;;  %9985 = vst [vmem:[#allocation102_spill] sm:$0xff] %v5579_v46  ;;  %v9991_v57 = vrot.slane %v9990_v30, 3  ;;  %v5613_v59 = vmul.f32 %v9970_v8, %v10001_v3  ;;  %v10003_v30 = vld [vmem:[#allocation114_spill] sm:$0xff]  ;;  %v5628_v3 = vmul.f32 %v4775_v54, %v2139_v4  ;;  %v5638_v46 = vmul.f32 %v4712_v5, %v2139_v4  ;;  %v10033_v33 = vld [vmem:[#allocation75_spill] sm:$0xff] }
  0xcd   : > { %9987 = vst [vmem:[#allocation144_spill] sm:$0xff] %v5585_v18  ;;  %9989 = vst [vmem:[#allocation145_spill] sm:$0xff] %v5591_v53  ;;  %v5605_v19 = vsel %vm683_vm2, %v9997_v21, %v9996_v35  ;;  %v9999_v18 = vld [vmem:[#allocation92_spill] sm:$0xff]  ;;  %v2169_v53 = vadd.f32 %v2167_v15, %v10003_v30  ;;  %v2573_v35 = vmul.f32 %v10007_v28, %v2139_v4  ;;  %v5634_v30 = vld [vmem:[%s4538_s20 + $0xe] ss:$0 sm:$0xff]  ;;  %v10032_v39 = vrot.slane %v5209_v10, 2 }
  0xce   : > { %v5598_v7 = vsel %vm683_vm2, %v9993_v47, %v9991_v57  ;;  %9998 = vst [vmem:[#allocation108_spill] sm:$0xff] %v5605_v19  ;;  %v5609_v16 = vmul.f32 %v9970_v8, %v9999_v18  ;;  %10002 = vst [vmem:[#allocation92_spill] sm:$0xff] %v5613_v59  ;;  %v10004_v47 = vld [vmem:[#allocation66_spill] sm:$0xff]  ;;  %v5625_v21 = vmul.f32 %v4772_v41, %v2139_v4  ;;  %v10048_v10 = vld [vmem:[#allocation81_spill] sm:$0xff] }
  0xcf   : > { %9994 = vst [vmem:[#allocation109_spill] sm:$0xff] %v5598_v7  ;;  %v5617_v57 = vmul.f32 %v10004_v47, %v2139_v4  ;;  %10006 = vst [vmem:[#allocation114_spill] sm:$0xff] %v5620_v13  ;;  %v5631_v15 = vmul.f32 %v4911_v48, %v2139_v4  ;;  %v10012_v7 = vld [vmem:[#allocation36_spill] sm:$0xff]  ;;  %v5641_v28 = vmul.f32 %v4715_v17, %v2139_v4  ;;  %v5671_v40 = vld [vmem:[%s4538_s20 + $0x8] ss:$0 sm:$0xff] }
  0xd0   : > { %10000 = vst [vmem:[#allocation110_spill] sm:$0xff] %v5609_v16  ;;  %10008 = vst [vmem:[#allocation66_spill] sm:$0xff] %v5625_v21  ;;  %v2979_v19 = vmul.f32 %v10012_v7, %v2139_v4  ;;  %v5644_v18 = vmul.f32 %v4718_v20, %v2139_v4  ;;  %v5647_v56 = vmul.f32 %v5634_v30, %v2139_v4  ;;  %v5660_v16 = vld [vmem:[%s4538_s20 + $0x7] ss:$0 sm:$0xff]  ;;  %v1730_v13 = vld [vmem:[#allocation2 + $0x78] sm:$0xf] }
  0xd1   : > { %10005 = vst [vmem:[#allocation94_spill] sm:$0xff] %v5617_v57  ;;  %10009 = vst [vmem:[#allocation49_spill] sm:$0xff] %v5628_v3  ;;  %v5657_v59 = vmul.f32 %v5654_v62, %v2139_v4  ;;  %v5663_v7 = vmul.f32 %v5660_v16, %v2139_v4  ;;  %v5668_v23 = vadd.f32 %v2573_v35, %v10022_v22  ;;  %v10030_v35 = vld [vmem:[#allocation71_spill] sm:$0xff]  ;;  %v10070_v32 = vld [vmem:[#allocation153_spill] sm:$0xff] }
  0xd2   : > { %10010 = vst [vmem:[#allocation146_spill] sm:$0xff] %v5631_v15  ;;  %10011 = vst [vmem:[#allocation147_spill] sm:$0xff] %v5634_v30  ;;  %v5674_v2 = vmul.f32 %v5671_v40, %v2139_v4  ;;  %v5683_v1 = vadd.f32 %v2979_v19, %v5397_v52  ;;  %v5697_v52 = vadd.f32 %v5423_v34, %v5413_v6  ;;  %v10029_v19 = vrot.slane %v5198_v0, 1  ;;  %v10037_v6 = vld [vmem:[#allocation77_spill] sm:$0xff]  ;;  %v10069_v15 = vld [vmem:[#allocation60_spill] sm:$0xff] }
  0xd3   : > { %10013 = vst [vmem:[#allocation148_spill] sm:$0xff] %v5638_v46  ;;  %10014 = vst [vmem:[#allocation149_spill] sm:$0xff] %v5641_v28  ;;  %v10031_v29 = vrot.slane %v10030_v35, 1  ;;  %v5716_v34 = vadd.f32 %v5443_v25, %v5436_v31  ;;  %v10036_v0 = vrot.slane %v5224_v58, 1  ;;  %v10038_v35 = vrot.slane %v10037_v6, 1  ;;  %v346_v21 = vld [vmem:[%s4530_s25 + $0x70] sm:$0xff] }
  0xd4   : > { %10015 = vst [vmem:[#allocation150_spill] sm:$0xff] %v5644_v18  ;;  %10016 = vst [vmem:[#allocation151_spill] sm:$0xff] %v5647_v56  ;;  %v5738_v58 = vmul.f32 %v10004_v47, %v1730_v13  ;;  %v2546_v31 = vld [vmem:[#allocation2 + $0x78] sm:$0xf]  ;;  %v5742_v6 = vmul.f32 %v9970_v8, %v1730_v13  ;;  %v5853_v18 = vld [vmem:[%s4538_s20 + $0x1] ss:$0 sm:$0xff] }
  0xd5   : > { %10019 = vst [vmem:[#allocation154_spill] sm:$0xff] %v5657_v59  ;;  %10020 = vst [vmem:[#allocation155_spill] sm:$0xff] %v5660_v16  ;;  %v5680_v16 = vmul.f32 %v9830_v49, %v2139_v4  ;;  %v5704_v22 = vsel %vm461_vm0, %v10031_v29, %v10029_v19  ;;  %v2138_v49 = vld [vmem:[#allocation2 + $0x78] sm:$0xf]  ;;  %v5723_v29 = vsel %vm461_vm0, %v10038_v35, %v10036_v0  ;;  %v10047_v0 = vrot.slane %v5255_v60, 2 }
  0xd6   : > { %10021 = vst [vmem:[#allocation156_spill] sm:$0xff] %v5663_v7  ;;  %10023 = vst [vmem:[#allocation140_spill] sm:$0xff] %v5668_v23  ;;  %v10034_v23 = vrot.slane %v10033_v33, 2  ;;  %v5727_v19 = vmul.f32 %v9978_v14, %v1730_v13  ;;  %v5745_v35 = vadd.f32 %v5469_v11, %v2169_v53  ;;  %v5756_v25 = vmul.f32 %v4772_v41, %v2138_v49  ;;  %v10052_v53 = vld [vmem:[#allocation82_spill] sm:$0xff]  ;;  %v5870_v57 = vld [vmem:[%s4538_s20 + $0x3] ss:$0 sm:$0xff] }
  0xd7   : > { %10024 = vst [vmem:[#allocation157_spill] sm:$0xff] %v5671_v40  ;;  %10025 = vst [vmem:[#allocation158_spill] sm:$0xff] %v5674_v2  ;;  %v10049_v13 = vrot.slane %v10048_v10, 2  ;;  %v5778_v60 = vmul.f32 %v4911_v48, %v2138_v49  ;;  %v2954_v10 = vld [vmem:[#allocation2 + $0x78] sm:$0xf] }
  0xd8   : > { %10026 = vst [vmem:[#allocation159_spill] sm:$0xff] %v5680_v16  ;;  %10027 = vst [vmem:[#allocation160_spill] sm:$0xff] %v5683_v1  ;;  %v5711_v44 = vsel %vm572_vm1, %v10034_v23, %v10032_v39  ;;  %v10039_v23 = vrot.slane %v5235_v55, 2  ;;  %v10040_v39 = vld [vmem:[#allocation78_spill] sm:$0xff]  ;;  %v10044_v55 = vrot.slane %v5251_v45, 1  ;;  %v5767_v45 = vmul.f32 %v4775_v54, %v2138_v49 }
  0xd9   : > { %10028 = vst [vmem:[#allocation161_spill] sm:$0xff] %v5690_v36  ;;  %10035 = vst [vmem:[#allocation71_spill] sm:$0xff] %v5711_v44  ;;  %v10041_v33 = vrot.slane %v10040_v39, 2  ;;  %v10045_v39 = vld [vmem:[#allocation80_spill] sm:$0xff]  ;;  %v5763_v16 = vsel %vm572_vm1, %v10049_v13, %v10047_v0  ;;  %v10056_v0 = vrot.slane %v5266_v24, 1  ;;  %v10057_v13 = vld [vmem:[#allocation83_spill] sm:$0xff]  ;;  %v5800_v24 = vmul.f32 %v4715_v17, %v2546_v31 }
  0xda   : > { %10043 = vst [vmem:[#allocation77_spill] sm:$0xff] %v5742_v6  ;;  %v10046_v62 = vrot.slane %v10045_v39, 1  ;;  %10050 = vst [vmem:[#allocation78_spill] sm:$0xff] %v5763_v16  ;;  %v10058_v11 = vrot.slane %v10057_v13, 1  ;;  %v5847_v59 = vld [vmem:[%s4538_s20 + $0x9] ss:$0 sm:$0xff] }
  0xdb   : > { %v5734_v4 = vsel %vm572_vm1, %v10041_v33, %v10039_v23  ;;  %10055 = vst [vmem:[#allocation81_spill] sm:$0xff] %v5778_v60  ;;  %v5817_v33 = vmul.f32 %v5634_v30, %v2546_v31  ;;  %10081 = vst [vmem:[#allocation163_spill] sm:$0xff] %v5847_v59  ;;  %v915_v3 = vld [vmem:[#allocation2 + $0xe8] sm:$0xf]  ;;  %v10163_v6 = vld [vmem:[#allocation147_spill] sm:$0xff] }
  0xdc   : > { %10042 = vst [vmem:[#allocation75_spill] sm:$0xff] %v5734_v4  ;;  %v5752_v23 = vsel %vm461_vm0, %v10046_v62, %v10044_v55  ;;  %v10051_v62 = vrot.slane %v5259_v38, 3  ;;  %v10053_v55 = vrot.slane %v10052_v53, 3  ;;  %v5785_v54 = vsel %vm461_vm0, %v10058_v11, %v10056_v0  ;;  %v10065_v0 = vld [vmem:[#allocation85_spill] sm:$0xff]  ;;  %v10072_v56 = vld [vmem:[#allocation155_spill] sm:$0xff]  ;;  %10083 = vst [vmem:[#allocation165_spill] sm:$0xff] %v5853_v18 }
  0xdd   : > { %10059 = vst [vmem:[#allocation82_spill] sm:$0xff] %v5785_v54  ;;  %v5789_v53 = vmul.f32 %v4712_v5, %v2546_v31  ;;  %v10064_v11 = vrot.slane %v9949_v27, 3  ;;  %v10066_v13 = vrot.slane %v10065_v0, 3  ;;  %10068 = vst [vmem:[#allocation85_spill] sm:$0xff] %v5817_v33  ;;  %v5821_v0 = vmul.f32 %v10070_v32, %v2954_v10  ;;  %v5861_v4 = vld [vmem:[%s4538_s20 + $0x2] ss:$0 sm:$0xff] }
  0xde   : > { %v5774_v39 = vsel %vm683_vm2, %v10053_v55, %v10051_v62  ;;  %v10060_v62 = vrot.slane %v5269_v42, 2  ;;  %v10061_v55 = vld [vmem:[#allocation84_spill] sm:$0xff]  ;;  %v5810_v42 = vld [vmem:[#allocation2 + $0xe0] sm:$0xff]  ;;  %10088 = vst [vmem:[#allocation168_spill] sm:$0xff] %v5870_v57  ;;  %362 = vst [vmem:[#allocation2 + $0x142] sm:$0xff] %v346_v21 }
  0xdf   : > { %10054 = vst [vmem:[#allocation80_spill] sm:$0xff] %v5774_v39  ;;  %v10062_v41 = vrot.slane %v10061_v55, 2  ;;  %v5807_v38 = vsel %vm683_vm2, %v10066_v13, %v10064_v11  ;;  %v404_v55 = vld [vmem:[#allocation2 + $0xe8] sm:$0xf]  ;;  %v5825_v39 = vmul.f32 %v10072_v56, %v2954_v10  ;;  %v500_v27 = vmul.f32 %v4712_v5, %v5810_v42 }
  0xe0   : > { %10067 = vst [vmem:[#allocation84_spill] sm:$0xff] %v5807_v38  ;;  %v3362_v38 = vld [vmem:[#allocation2 + $0x78] sm:$0xf]  ;;  %v611_v13 = vmul.f32 %v4715_v17, %v5810_v42  ;;  %v612_v54 = vmul.f32 %v4715_v17, %v404_v55  ;;  %v722_v44 = vmul.f32 %v4718_v20, %v5810_v42  ;;  %v723_v36 = vmul.f32 %v4718_v20, %v404_v55 }
  0xe1   : > { %v5796_v49 = vsel %vm572_vm1, %v10062_v41, %v10060_v62  ;;  %v5813_v41 = vmul.f32 %v4718_v20, %v2546_v31  ;;  %10073 = vst [vmem:[#allocation60_spill] sm:$0xff] %v5825_v39  ;;  %v5829_v62 = vmul.f32 %v5671_v40, %v2954_v10  ;;  %v10076_v31 = vld [vmem:[#allocation129_spill] sm:$0xff]  ;;  %v5856_v17 = vmul.f32 %v5853_v18, %v3362_v38  ;;  %v10085_v20 = vld [vmem:[#allocation36_spill] sm:$0xff] }
  0xe2   : > { %10063 = vst [vmem:[#allocation83_spill] sm:$0xff] %v5796_v49  ;;  %v5832_v12 = vrot.slane %v10076_v31, 3  ;;  %v501_v49 = vmul.f32 %v4712_v5, %v404_v55  ;;  %v5850_v5 = vmul.f32 %v5847_v59, %v2954_v10  ;;  %v430_v28 = vmul.f32 %v10085_v20, %v5810_v42  ;;  %10086 = vst [vmem:[#allocation36_spill] sm:$0xff] %v5861_v4 }
  0xe3   : > { %10075 = vst [vmem:[#allocation162_spill] sm:$0xff] %v5829_v62  ;;  %10084 = vst [vmem:[#allocation166_spill] sm:$0xff] %v5856_v17  ;;  %v509_v16 = vrot.slane %v500_v27, 1  ;;  %v5864_v7 = vmul.f32 %v5861_v4, %v3362_v38  ;;  %v620_v2 = vrot.slane %v611_v13, 2  ;;  %v621_v46 = vrot.slane %v612_v54, 2 }
  0xe4   : > { %10077 = vst [vmem:[#allocation129_spill] sm:$0xff] %v5832_v12  ;;  %10082 = vst [vmem:[#allocation164_spill] sm:$0xff] %v5850_v5  ;;  %v510_v1 = vrot.slane %v501_v49, 1  ;;  %v833_v10 = vmul.f32 %v5634_v30, %v5810_v42  ;;  %v5873_v17 = vmul.f32 %v5870_v57, %v3362_v38  ;;  %v731_v49 = vrot.slane %v722_v44, 3  ;;  %v1322_v12 = vld [vmem:[#allocation2 + $0xe8] sm:$0xf] }
  0xe5   : > { %10087 = vst [vmem:[#allocation167_spill] sm:$0xff] %v5864_v7  ;;  %v732_v5 = vrot.slane %v723_v36, 3  ;;  %v5878_v7 = vld [vmem:[%s4538_s20 + $0x4] ss:$0 sm:$0xff]  ;;  %v834_v13 = vmul.f32 %v5634_v30, %v404_v55  ;;  %v962_v62 = vmul.f32 %v10070_v32, %v5810_v42  ;;  %v5887_v39 = vadd.f32 %v430_v28, %v10094_v61  ;;  %v10098_v55 = vld [vmem:[#allocation152_spill] sm:$0xff] }
  0xe6   : > { %10089 = vst [vmem:[#allocation169_spill] sm:$0xff] %v5873_v17  ;;  %10092 = vst [vmem:[#allocation170_spill] sm:$0xff] %v5878_v7  ;;  %v5881_v54 = vmul.f32 %v5878_v7, %v3362_v38  ;;  %v5890_v20 = vsel %vm461_vm0, %v509_v16, %v510_v1  ;;  %v963_v36 = vmul.f32 %v10070_v32, %v915_v3  ;;  %v842_v38 = vrot.slane %v833_v10, 4 }
  0xe7   : > { %10095 = vst [vmem:[#allocation16_spill] sm:$0xff] %v5887_v39  ;;  %10096 = vst [vmem:[#allocation172_spill] sm:$0xff] %v5890_v20  ;;  %v1052_v44 = vmul.f32 %v10072_v56, %v5810_v42  ;;  %v5896_v21 = vsel %vm572_vm1, %v620_v2, %v621_v46  ;;  %v927_v31 = vmul.f32 %v10098_v55, %v5810_v42  ;;  %v843_v2 = vrot.slane %v834_v13, 4 }
  0xe8   : > { %10093 = vst [vmem:[#allocation171_spill] sm:$0xff] %v5881_v54  ;;  %10097 = vst [vmem:[#allocation173_spill] sm:$0xff] %v5896_v21  ;;  %v1053_v54 = vmul.f32 %v10072_v56, %v915_v3  ;;  %v5902_v61 = vsel %vm683_vm2, %v731_v49, %v732_v5  ;;  %v1142_v1 = vmul.f32 %v5671_v40, %v5810_v42  ;;  %v971_v46 = vrot.slane %v962_v62, 1 }
  0xe9   : > { %10099 = vst [vmem:[#allocation174_spill] sm:$0xff] %v5902_v61  ;;  %v1143_v16 = vmul.f32 %v5671_v40, %v915_v3  ;;  %v1232_v28 = vmul.f32 %v5847_v59, %v5810_v42  ;;  %v1233_v10 = vmul.f32 %v5847_v59, %v915_v3  ;;  %v1353_v21 = vmul.f32 %v5853_v18, %v5810_v42 }
  0xea   : > { %v972_v20 = vrot.slane %v963_v36, 1  ;;  %v1061_v55 = vrot.slane %v1052_v44, 2  ;;  %v1354_v5 = vmul.f32 %v5853_v18, %v1322_v12  ;;  %v1443_v49 = vmul.f32 %v5861_v4, %v5810_v42 }
  0xeb   : > { %v1062_v61 = vrot.slane %v1053_v54, 2  ;;  %v1444_v39 = vmul.f32 %v5861_v4, %v1322_v12  ;;  %v1533_v27 = vmul.f32 %v5870_v57, %v5810_v42  ;;  %v1534_v62 = vmul.f32 %v5870_v57, %v1322_v12  ;;  %v10101_v57 = vld [vmem:[#allocation14_spill] sm:$0xff]  ;;  %v10160_v33 = vld [vmem:[#allocation129_spill] sm:$0xff] }
  0xec   : > { %v1151_v13 = vrot.slane %v1142_v1, 3  ;;  %v1152_v3 = vrot.slane %v1143_v16, 3  ;;  %v1241_v59 = vrot.slane %v1232_v28, 4  ;;  %v1623_v36 = vmul.f32 %v5878_v7, %v5810_v42 }
  0xed   : > { %v1242_v44 = vrot.slane %v1233_v10, 4  ;;  %v1362_v18 = vrot.slane %v1353_v21, 1  ;;  %v1363_v40 = vrot.slane %v1354_v5, 1  ;;  %v1624_v17 = vmul.f32 %v5878_v7, %v1322_v12  ;;  %v10119_v5 = vld [vmem:[#allocation113_spill] sm:$0xff] }
  0xee   : > { %v1452_v54 = vrot.slane %v1443_v49, 2  ;;  %v1453_v56 = vrot.slane %v1444_v39, 2  ;;  %v1542_v4 = vrot.slane %v1533_v27, 3  ;;  %v1543_v32 = vrot.slane %v1534_v62, 3  ;;  %v5938_v39 = vld [vmem:[%s4538_s20] ss:$0 sm:$0xff] }
  0xef   : > { %v5923_v30 = vsel %vm794_vm3, %v842_v38, %v843_v2  ;;  %v5926_v1 = vadd.f32 %v927_v31, %v10101_v57  ;;  %v1632_v16 = vrot.slane %v1623_v36, 4  ;;  %v1633_v28 = vrot.slane %v1624_v17, 4  ;;  %v2140_v38 = vld [vmem:[#allocation2 + $0x88] sm:$0xf]  ;;  %v10122_v36 = vld [vmem:[#allocation115_spill] sm:$0xff] }
  0xf0   : > { %10100 = vst [vmem:[#allocation175_spill] sm:$0xff] %v5923_v30  ;;  %v5929_v11 = vsel %vm461_vm0, %v971_v46, %v972_v20  ;;  %v5932_v21 = vsel %vm572_vm1, %v1061_v55, %v1062_v61  ;;  %v5935_v12 = vsel %vm683_vm2, %v1151_v13, %v1152_v3  ;;  %v5942_v27 = vmul.f32 %v5938_v39, %v5810_v42  ;;  %v10111_v61 = vld [vmem:[#allocation105_spill] sm:$0xff] }
  0xf1   : > { %10102 = vst [vmem:[#allocation14_spill] sm:$0xff] %v5929_v11  ;;  %10103 = vst [vmem:[#allocation176_spill] sm:$0xff] %v5932_v21  ;;  %v5945_v57 = vsel %vm794_vm3, %v1241_v59, %v1242_v44  ;;  %v5948_v31 = vsel %vm461_vm0, %v1362_v18, %v1363_v40  ;;  %v5952_v17 = vadd.f32 %v5704_v22, %v5697_v52  ;;  %v10110_v59 = vrot.slane %v5447_v51, 1  ;;  %v2548_v22 = vld [vmem:[#allocation2 + $0x88] sm:$0xf]  ;;  %v10179_v21 = vld [vmem:[#allocation92_spill] sm:$0xff] }
  0xf2   : > { %10104 = vst [vmem:[#allocation177_spill] sm:$0xff] %v5935_v12  ;;  %10105 = vst [vmem:[#allocation178_spill] sm:$0xff] %v5945_v57  ;;  %v5956_v20 = vadd.f32 %v5723_v29, %v5716_v34  ;;  %v5959_v55 = vsel %vm572_vm1, %v1452_v54, %v1453_v56  ;;  %v5962_v42 = vsel %vm683_vm2, %v1542_v4, %v1543_v32  ;;  %v10112_v2 = vrot.slane %v10111_v61, 1  ;;  %v10115_v56 = vld [vmem:[#allocation111_spill] sm:$0xff]  ;;  %v6063_v4 = vld [vmem:[%s4538_s20 + $0xb] ss:$0 sm:$0xff] }
  0xf3   : > { %10106 = vst [vmem:[#allocation179_spill] sm:$0xff] %v5948_v31  ;;  %10107 = vst [vmem:[#allocation180_spill] sm:$0xff] %v5952_v17  ;;  %v5973_v52 = vsel %vm794_vm3, %v1632_v16, %v1633_v28  ;;  %v10114_v34 = vrot.slane %v5458_v63, 2  ;;  %v10116_v29 = vrot.slane %v10115_v56, 2  ;;  %v5986_v46 = vadd.f32 %v5752_v23, %v5745_v35  ;;  %v2956_v16 = vld [vmem:[#allocation2 + $0x88] sm:$0xf] }
  0xf4   : > { %10108 = vst [vmem:[#allocation181_spill] sm:$0xff] %v5959_v55  ;;  %10109 = vst [vmem:[#allocation182_spill] sm:$0xff] %v5962_v42  ;;  %v5969_v40 = vsel %vm461_vm0, %v10112_v2, %v10110_v59  ;;  %v10118_v10 = vrot.slane %v5473_v9, 1  ;;  %v10120_v49 = vrot.slane %v10119_v5, 1  ;;  %v5997_v13 = vmul.f32 %v9978_v14, %v2140_v38  ;;  %v10127_v59 = vld [vmem:[#allocation117_spill] sm:$0xff]  ;;  %v10153_v9 = vld [vmem:[#allocation122_spill] sm:$0xff] }
  0xf5   : > { %10113 = vst [vmem:[#allocation105_spill] sm:$0xff] %v5973_v52  ;;  %v5980_v32 = vsel %vm572_vm1, %v10116_v29, %v10114_v34  ;;  %v10121_v3 = vrot.slane %v5484_v37, 2  ;;  %v10123_v44 = vrot.slane %v10122_v36, 2  ;;  %v6008_v23 = vmul.f32 %v10004_v47, %v2140_v38  ;;  %v6023_v34 = vld [vmem:[%s4538_s20 + $0x10] ss:$0 sm:$0xff]  ;;  %v10132_v29 = vld [vmem:[#allocation118_spill] sm:$0xff] }
  0xf6   : > { %10117 = vst [vmem:[#allocation111_spill] sm:$0xff] %v5980_v32  ;;  %v5993_v63 = vsel %vm461_vm0, %v10120_v49, %v10118_v10  ;;  %v6012_v28 = vmul.f32 %v9970_v8, %v2140_v38  ;;  %v10126_v14 = vrot.slane %v5500_v50, 1  ;;  %v10128_v37 = vrot.slane %v10127_v59, 1  ;;  %10130 = vst [vmem:[#allocation183_spill] sm:$0xff] %v6023_v34  ;;  %v6037_v5 = vld [vmem:[%s4538_s20 + $0x11] ss:$0 sm:$0xff] }
  0xf7   : > { %v6004_v35 = vsel %vm572_vm1, %v10123_v44, %v10121_v3  ;;  %v6026_v47 = vmul.f32 %v6023_v34, %v2548_v22  ;;  %v10131_v56 = vrot.slane %v5504_v43, 2  ;;  %v10133_v38 = vrot.slane %v10132_v29, 2  ;;  %v10136_v36 = vld [vmem:[#allocation119_spill] sm:$0xff]  ;;  %v10141_v29 = vld [vmem:[#allocation120_spill] sm:$0xff]  ;;  %10144 = vst [vmem:[#allocation185_spill] sm:$0xff] %v6063_v4  ;;  %v10151_v10 = vld [vmem:[#allocation98_spill] sm:$0xff] }
  0xf8   : > { %10124 = vst [vmem:[#allocation113_spill] sm:$0xff] %v6004_v35  ;;  %10125 = vst [vmem:[#allocation115_spill] sm:$0xff] %v6012_v28  ;;  %v6019_v61 = vsel %vm461_vm0, %v10128_v37, %v10126_v14  ;;  %v6040_v49 = vmul.f32 %v6037_v5, %v2548_v22  ;;  %v10135_v3 = vrot.slane %v5509_v26, 3  ;;  %v10137_v44 = vrot.slane %v10136_v36, 3  ;;  %v3364_v26 = vld [vmem:[#allocation2 + $0x88] sm:$0xf] }
  0xf9   : > { %10129 = vst [vmem:[#allocation117_spill] sm:$0xff] %v6019_v61  ;;  %v6033_v50 = vsel %vm572_vm1, %v10133_v38, %v10131_v56  ;;  %v6051_v59 = vmul.f32 %v4911_v48, %v2548_v22  ;;  %v10140_v56 = vrot.slane %v10069_v15, 1  ;;  %v10142_v38 = vrot.slane %v10141_v29, 1  ;;  %v10145_v22 = vld [vmem:[#allocation126_spill] sm:$0xff]  ;;  %v10147_v14 = vld [vmem:[#allocation121_spill] sm:$0xff]  ;;  %v10150_v29 = vld [vmem:[#allocation60_spill] sm:$0xff] }
  0xfa   : > { %10134 = vst [vmem:[#allocation118_spill] sm:$0xff] %v6033_v50  ;;  %v6047_v43 = vsel %vm683_vm2, %v10137_v44, %v10135_v3  ;;  %v6066_v3 = vmul.f32 %v6063_v4, %v2956_v16  ;;  %v10146_v44 = vrot.slane %v10145_v22, 2  ;;  %v10148_v37 = vrot.slane %v10147_v14, 2  ;;  %v10156_v22 = vld [vmem:[#allocation162_spill] sm:$0xff]  ;;  %v405_v17 = vld [vmem:[#allocation2 + $0xf0] sm:$0xff]  ;;  %v10166_v14 = vld [vmem:[#allocation153_spill] sm:$0xff] }
  0xfb   : > { %10138 = vst [vmem:[#allocation119_spill] sm:$0xff] %v6047_v43  ;;  %10139 = vst [vmem:[#allocation184_spill] sm:$0xff] %v6051_v59  ;;  %v6059_v54 = vsel %vm461_vm0, %v10142_v38, %v10140_v56  ;;  %v6077_v38 = vld [vmem:[%s4538_s20 + $0xc] ss:$0 sm:$0xff]  ;;  %v10152_v2 = vrot.slane %v10151_v10, 3  ;;  %v10154_v62 = vrot.slane %v10153_v9, 3  ;;  %v6104_v9 = vmul.f32 %v10163_v6, %v2956_v16 }
  0xfc   : > { %10143 = vst [vmem:[#allocation120_spill] sm:$0xff] %v6059_v54  ;;  %v6073_v15 = vsel %vm572_vm1, %v10148_v37, %v10146_v44  ;;  %v6080_v36 = vmul.f32 %v6077_v38, %v2956_v16  ;;  %v6091_v18 = vld [vmem:[%s4538_s20 + $0xd] ss:$0 sm:$0xff]  ;;  %v10158_v44 = vld [vmem:[#allocation88_spill] sm:$0xff]  ;;  %v6114_v50 = vld [vmem:[%s4538_s20 + $0xf] ss:$0 sm:$0xff]  ;;  %v6121_v10 = vmul.f32 %v6037_v5, %v405_v17  ;;  %v6129_v52 = vmul.f32 %v4911_v48, %v405_v17 }
  0xfd   : > { %10149 = vst [vmem:[#allocation126_spill] sm:$0xff] %v6073_v15  ;;  %v6087_v51 = vsel %vm683_vm2, %v10154_v62, %v10152_v2  ;;  %10157 = vst [vmem:[#allocation60_spill] sm:$0xff] %v6091_v18  ;;  %v6094_v37 = vmul.f32 %v6091_v18, %v2956_v16  ;;  %v10159_v56 = vrot.slane %v10158_v44, 3  ;;  %v10165_v62 = vld [vmem:[#allocation166_spill] sm:$0xff]  ;;  %v6111_v15 = vld [vmem:[%s4538_s20 + $0x13] ss:$0 sm:$0xff]  ;;  %v438_v44 = vmul.f32 %v6114_v50, %v405_v17 }
  0xfe   : > { %10155 = vst [vmem:[#allocation121_spill] sm:$0xff] %v6087_v51  ;;  %10164 = vst [vmem:[#allocation122_spill] sm:$0xff] %v6104_v9  ;;  %v6108_v51 = vmul.f32 %v10166_v14, %v3364_v26  ;;  %v10170_v16 = vld [vmem:[#allocation167_spill] sm:$0xff]  ;;  %v10172_v54 = vld [vmem:[#allocation169_spill] sm:$0xff]  ;;  %v10180_v35 = vrot.slane %v10179_v21, 3  ;;  %v6151_v11 = vmul.f32 %v6111_v15, %v405_v17  ;;  %v6221_v32 = vadd.f32 %v5969_v40, %v5956_v20 }
  0xff   : > { %v6100_v43 = vsel %vm683_vm2, %v10160_v33, %v10159_v56  ;;  %10167 = vst [vmem:[#allocation162_spill] sm:$0xff] %v6114_v50  ;;  %v6118_v56 = vmul.f32 %v6023_v34, %v405_v17  ;;  %10169 = vst [vmem:[#allocation166_spill] sm:$0xff] %v6121_v10  ;;  %v10171_v2 = vld [vmem:[#allocation155_spill] sm:$0xff]  ;;  %v10174_v57 = vld [vmem:[#allocation157_spill] sm:$0xff]  ;;  %v6212_v10 = vmul.f32 %v5938_v39, %v405_v17  ;;  %v10211_v40 = vrot.slane %v5756_v25, 1 }
 0x100   : > { %10161 = vst [vmem:[#allocation98_spill] sm:$0xff] %v6100_v43  ;;  %v6125_v43 = vmul.f32 %v10171_v2, %v3364_v26  ;;  %10173 = vst [vmem:[#allocation167_spill] sm:$0xff] %v6129_v52  ;;  %v6132_v30 = vmul.f32 %v10174_v57, %v3364_v26  ;;  %v10176_v42 = vld [vmem:[#allocation110_spill] sm:$0xff]  ;;  %v6144_v60 = vsel %vm683_vm2, %v10160_v33, %v10180_v35  ;;  %v10183_v31 = vld [vmem:[#allocation163_spill] sm:$0xff]  ;;  %v10218_v25 = vrot.slane %v5789_v53, 1 }
 0x101   : > { %10168 = vst [vmem:[#allocation88_spill] sm:$0xff] %v6118_v56  ;;  %v10177_v12 = vrot.slane %v10176_v42, 3  ;;  %10181 = vst [vmem:[#allocation92_spill] sm:$0xff] %v6144_v60  ;;  %v6148_v48 = vmul.f32 %v10183_v31, %v3364_v26  ;;  %v10188_v21 = vld [vmem:[#allocation16_spill] sm:$0xff]  ;;  %v6166_v26 = vmul.f32 %v6077_v38, %v405_v17  ;;  %v6173_v60 = vmul.f32 %v10163_v6, %v405_v17  ;;  %v10197_v56 = vld [vmem:[#allocation165_spill] sm:$0xff] }
 0x102   : > { %10175 = vst [vmem:[#allocation169_spill] sm:$0xff] %v6132_v30  ;;  %10185 = vst [vmem:[#allocation187_spill] sm:$0xff] %v6151_v11  ;;  %v6154_v30 = vld [vmem:[%s4538_s20 + $0xa] ss:$0 sm:$0xff]  ;;  %v6183_v61 = vmul.f32 %v10174_v57, %v405_v17  ;;  %v6186_v35 = vmul.f32 %v10183_v31, %v405_v17  ;;  %v10201_v57 = vld [vmem:[#allocation168_spill] sm:$0xff]  ;;  %v6204_v31 = vmul.f32 %v5878_v7, %v405_v17  ;;  %v10256_v9 = vrot.slane %v10172_v54, 3 }
 0x103   : > { %v6138_v55 = vsel %vm683_vm2, %v10160_v33, %v10177_v12  ;;  %10184 = vst [vmem:[#allocation186_spill] sm:$0xff] %v6148_v48  ;;  %10186 = vst [vmem:[#allocation188_spill] sm:$0xff] %v6154_v30  ;;  %v931_v42 = vmul.f32 %v6154_v30, %v405_v17  ;;  %v6158_v12 = vmul.f32 %v6063_v4, %v405_v17  ;;  %v10192_v4 = vld [vmem:[#allocation152_spill] sm:$0xff]  ;;  %v10227_v53 = vld [vmem:[#allocation135_spill] sm:$0xff] }
 0x104   : > { %10178 = vst [vmem:[#allocation110_spill] sm:$0xff] %v6138_v55  ;;  %v6161_v55 = vadd.f32 %v438_v44, %v10188_v21  ;;  %10189 = vst [vmem:[#allocation16_spill] sm:$0xff] %v6166_v26  ;;  %v6170_v33 = vmul.f32 %v6091_v18, %v405_v17  ;;  %v1336_v30 = vmul.f32 %v10192_v4, %v405_v17  ;;  %v10208_v26 = vld [vmem:[#allocation131_spill] sm:$0xff] }
 0x105   : > { %10187 = vst [vmem:[#allocation189_spill] sm:$0xff] %v6158_v12  ;;  %10191 = vst [vmem:[#allocation191_spill] sm:$0xff] %v6173_v60  ;;  %v6177_v44 = vmul.f32 %v10166_v14, %v405_v17  ;;  %v6180_v21 = vmul.f32 %v10171_v2, %v405_v17  ;;  %v6190_v52 = vadd.f32 %v931_v42, %v5926_v1  ;;  %v10199_v2 = vld [vmem:[#allocation36_spill] sm:$0xff]  ;;  %v10207_v14 = vrot.slane %v5738_v58, 2 }
 0x106   : > { %10190 = vst [vmem:[#allocation190_spill] sm:$0xff] %v6170_v33  ;;  %10195 = vst [vmem:[#allocation194_spill] sm:$0xff] %v6183_v61  ;;  %v6194_v4 = vmul.f32 %v10197_v56, %v405_v17  ;;  %v6198_v6 = vmul.f32 %v10199_v2, %v405_v17  ;;  %v6201_v18 = vmul.f32 %v10201_v57, %v405_v17  ;;  %v406_v33 = vld [vmem:[#allocation2 + $0xf8] sm:$0xf] }
 0x107   : > { %10193 = vst [vmem:[#allocation192_spill] sm:$0xff] %v6177_v44  ;;  %10194 = vst [vmem:[#allocation193_spill] sm:$0xff] %v6180_v21  ;;  %v6209_v42 = vadd.f32 %v1336_v30, %v5942_v27  ;;  %v10204_v30 = vrot.slane %v5727_v19, 1  ;;  %v10205_v27 = vld [vmem:[#allocation130_spill] sm:$0xff]  ;;  %v10209_v21 = vrot.slane %v10208_v26, 2  ;;  %v6242_v19 = vadd.f32 %v5993_v63, %v5986_v46 }
 0x108   : > { %10196 = vst [vmem:[#allocation195_spill] sm:$0xff] %v6186_v35  ;;  %10198 = vst [vmem:[#allocation165_spill] sm:$0xff] %v6194_v4  ;;  %v10206_v1 = vrot.slane %v10205_v27, 1  ;;  %v10214_v26 = vrot.slane %v5767_v45, 2  ;;  %v10222_v45 = vrot.slane %v5800_v24, 2  ;;  %v10226_v63 = vrot.slane %v5813_v41, 3 }
 0x109   : > { %10200 = vst [vmem:[#allocation36_spill] sm:$0xff] %v6198_v6  ;;  %10202 = vst [vmem:[#allocation168_spill] sm:$0xff] %v6201_v18  ;;  %v6235_v12 = vsel %vm572_vm1, %v10209_v21, %v10207_v14  ;;  %v10215_v21 = vld [vmem:[#allocation106_spill] sm:$0xff]  ;;  %v10228_v46 = vrot.slane %v10227_v53, 3  ;;  %v10231_v24 = vld [vmem:[#allocation13_spill] sm:$0xff]  ;;  %v10234_v41 = vrot.slane %v10150_v29, 2 }
 0x10a   : > { %10203 = vst [vmem:[#allocation196_spill] sm:$0xff] %v6204_v31  ;;  %v6228_v17 = vsel %vm461_vm0, %v10206_v1, %v10204_v30  ;;  %10210 = vst [vmem:[#allocation130_spill] sm:$0xff] %v6235_v12  ;;  %v10212_v1 = vld [vmem:[#allocation74_spill] sm:$0xff]  ;;  %v10216_v27 = vrot.slane %v10215_v21, 2  ;;  %v10249_v14 = vld [vmem:[#allocation141_spill] sm:$0xff] }
 0x10b   : > { %v10213_v30 = vrot.slane %v10212_v1, 1  ;;  %v10219_v1 = vld [vmem:[#allocation133_spill] sm:$0xff]  ;;  %v10223_v21 = vld [vmem:[#allocation134_spill] sm:$0xff]  ;;  %v10250_v29 = vrot.slane %v10249_v14, 2 }
 0x10c   : > { %v6257_v20 = vsel %vm572_vm1, %v10216_v27, %v10214_v26  ;;  %v10220_v11 = vrot.slane %v10219_v1, 1  ;;  %v10224_v7 = vrot.slane %v10223_v21, 2  ;;  %v6282_v1 = vsel %vm683_vm2, %v10228_v46, %v10226_v63  ;;  %v10262_v28 = vld [vmem:[#allocation169_spill] sm:$0xff]  ;;  %v10293_v35 = vld [vmem:[#allocation170_spill] sm:$0xff] }
 0x10d   : > { %v6249_v58 = vsel %vm461_vm0, %v10213_v30, %v10211_v40  ;;  %10217 = vst [vmem:[#allocation131_spill] sm:$0xff] %v6257_v20  ;;  %10229 = vst [vmem:[#allocation133_spill] sm:$0xff] %v6282_v1  ;;  %v10232_v30 = vrot.slane %v10231_v24, 1  ;;  %v10271_v20 = vld [vmem:[#allocation188_spill] sm:$0xff]  ;;  %v10285_v18 = vld [vmem:[#allocation157_spill] sm:$0xff] }
 0x10e   : > { %v6266_v40 = vsel %vm461_vm0, %v10220_v11, %v10218_v25  ;;  %v6274_v26 = vsel %vm572_vm1, %v10224_v7, %v10222_v45  ;;  %v10230_v25 = vrot.slane %v5821_v0, 1  ;;  %v10235_v45 = vld [vmem:[#allocation136_spill] sm:$0xff]  ;;  %v10238_v11 = vrot.slane %v10156_v22, 3  ;;  %v10239_v0 = vld [vmem:[#allocation137_spill] sm:$0xff]  ;;  %v6323_v22 = vld [vmem:[%s4538_s20 + $0x14] ss:$0 sm:$0xff] }
 0x10f   : > { %10221 = vst [vmem:[#allocation74_spill] sm:$0xff] %v6266_v40  ;;  %10225 = vst [vmem:[#allocation106_spill] sm:$0xff] %v6274_v26  ;;  %v10236_v53 = vrot.slane %v10235_v45, 2  ;;  %v10240_v27 = vrot.slane %v10239_v0, 3  ;;  %v10248_v0 = vrot.slane %v10170_v16, 2 }
 0x110   : > { %v6290_v21 = vsel %vm461_vm0, %v10232_v30, %v10230_v25  ;;  %v6309_v30 = vld [vmem:[%s4538_s20 + $0x18] ss:$0 sm:$0xff]  ;;  %v6311_v25 = vld [vmem:[#allocation2 + $0x100] sm:$0xff]  ;;  %v6391_v40 = vld [vmem:[%s4538_s20 + $0x12] ss:$0 sm:$0xff] }
 0x111   : > { %10233 = vst [vmem:[#allocation134_spill] sm:$0xff] %v6290_v21  ;;  %v6298_v46 = vsel %vm572_vm1, %v10236_v53, %v10234_v41  ;;  %v6306_v24 = vsel %vm683_vm2, %v10240_v27, %v10238_v11  ;;  %10242 = vst [vmem:[#allocation136_spill] sm:$0xff] %v6309_v30  ;;  %v10243_v41 = vrot.slane %v10165_v62, 1  ;;  %v10244_v53 = vld [vmem:[#allocation139_spill] sm:$0xff]  ;;  %v446_v27 = vmul.f32 %v6323_v22, %v6311_v25 }
 0x112   : > { %10237 = vst [vmem:[#allocation135_spill] sm:$0xff] %v6298_v46  ;;  %10241 = vst [vmem:[#allocation13_spill] sm:$0xff] %v6306_v24  ;;  %v10245_v7 = vrot.slane %v10244_v53, 1  ;;  %v6333_v45 = vsel %vm572_vm1, %v10250_v29, %v10248_v0  ;;  %v6336_v62 = vld [vmem:[%s4538_s20 + $0x15] ss:$0 sm:$0xff]  ;;  %v6352_v16 = vmul.f32 %v9970_v8, %v6311_v25  ;;  %v6356_v14 = vmul.f32 %v6309_v30, %v6311_v25  ;;  %v10257_v24 = vld [vmem:[#allocation142_spill] sm:$0xff] }
 0x113   : > { %10247 = vst [vmem:[#allocation139_spill] sm:$0xff] %v6323_v22  ;;  %10251 = vst [vmem:[#allocation141_spill] sm:$0xff] %v6333_v45  ;;  %v448_v11 = vadd.f32 %v446_v27, %v6161_v55  ;;  %v935_v29 = vmul.f32 %v6114_v50, %v6311_v25  ;;  %v10258_v59 = vrot.slane %v10257_v24, 3  ;;  %v6370_v27 = vmul.f32 %v6023_v34, %v6311_v25  ;;  %v10263_v0 = vld [vmem:[#allocation100_spill] sm:$0xff]  ;;  %v10265_v24 = vld [vmem:[#allocation17_spill] sm:$0xff] }
 0x114   : > { %v6320_v63 = vsel %vm461_vm0, %v10245_v7, %v10243_v41  ;;  %v6340_v7 = vmul.f32 %v6336_v62, %v6311_v25  ;;  %v6343_v41 = vld [vmem:[%s4538_s20 + $0x16] ss:$0 sm:$0xff]  ;;  %10254 = vst [vmem:[#allocation199_spill] sm:$0xff] %v6352_v16  ;;  %10255 = vst [vmem:[#allocation200_spill] sm:$0xff] %v6356_v14  ;;  %v6374_v1 = vmul.f32 %v6037_v5, %v6311_v25 }
 0x115   : > { %10246 = vst [vmem:[#allocation137_spill] sm:$0xff] %v6320_v63  ;;  %v6347_v53 = vmul.f32 %v6343_v41, %v6311_v25  ;;  %v6366_v55 = vsel %vm683_vm2, %v10258_v59, %v10256_v9  ;;  %10260 = vst [vmem:[#allocation201_spill] sm:$0xff] %v6370_v27  ;;  %v6380_v54 = vmul.f32 %v10263_v0, %v6111_v15  ;;  %v4121_v59 = vld [vmem:[#allocation2 + $0xa8] sm:$0xf]  ;;  %v10281_v27 = vld [vmem:[#allocation153_spill] sm:$0xff] }
 0x116   : > { %10252 = vst [vmem:[#allocation197_spill] sm:$0xff] %v6340_v7  ;;  %10259 = vst [vmem:[#allocation142_spill] sm:$0xff] %v6366_v55  ;;  %v471_v63 = vadd.f32 %v10265_v24, %v448_v11  ;;  %v6384_v9 = vmul.f32 %v4121_v59, %v6111_v15  ;;  %v4122_v55 = vld [vmem:[#allocation2 + $0x168] sm:$0xf]  ;;  %v6395_v46 = vmul.f32 %v6391_v40, %v6311_v25  ;;  %v10272_v7 = vld [vmem:[#allocation19_spill] sm:$0xff] }
 0x117   : > { %10253 = vst [vmem:[#allocation198_spill] sm:$0xff] %v6347_v53  ;;  %10261 = vst [vmem:[#allocation202_spill] sm:$0xff] %v6374_v1  ;;  %v6387_v26 = vmul.f32 %v4122_v55, %v6111_v15  ;;  %v6401_v59 = vadd.f32 %v935_v29, %v6190_v52  ;;  %v6407_v21 = vmul.f32 %v6111_v15, %v6311_v25  ;;  %v10273_v11 = vld [vmem:[#allocation185_spill] sm:$0xff]  ;;  %v10276_v29 = vld [vmem:[#allocation60_spill] sm:$0xff] }
 0x118   : > { %10264 = vst [vmem:[#allocation169_spill] sm:$0xff] %v6380_v54  ;;  %10266 = vst [vmem:[#allocation100_spill] sm:$0xff] %v6384_v9  ;;  %v1340_v12 = vmul.f32 %v10271_v20, %v6311_v25  ;;  %v493_v45 = vadd.f32 %v10272_v7, %v471_v63  ;;  %v6414_v16 = vmul.f32 %v10273_v11, %v6311_v25  ;;  %v10278_v24 = vld [vmem:[#allocation147_spill] sm:$0xff]  ;;  %v10280_v63 = vld [vmem:[#allocation152_spill] sm:$0xff] }
 0x119   : > { %10267 = vst [vmem:[#allocation17_spill] sm:$0xff] %v6387_v26  ;;  %10268 = vst [vmem:[#allocation203_spill] sm:$0xff] %v6391_v40  ;;  %v6418_v52 = vmul.f32 %v6077_v38, %v6311_v25  ;;  %v6422_v48 = vmul.f32 %v10276_v29, %v6311_v25  ;;  %v6427_v1 = vmul.f32 %v10278_v24, %v6311_v25  ;;  %v10283_v53 = vld [vmem:[#allocation155_spill] sm:$0xff] }
 0x11a   : > { %10269 = vst [vmem:[#allocation204_spill] sm:$0xff] %v6395_v46  ;;  %10270 = vst [vmem:[#allocation205_spill] sm:$0xff] %v6407_v21  ;;  %v1746_v7 = vmul.f32 %v10280_v63, %v6311_v25  ;;  %v6433_v14 = vmul.f32 %v10281_v27, %v6311_v25  ;;  %v6437_v31 = vmul.f32 %v10283_v53, %v6311_v25  ;;  %v10287_v55 = vld [vmem:[#allocation163_spill] sm:$0xff]  ;;  %v917_v63 = vld [vmem:[#allocation2 + $0xf8] sm:$0xf] }
 0x11b   : > { %10274 = vst [vmem:[#allocation19_spill] sm:$0xff] %v6414_v16  ;;  %10275 = vst [vmem:[#allocation185_spill] sm:$0xff] %v6418_v52  ;;  %v6441_v6 = vmul.f32 %v10285_v18, %v6311_v25  ;;  %v6445_v46 = vmul.f32 %v10287_v55, %v6311_v25  ;;  %v6449_v4 = vmul.f32 %v10197_v56, %v6311_v25  ;;  %v1324_v16 = vld [vmem:[#allocation2 + $0xf8] sm:$0xf] }
 0x11c   : > { %10277 = vst [vmem:[#allocation60_spill] sm:$0xff] %v6422_v48  ;;  %10279 = vst [vmem:[#allocation147_spill] sm:$0xff] %v6427_v1  ;;  %v6453_v61 = vadd.f32 %v1340_v12, %v6209_v42  ;;  %v6457_v44 = vmul.f32 %v10199_v2, %v6311_v25  ;;  %v6461_v60 = vmul.f32 %v10201_v57, %v6311_v25  ;;  %v10306_v1 = vld [vmem:[#allocation65_spill] sm:$0xff] }
 0x11d   : > { %10282 = vst [vmem:[#allocation153_spill] sm:$0xff] %v6433_v14  ;;  %10284 = vst [vmem:[#allocation155_spill] sm:$0xff] %v6437_v31  ;;  %v6468_v21 = vmul.f32 %v10293_v35, %v6311_v25  ;;  %v6472_v42 = vadd.f32 %v1746_v7, %v6212_v10  ;;  %v6477_v9 = vmul.f32 %v5938_v39, %v6311_v25  ;;  %v10295_v7 = vld [vmem:[#allocation172_spill] sm:$0xff]  ;;  %v10305_v31 = vrot.slane %v5997_v13, 1 }
 0x11e   : > { %10286 = vst [vmem:[#allocation157_spill] sm:$0xff] %v6441_v6  ;;  %10288 = vst [vmem:[#allocation163_spill] sm:$0xff] %v6445_v46  ;;  %v6489_v25 = vmul.f32 %v6023_v34, %v406_v33  ;;  %v1732_v14 = vld [vmem:[#allocation2 + $0xf8] sm:$0xf]  ;;  %v6493_v26 = vmul.f32 %v6037_v5, %v406_v33  ;;  %v6496_v48 = vmul.f32 %v6391_v40, %v406_v33  ;;  %v10316_v13 = vrot.slane %v6040_v49, 2  ;;  %v920_v49 = vld [vmem:[#allocation2 + $0x110] sm:$0xff] }
 0x11f   : > { %10289 = vst [vmem:[#allocation206_spill] sm:$0xff] %v6449_v4  ;;  %10290 = vst [vmem:[#allocation207_spill] sm:$0xff] %v6453_v61  ;;  %v6486_v61 = vadd.f32 %v10295_v7, %v493_v45  ;;  %v6499_v52 = vmul.f32 %v6111_v15, %v406_v33  ;;  %v6502_v10 = vmul.f32 %v10273_v11, %v917_v63 }
 0x120   : > { %10291 = vst [vmem:[#allocation208_spill] sm:$0xff] %v6457_v44  ;;  %10292 = vst [vmem:[#allocation209_spill] sm:$0xff] %v6461_v60  ;;  %v6505_v45 = vmul.f32 %v6077_v38, %v917_v63  ;;  %v6508_v7 = vmul.f32 %v10276_v29, %v917_v63  ;;  %v6511_v20 = vmul.f32 %v10278_v24, %v917_v63 }
 0x121   : > { %10294 = vst [vmem:[#allocation170_spill] sm:$0xff] %v6468_v21  ;;  %10296 = vst [vmem:[#allocation172_spill] sm:$0xff] %v6486_v61  ;;  %v6514_v12 = vmul.f32 %v10281_v27, %v1324_v16  ;;  %v6517_v21 = vmul.f32 %v10283_v53, %v1324_v16  ;;  %v6520_v33 = vmul.f32 %v10285_v18, %v1324_v16  ;;  %v10307_v61 = vrot.slane %v10306_v1, 1 }
 0x122   : > { %v6523_v60 = vmul.f32 %v10287_v55, %v1324_v16  ;;  %v6526_v44 = vmul.f32 %v10197_v56, %v1732_v14  ;;  %v6530_v4 = vadd.f32 %v6228_v17, %v6221_v32  ;;  %v6533_v63 = vmul.f32 %v10199_v2, %v1732_v14 }
 0x123   : > { %10297 = vst [vmem:[#allocation210_spill] sm:$0xff] %v6517_v21  ;;  %10298 = vst [vmem:[#allocation211_spill] sm:$0xff] %v6520_v33  ;;  %v6536_v46 = vmul.f32 %v10201_v57, %v1732_v14  ;;  %v6539_v6 = vmul.f32 %v10293_v35, %v1732_v14  ;;  %v6543_v16 = vadd.f32 %v6249_v58, %v6242_v19  ;;  %v10308_v17 = vrot.slane %v6008_v23, 2  ;;  %v10317_v58 = vld [vmem:[#allocation49_spill] sm:$0xff] }
 0x124   : > { %10299 = vst [vmem:[#allocation212_spill] sm:$0xff] %v6523_v60  ;;  %10300 = vst [vmem:[#allocation213_spill] sm:$0xff] %v6526_v44  ;;  %v6550_v32 = vsel %vm461_vm0, %v10307_v61, %v10305_v31  ;;  %v10312_v14 = vrot.slane %v6026_v47, 1  ;;  %v10318_v1 = vrot.slane %v10317_v58, 2  ;;  %v10320_v23 = vrot.slane %v6066_v3, 1  ;;  %v10329_v58 = vld [vmem:[#allocation150_spill] sm:$0xff] }
 0x125   : > { %10301 = vst [vmem:[#allocation214_spill] sm:$0xff] %v6530_v4  ;;  %10302 = vst [vmem:[#allocation215_spill] sm:$0xff] %v6533_v63  ;;  %v10309_v4 = vld [vmem:[#allocation94_spill] sm:$0xff]  ;;  %v10324_v47 = vrot.slane %v6080_v36, 2  ;;  %v6596_v3 = vmul.f32 %v10263_v0, %v6309_v30  ;;  %v6616_v0 = vmul.f32 %v9970_v8, %v920_v49  ;;  %v10348_v8 = vrot.slane %v10262_v28, 3  ;;  %v1329_v60 = vld [vmem:[#allocation2 + $0x120] sm:$0xff] }
 0x126   : > { %10303 = vst [vmem:[#allocation216_spill] sm:$0xff] %v6536_v46  ;;  %10304 = vst [vmem:[#allocation217_spill] sm:$0xff] %v6539_v6  ;;  %v10310_v63 = vrot.slane %v10309_v4, 2  ;;  %v10313_v6 = vld [vmem:[#allocation66_spill] sm:$0xff]  ;;  %v6571_v31 = vsel %vm572_vm1, %v10318_v1, %v10316_v13  ;;  %v10321_v4 = vld [vmem:[#allocation148_spill] sm:$0xff]  ;;  %v10330_v13 = vrot.slane %v10329_v58, 3  ;;  %v6619_v58 = vmul.f32 %v6309_v30, %v920_v49 }
 0x127   : > { %v10314_v44 = vrot.slane %v10313_v6, 1  ;;  %10319 = vst [vmem:[#allocation66_spill] sm:$0xff] %v6571_v31  ;;  %v10322_v61 = vrot.slane %v10321_v4, 1  ;;  %v10325_v6 = vld [vmem:[#allocation149_spill] sm:$0xff]  ;;  %10332 = vst [vmem:[#allocation150_spill] sm:$0xff] %v6596_v3  ;;  %v939_v4 = vmul.f32 %v6323_v22, %v920_v49  ;;  %v10365_v3 = vld [vmem:[#allocation152_spill] sm:$0xff]  ;;  %v6883_v21 = vmul.f32 %v10283_v53, %v1329_v60 }
 0x128   : > { %v6557_v46 = vsel %vm572_vm1, %v10310_v63, %v10308_v17  ;;  %v10326_v17 = vrot.slane %v10325_v6, 2  ;;  %10340 = vst [vmem:[#allocation221_spill] sm:$0xff] %v6616_v0  ;;  %10341 = vst [vmem:[#allocation222_spill] sm:$0xff] %v6619_v58  ;;  %v6723_v0 = vmul.f32 %v5938_v39, %v920_v49 }
 0x129   : > { %10311 = vst [vmem:[#allocation65_spill] sm:$0xff] %v6557_v46  ;;  %v6564_v19 = vsel %vm461_vm0, %v10314_v44, %v10312_v14  ;;  %v6578_v63 = vsel %vm461_vm0, %v10322_v61, %v10320_v23  ;;  %v10328_v14 = vrot.slane %v6094_v37, 3  ;;  %v4124_v23 = vld [vmem:[#allocation2 + $0x168] sm:$0xf]  ;;  %v10334_v61 = vrot.slane %v6108_v51, 1  ;;  %v10358_v46 = vld [vmem:[#allocation27_spill] sm:$0xff] }
 0x12a   : > { %10315 = vst [vmem:[#allocation94_spill] sm:$0xff] %v6564_v19  ;;  %10323 = vst [vmem:[#allocation49_spill] sm:$0xff] %v6578_v63  ;;  %v6585_v44 = vsel %vm572_vm1, %v10326_v17, %v10324_v47  ;;  %v6599_v36 = vmul.f32 %v4124_v23, %v6309_v30  ;;  %v10335_v47 = vld [vmem:[#allocation154_spill] sm:$0xff]  ;;  %v6610_v17 = vmul.f32 %v6336_v62, %v920_v49 }
 0x12b   : > { %10327 = vst [vmem:[#allocation148_spill] sm:$0xff] %v6585_v44  ;;  %v6592_v1 = vsel %vm683_vm2, %v10330_v13, %v10328_v14  ;;  %v10336_v6 = vrot.slane %v10335_v47, 1  ;;  %v6613_v14 = vmul.f32 %v6343_v41, %v920_v49  ;;  %v1344_v13 = vmul.f32 %v6114_v50, %v920_v49  ;;  %v10345_v47 = vld [vmem:[#allocation156_spill] sm:$0xff]  ;;  %v10349_v44 = vld [vmem:[#allocation158_spill] sm:$0xff]  ;;  %10416 = vst [vmem:[#allocation261_spill] sm:$0xff] %v6883_v21 }
 0x12c   : > { %10331 = vst [vmem:[#allocation149_spill] sm:$0xff] %v6592_v1  ;;  %10333 = vst [vmem:[#allocation218_spill] sm:$0xff] %v6599_v36  ;;  %v6623_v51 = vmul.f32 %v6023_v34, %v920_v49  ;;  %v6626_v23 = vmul.f32 %v6037_v5, %v920_v49  ;;  %v10350_v31 = vrot.slane %v10349_v44, 3  ;;  %v941_v19 = vadd.f32 %v939_v4, %v6401_v59  ;;  %v10357_v36 = vld [vmem:[#allocation207_spill] sm:$0xff]  ;;  %v10360_v44 = vld [vmem:[#allocation188_spill] sm:$0xff] }
 0x12d   : > { %v6607_v37 = vsel %vm461_vm0, %v10336_v6, %v10334_v61  ;;  %10338 = vst [vmem:[#allocation219_spill] sm:$0xff] %v6610_v17  ;;  %10339 = vst [vmem:[#allocation220_spill] sm:$0xff] %v6613_v14  ;;  %v10344_v61 = vrot.slane %v6125_v43, 2  ;;  %v10346_v6 = vrot.slane %v10345_v47, 2  ;;  %v4125_v47 = vld [vmem:[#allocation2 + $0xb8] sm:$0xf]  ;;  %v6656_v59 = vmul.f32 %v6391_v40, %v920_v49 }
 0x12e   : > { %10337 = vst [vmem:[#allocation154_spill] sm:$0xff] %v6607_v37  ;;  %10342 = vst [vmem:[#allocation223_spill] sm:$0xff] %v6623_v51  ;;  %v6640_v37 = vsel %vm683_vm2, %v10350_v31, %v10348_v8  ;;  %v6660_v63 = vadd.f32 %v1344_v13, %v10357_v36  ;;  %v959_v54 = vadd.f32 %v10358_v46, %v941_v19  ;;  %v408_v17 = vld [vmem:[#allocation2 + $0x108] sm:$0xf]  ;;  %v10459_v21 = vld [vmem:[#allocation193_spill] sm:$0xff] }
 0x12f   : > { %10343 = vst [vmem:[#allocation224_spill] sm:$0xff] %v6626_v23  ;;  %v6633_v1 = vsel %vm572_vm1, %v10346_v6, %v10344_v61  ;;  %10351 = vst [vmem:[#allocation158_spill] sm:$0xff] %v6640_v37  ;;  %v6647_v61 = vmul.f32 %v4125_v47, %v6309_v30  ;;  %v4126_v6 = vld [vmem:[#allocation2 + $0x178] sm:$0xf]  ;;  %v6667_v31 = vmul.f32 %v6111_v15, %v920_v49 }
 0x130   : > { %10347 = vst [vmem:[#allocation156_spill] sm:$0xff] %v6633_v1  ;;  %v6650_v28 = vmul.f32 %v4126_v6, %v6309_v30  ;;  %10356 = vst [vmem:[#allocation227_spill] sm:$0xff] %v6656_v59  ;;  %v339_v6 = vld [vmem:[%s4530_s25 + $0x38] sm:$0xff]  ;;  %v1750_v8 = vmul.f32 %v10360_v44, %v920_v49  ;;  %v6671_v43 = vmul.f32 %v10273_v11, %v920_v49  ;;  %v6740_v44 = vld [vmem:[%s4538_s20 + $0x17] ss:$0 sm:$0xff] }
 0x131   : > { %10354 = vst [vmem:[#allocation225_spill] sm:$0xff] %v6647_v61  ;;  %10359 = vst [vmem:[#allocation207_spill] sm:$0xff] %v6667_v31  ;;  %v6674_v4 = vmul.f32 %v6077_v38, %v920_v49  ;;  %v6677_v36 = vmul.f32 %v10276_v29, %v920_v49  ;;  %v6680_v13 = vmul.f32 %v10278_v24, %v920_v49  ;;  %v10375_v59 = vld [vmem:[#allocation14_spill] sm:$0xff] }
 0x132   : > { %10355 = vst [vmem:[#allocation226_spill] sm:$0xff] %v6650_v28  ;;  %10361 = vst [vmem:[#allocation27_spill] sm:$0xff] %v6671_v43  ;;  %v2156_v46 = vmul.f32 %v10365_v3, %v920_v49  ;;  %v6685_v47 = vmul.f32 %v10281_v27, %v920_v49  ;;  %v6688_v37 = vmul.f32 %v10283_v53, %v920_v49  ;;  %v919_v43 = vld [vmem:[#allocation2 + $0x108] sm:$0xf] }
 0x133   : > { %355 = vst [vmem:[#allocation2 + $0x92] sm:$0xff] %v339_v6  ;;  %10362 = vst [vmem:[#allocation228_spill] sm:$0xff] %v6674_v4  ;;  %v6691_v6 = vmul.f32 %v10285_v18, %v920_v49  ;;  %v6694_v1 = vmul.f32 %v10287_v55, %v920_v49  ;;  %v6697_v23 = vmul.f32 %v10197_v56, %v920_v49  ;;  %v1734_v3 = vld [vmem:[#allocation2 + $0x108] sm:$0xf] }
 0x134   : > { %10363 = vst [vmem:[#allocation229_spill] sm:$0xff] %v6677_v36  ;;  %10364 = vst [vmem:[#allocation230_spill] sm:$0xff] %v6680_v13  ;;  %v6700_v51 = vmul.f32 %v10199_v2, %v920_v49  ;;  %v6703_v19 = vmul.f32 %v10201_v57, %v920_v49  ;;  %v6707_v58 = vadd.f32 %v1750_v8, %v6472_v42  ;;  %v347_v13 = vld [vmem:[%s4530_s25 + $0x78] sm:$0xff]  ;;  %s3874_s25 = scalar_lea.sflag [#allocation6], %s4524_s12 }
 0x135   : > { %10366 = vst [vmem:[#allocation231_spill] sm:$0xff] %v6685_v47  ;;  %10367 = vst [vmem:[#allocation232_spill] sm:$0xff] %v6688_v37  ;;  %v6711_v14 = vmul.f32 %v10293_v35, %v920_v49  ;;  %v6717_v61 = vadd.f32 %v2156_v46, %v6477_v9  ;;  %v6732_v42 = vmul.f32 %v6336_v62, %v408_v17  ;;  %v1326_v49 = vld [vmem:[#allocation2 + $0x108] sm:$0xf] }
 0x136   : > { %10368 = vst [vmem:[#allocation233_spill] sm:$0xff] %v6691_v6  ;;  %10369 = vst [vmem:[#allocation234_spill] sm:$0xff] %v6694_v1  ;;  %v6736_v6 = vmul.f32 %v6343_v41, %v408_v17  ;;  %v6743_v28 = vmul.f32 %v6740_v44, %v408_v17  ;;  %v6747_v9 = vmul.f32 %v6309_v30, %v408_v17  ;;  %v10384_v46 = vld [vmem:[#allocation42_spill] sm:$0xff] }
 0x137   : > { %10370 = vst [vmem:[#allocation235_spill] sm:$0xff] %v6697_v23  ;;  %10371 = vst [vmem:[#allocation236_spill] sm:$0xff] %v6700_v51  ;;  %v6758_v23 = vmul.f32 %v6037_v5, %v919_v43  ;;  %v6762_v17 = vmul.f32 %v6391_v40, %v919_v43  ;;  %v6770_v1 = vmul.f32 %v10273_v11, %v1326_v49 }
 0x138   : > { %10372 = vst [vmem:[#allocation237_spill] sm:$0xff] %v6703_v19  ;;  %10373 = vst [vmem:[#allocation238_spill] sm:$0xff] %v6711_v14  ;;  %v6750_v14 = vadd.f32 %v10375_v59, %v959_v54  ;;  %v6754_v19 = vmul.f32 %v6023_v34, %v919_v43  ;;  %v6766_v59 = vmul.f32 %v6111_v15, %v919_v43  ;;  %v2142_v54 = vld [vmem:[#allocation2 + $0x108] sm:$0xf] }
 0x139   : > { %10374 = vst [vmem:[#allocation239_spill] sm:$0xff] %v6740_v44  ;;  %v6774_v37 = vmul.f32 %v6077_v38, %v1326_v49  ;;  %v6778_v47 = vmul.f32 %v10276_v29, %v1326_v49  ;;  %v6783_v36 = vmul.f32 %v10278_v24, %v1326_v49  ;;  %v6787_v31 = vmul.f32 %v10281_v27, %v1734_v3 }
 0x13a   : > { %10376 = vst [vmem:[#allocation14_spill] sm:$0xff] %v6750_v14  ;;  %363 = vst [vmem:[#allocation2 + $0x152] sm:$0xff] %v347_v13  ;;  %v6799_v49 = vmul.f32 %v10285_v18, %v1734_v3  ;;  %v1348_v13 = vmul.f32 %v6323_v22, %v1329_v60  ;;  %v6807_v14 = vmul.f32 %v10197_v56, %v2142_v54 }
 0x13b   : > { %10377 = vst [vmem:[#allocation240_spill] sm:$0xff] %v6774_v37  ;;  %10378 = vst [vmem:[#allocation241_spill] sm:$0xff] %v6778_v47  ;;  %v10383_v37 = vld [vmem:[#allocation214_spill] sm:$0xff]  ;;  %v6795_v47 = vmul.f32 %v10283_v53, %v1734_v3  ;;  %v6817_v43 = vmul.f32 %v6343_v41, %v1329_v60  ;;  %v6820_v8 = vmul.f32 %v6740_v44, %v1329_v60 }
 0x13c   : > { %10379 = vst [vmem:[#allocation242_spill] sm:$0xff] %v6783_v36  ;;  %10381 = vst [vmem:[#allocation243_spill] sm:$0xff] %v6787_v31  ;;  %v6792_v33 = vadd.f32 %v10384_v46, %v10383_v37  ;;  %v6803_v31 = vmul.f32 %v10287_v55, %v1734_v3  ;;  %v6811_v37 = vadd.f32 %v6550_v32, %v6543_v16 }
 0x13d   : > { %10386 = vst [vmem:[#allocation42_spill] sm:$0xff] %v6795_v47  ;;  %10388 = vst [vmem:[#allocation244_spill] sm:$0xff] %v6799_v49  ;;  %v6814_v46 = vmul.f32 %v6336_v62, %v1329_v60  ;;  %v6823_v3 = vmul.f32 %v6309_v30, %v1329_v60  ;;  %v1754_v22 = vmul.f32 %v6114_v50, %v1329_v60 }
 0x13e   : > { %10385 = vst [vmem:[#allocation214_spill] sm:$0xff] %v6792_v33  ;;  %10390 = vst [vmem:[#allocation245_spill] sm:$0xff] %v6803_v31  ;;  %v6830_v16 = vmul.f32 %v10199_v2, %v2142_v54  ;;  %v6833_v32 = vmul.f32 %v10201_v57, %v2142_v54  ;;  %v6837_v31 = vmul.f32 %v6037_v5, %v1329_v60  ;;  %v10407_v33 = vld [vmem:[#allocation179_spill] sm:$0xff] }
 0x13f   : > { %10391 = vst [vmem:[#allocation246_spill] sm:$0xff] %v6807_v14  ;;  %10392 = vst [vmem:[#allocation247_spill] sm:$0xff] %v6811_v37  ;;  %v6827_v14 = vmul.f32 %v6023_v34, %v1329_v60  ;;  %v1350_v37 = vadd.f32 %v1348_v13, %v6660_v63  ;;  %v6840_v4 = vmul.f32 %v10293_v35, %v2142_v54 }
 0x140   : > { %10393 = vst [vmem:[#allocation248_spill] sm:$0xff] %v6814_v46  ;;  %10394 = vst [vmem:[#allocation249_spill] sm:$0xff] %v6817_v43  ;;  %v6849_v63 = vmul.f32 %v6391_v40, %v1329_v60  ;;  %v6866_v36 = vmul.f32 %v10273_v11, %v1329_v60  ;;  %v6869_v54 = vmul.f32 %v6077_v38, %v1329_v60 }
 0x141   : > { %10395 = vst [vmem:[#allocation250_spill] sm:$0xff] %v6820_v8  ;;  %10396 = vst [vmem:[#allocation251_spill] sm:$0xff] %v6823_v3  ;;  %v6858_v51 = vadd.f32 %v10407_v33, %v1350_v37  ;;  %v10414_v37 = vld [vmem:[#allocation152_spill] sm:$0xff]  ;;  %v6880_v13 = vmul.f32 %v10281_v27, %v1329_v60  ;;  %v6886_v49 = vmul.f32 %v10285_v18, %v1329_v60  ;;  %v10426_v33 = vrot.slane %v6493_v26, 2  ;;  %v10439_v8 = vld [vmem:[#allocation189_spill] sm:$0xff] }
 0x142   : > { %10397 = vst [vmem:[#allocation252_spill] sm:$0xff] %v6827_v14  ;;  %10398 = vst [vmem:[#allocation253_spill] sm:$0xff] %v6830_v16  ;;  %v6862_v16 = vmul.f32 %v6111_v15, %v1329_v60  ;;  %v2566_v34 = vmul.f32 %v10414_v37, %v1329_v60  ;;  %v6889_v50 = vmul.f32 %v10287_v55, %v1329_v60  ;;  %v10493_v14 = vld [vmem:[#allocation216_spill] sm:$0xff] }
 0x143   : > { %10399 = vst [vmem:[#allocation254_spill] sm:$0xff] %v6833_v32  ;;  %10400 = vst [vmem:[#allocation255_spill] sm:$0xff] %v6837_v31  ;;  %v10409_v32 = vld [vmem:[#allocation188_spill] sm:$0xff]  ;;  %v6892_v3 = vmul.f32 %v10197_v56, %v1329_v60  ;;  %v6902_v53 = vmul.f32 %v10201_v57, %v1329_v60  ;;  %v6905_v18 = vmul.f32 %v10293_v35, %v1329_v60  ;;  %v10494_v46 = vrot.slane %v10493_v14, 3  ;;  %v7091_v14 = vld [vmem:[%s4538_s20 + $0xe] ss:$0 sm:$0xff] }
 0x144   : > { %10401 = vst [vmem:[#allocation256_spill] sm:$0xff] %v6840_v4  ;;  %10406 = vst [vmem:[#allocation257_spill] sm:$0xff] %v6849_v63  ;;  %v6854_v4 = vadd.f32 %v1754_v22, %v6707_v58  ;;  %v2160_v47 = vmul.f32 %v10409_v32, %v1329_v60  ;;  %v6872_v22 = vmul.f32 %v10276_v29, %v1329_v60 }
 0x145   : > { %10408 = vst [vmem:[#allocation179_spill] sm:$0xff] %v6862_v16  ;;  %10410 = vst [vmem:[#allocation188_spill] sm:$0xff] %v6866_v36  ;;  %v6875_v58 = vmul.f32 %v10278_v24, %v1329_v60  ;;  %v6895_v24 = vmul.f32 %v10199_v2, %v1329_v60  ;;  %v6912_v43 = vadd.f32 %v2566_v34, %v6723_v0  ;;  %v10423_v0 = vrot.slane %v6489_v25, 1  ;;  %v10435_v16 = vld [vmem:[#allocation187_spill] sm:$0xff] }
 0x146   : > { %10411 = vst [vmem:[#allocation258_spill] sm:$0xff] %v6869_v54  ;;  %10412 = vst [vmem:[#allocation259_spill] sm:$0xff] %v6872_v22  ;;  %v6899_v27 = vadd.f32 %v2160_v47, %v6717_v61  ;;  %v6917_v37 = vmul.f32 %v5938_v39, %v1329_v60  ;;  %v921_v22 = vld [vmem:[#allocation2 + $0x118] sm:$0xf]  ;;  %v10430_v34 = vrot.slane %v6496_v48, 3  ;;  %v10436_v26 = vrot.slane %v10435_v16, 4 }
 0x147   : > { %10413 = vst [vmem:[#allocation260_spill] sm:$0xff] %v6875_v58  ;;  %10415 = vst [vmem:[#allocation152_spill] sm:$0xff] %v6880_v13  ;;  %v10424_v61 = vld [vmem:[#allocation88_spill] sm:$0xff]  ;;  %v10440_v48 = vrot.slane %v10439_v8, 1  ;;  %v6977_v8 = vmul.f32 %v6343_v41, %v921_v22  ;;  %v10465_v58 = vld [vmem:[#allocation194_spill] sm:$0xff] }
 0x148   : > { %10417 = vst [vmem:[#allocation262_spill] sm:$0xff] %v6886_v49  ;;  %10418 = vst [vmem:[#allocation263_spill] sm:$0xff] %v6889_v50  ;;  %v10425_v47 = vrot.slane %v10424_v61, 1  ;;  %v10427_v50 = vld [vmem:[#allocation166_spill] sm:$0xff]  ;;  %v10442_v16 = vld [vmem:[#allocation16_spill] sm:$0xff] }
 0x149   : > { %10419 = vst [vmem:[#allocation264_spill] sm:$0xff] %v6892_v3  ;;  %10420 = vst [vmem:[#allocation265_spill] sm:$0xff] %v6895_v24  ;;  %v10428_v63 = vrot.slane %v10427_v50, 2  ;;  %v10456_v49 = vld [vmem:[#allocation183_spill] sm:$0xff]  ;;  %v10460_v24 = vrot.slane %v10459_v21, 2  ;;  %v10462_v13 = vld [vmem:[#allocation240_spill] sm:$0xff] }
 0x14a   : > { %10421 = vst [vmem:[#allocation266_spill] sm:$0xff] %v6902_v53  ;;  %10422 = vst [vmem:[#allocation267_spill] sm:$0xff] %v6905_v18  ;;  %v6930_v60 = vsel %vm461_vm0, %v10425_v47, %v10423_v0  ;;  %v10431_v18 = vld [vmem:[#allocation167_spill] sm:$0xff]  ;;  %v10434_v0 = vrot.slane %v6499_v52, 4  ;;  %v6966_v47 = vmul.f32 %v6336_v62, %v921_v22  ;;  %v10441_v52 = vrot.slane %v6505_v45, 2  ;;  %v10469_v21 = vld [vmem:[#allocation212_spill] sm:$0xff] }
 0x14b   : > { %v6938_v31 = vsel %vm572_vm1, %v10428_v63, %v10426_v33  ;;  %v10432_v25 = vrot.slane %v10431_v18, 3  ;;  %v10438_v33 = vrot.slane %v6502_v10, 1  ;;  %v6988_v45 = vmul.f32 %v6740_v44, %v921_v22 }
 0x14c   : > { %10429 = vst [vmem:[#allocation88_spill] sm:$0xff] %v6938_v31  ;;  %v6954_v50 = vsel %vm794_vm3, %v10436_v26, %v10434_v0  ;;  %v10443_v0 = vrot.slane %v10442_v16, 2  ;;  %v10450_v16 = vld [vmem:[#allocation191_spill] sm:$0xff]  ;;  %v10466_v3 = vrot.slane %v10465_v58, 3  ;;  %v10489_v31 = vld [vmem:[#allocation214_spill] sm:$0xff] }
 0x14d   : > { %v6946_v61 = vsel %vm683_vm2, %v10432_v25, %v10430_v34  ;;  %10437 = vst [vmem:[#allocation167_spill] sm:$0xff] %v6954_v50  ;;  %v6962_v18 = vsel %vm461_vm0, %v10440_v48, %v10438_v33  ;;  %v1328_v25 = vld [vmem:[#allocation2 + $0x118] sm:$0xf]  ;;  %v10445_v33 = vrot.slane %v6508_v7, 3  ;;  %v10446_v48 = vld [vmem:[#allocation190_spill] sm:$0xff]  ;;  %v6999_v7 = vmul.f32 %v6309_v30, %v921_v22  ;;  %v10468_v50 = vld [vmem:[#allocation241_spill] sm:$0xff] }
 0x14e   : > { %10433 = vst [vmem:[#allocation166_spill] sm:$0xff] %v6946_v61  ;;  %v6973_v26 = vsel %vm572_vm1, %v10443_v0, %v10441_v52  ;;  %v10447_v34 = vrot.slane %v10446_v48, 3  ;;  %v10449_v52 = vrot.slane %v6511_v20, 4  ;;  %v10451_v0 = vrot.slane %v10450_v16, 4  ;;  %v1736_v20 = vld [vmem:[#allocation2 + $0x118] sm:$0xf] }
 0x14f   : > { %10444 = vst [vmem:[#allocation187_spill] sm:$0xff] %v6973_v26  ;;  %v7010_v16 = vmul.f32 %v10456_v49, %v1328_v25  ;;  %v7043_v58 = vmul.f32 %v6111_v15, %v1328_v25 }
 0x150   : > { %v6984_v63 = vsel %vm683_vm2, %v10447_v34, %v10445_v33  ;;  %v6995_v10 = vsel %vm794_vm3, %v10451_v0, %v10449_v52  ;;  %v10453_v34 = vrot.slane %v6514_v12, 1  ;;  %v10454_v33 = vld [vmem:[#allocation192_spill] sm:$0xff]  ;;  %v10457_v52 = vld [vmem:[#allocation210_spill] sm:$0xff] }
 0x151   : > { %10448 = vst [vmem:[#allocation189_spill] sm:$0xff] %v6984_v63  ;;  %10452 = vst [vmem:[#allocation16_spill] sm:$0xff] %v6995_v10  ;;  %v10455_v48 = vrot.slane %v10454_v33, 1  ;;  %v10458_v0 = vrot.slane %v10457_v52, 2  ;;  %v7021_v33 = vmul.f32 %v6037_v5, %v1328_v25  ;;  %v7032_v52 = vmul.f32 %v6391_v40, %v1328_v25 }
 0x152   : > { %10475 = vst [vmem:[#allocation210_spill] sm:$0xff] %v7043_v58 }
 0x153   : > { %v7006_v53 = vsel %vm461_vm0, %v10455_v48, %v10453_v34  ;;  %v7017_v22 = vsel %vm572_vm1, %v10460_v24, %v10458_v0  ;;  %v10463_v34 = vld [vmem:[#allocation211_spill] sm:$0xff]  ;;  %v10470_v24 = vrot.slane %v10469_v21, 4  ;;  %v7069_v21 = vmul.f32 %v6077_v38, %v1736_v20 }
 0x154   : > { %10461 = vst [vmem:[#allocation190_spill] sm:$0xff] %v7017_v22  ;;  %v10464_v48 = vrot.slane %v10463_v34, 3  ;;  %v10471_v0 = vld [vmem:[#allocation195_spill] sm:$0xff]  ;;  %v10485_v34 = vld [vmem:[#allocation36_spill] sm:$0xff] }
 0x155   : > { %v10472_v63 = vrot.slane %v10471_v0, 4  ;;  %v2144_v0 = vld [vmem:[#allocation2 + $0x118] sm:$0xf]  ;;  %v10486_v26 = vrot.slane %v10485_v34, 2  ;;  %10492 = vst [vmem:[#allocation241_spill] sm:$0xff] %v7069_v21 }
 0x156   : > { %v7028_v10 = vsel %vm683_vm2, %v10466_v3, %v10464_v48  ;;  %v10476_v3 = vld [vmem:[#allocation213_spill] sm:$0xff]  ;;  %v7140_v58 = vmul.f32 %v10287_v55, %v2144_v0 }
 0x157   : > { %10467 = vst [vmem:[#allocation191_spill] sm:$0xff] %v7028_v10  ;;  %v7039_v12 = vsel %vm794_vm3, %v10472_v63, %v10470_v24  ;;  %v10477_v48 = vrot.slane %v10476_v3, 1  ;;  %v10478_v10 = vld [vmem:[#allocation165_spill] sm:$0xff]  ;;  %v7054_v63 = vmul.f32 %v10273_v11, %v1736_v20  ;;  %v10483_v24 = vld [vmem:[#allocation215_spill] sm:$0xff]  ;;  %v10502_v3 = vld [vmem:[#allocation196_spill] sm:$0xff] }
 0x158   : > { %10473 = vst [vmem:[#allocation192_spill] sm:$0xff] %v7039_v12  ;;  %v10479_v54 = vrot.slane %v10478_v10, 1  ;;  %v10484_v12 = vrot.slane %v10483_v24, 2  ;;  %v10500_v10 = vld [vmem:[#allocation217_spill] sm:$0xff]  ;;  %10506 = vst [vmem:[#allocation165_spill] sm:$0xff] %v7091_v14 }
 0x159   : > { %10482 = vst [vmem:[#allocation240_spill] sm:$0xff] %v7054_v63  ;;  %v10495_v63 = vld [vmem:[#allocation168_spill] sm:$0xff]  ;;  %v7109_v21 = vld [vmem:[%s4538_s20 + $0x7] ss:$0 sm:$0xff] }
 0x15a   : > { %v7050_v36 = vsel %vm461_vm0, %v10479_v54, %v10477_v48  ;;  %v7061_v25 = vsel %vm572_vm1, %v10486_v26, %v10484_v12  ;;  %v10490_v54 = vld [vmem:[#allocation52_spill] sm:$0xff]  ;;  %v10496_v22 = vrot.slane %v10495_v63, 3  ;;  %v7080_v12 = vmul.f32 %v10276_v29, %v1736_v20  ;;  %v7098_v26 = vld [vmem:[%s4538_s20 + $0x6] ss:$0 sm:$0xff]  ;;  %10515 = vst [vmem:[#allocation216_spill] sm:$0xff] %v7109_v21 }
 0x15b   : > { %10480 = vst [vmem:[#allocation193_spill] sm:$0xff] %v7050_v36  ;;  %10487 = vst [vmem:[#allocation211_spill] sm:$0xff] %v7061_v25  ;;  %v7066_v48 = vadd.f32 %v10490_v54, %v10489_v31  ;;  %v10501_v25 = vrot.slane %v10500_v10, 4  ;;  %v10503_v31 = vrot.slane %v10502_v3, 4  ;;  %v7094_v63 = vmul.f32 %v7091_v14, %v1736_v20  ;;  %v1739_v20 = vld [vmem:[#allocation2 + $0x130] sm:$0xff] }
 0x15c   : > { %v7076_v24 = vsel %vm683_vm2, %v10496_v22, %v10494_v46  ;;  %10499 = vst [vmem:[#allocation195_spill] sm:$0xff] %v7080_v12  ;;  %10509 = vst [vmem:[#allocation36_spill] sm:$0xff] %v7098_v26  ;;  %v10512_v12 = vld [vmem:[#allocation247_spill] sm:$0xff]  ;;  %v7117_v36 = vmul.f32 %v6336_v62, %v1739_v20  ;;  %v7120_v3 = vmul.f32 %v6343_v41, %v1739_v20  ;;  %v7133_v46 = vld [vmem:[%s4538_s20 + $0x8] ss:$0 sm:$0xff] }
 0x15d   : > { %10491 = vst [vmem:[#allocation194_spill] sm:$0xff] %v7066_v48  ;;  %10497 = vst [vmem:[#allocation212_spill] sm:$0xff] %v7076_v24  ;;  %v7087_v54 = vsel %vm794_vm3, %v10503_v31, %v10501_v25  ;;  %v7101_v24 = vmul.f32 %v7098_v26, %v2144_v0  ;;  %v10513_v25 = vld [vmem:[#allocation55_spill] sm:$0xff]  ;;  %v7130_v10 = vmul.f32 %v10456_v49, %v1739_v20  ;;  %v10527_v22 = vld [vmem:[#allocation256_spill] sm:$0xff] }
 0x15e   : > { %10504 = vst [vmem:[#allocation213_spill] sm:$0xff] %v7087_v54  ;;  %10507 = vst [vmem:[#allocation215_spill] sm:$0xff] %v7094_v63  ;;  %v7106_v31 = vadd.f32 %v10513_v25, %v10512_v12  ;;  %v7112_v54 = vmul.f32 %v7109_v21, %v2144_v0  ;;  %v2552_v63 = vld [vmem:[#allocation2 + $0x118] sm:$0xf]  ;;  %v10518_v48 = vld [vmem:[#allocation139_spill] sm:$0xff]  ;;  %v7123_v12 = vmul.f32 %v6740_v44, %v1739_v20 }
 0x15f   : > { %10510 = vst [vmem:[#allocation214_spill] sm:$0xff] %v7101_v24  ;;  %v1758_v34 = vmul.f32 %v10518_v48, %v1739_v20  ;;  %10519 = vst [vmem:[#allocation217_spill] sm:$0xff] %v7117_v36  ;;  %v7126_v25 = vmul.f32 %v6309_v30, %v1739_v20  ;;  %v7136_v48 = vmul.f32 %v7133_v46, %v2144_v0  ;;  %v7221_v36 = vld [vmem:[%s4538_s20 + $0x3] ss:$0 sm:$0xff] }
 0x160   : > { %10514 = vst [vmem:[#allocation52_spill] sm:$0xff] %v7106_v31  ;;  %10516 = vst [vmem:[#allocation168_spill] sm:$0xff] %v7112_v54  ;;  %v10523_v31 = vld [vmem:[#allocation162_spill] sm:$0xff]  ;;  %v7143_v61 = vmul.f32 %v6037_v5, %v1739_v20  ;;  %v7146_v30 = vmul.f32 %v10197_v56, %v2552_v63  ;;  %v7152_v49 = vmul.f32 %v10201_v57, %v2552_v63 }
 0x161   : > { %10520 = vst [vmem:[#allocation196_spill] sm:$0xff] %v7120_v3  ;;  %10521 = vst [vmem:[#allocation247_spill] sm:$0xff] %v7123_v12  ;;  %v2164_v54 = vmul.f32 %v10523_v31, %v1739_v20  ;;  %v7149_v31 = vmul.f32 %v10199_v2, %v2552_v63  ;;  %v7155_v44 = vmul.f32 %v10293_v35, %v2552_v63  ;;  %v7209_v3 = vld [vmem:[%s4538_s20 + $0x1] ss:$0 sm:$0xff] }
 0x162   : > { %10522 = vst [vmem:[#allocation55_spill] sm:$0xff] %v7126_v25  ;;  %10524 = vst [vmem:[#allocation162_spill] sm:$0xff] %v7130_v10  ;;  %v7158_v24 = vadd.f32 %v1758_v34, %v6854_v4  ;;  %v7163_v56 = vmul.f32 %v6391_v40, %v1739_v20  ;;  %v7173_v34 = vmul.f32 %v6111_v15, %v1739_v20  ;;  %v7189_v4 = vld [vmem:[%s4538_s20 + $0x5] ss:$0 sm:$0xff] }
 0x163   : > { %10525 = vst [vmem:[#allocation268_spill] sm:$0xff] %v7133_v46  ;;  %10526 = vst [vmem:[#allocation269_spill] sm:$0xff] %v7136_v48  ;;  %v7168_v57 = vadd.f32 %v2164_v54, %v6899_v27  ;;  %v2570_v63 = vmul.f32 %v10409_v32, %v1739_v20  ;;  %v7177_v0 = vmul.f32 %v10273_v11, %v1739_v20  ;;  %v7215_v32 = vld [vmem:[%s4538_s20 + $0x2] ss:$0 sm:$0xff] }
 0x164   : > { %10528 = vst [vmem:[#allocation256_spill] sm:$0xff] %v7140_v58  ;;  %10529 = vst [vmem:[#allocation270_spill] sm:$0xff] %v7143_v61  ;;  %v7183_v27 = vmul.f32 %v10276_v29, %v1739_v20  ;;  %v7186_v54 = vmul.f32 %v7091_v14, %v1739_v20  ;;  %v2976_v2 = vmul.f32 %v7189_v4, %v1739_v20  ;;  %v7203_v61 = vld [vmem:[%s4538_s20 + $0x9] ss:$0 sm:$0xff] }
 0x165   : > { %10530 = vst [vmem:[#allocation271_spill] sm:$0xff] %v7146_v30  ;;  %10531 = vst [vmem:[#allocation272_spill] sm:$0xff] %v7149_v31  ;;  %v7180_v31 = vmul.f32 %v6077_v38, %v1739_v20  ;;  %v7194_v35 = vmul.f32 %v7098_v26, %v1739_v20  ;;  %v7197_v55 = vmul.f32 %v7109_v21, %v1739_v20  ;;  %v1330_v21 = vld [vmem:[#allocation2 + $0x128] sm:$0xf] }
 0x166   : > { %10532 = vst [vmem:[#allocation273_spill] sm:$0xff] %v7152_v49  ;;  %10533 = vst [vmem:[#allocation274_spill] sm:$0xff] %v7155_v44  ;;  %v7200_v25 = vmul.f32 %v7133_v46, %v1739_v20  ;;  %v7206_v12 = vmul.f32 %v7203_v61, %v1739_v20  ;;  %v7212_v10 = vmul.f32 %v7209_v3, %v1739_v20  ;;  %v7232_v46 = vld [vmem:[%s4538_s20 + $0x4] ss:$0 sm:$0xff] }
 0x167   : > { %10534 = vst [vmem:[#allocation275_spill] sm:$0xff] %v7163_v56  ;;  %10535 = vst [vmem:[#allocation276_spill] sm:$0xff] %v7168_v57  ;;  %v7218_v56 = vmul.f32 %v7215_v32, %v1739_v20  ;;  %v7247_v44 = vmul.f32 %v5938_v39, %v1739_v20 }
 0x168   : > { %10536 = vst [vmem:[#allocation277_spill] sm:$0xff] %v7173_v34  ;;  %10537 = vst [vmem:[#allocation278_spill] sm:$0xff] %v7177_v0  ;;  %v10615_v34 = vld [vmem:[#allocation155_spill] sm:$0xff] }
 0x169   : > { %10538 = vst [vmem:[#allocation279_spill] sm:$0xff] %v7180_v31  ;;  %10539 = vst [vmem:[#allocation280_spill] sm:$0xff] %v7183_v27  ;;  %v10613_v31 = vld [vmem:[#allocation42_spill] sm:$0xff]  ;;  %v10623_v27 = vld [vmem:[#allocation157_spill] sm:$0xff] }
 0x16a   : > { %10540 = vst [vmem:[#allocation281_spill] sm:$0xff] %v7186_v54  ;;  %10541 = vst [vmem:[#allocation282_spill] sm:$0xff] %v7189_v4  ;;  %v7224_v4 = vmul.f32 %v7221_v36, %v1739_v20 }
 0x16b   : > { %10542 = vst [vmem:[#allocation283_spill] sm:$0xff] %v7194_v35  ;;  %10543 = vst [vmem:[#allocation284_spill] sm:$0xff] %v7197_v55  ;;  %v10609_v35 = vld [vmem:[#allocation153_spill] sm:$0xff] }
 0x16c   : > { %10544 = vst [vmem:[#allocation285_spill] sm:$0xff] %v7200_v25  ;;  %10545 = vst [vmem:[#allocation286_spill] sm:$0xff] %v7203_v61  ;;  %v7228_v61 = vadd.f32 %v2570_v63, %v6912_v43  ;;  %v10556_v43 = vrot.slane %v6732_v42, 1  ;;  %v10557_v63 = vld [vmem:[#allocation197_spill] sm:$0xff]  ;;  %v10567_v42 = vrot.slane %v6747_v9, 4  ;;  %v10575_v9 = vrot.slane %v6758_v23, 2 }
 0x16d   : > { %10546 = vst [vmem:[#allocation287_spill] sm:$0xff] %v7206_v12  ;;  %10547 = vst [vmem:[#allocation288_spill] sm:$0xff] %v7209_v3  ;;  %v7235_v3 = vmul.f32 %v7232_v46, %v1739_v20  ;;  %v10558_v25 = vrot.slane %v10557_v63, 1  ;;  %v10559_v20 = vrot.slane %v6736_v6, 2  ;;  %v10568_v63 = vld [vmem:[#allocation200_spill] sm:$0xff]  ;;  %v10571_v6 = vld [vmem:[#allocation14_spill] sm:$0xff] }
 0x16e   : > { %10548 = vst [vmem:[#allocation289_spill] sm:$0xff] %v7212_v10  ;;  %10549 = vst [vmem:[#allocation290_spill] sm:$0xff] %v7215_v32  ;;  %v10560_v32 = vld [vmem:[#allocation198_spill] sm:$0xff]  ;;  %v10610_v54 = vrot.slane %v10609_v35, 1  ;;  %v10620_v35 = vld [vmem:[#allocation75_spill] sm:$0xff] }
 0x16f   : > { %10550 = vst [vmem:[#allocation291_spill] sm:$0xff] %v7218_v56  ;;  %10551 = vst [vmem:[#allocation292_spill] sm:$0xff] %v7221_v36  ;;  %v7241_v36 = vadd.f32 %v2976_v2, %v6917_v37  ;;  %v10555_v2 = vld [vmem:[#allocation172_spill] sm:$0xff]  ;;  %v7263_v39 = vsel %vm461_vm0, %v10558_v25, %v10556_v43  ;;  %v10561_v0 = vrot.slane %v10560_v32, 2  ;;  %v10563_v37 = vrot.slane %v6743_v28, 3  ;;  %v10604_v10 = vld [vmem:[#allocation210_spill] sm:$0xff] }
 0x170   : > { %10552 = vst [vmem:[#allocation293_spill] sm:$0xff] %v7224_v4  ;;  %10553 = vst [vmem:[#allocation294_spill] sm:$0xff] %v7232_v46  ;;  %v7256_v57 = vadd.f32 %v6930_v60, %v10555_v2  ;;  %v10569_v25 = vrot.slane %v10568_v63, 4  ;;  %v7288_v32 = vadd.f32 %v6962_v18, %v10571_v6  ;;  %v10579_v18 = vrot.slane %v6762_v17, 3  ;;  %v10580_v6 = vld [vmem:[#allocation204_spill] sm:$0xff] }
 0x171   : > { %10554 = vst [vmem:[#allocation295_spill] sm:$0xff] %v7235_v3  ;;  %v7270_v49 = vsel %vm572_vm1, %v10561_v0, %v10559_v20  ;;  %v10564_v3 = vld [vmem:[#allocation199_spill] sm:$0xff]  ;;  %v10572_v0 = vrot.slane %v6754_v19, 1  ;;  %v10573_v20 = vld [vmem:[#allocation201_spill] sm:$0xff]  ;;  %v10581_v19 = vrot.slane %v10580_v6, 3  ;;  %v10587_v6 = vrot.slane %v6770_v1, 1 }
 0x172   : > { %10562 = vst [vmem:[#allocation172_spill] sm:$0xff] %v7270_v49  ;;  %v10565_v60 = vrot.slane %v10564_v3, 3  ;;  %v7284_v43 = vsel %vm794_vm3, %v10569_v25, %v10567_v42  ;;  %v10574_v28 = vrot.slane %v10573_v20, 1  ;;  %v1738_v17 = vld [vmem:[#allocation2 + $0x128] sm:$0xf]  ;;  %v7346_v1 = vmul.f32 %v6343_v41, %v1330_v21  ;;  %v10646_v49 = vld [vmem:[#allocation52_spill] sm:$0xff] }
 0x173   : > { %10570 = vst [vmem:[#allocation198_spill] sm:$0xff] %v7284_v43  ;;  %v7311_v20 = vsel %vm683_vm2, %v10581_v19, %v10579_v18  ;;  %v10588_v18 = vld [vmem:[#allocation19_spill] sm:$0xff]  ;;  %v2146_v12 = vld [vmem:[#allocation2 + $0x128] sm:$0xf]  ;;  %v10616_v43 = vrot.slane %v10615_v34, 2 }
 0x174   : > { %v7277_v2 = vsel %vm683_vm2, %v10565_v60, %v10563_v37  ;;  %v7295_v3 = vsel %vm461_vm0, %v10574_v28, %v10572_v0  ;;  %v10576_v60 = vld [vmem:[#allocation202_spill] sm:$0xff]  ;;  %10582 = vst [vmem:[#allocation200_spill] sm:$0xff] %v7311_v20  ;;  %v10583_v28 = vrot.slane %v6766_v59, 4  ;;  %v10584_v37 = vld [vmem:[#allocation205_spill] sm:$0xff]  ;;  %v10589_v19 = vrot.slane %v10588_v18, 1  ;;  %v10595_v18 = vld [vmem:[#allocation60_spill] sm:$0xff] }
 0x175   : > { %10566 = vst [vmem:[#allocation197_spill] sm:$0xff] %v7277_v2  ;;  %v10577_v63 = vrot.slane %v10576_v60, 2  ;;  %v10585_v23 = vrot.slane %v10584_v37, 4  ;;  %v7335_v37 = vmul.f32 %v6336_v62, %v1330_v21  ;;  %v10626_v34 = vld [vmem:[#allocation195_spill] sm:$0xff]  ;;  %v10673_v30 = vld [vmem:[#allocation286_spill] sm:$0xff] }
 0x176   : > { %v7331_v0 = vsel %vm461_vm0, %v10589_v19, %v10587_v6  ;;  %v10594_v6 = vrot.slane %v10468_v50, 3  ;;  %v10596_v19 = vrot.slane %v10595_v18, 3  ;;  %v10605_v50 = vld [vmem:[#allocation136_spill] sm:$0xff]  ;;  %v10629_v2 = vld [vmem:[#allocation163_spill] sm:$0xff] }
 0x177   : > { %v7303_v42 = vsel %vm572_vm1, %v10577_v63, %v10575_v9  ;;  %v7319_v60 = vsel %vm794_vm3, %v10585_v23, %v10583_v28  ;;  %v7324_v63 = vadd.f32 %v7006_v53, %v6858_v51  ;;  %v10590_v28 = vrot.slane %v10462_v13, 2  ;;  %v10591_v23 = vld [vmem:[#allocation185_spill] sm:$0xff]  ;;  %v10598_v13 = vld [vmem:[#allocation239_spill] sm:$0xff] }
 0x178   : > { %10578 = vst [vmem:[#allocation199_spill] sm:$0xff] %v7303_v42  ;;  %10586 = vst [vmem:[#allocation14_spill] sm:$0xff] %v7319_v60  ;;  %v10592_v9 = vrot.slane %v10591_v23, 2  ;;  %v7353_v59 = vsel %vm683_vm2, %v10596_v19, %v10594_v6  ;;  %v7357_v4 = vmul.f32 %v10598_v13, %v1330_v21  ;;  %v10599_v23 = vld [vmem:[#allocation242_spill] sm:$0xff]  ;;  %v7368_v55 = vmul.f32 %v10605_v50, %v1330_v21  ;;  %v10606_v6 = vld [vmem:[#allocation193_spill] sm:$0xff] }
 0x179   : > { %10597 = vst [vmem:[#allocation202_spill] sm:$0xff] %v7353_v59  ;;  %v7372_v18 = vadd.f32 %v10606_v6, %v7158_v24  ;;  %v10607_v19 = vld [vmem:[#allocation243_spill] sm:$0xff]  ;;  %v10614_v21 = vrot.slane %v10613_v31, 2  ;;  %v10618_v6 = vld [vmem:[#allocation241_spill] sm:$0xff]  ;;  %v10624_v59 = vrot.slane %v10623_v27, 3  ;;  %v10634_v27 = vld [vmem:[#allocation246_spill] sm:$0xff] }
 0x17a   : > { %v7342_v51 = vsel %vm572_vm1, %v10592_v9, %v10590_v28  ;;  %v10600_v9 = vrot.slane %v10599_v23, 4  ;;  %v10601_v28 = vld [vmem:[#allocation147_spill] sm:$0xff]  ;;  %v10608_v25 = vrot.slane %v10607_v19, 1 }
 0x17b   : > { %10593 = vst [vmem:[#allocation201_spill] sm:$0xff] %v7342_v51  ;;  %v10602_v56 = vrot.slane %v10601_v28, 4  ;;  %v10611_v28 = vld [vmem:[#allocation240_spill] sm:$0xff]  ;;  %v7390_v24 = vsel %vm572_vm1, %v10616_v43, %v10614_v21  ;;  %v7409_v43 = vmul.f32 %v6391_v40, %v1738_v17  ;;  %v10627_v21 = vld [vmem:[#allocation245_spill] sm:$0xff]  ;;  %v10638_v51 = vld [vmem:[#allocation214_spill] sm:$0xff] }
 0x17c   : > { %v7379_v23 = vsel %vm461_vm0, %v10610_v54, %v10608_v25  ;;  %10617 = vst [vmem:[#allocation205_spill] sm:$0xff] %v7390_v24  ;;  %v7398_v54 = vmul.f32 %v6037_v5, %v1738_v17  ;;  %v10621_v25 = vld [vmem:[#allocation244_spill] sm:$0xff]  ;;  %v10628_v19 = vrot.slane %v10627_v21, 4  ;;  %v10632_v5 = vld [vmem:[#allocation215_spill] sm:$0xff]  ;;  %v2554_v21 = vld [vmem:[#allocation2 + $0x128] sm:$0xf] }
 0x17d   : > { %v7364_v53 = vsel %vm794_vm3, %v10602_v56, %v10600_v9  ;;  %v10612_v56 = vld [vmem:[#allocation183_spill] sm:$0xff] }
 0x17e   : > { %10603 = vst [vmem:[#allocation204_spill] sm:$0xff] %v7364_v53  ;;  %v7383_v9 = vmul.f32 %v10612_v56, %v1738_v17  ;;  %v10619_v53 = vld [vmem:[#allocation194_spill] sm:$0xff]  ;;  %v10622_v56 = vrot.slane %v10621_v25, 3  ;;  %v7420_v25 = vmul.f32 %v6111_v15, %v1738_v17  ;;  %v10645_v17 = vld [vmem:[#allocation168_spill] sm:$0xff] }
 0x17f   : > { %v7395_v60 = vadd.f32 %v10620_v35, %v10619_v53  ;;  %v10630_v53 = vrot.slane %v10629_v2, 4  ;;  %v7431_v2 = vmul.f32 %v10273_v11, %v2146_v12  ;;  %v10652_v11 = vld [vmem:[#allocation209_spill] sm:$0xff] }
 0x180   : > { %v7405_v31 = vsel %vm683_vm2, %v10624_v59, %v10622_v56  ;;  %10633 = vst [vmem:[#allocation60_spill] sm:$0xff] %v7420_v25  ;;  %v10635_v59 = vrot.slane %v10634_v27, 1  ;;  %v10636_v56 = vld [vmem:[#allocation206_spill] sm:$0xff]  ;;  %v10656_v27 = vrot.slane %v10527_v22, 4 }
 0x181   : > { %10625 = vst [vmem:[#allocation19_spill] sm:$0xff] %v7405_v31  ;;  %v7416_v35 = vsel %vm794_vm3, %v10630_v53, %v10628_v19  ;;  %v10637_v31 = vrot.slane %v10636_v56, 1  ;;  %10639 = vst [vmem:[#allocation239_spill] sm:$0xff] %v7431_v2  ;;  %v10640_v19 = vld [vmem:[#allocation253_spill] sm:$0xff]  ;;  %v10647_v56 = vld [vmem:[#allocation78_spill] sm:$0xff]  ;;  %v10653_v2 = vrot.slane %v10652_v11, 3  ;;  %v7468_v11 = vmul.f32 %v7091_v14, %v2146_v12 }
 0x182   : > { %10631 = vst [vmem:[#allocation185_spill] sm:$0xff] %v7416_v35  ;;  %v10641_v53 = vrot.slane %v10640_v19, 2  ;;  %v10642_v35 = vld [vmem:[#allocation208_spill] sm:$0xff]  ;;  %v7443_v25 = vadd.f32 %v10647_v56, %v10646_v49  ;;  %v10657_v49 = vld [vmem:[#allocation170_spill] sm:$0xff] }
 0x183   : > { %v7427_v20 = vsel %vm461_vm0, %v10637_v31, %v10635_v59  ;;  %v10643_v24 = vrot.slane %v10642_v35, 2  ;;  %v7446_v31 = vmul.f32 %v6077_v38, %v2146_v12  ;;  %v10650_v59 = vld [vmem:[#allocation254_spill] sm:$0xff]  ;;  %v10658_v56 = vrot.slane %v10657_v49, 4  ;;  %10660 = vst [vmem:[#allocation153_spill] sm:$0xff] %v7468_v11  ;;  %v10665_v49 = vld [vmem:[#allocation139_spill] sm:$0xff]  ;;  %v10675_v11 = vld [vmem:[#allocation288_spill] sm:$0xff] }
 0x184   : > { %10648 = vst [vmem:[#allocation147_spill] sm:$0xff] %v7443_v25  ;;  %v10651_v42 = vrot.slane %v10650_v59, 3  ;;  %v7472_v35 = vmul.f32 %v7098_v26, %v2554_v21 }
 0x185   : > { %v7438_v15 = vsel %vm572_vm1, %v10643_v24, %v10641_v53  ;;  %10649 = vst [vmem:[#allocation210_spill] sm:$0xff] %v7446_v31  ;;  %v7457_v24 = vmul.f32 %v10276_v29, %v2146_v12  ;;  %v2962_v53 = vld [vmem:[#allocation2 + $0x128] sm:$0xf]  ;;  %v7464_v38 = vsel %vm794_vm3, %v10658_v56, %v10656_v27 }
 0x186   : > { %10644 = vst [vmem:[#allocation242_spill] sm:$0xff] %v7438_v15  ;;  %v7453_v19 = vsel %vm683_vm2, %v10653_v2, %v10651_v42  ;;  %10659 = vst [vmem:[#allocation243_spill] sm:$0xff] %v7464_v38  ;;  %v2149_v2 = vld [vmem:[#allocation2 + $0x140] sm:$0xff]  ;;  %v10663_v15 = vld [vmem:[#allocation216_spill] sm:$0xff]  ;;  %v7497_v59 = vmul.f32 %v10675_v11, %v2962_v53  ;;  %v7506_v25 = vmul.f32 %v7232_v46, %v2962_v53 }
 0x187   : > { %10654 = vst [vmem:[#allocation136_spill] sm:$0xff] %v7453_v19  ;;  %10655 = vst [vmem:[#allocation193_spill] sm:$0xff] %v7457_v24  ;;  %v7476_v22 = vmul.f32 %v10663_v15, %v2554_v21  ;;  %v2168_v27 = vmul.f32 %v10665_v49, %v2149_v2  ;;  %v7481_v12 = vmul.f32 %v6336_v62, %v2149_v2  ;;  %v10670_v19 = vld [vmem:[#allocation268_spill] sm:$0xff]  ;;  %v10677_v56 = vld [vmem:[#allocation290_spill] sm:$0xff] }
 0x188   : > { %10661 = vst [vmem:[#allocation240_spill] sm:$0xff] %v7472_v35  ;;  %v7484_v42 = vmul.f32 %v6343_v41, %v2149_v2  ;;  %v7487_v38 = vmul.f32 %v10598_v13, %v2149_v2  ;;  %v7490_v29 = vmul.f32 %v10670_v19, %v2554_v21  ;;  %v7494_v49 = vmul.f32 %v10673_v30, %v2554_v21  ;;  %v10679_v24 = vld [vmem:[#allocation292_spill] sm:$0xff]  ;;  %v7515_v11 = vld [vmem:[%s4538_s20 + $0xf] ss:$0 sm:$0xff]  ;;  %v7547_v35 = vld [vmem:[%s4538_s20 + $0xb] ss:$0 sm:$0xff] }
 0x189   : > { %10664 = vst [vmem:[#allocation183_spill] sm:$0xff] %v7476_v22  ;;  %10667 = vst [vmem:[#allocation42_spill] sm:$0xff] %v7481_v12  ;;  %v7500_v58 = vmul.f32 %v10677_v56, %v2962_v53  ;;  %v7503_v48 = vmul.f32 %v10679_v24, %v2962_v53  ;;  %v10683_v22 = vld [vmem:[#allocation276_spill] sm:$0xff]  ;;  %v2574_v56 = vmul.f32 %v7515_v11, %v2149_v2  ;;  %v7525_v53 = vld [vmem:[%s4538_s20 + $0x11] ss:$0 sm:$0xff] }
 0x18a   : > { %10668 = vst [vmem:[#allocation155_spill] sm:$0xff] %v7484_v42  ;;  %10669 = vst [vmem:[#allocation241_spill] sm:$0xff] %v7487_v38  ;;  %v7512_v21 = vadd.f32 %v2168_v27, %v10683_v22  ;;  %v7550_v46 = vmul.f32 %v7547_v35, %v2149_v2  ;;  %v7553_v22 = vld [vmem:[%s4538_s20 + $0xc] ss:$0 sm:$0xff]  ;;  %v7560_v42 = vld [vmem:[%s4538_s20 + $0xd] ss:$0 sm:$0xff]  ;;  %v7575_v31 = vmul.f32 %v7098_v26, %v2149_v2 }
 0x18b   : > { %10671 = vst [vmem:[#allocation194_spill] sm:$0xff] %v7490_v29  ;;  %10674 = vst [vmem:[#allocation75_spill] sm:$0xff] %v7494_v49  ;;  %v7509_v29 = vmul.f32 %v10605_v50, %v2149_v2  ;;  %v7528_v50 = vmul.f32 %v7525_v53, %v2149_v2  ;;  %v7556_v27 = vmul.f32 %v7553_v22, %v2149_v2 }
 0x18c   : > { %10676 = vst [vmem:[#allocation244_spill] sm:$0xff] %v7497_v59  ;;  %10678 = vst [vmem:[#allocation157_spill] sm:$0xff] %v7500_v58  ;;  %v7519_v58 = vld [vmem:[%s4538_s20 + $0x10] ss:$0 sm:$0xff]  ;;  %v7543_v59 = vld [vmem:[%s4538_s20 + $0xa] ss:$0 sm:$0xff]  ;;  %v7563_v12 = vmul.f32 %v7560_v42, %v2149_v2 }
 0x18d   : > { %10680 = vst [vmem:[#allocation195_spill] sm:$0xff] %v7503_v48  ;;  %10681 = vst [vmem:[#allocation245_spill] sm:$0xff] %v7506_v25  ;;  %v7522_v24 = vmul.f32 %v7519_v58, %v2149_v2  ;;  %v7534_v25 = vmul.f32 %v6391_v40, %v2149_v2  ;;  %v2980_v49 = vmul.f32 %v7543_v59, %v2149_v2 }
 0x18e   : > { %10682 = vst [vmem:[#allocation163_spill] sm:$0xff] %v7509_v29  ;;  %10684 = vst [vmem:[#allocation215_spill] sm:$0xff] %v7515_v11  ;;  %v7537_v11 = vld [vmem:[%s4538_s20 + $0x13] ss:$0 sm:$0xff]  ;;  %v7579_v29 = vmul.f32 %v10663_v15, %v2149_v2 }
 0x18f   : > { %10685 = vst [vmem:[#allocation246_spill] sm:$0xff] %v7522_v24  ;;  %10686 = vst [vmem:[#allocation206_spill] sm:$0xff] %v7525_v53  ;;  %v7540_v48 = vmul.f32 %v7537_v11, %v2149_v2  ;;  %v10708_v53 = vld [vmem:[#allocation219_spill] sm:$0xff] }
 0x190   : > { %10687 = vst [vmem:[#allocation214_spill] sm:$0xff] %v7528_v50  ;;  %10688 = vst [vmem:[#allocation253_spill] sm:$0xff] %v7534_v25 }
 0x191   : > { %10689 = vst [vmem:[#allocation208_spill] sm:$0xff] %v7537_v11  ;;  %10690 = vst [vmem:[#allocation168_spill] sm:$0xff] %v7540_v48  ;;  %v7566_v11 = vmul.f32 %v7091_v14, %v2149_v2  ;;  %v7582_v14 = vmul.f32 %v10670_v19, %v2149_v2  ;;  %v10768_v48 = vld [vmem:[#allocation234_spill] sm:$0xff] }
 0x192   : > { %10691 = vst [vmem:[#allocation52_spill] sm:$0xff] %v7543_v59  ;;  %10692 = vst [vmem:[#allocation78_spill] sm:$0xff] %v7547_v35  ;;  %v10699_v59 = vld [vmem:[#allocation282_spill] sm:$0xff]  ;;  %v7570_v35 = vadd.f32 %v2574_v56, %v7228_v61  ;;  %v7589_v56 = vadd.f32 %v2980_v49, %v7241_v36  ;;  %v7605_v36 = vadd.f32 %v7295_v3, %v7288_v32  ;;  %v10707_v49 = vrot.slane %v6966_v47, 1  ;;  %v10714_v3 = vld [vmem:[#allocation221_spill] sm:$0xff] }
 0x193   : > { %10693 = vst [vmem:[#allocation254_spill] sm:$0xff] %v7550_v46  ;;  %10694 = vst [vmem:[#allocation209_spill] sm:$0xff] %v7553_v22  ;;  %v3386_v40 = vmul.f32 %v10699_v59, %v2149_v2  ;;  %v7585_v59 = vmul.f32 %v10673_v30, %v2149_v2  ;;  %v7600_v2 = vadd.f32 %v7263_v39, %v7256_v57  ;;  %v10709_v22 = vrot.slane %v10708_v53, 1  ;;  %v10721_v61 = vld [vmem:[#allocation223_spill] sm:$0xff]  ;;  %v10724_v39 = vld [vmem:[#allocation224_spill] sm:$0xff] }
 0x194   : > { %10695 = vst [vmem:[#allocation170_spill] sm:$0xff] %v7556_v27  ;;  %10696 = vst [vmem:[#allocation216_spill] sm:$0xff] %v7560_v42  ;;  %v10713_v47 = vrot.slane %v6988_v45, 3  ;;  %v10715_v53 = vrot.slane %v10714_v3, 3  ;;  %v10720_v32 = vrot.slane %v7010_v16, 1  ;;  %v10722_v45 = vrot.slane %v10721_v61, 1 }
 0x195   : > { %10697 = vst [vmem:[#allocation139_spill] sm:$0xff] %v7563_v12  ;;  %10698 = vst [vmem:[#allocation276_spill] sm:$0xff] %v7566_v11  ;;  %v7596_v25 = vadd.f32 %v3386_v40, %v7247_v44  ;;  %v7612_v38 = vsel %vm461_vm0, %v10709_v22, %v10707_v49  ;;  %v10710_v40 = vrot.slane %v6977_v8, 2  ;;  %v10711_v44 = vld [vmem:[#allocation220_spill] sm:$0xff]  ;;  %v10716_v8 = vrot.slane %v6999_v7, 4  ;;  %v10761_v11 = vld [vmem:[#allocation233_spill] sm:$0xff] }
 0x196   : > { %10700 = vst [vmem:[#allocation282_spill] sm:$0xff] %v7570_v35  ;;  %10701 = vst [vmem:[#allocation296_spill] sm:$0xff] %v7575_v31  ;;  %v10712_v35 = vrot.slane %v10711_v44, 2  ;;  %v7629_v22 = vsel %vm683_vm2, %v10715_v53, %v10713_v47  ;;  %v1740_v49 = vld [vmem:[#allocation2 + $0x138] sm:$0xf]  ;;  %v10717_v44 = vld [vmem:[#allocation222_spill] sm:$0xff]  ;;  %v1418_v3 = vsel %vm461_vm0, %v10722_v45, %v10720_v32 }
 0x197   : > { %10702 = vst [vmem:[#allocation297_spill] sm:$0xff] %v7579_v29  ;;  %10703 = vst [vmem:[#allocation298_spill] sm:$0xff] %v7582_v14  ;;  %v1435_v47 = vrot.slane %v7335_v37, 1  ;;  %v10723_v53 = vrot.slane %v7021_v33, 2  ;;  %v10725_v7 = vrot.slane %v10724_v39, 2  ;;  %v10729_v37 = vrot.slane %v10604_v10, 4 }
 0x198   : > { %10704 = vst [vmem:[#allocation299_spill] sm:$0xff] %v7585_v59  ;;  %10705 = vst [vmem:[#allocation300_spill] sm:$0xff] %v7589_v56  ;;  %v7619_v57 = vsel %vm572_vm1, %v10712_v35, %v10710_v40  ;;  %v1404_v40 = vadd.f32 %v7331_v0, %v7324_v63  ;;  %v10727_v0 = vld [vmem:[#allocation227_spill] sm:$0xff]  ;;  %v1827_v10 = vrot.slane %v7383_v9, 1  ;;  %v10740_v9 = vrot.slane %v10626_v34, 3  ;;  %v10757_v29 = vld [vmem:[#allocation113_spill] sm:$0xff] }
 0x199   : > { %10706 = vst [vmem:[#allocation301_spill] sm:$0xff] %v7596_v25  ;;  %v10718_v25 = vrot.slane %v10717_v44, 4  ;;  %v7651_v44 = vsel %vm572_vm1, %v10725_v7, %v10723_v53  ;;  %v10728_v63 = vrot.slane %v10727_v0, 3  ;;  %v10730_v32 = vld [vmem:[#allocation207_spill] sm:$0xff]  ;;  %v10733_v53 = vrot.slane %v10611_v28, 1 }
 0x19a   : > { %v10731_v33 = vrot.slane %v10730_v32, 4  ;;  %v10734_v7 = vld [vmem:[#allocation27_spill] sm:$0xff]  ;;  %v7679_v32 = vmul.f32 %v6336_v62, %v1740_v49  ;;  %v10741_v62 = vld [vmem:[#allocation229_spill] sm:$0xff]  ;;  %v7716_v34 = vld [vmem:[%s4538_s20 + $0x18] ss:$0 sm:$0xff]  ;;  %v10752_v56 = vrot.slane %v10645_v17, 2 }
 0x19b   : > { %v7636_v35 = vsel %vm794_vm3, %v10718_v25, %v10716_v8  ;;  %v10726_v8 = vrot.slane %v7032_v52, 3  ;;  %v1796_v52 = vadd.f32 %v7379_v23, %v7372_v18  ;;  %v10739_v23 = vld [vmem:[#allocation111_spill] sm:$0xff]  ;;  %v2556_v18 = vld [vmem:[#allocation2 + $0x138] sm:$0xf]  ;;  %v10762_v12 = vrot.slane %v10761_v11, 3  ;;  %v10786_v50 = vld [vmem:[#allocation209_spill] sm:$0xff] }
 0x19c   : > { %10719 = vst [vmem:[#allocation219_spill] sm:$0xff] %v7636_v35  ;;  %v7667_v39 = vsel %vm794_vm3, %v10731_v33, %v10729_v37  ;;  %v10736_v37 = vrot.slane %v10618_v6, 2  ;;  %v10737_v33 = vld [vmem:[#allocation228_spill] sm:$0xff]  ;;  %v7691_v28 = vadd.f32 %v10739_v23, %v7395_v60  ;;  %v10751_v25 = vld [vmem:[#allocation239_spill] sm:$0xff] }
 0x19d   : > { %v7659_v16 = vsel %vm683_vm2, %v10728_v63, %v10726_v8  ;;  %10732 = vst [vmem:[#allocation220_spill] sm:$0xff] %v7667_v39  ;;  %v10735_v8 = vrot.slane %v10734_v7, 1  ;;  %v2148_v63 = vld [vmem:[#allocation2 + $0x138] sm:$0xf]  ;;  %v10738_v61 = vrot.slane %v10737_v33, 2  ;;  %v10742_v7 = vrot.slane %v10741_v62, 3 }
 0x19e   : > { %v10744_v33 = vld [vmem:[#allocation230_spill] sm:$0xff]  ;;  %v7719_v62 = vmul.f32 %v7716_v34, %v1740_v49  ;;  %v10773_v11 = vld [vmem:[#allocation271_spill] sm:$0xff] }
 0x19f   : > { %v1810_v0 = vsel %vm461_vm0, %v10735_v8, %v10733_v53  ;;  %v7686_v45 = vsel %vm572_vm1, %v10738_v61, %v10736_v37  ;;  %v7694_v53 = vmul.f32 %v6343_v41, %v1740_v49  ;;  %v7701_v6 = vsel %vm683_vm2, %v10742_v7, %v10740_v9  ;;  %v10747_v41 = vld [vmem:[#allocation60_spill] sm:$0xff]  ;;  %v10749_v8 = vld [vmem:[#allocation231_spill] sm:$0xff] }
 0x1a0   : > { %v7705_v61 = vmul.f32 %v10598_v13, %v1740_v49  ;;  %v10743_v37 = vrot.slane %v10632_v5, 4  ;;  %v10745_v60 = vrot.slane %v10744_v33, 4  ;;  %v7723_v9 = vadd.f32 %v7427_v20, %v7512_v21  ;;  %v10753_v49 = vld [vmem:[#allocation232_spill] sm:$0xff]  ;;  %v10755_v20 = vld [vmem:[#allocation210_spill] sm:$0xff] }
 0x1a1   : > { %v10748_v7 = vrot.slane %v10638_v51, 1  ;;  %v10750_v5 = vrot.slane %v10749_v8, 1  ;;  %v10754_v59 = vrot.slane %v10753_v49, 2  ;;  %v10756_v51 = vld [vmem:[#allocation147_spill] sm:$0xff]  ;;  %v10764_v49 = vld [vmem:[#allocation193_spill] sm:$0xff]  ;;  %v10766_v21 = vld [vmem:[#allocation256_spill] sm:$0xff] }
 0x1a2   : > { %v7712_v23 = vsel %vm794_vm3, %v10745_v60, %v10743_v37  ;;  %v7732_v60 = vmul.f32 %v7519_v58, %v2148_v63  ;;  %v7744_v8 = vadd.f32 %v10757_v29, %v10756_v51  ;;  %v10759_v37 = vld [vmem:[#allocation269_spill] sm:$0xff]  ;;  %v10767_v46 = vrot.slane %v10766_v21, 4  ;;  %v2964_v21 = vld [vmem:[#allocation2 + $0x138] sm:$0xf] }
 0x1a3   : > { %10746 = vst [vmem:[#allocation221_spill] sm:$0xff] %v7712_v23  ;;  %v2202_v33 = vsel %vm461_vm0, %v10750_v5, %v10748_v7  ;;  %v7739_v14 = vsel %vm572_vm1, %v10754_v59, %v10752_v56  ;;  %v10758_v7 = vld [vmem:[#allocation206_spill] sm:$0xff]  ;;  %v10760_v31 = vrot.slane %v10759_v37, 3  ;;  %v10765_v59 = vld [vmem:[#allocation203_spill] sm:$0xff]  ;;  %v10769_v29 = vrot.slane %v10768_v48, 4  ;;  %v10772_v37 = vld [vmem:[#allocation208_spill] sm:$0xff] }
 0x1a4   : > { %v7747_v5 = vmul.f32 %v10758_v7, %v2148_v63  ;;  %v7758_v56 = vmul.f32 %v10765_v59, %v2148_v63  ;;  %v7769_v39 = vmul.f32 %v10772_v37, %v2148_v63  ;;  %v10779_v23 = vld [vmem:[#allocation78_spill] sm:$0xff]  ;;  %v10805_v37 = vld [vmem:[#allocation21_spill] sm:$0xff] }
 0x1a5   : > { %v7754_v17 = vsel %vm683_vm2, %v10762_v12, %v10760_v31  ;;  %v7765_v51 = vsel %vm794_vm3, %v10769_v29, %v10767_v46  ;;  %v10774_v31 = vrot.slane %v10773_v11, 1  ;;  %v10775_v12 = vld [vmem:[#allocation235_spill] sm:$0xff]  ;;  %v7780_v48 = vmul.f32 %v10779_v23, %v2556_v18  ;;  %v10780_v46 = vld [vmem:[#allocation272_spill] sm:$0xff]  ;;  %v10793_v23 = vld [vmem:[#allocation194_spill] sm:$0xff] }
 0x1a6   : > { %10763 = vst [vmem:[#allocation222_spill] sm:$0xff] %v7754_v17  ;;  %10770 = vst [vmem:[#allocation223_spill] sm:$0xff] %v7765_v51  ;;  %v10776_v35 = vrot.slane %v10775_v12, 1  ;;  %v10781_v29 = vrot.slane %v10780_v46, 2  ;;  %v10782_v51 = vld [vmem:[#allocation236_spill] sm:$0xff]  ;;  %v7791_v12 = vmul.f32 %v10786_v50, %v2556_v18  ;;  %v7802_v46 = vmul.f32 %v7560_v42, %v2556_v18 }
 0x1a7   : > { %v10783_v24 = vrot.slane %v10782_v51, 2  ;;  %v10794_v51 = vld [vmem:[#allocation274_spill] sm:$0xff] }
 0x1a8   : > { %v7776_v27 = vsel %vm461_vm0, %v10776_v35, %v10774_v31  ;;  %10787 = vst [vmem:[#allocation207_spill] sm:$0xff] %v7791_v12  ;;  %v10788_v35 = vld [vmem:[#allocation273_spill] sm:$0xff] }
 0x1a9   : > { %10777 = vst [vmem:[#allocation224_spill] sm:$0xff] %v7776_v27  ;;  %v7787_v63 = vsel %vm572_vm1, %v10783_v24, %v10781_v29  ;;  %v10789_v31 = vrot.slane %v10788_v35, 3  ;;  %v10790_v27 = vld [vmem:[#allocation237_spill] sm:$0xff]  ;;  %v10795_v24 = vrot.slane %v10794_v51, 4  ;;  %v10796_v29 = vld [vmem:[#allocation238_spill] sm:$0xff] }
 0x1aa   : > { %10784 = vst [vmem:[#allocation227_spill] sm:$0xff] %v7787_v63  ;;  %v10791_v7 = vrot.slane %v10790_v27, 3  ;;  %v10797_v63 = vrot.slane %v10796_v29, 4  ;;  %v10800_v35 = vld [vmem:[#allocation165_spill] sm:$0xff]  ;;  %v1031_v29 = vadd.f32 %v7612_v38, %v7605_v36  ;;  %v1814_v27 = vadd.f32 %v1810_v0, %v1796_v52  ;;  %v10811_v36 = vld [vmem:[#allocation195_spill] sm:$0xff]  ;;  %v10814_v0 = vld [vmem:[#allocation176_spill] sm:$0xff] }
 0x1ab   : > { %v7813_v12 = vmul.f32 %v10800_v35, %v2556_v18  ;;  %v1845_v38 = vrot.slane %v7679_v32, 1  ;;  %v7848_v32 = vmul.f32 %v10673_v30, %v2964_v21 }
 0x1ac   : > { %v7798_v59 = vsel %vm683_vm2, %v10791_v7, %v10789_v31  ;;  %v7809_v11 = vsel %vm794_vm3, %v10797_v63, %v10795_v24  ;;  %v10802_v31 = vld [vmem:[#allocation20_spill] sm:$0xff]  ;;  %v1422_v63 = vadd.f32 %v1418_v3, %v1404_v40  ;;  %v7825_v24 = vmul.f32 %v10663_v15, %v2964_v21 }
 0x1ad   : > { %10792 = vst [vmem:[#allocation27_spill] sm:$0xff] %v7798_v59  ;;  %10798 = vst [vmem:[#allocation228_spill] sm:$0xff] %v7809_v11  ;;  %v582_v17 = vadd.f32 %v10802_v31, %v7600_v2  ;;  %v7819_v59 = vmul.f32 %v7098_v26, %v2964_v21  ;;  %v10806_v11 = vld [vmem:[#allocation248_spill] sm:$0xff]  ;;  %v10808_v31 = vld [vmem:[#allocation30_spill] sm:$0xff]  ;;  %v7838_v3 = vmul.f32 %v10670_v19, %v2964_v21 }
 0x1ae   : > { %v10807_v35 = vrot.slane %v10806_v11, 1  ;;  %v3372_v2 = vld [vmem:[#allocation2 + $0x138] sm:$0xf]  ;;  %v1049_v26 = vadd.f32 %v10808_v31, %v1031_v29  ;;  %v10815_v29 = vld [vmem:[#allocation181_spill] sm:$0xff]  ;;  %v10824_v21 = vld [vmem:[#allocation294_spill] sm:$0xff] }
 0x1af   : > { %10803 = vst [vmem:[#allocation111_spill] sm:$0xff] %v7819_v59  ;;  %v604_v18 = vadd.f32 %v10805_v37, %v582_v17  ;;  %v10809_v59 = vld [vmem:[#allocation252_spill] sm:$0xff]  ;;  %v10812_v17 = vld [vmem:[#allocation173_spill] sm:$0xff] }
 0x1b0   : > { %v1436_v7 = vsel %vm461_vm0, %v10807_v35, %v1435_v47  ;;  %v10810_v51 = vrot.slane %v10809_v59, 1  ;;  %v1067_v35 = vadd.f32 %v10814_v0, %v1049_v26  ;;  %v10819_v40 = vld [vmem:[#allocation88_spill] sm:$0xff]  ;;  %v10832_v47 = vrot.slane %v10751_v25, 1 }
 0x1b1   : > { %v1440_v50 = vadd.f32 %v1436_v7, %v1422_v63  ;;  %v626_v37 = vadd.f32 %v10812_v17, %v604_v18  ;;  %v10816_v63 = vld [vmem:[#allocation217_spill] sm:$0xff]  ;;  %v10821_v17 = vld [vmem:[#allocation292_spill] sm:$0xff] }
 0x1b2   : > { %v1828_v42 = vsel %vm461_vm0, %v10810_v51, %v1827_v10  ;;  %v10817_v59 = vrot.slane %v10816_v63, 1  ;;  %v10818_v51 = vld [vmem:[#allocation288_spill] sm:$0xff]  ;;  %v7858_v26 = vmul.f32 %v10821_v17, %v3372_v2  ;;  %v10828_v17 = vld [vmem:[#allocation201_spill] sm:$0xff] }
 0x1b3   : > { %v1832_v11 = vadd.f32 %v1828_v42, %v1814_v27  ;;  %v1458_v7 = vadd.f32 %v10815_v29, %v1440_v50  ;;  %v7851_v31 = vmul.f32 %v10818_v51, %v3372_v2  ;;  %v648_v19 = vadd.f32 %v10819_v40, %v626_v37  ;;  %v10820_v42 = vld [vmem:[#allocation290_spill] sm:$0xff]  ;;  %v10822_v50 = vld [vmem:[#allocation187_spill] sm:$0xff]  ;;  %v10825_v51 = vld [vmem:[#allocation172_spill] sm:$0xff] }
 0x1b4   : > { %v1846_v10 = vsel %vm461_vm0, %v10817_v59, %v1845_v38  ;;  %v7855_v27 = vmul.f32 %v10820_v42, %v3372_v2  ;;  %v1085_v0 = vadd.f32 %v10822_v50, %v1067_v35  ;;  %v10823_v29 = vld [vmem:[#allocation190_spill] sm:$0xff]  ;;  %v7865_v59 = vmul.f32 %v10824_v21, %v3372_v2  ;;  %v10826_v40 = vld [vmem:[#allocation211_spill] sm:$0xff]  ;;  %v10830_v50 = vld [vmem:[#allocation249_spill] sm:$0xff] }
 0x1b5   : > { %v1850_v18 = vadd.f32 %v1846_v10, %v1832_v11  ;;  %v1476_v63 = vadd.f32 %v10823_v29, %v1458_v7  ;;  %v7862_v38 = vld [vmem:[#allocation2 + $0x148] sm:$0xf]  ;;  %v670_v52 = vadd.f32 %v10825_v51, %v648_v19  ;;  %v2206_v11 = vadd.f32 %v2202_v33, %v7723_v9  ;;  %v10827_v10 = vld [vmem:[#allocation199_spill] sm:$0xff]  ;;  %v10833_v2 = vld [vmem:[#allocation188_spill] sm:$0xff] }
 0x1b6   : > { %v1103_v42 = vadd.f32 %v10827_v10, %v1085_v0  ;;  %v10829_v35 = vrot.slane %v7346_v1, 2  ;;  %v10831_v7 = vrot.slane %v10830_v50, 2  ;;  %v10834_v21 = vrot.slane %v10833_v2, 1  ;;  %v10835_v51 = vld [vmem:[#allocation22_spill] sm:$0xff] }
 0x1b7   : > { %v1868_v37 = vadd.f32 %v10826_v40, %v1850_v18  ;;  %v1494_v30 = vadd.f32 %v10828_v17, %v1476_v63  ;;  %v693_v18 = vadd.f32 %v10835_v51, %v670_v52  ;;  %v10836_v40 = vld [vmem:[#allocation205_spill] sm:$0xff]  ;;  %v1935_v33 = vrot.slane %v7694_v53, 2  ;;  %v7889_v17 = vld [vmem:[%s4538_s20 + $0x15] ss:$0 sm:$0xff]  ;;  %v10840_v50 = vld [vmem:[#allocation250_spill] sm:$0xff] }
 0x1b8   : > { %v1526_v29 = vsel %vm572_vm1, %v10831_v7, %v10829_v35  ;;  %v2220_v19 = vsel %vm461_vm0, %v10834_v21, %v10832_v47  ;;  %v1121_v63 = vadd.f32 %v7619_v57, %v1103_v42  ;;  %v2237_v10 = vrot.slane %v7732_v60, 1  ;;  %10837 = vst [vmem:[#allocation229_spill] sm:$0xff] %v7889_v17  ;;  %v10838_v35 = vld [vmem:[#allocation24_spill] sm:$0xff]  ;;  %v10845_v42 = vld [vmem:[#allocation31_spill] sm:$0xff]  ;;  %v10846_v21 = vld [vmem:[#allocation162_spill] sm:$0xff] }
 0x1b9   : > { %v1886_v9 = vadd.f32 %v10836_v40, %v1868_v37  ;;  %v2224_v0 = vadd.f32 %v2220_v19, %v2206_v11  ;;  %v1512_v1 = vadd.f32 %v7651_v44, %v1494_v30  ;;  %v2246_v25 = vmul.f32 %v7889_v17, %v7862_v38  ;;  %v10843_v30 = vld [vmem:[#allocation255_spill] sm:$0xff] }
 0x1ba   : > { %v715_v47 = vadd.f32 %v10838_v35, %v693_v18  ;;  %v10839_v52 = vrot.slane %v7357_v4, 3  ;;  %v10841_v37 = vrot.slane %v10840_v50, 3  ;;  %v10842_v57 = vrot.slane %v7398_v54, 2  ;;  %v10848_v18 = vld [vmem:[#allocation174_spill] sm:$0xff] }
 0x1bb   : > { %v1904_v11 = vadd.f32 %v7686_v45, %v1886_v9  ;;  %v10844_v44 = vrot.slane %v10843_v30, 2  ;;  %v1139_v7 = vadd.f32 %v10845_v42, %v1121_v63  ;;  %v1530_v2 = vadd.f32 %v1526_v29, %v1512_v1  ;;  %v10850_v45 = vld [vmem:[#allocation251_spill] sm:$0xff]  ;;  %v10853_v29 = vld [vmem:[#allocation182_spill] sm:$0xff] }
 0x1bc   : > { %v1616_v53 = vsel %vm683_vm2, %v10841_v37, %v10839_v52  ;;  %v10847_v19 = vrot.slane %v10846_v21, 1  ;;  %v2255_v4 = vrot.slane %v2246_v25, 1  ;;  %v737_v40 = vadd.f32 %v10848_v18, %v715_v47  ;;  %v10852_v37 = vld [vmem:[#allocation177_spill] sm:$0xff]  ;;  %v10856_v25 = vld [vmem:[#allocation42_spill] sm:$0xff] }
 0x1bd   : > { %v1918_v60 = vsel %vm572_vm1, %v10844_v44, %v10842_v57  ;;  %v10849_v35 = vrot.slane %v7368_v55, 4  ;;  %v10851_v9 = vrot.slane %v10850_v45, 4  ;;  %v1157_v63 = vadd.f32 %v10852_v37, %v1139_v7  ;;  %v10854_v57 = vld [vmem:[#allocation196_spill] sm:$0xff]  ;;  %v10858_v55 = vld [vmem:[#allocation166_spill] sm:$0xff] }
 0x1be   : > { %v2238_v51 = vsel %vm461_vm0, %v10847_v19, %v2237_v10  ;;  %v1922_v52 = vadd.f32 %v1918_v60, %v1904_v11  ;;  %v1548_v1 = vadd.f32 %v10853_v29, %v1530_v2  ;;  %v10855_v30 = vrot.slane %v10854_v57, 2  ;;  %v10859_v21 = vld [vmem:[#allocation130_spill] sm:$0xff]  ;;  %v10861_v60 = vld [vmem:[#allocation189_spill] sm:$0xff]  ;;  %v10867_v37 = vld [vmem:[#allocation212_spill] sm:$0xff] }
 0x1bf   : > { %v7915_v54 = vsel %vm794_vm3, %v10851_v9, %v10849_v35  ;;  %v2242_v50 = vadd.f32 %v2238_v51, %v2224_v0  ;;  %v10857_v44 = vrot.slane %v10856_v25, 1  ;;  %v759_v42 = vadd.f32 %v10858_v55, %v737_v40  ;;  %v10862_v51 = vld [vmem:[#allocation191_spill] sm:$0xff]  ;;  %v10864_v35 = vld [vmem:[#allocation257_spill] sm:$0xff] }
 0x1c0   : > { %v1936_v10 = vsel %vm572_vm1, %v10855_v30, %v1935_v33  ;;  %v7928_v19 = vadd.f32 %v10859_v21, %v7691_v28  ;;  %v1175_v7 = vadd.f32 %v10861_v60, %v1157_v63  ;;  %v1566_v2 = vadd.f32 %v10862_v51, %v1548_v1  ;;  %v7938_v9 = vld [vmem:[%s4538_s20 + $0x16] ss:$0 sm:$0xff]  ;;  %v10866_v40 = vld [vmem:[#allocation197_spill] sm:$0xff]  ;;  %v10868_v63 = vld [vmem:[#allocation242_spill] sm:$0xff] }
 0x1c1   : > { %v2256_v47 = vsel %vm461_vm0, %v10857_v44, %v2255_v4  ;;  %v1940_v11 = vadd.f32 %v1936_v10, %v1922_v52  ;;  %v10863_v18 = vrot.slane %v7409_v43, 3  ;;  %v10865_v33 = vrot.slane %v10864_v35, 3  ;;  %v10869_v1 = vld [vmem:[#allocation200_spill] sm:$0xff]  ;;  %v10870_v43 = vld [vmem:[#allocation202_spill] sm:$0xff]  ;;  %v10872_v25 = vld [vmem:[#allocation179_spill] sm:$0xff] }
 0x1c2   : > { %10860 = vst [vmem:[#allocation230_spill] sm:$0xff] %v7928_v19  ;;  %v2260_v0 = vadd.f32 %v2256_v47, %v2242_v50  ;;  %v2336_v4 = vmul.f32 %v7938_v9, %v7862_v38  ;;  %v781_v28 = vadd.f32 %v10866_v40, %v759_v42  ;;  %v2025_v50 = vrot.slane %v7705_v61, 3  ;;  %v10874_v42 = vld [vmem:[#allocation25_spill] sm:$0xff] }
 0x1c3   : > { %v2008_v45 = vsel %vm683_vm2, %v10865_v33, %v10863_v18  ;;  %v1958_v52 = vadd.f32 %v10867_v37, %v1940_v11  ;;  %v1193_v57 = vadd.f32 %v10869_v1, %v1175_v7  ;;  %v1584_v30 = vadd.f32 %v10870_v43, %v1566_v2  ;;  %v10875_v11 = vld [vmem:[#allocation19_spill] sm:$0xff]  ;;  %v10877_v2 = vld [vmem:[#allocation258_spill] sm:$0xff] }
 0x1c4   : > { %v2278_v29 = vadd.f32 %v10868_v63, %v2260_v0  ;;  %v10871_v10 = vrot.slane %v10747_v41, 4  ;;  %v10873_v44 = vrot.slane %v10872_v25, 4  ;;  %v2327_v55 = vrot.slane %v7747_v5, 2  ;;  %v10879_v5 = vld [vmem:[#allocation26_spill] sm:$0xff]  ;;  %v10880_v37 = vld [vmem:[#allocation247_spill] sm:$0xff]  ;;  %v10882_v63 = vld [vmem:[#allocation32_spill] sm:$0xff] }
 0x1c5   : > { %v804_v21 = vadd.f32 %v10874_v42, %v781_v28  ;;  %v1976_v60 = vadd.f32 %v10875_v11, %v1958_v52  ;;  %v2115_v61 = vrot.slane %v7719_v62, 4  ;;  %v1211_v7 = vadd.f32 %v7629_v22, %v1193_v57  ;;  %v10888_v42 = vld [vmem:[#allocation105_spill] sm:$0xff]  ;;  %v10889_v11 = vld [vmem:[#allocation155_spill] sm:$0xff] }
 0x1c6   : > { %v7953_v47 = vsel %vm794_vm3, %v10873_v44, %v10871_v10  ;;  %v2296_v0 = vadd.f32 %v7739_v14, %v2278_v29  ;;  %v1602_v51 = vadd.f32 %v7659_v16, %v1584_v30  ;;  %v10876_v41 = vrot.slane %v10755_v20, 2  ;;  %v10883_v16 = vld [vmem:[#allocation270_spill] sm:$0xff] }
 0x1c7   : > { %v10878_v18 = vrot.slane %v10877_v2, 2  ;;  %v2345_v33 = vrot.slane %v2336_v4, 2  ;;  %v826_v40 = vadd.f32 %v10879_v5, %v804_v21  ;;  %v1994_v28 = vadd.f32 %v7701_v6, %v1976_v60  ;;  %v10885_v4 = vld [vmem:[#allocation175_spill] sm:$0xff]  ;;  %v10887_v44 = vld [vmem:[#allocation178_spill] sm:$0xff] }
 0x1c8   : > { %v10881_v52 = vrot.slane %v10880_v37, 3  ;;  %v1229_v22 = vadd.f32 %v10882_v63, %v1211_v7  ;;  %v1620_v29 = vadd.f32 %v1616_v53, %v1602_v51  ;;  %v10884_v1 = vrot.slane %v10883_v16, 2  ;;  %v10886_v6 = vld [vmem:[#allocation131_spill] sm:$0xff] }
 0x1c9   : > { %v2310_v35 = vsel %vm572_vm1, %v10878_v18, %v10876_v41  ;;  %v2426_v57 = vmul.f32 %v10598_v13, %v7862_v38  ;;  %v848_v43 = vadd.f32 %v10885_v4, %v826_v40  ;;  %v2012_v30 = vadd.f32 %v2008_v45, %v1994_v28  ;;  %v10891_v7 = vld [vmem:[#allocation55_spill] sm:$0xff]  ;;  %v10895_v40 = vld [vmem:[#allocation192_spill] sm:$0xff]  ;;  %v10903_v4 = vld [vmem:[#allocation14_spill] sm:$0xff] }
 0x1ca   : > { %v2026_v62 = vsel %vm683_vm2, %v10881_v52, %v2025_v50  ;;  %v2314_v14 = vadd.f32 %v2310_v35, %v2296_v0  ;;  %v2328_v20 = vsel %vm572_vm1, %v10884_v1, %v2327_v55  ;;  %v2331_v10 = vadd.f32 %v10886_v6, %v7744_v8  ;;  %v2558_v0 = vld [vmem:[#allocation2 + $0x148] sm:$0xf]  ;;  %v10893_v2 = vld [vmem:[#allocation167_spill] sm:$0xff]  ;;  %v10894_v35 = vld [vmem:[#allocation16_spill] sm:$0xff] }
 0x1cb   : > { %v1247_v50 = vadd.f32 %v10887_v44, %v1229_v22  ;;  %v1638_v21 = vadd.f32 %v10888_v42, %v1620_v29  ;;  %v10890_v53 = vrot.slane %v10889_v11, 2  ;;  %v2516_v55 = vmul.f32 %v7716_v34, %v7862_v38  ;;  %v10901_v29 = vld [vmem:[#allocation259_spill] sm:$0xff]  ;;  %v10906_v44 = vld [vmem:[#allocation222_spill] sm:$0xff] }
 0x1cc   : > { %v2332_v25 = vadd.f32 %v2328_v20, %v2314_v14  ;;  %v2030_v13 = vadd.f32 %v2026_v62, %v2012_v30  ;;  %v10892_v51 = vrot.slane %v10891_v7, 4  ;;  %v2417_v8 = vrot.slane %v7758_v56, 3  ;;  %v10897_v14 = vld [vmem:[#allocation65_spill] sm:$0xff]  ;;  %v10899_v62 = vld [vmem:[#allocation136_spill] sm:$0xff]  ;;  %v10909_v42 = vld [vmem:[#allocation275_spill] sm:$0xff] }
 0x1cd   : > { %v2346_v60 = vsel %vm572_vm1, %v10890_v53, %v2345_v33  ;;  %v870_v18 = vadd.f32 %v10893_v2, %v848_v43  ;;  %v1265_v5 = vadd.f32 %v10894_v35, %v1247_v50  ;;  %v1656_v28 = vadd.f32 %v10895_v40, %v1638_v21  ;;  %v10896_v33 = vld [vmem:[#allocation213_spill] sm:$0xff]  ;;  %v10904_v30 = vld [vmem:[#allocation204_spill] sm:$0xff] }
 0x1ce   : > { %v2116_v45 = vsel %vm794_vm3, %v10892_v51, %v2115_v61  ;;  %v2350_v41 = vadd.f32 %v2346_v60, %v2332_v25  ;;  %v2435_v37 = vrot.slane %v2426_v57, 3  ;;  %v2048_v52 = vadd.f32 %v10896_v33, %v2030_v13  ;;  %v10911_v53 = vld [vmem:[#allocation241_spill] sm:$0xff]  ;;  %v10915_v7 = vld [vmem:[#allocation260_spill] sm:$0xff] }
 0x1cf   : > { %v7997_v38 = vadd.f32 %v10897_v14, %v2331_v10  ;;  %v2507_v22 = vrot.slane %v7769_v39, 4  ;;  %v10900_v61 = vrot.slane %v10764_v49, 3  ;;  %v10902_v56 = vrot.slane %v10901_v29, 3  ;;  %v10905_v10 = vld [vmem:[#allocation185_spill] sm:$0xff]  ;;  %v10907_v39 = vld [vmem:[#allocation198_spill] sm:$0xff] }
 0x1d0   : > { %v2368_v63 = vadd.f32 %v10899_v62, %v2350_v41  ;;  %v2525_v1 = vrot.slane %v2516_v55, 4  ;;  %v2629_v20 = vrot.slane %v7780_v48, 1  ;;  %v2638_v57 = vmul.f32 %v7519_v58, %v2558_v0  ;;  %v10913_v55 = vld [vmem:[#allocation153_spill] sm:$0xff]  ;;  %v10926_v62 = vld [vmem:[#allocation240_spill] sm:$0xff] }
 0x1d1   : > { %10898 = vst [vmem:[#allocation60_spill] sm:$0xff] %v7997_v38  ;;  %v2400_v16 = vsel %vm683_vm2, %v10902_v56, %v10900_v61  ;;  %v1283_v43 = vadd.f32 %v10903_v4, %v1265_v5  ;;  %v1674_v6 = vadd.f32 %v10904_v30, %v1656_v28  ;;  %v2066_v25 = vadd.f32 %v10905_v10, %v2048_v52  ;;  %v10918_v2 = vld [vmem:[#allocation221_spill] sm:$0xff]  ;;  %v10923_v52 = vld [vmem:[#allocation163_spill] sm:$0xff]  ;;  %v10928_v61 = vld [vmem:[#allocation152_spill] sm:$0xff] }
 0x1d2   : > { %v2386_v50 = vadd.f32 %v10906_v44, %v2368_v63  ;;  %v8013_v49 = vadd.f32 %v10907_v39, %v870_v18  ;;  %v10910_v21 = vrot.slane %v10909_v42, 3  ;;  %v10912_v48 = vrot.slane %v10911_v53, 3  ;;  %v10919_v18 = vld [vmem:[#allocation277_spill] sm:$0xff]  ;;  %v10932_v10 = vld [vmem:[#allocation219_spill] sm:$0xff]  ;;  %v10934_v44 = vld [vmem:[#allocation220_spill] sm:$0xff] }
 0x1d3   : > { %v10914_v13 = vrot.slane %v10913_v55, 4  ;;  %v10916_v51 = vrot.slane %v10915_v7, 4  ;;  %v2084_v35 = vadd.f32 %v10918_v2, %v2066_v25  ;;  %v10920_v40 = vrot.slane %v10919_v18, 4  ;;  %v8057_v39 = vld [vmem:[%s4538_s20 + $0x12] ss:$0 sm:$0xff]  ;;  %v10937_v55 = vld [vmem:[#allocation208_spill] sm:$0xff] }
 0x1d4   : > { %10908 = vst [vmem:[#allocation231_spill] sm:$0xff] %v8013_v49  ;;  %v2418_v11 = vsel %vm683_vm2, %v10910_v21, %v2417_v8  ;;  %v2436_v60 = vsel %vm683_vm2, %v10912_v48, %v2435_v37  ;;  %v2404_v5 = vadd.f32 %v2400_v16, %v2386_v50  ;;  %v10922_v8 = vld [vmem:[#allocation206_spill] sm:$0xff]  ;;  %v10924_v14 = vrot.slane %v10923_v52, 4  ;;  %v10936_v53 = vld [vmem:[#allocation207_spill] sm:$0xff]  ;;  %v11050_v38 = vld [vmem:[#allocation160_spill] sm:$0xff] }
 0x1d5   : > { %v8026_v41 = vsel %vm794_vm3, %v10916_v51, %v10914_v13  ;;  %v8032_v28 = vsel %vm794_vm3, %v10920_v40, %v2507_v22  ;;  %v2728_v33 = vmul.f32 %v10922_v8, %v2558_v0  ;;  %v10927_v63 = vrot.slane %v10926_v62, 1  ;;  %v10930_v16 = vld [vmem:[#allocation278_spill] sm:$0xff]  ;;  %v10940_v51 = vld [vmem:[#allocation261_spill] sm:$0xff] }
 0x1d6   : > { %10917 = vst [vmem:[#allocation239_spill] sm:$0xff] %v8026_v41  ;;  %10921 = vst [vmem:[#allocation232_spill] sm:$0xff] %v8032_v28  ;;  %v8038_v37 = vsel %vm794_vm3, %v10924_v14, %v2525_v1  ;;  %v10929_v29 = vrot.slane %v10928_v61, 1  ;;  %v10931_v4 = vrot.slane %v10930_v16, 1  ;;  %v2647_v22 = vrot.slane %v2638_v57, 1  ;;  %v10942_v40 = vld [vmem:[#allocation246_spill] sm:$0xff] }
 0x1d7   : > { %10925 = vst [vmem:[#allocation210_spill] sm:$0xff] %v8038_v37  ;;  %v8053_v25 = vadd.f32 %v10932_v10, %v1283_v43  ;;  %v1692_v50 = vadd.f32 %v10934_v44, %v1674_v6  ;;  %v2422_v1 = vadd.f32 %v2418_v11, %v2404_v5  ;;  %v2818_v42 = vmul.f32 %v8057_v39, %v2558_v0  ;;  %v2966_v13 = vld [vmem:[#allocation2 + $0x148] sm:$0xf]  ;;  %v10938_v6 = vld [vmem:[#allocation183_spill] sm:$0xff] }
 0x1d8   : > { %v8045_v56 = vsel %vm461_vm0, %v10929_v29, %v10927_v63  ;;  %v8050_v30 = vsel %vm461_vm0, %v10931_v4, %v2629_v20  ;;  %v8062_v21 = vmul.f32 %v8013_v49, %v8013_v49  ;;  %v2719_v48 = vrot.slane %v10936_v53, 2  ;;  %v10950_v29 = vld [vmem:[#allocation111_spill] sm:$0xff]  ;;  %v10957_v53 = vld [vmem:[#allocation78_spill] sm:$0xff] }
 0x1d9   : > { %10933 = vst [vmem:[#allocation147_spill] sm:$0xff] %v8053_v25  ;;  %v2809_v20 = vrot.slane %v7802_v46, 3  ;;  %v2908_v57 = vmul.f32 %v10937_v55, %v2558_v0  ;;  %v2102_v43 = vadd.f32 %v7953_v47, %v2084_v35  ;;  %v2440_v7 = vadd.f32 %v2436_v60, %v2422_v1  ;;  %v10945_v0 = vld [vmem:[#allocation262_spill] sm:$0xff]  ;;  %v10951_v4 = vld [vmem:[#allocation243_spill] sm:$0xff]  ;;  %v10954_v1 = vld [vmem:[#allocation280_spill] sm:$0xff] }
 0x1da   : > { %10935 = vst [vmem:[#allocation113_spill] sm:$0xff] %v8062_v21  ;;  %v10939_v11 = vrot.slane %v10938_v6, 2  ;;  %v10941_v2 = vrot.slane %v10940_v51, 2  ;;  %v2737_v18 = vrot.slane %v2728_v33, 2  ;;  %v10943_v52 = vrot.slane %v10942_v40, 1  ;;  %v10963_v40 = vld [vmem:[#allocation263_spill] sm:$0xff] }
 0x1db   : > { %v10944_v46 = vrot.slane %v10793_v23, 3  ;;  %v10946_v62 = vrot.slane %v10945_v0, 3  ;;  %v2827_v60 = vrot.slane %v2818_v42, 3  ;;  %v2899_v35 = vrot.slane %v7813_v12, 4  ;;  %v10967_v0 = vld [vmem:[#allocation253_spill] sm:$0xff]  ;;  %v11052_v21 = vld [vmem:[#allocation299_spill] sm:$0xff] }
 0x1dc   : > { %v8073_v5 = vsel %vm572_vm1, %v10941_v2, %v10939_v11  ;;  %v8078_v14 = vsel %vm461_vm0, %v10943_v52, %v2647_v22  ;;  %v8090_v63 = vmul.f32 %v8053_v25, %v8053_v25  ;;  %v8093_v33 = vadd.f32 %v7915_v54, %v1692_v50  ;;  %v10952_v22 = vld [vmem:[#allocation279_spill] sm:$0xff]  ;;  %v3374_v11 = vld [vmem:[#allocation2 + $0x148] sm:$0xf] }
 0x1dd   : > { %v8085_v47 = vsel %vm683_vm2, %v10946_v62, %v10944_v46  ;;  %v2917_v61 = vrot.slane %v2908_v57, 4  ;;  %v3021_v16 = vrot.slane %v10950_v29, 1  ;;  %v2458_v23 = vadd.f32 %v10951_v4, %v2440_v7  ;;  %v10959_v50 = vld [vmem:[#allocation214_spill] sm:$0xff]  ;;  %v10961_v7 = vld [vmem:[#allocation75_spill] sm:$0xff]  ;;  %v10966_v46 = vld [vmem:[#allocation209_spill] sm:$0xff] }
 0x1de   : > { %10947 = vst [vmem:[#allocation269_spill] sm:$0xff] %v8085_v47  ;;  %10948 = vst [vmem:[#allocation233_spill] sm:$0xff] %v8090_v63  ;;  %v10953_v10 = vrot.slane %v10952_v22, 2  ;;  %v10955_v42 = vrot.slane %v10954_v1, 3  ;;  %v3030_v6 = vmul.f32 %v10957_v53, %v2966_v13  ;;  %v8108_v54 = vadd.f32 %v2116_v45, %v2102_v43  ;;  %v10970_v45 = vld [vmem:[#allocation281_spill] sm:$0xff]  ;;  %v2559_v63 = vld [vmem:[#allocation2 + $0x150] sm:$0xff] }
 0x1df   : > { %10949 = vst [vmem:[#allocation193_spill] sm:$0xff] %v8093_v33  ;;  %v10960_v57 = vrot.slane %v10959_v50, 2  ;;  %v10962_v2 = vrot.slane %v10961_v7, 4  ;;  %v10968_v62 = vrot.slane %v10967_v0, 3  ;;  %v10971_v43 = vrot.slane %v10970_v45, 4  ;;  %v10977_v50 = vld [vmem:[#allocation216_spill] sm:$0xff] }
 0x1e0   : > { %v8100_v44 = vsel %vm572_vm1, %v10953_v10, %v2719_v48  ;;  %v8105_v12 = vsel %vm683_vm2, %v10955_v42, %v2809_v20  ;;  %10958 = vst [vmem:[#allocation256_spill] sm:$0xff] %v8108_v54  ;;  %v10964_v48 = vrot.slane %v10963_v40, 4  ;;  %v3120_v20 = vmul.f32 %v10966_v46, %v2966_v13  ;;  %v10975_v10 = vld [vmem:[#allocation264_spill] sm:$0xff]  ;;  %v10985_v45 = vld [vmem:[#allocation265_spill] sm:$0xff]  ;;  %v8270_v54 = vld [vmem:[%s4538_s20 + $0x17] ss:$0 sm:$0xff] }
 0x1e1   : > { %10956 = vst [vmem:[#allocation203_spill] sm:$0xff] %v8105_v12  ;;  %v8113_v51 = vsel %vm572_vm1, %v10960_v57, %v2737_v18  ;;  %v8126_v29 = vsel %vm683_vm2, %v10968_v62, %v2827_v60  ;;  %v8131_v4 = vsel %vm794_vm3, %v10971_v43, %v2899_v35  ;;  %v10973_v18 = vld [vmem:[#allocation244_spill] sm:$0xff]  ;;  %v10976_v1 = vrot.slane %v10975_v10, 1  ;;  %v10981_v60 = vld [vmem:[#allocation283_spill] sm:$0xff]  ;;  %v10983_v35 = vld [vmem:[#allocation157_spill] sm:$0xff] }
 0x1e2   : > { %v8120_v52 = vsel %vm794_vm3, %v10964_v48, %v10962_v2  ;;  %10969 = vst [vmem:[#allocation271_spill] sm:$0xff] %v8126_v29  ;;  %10972 = vst [vmem:[#allocation235_spill] sm:$0xff] %v8131_v4  ;;  %v10974_v22 = vrot.slane %v10973_v18, 1  ;;  %v3210_v57 = vmul.f32 %v10977_v50, %v2966_v13  ;;  %v10978_v7 = vld [vmem:[#allocation168_spill] sm:$0xff]  ;;  %v10982_v48 = vrot.slane %v10981_v60, 1  ;;  %v11065_v29 = vld [vmem:[#allocation117_spill] sm:$0xff] }
 0x1e3   : > { %10965 = vst [vmem:[#allocation234_spill] sm:$0xff] %v8120_v52  ;;  %v10979_v2 = vrot.slane %v10978_v7, 4  ;;  %v10984_v62 = vrot.slane %v10983_v35, 2  ;;  %v10986_v43 = vrot.slane %v10985_v45, 2  ;;  %v3039_v7 = vrot.slane %v3030_v6, 1  ;;  %v10996_v52 = vld [vmem:[#allocation254_spill] sm:$0xff] }
 0x1e4   : > { %v8138_v42 = vsel %vm461_vm0, %v10976_v1, %v10974_v22  ;;  %v8149_v0 = vsel %vm461_vm0, %v10982_v48, %v3021_v16  ;;  %v10987_v22 = vld [vmem:[#allocation165_spill] sm:$0xff]  ;;  %v10988_v1 = vld [vmem:[#allocation223_spill] sm:$0xff]  ;;  %v10991_v16 = vrot.slane %v10811_v36, 3  ;;  %v10992_v48 = vld [vmem:[#allocation266_spill] sm:$0xff]  ;;  %v3593_v36 = vrot.slane %v7858_v26, 3  ;;  %11043 = vst [vmem:[#allocation181_spill] sm:$0xff] %v8270_v54 }
 0x1e5   : > { %v8144_v40 = vsel %vm794_vm3, %v10979_v2, %v2917_v61  ;;  %v8156_v18 = vsel %vm572_vm1, %v10986_v43, %v10984_v62  ;;  %v3300_v10 = vmul.f32 %v10987_v22, %v2966_v13  ;;  %v8160_v4 = vadd.f32 %v10988_v1, %v2458_v23  ;;  %v10990_v2 = vld [vmem:[#allocation36_spill] sm:$0xff] }
 0x1e6   : > { %10980 = vst [vmem:[#allocation272_spill] sm:$0xff] %v8144_v40  ;;  %v3111_v61 = vrot.slane %v7825_v24, 2  ;;  %v3422_v60 = vmul.f32 %v10990_v2, %v3374_v11  ;;  %v3129_v40 = vrot.slane %v3120_v20, 2  ;;  %v10993_v35 = vrot.slane %v10992_v48, 3  ;;  %v10995_v2 = vld [vmem:[#allocation268_spill] sm:$0xff] }
 0x1e7   : > { %10989 = vst [vmem:[#allocation236_spill] sm:$0xff] %v8160_v4  ;;  %v3201_v62 = vrot.slane %v7838_v3, 3  ;;  %v3512_v13 = vmul.f32 %v10663_v15, %v3374_v11  ;;  %v3219_v43 = vrot.slane %v3210_v57, 3  ;;  %v3291_v23 = vrot.slane %v7848_v32, 4  ;;  %v10998_v3 = vld [vmem:[#allocation284_spill] sm:$0xff]  ;;  %v11000_v32 = vld [vmem:[#allocation245_spill] sm:$0xff] }
 0x1e8   : > { %v8169_v45 = vsel %vm683_vm2, %v10993_v35, %v10991_v16  ;;  %v3309_v6 = vrot.slane %v3300_v10, 4  ;;  %v3413_v24 = vrot.slane %v7851_v31, 1  ;;  %v3431_v1 = vrot.slane %v3422_v60, 1  ;;  %v11002_v31 = vld [vmem:[#allocation267_spill] sm:$0xff]  ;;  %v2958_v12 = vld [vmem:[#allocation2 + $0x98] sm:$0xf] }
 0x1e9   : > { %10994 = vst [vmem:[#allocation273_spill] sm:$0xff] %v8169_v45  ;;  %v3503_v20 = vrot.slane %v7855_v27, 2  ;;  %v3602_v48 = vmul.f32 %v10995_v2, %v3374_v11  ;;  %v10997_v16 = vrot.slane %v10996_v52, 1  ;;  %v10999_v15 = vrot.slane %v10998_v3, 2  ;;  %v11005_v2 = vld [vmem:[#allocation170_spill] sm:$0xff]  ;;  %v11066_v45 = vld [vmem:[#allocation301_spill] sm:$0xff] }
 0x1ea   : > { %v11001_v10 = vrot.slane %v11000_v32, 4  ;;  %v11003_v60 = vrot.slane %v11002_v31, 4  ;;  %v3521_v26 = vrot.slane %v3512_v13, 2  ;;  %v11006_v37 = vrot.slane %v11005_v2, 2  ;;  %v11012_v31 = vld [vmem:[#allocation139_spill] sm:$0xff] }
 0x1eb   : > { %v8181_v35 = vsel %vm461_vm0, %v10997_v16, %v3039_v7  ;;  %v8186_v57 = vsel %vm572_vm1, %v10999_v15, %v3111_v61  ;;  %v11008_v7 = vld [vmem:[#allocation285_spill] sm:$0xff]  ;;  %v3683_v61 = vrot.slane %v7865_v59, 4  ;;  %v11011_v15 = vld [vmem:[#allocation286_spill] sm:$0xff]  ;;  %v11013_v28 = vrot.slane %v11012_v31, 3  ;;  %v11015_v13 = vld [vmem:[#allocation287_spill] sm:$0xff] }
 0x1ec   : > { %v8193_v27 = vsel %vm794_vm3, %v11003_v60, %v11001_v10  ;;  %v8198_v52 = vsel %vm572_vm1, %v11006_v37, %v3129_v40  ;;  %v11009_v16 = vrot.slane %v11008_v7, 3  ;;  %v3692_v32 = vmul.f32 %v11011_v15, %v3374_v11  ;;  %v11018_v37 = vld [vmem:[#allocation289_spill] sm:$0xff]  ;;  %v2549_v59 = vld [vmem:[#allocation2 + $0x90] sm:$0xff] }
 0x1ed   : > { %11004 = vst [vmem:[#allocation237_spill] sm:$0xff] %v8193_v27  ;;  %11007 = vst [vmem:[#allocation194_spill] sm:$0xff] %v8198_v52  ;;  %v8210_v10 = vsel %vm683_vm2, %v11013_v28, %v3219_v43  ;;  %v11016_v60 = vrot.slane %v11015_v13, 4  ;;  %v11019_v40 = vrot.slane %v11018_v37, 1  ;;  %v11023_v28 = vld [vmem:[#allocation296_spill] sm:$0xff]  ;;  %v8273_v41 = vmul.f32 %v8270_v54, %v2549_v59  ;;  %v11055_v27 = vld [vmem:[#allocation161_spill] sm:$0xff] }
 0x1ee   : > { %v8203_v3 = vsel %vm683_vm2, %v11009_v16, %v3201_v62  ;;  %11014 = vst [vmem:[#allocation238_spill] sm:$0xff] %v8210_v10  ;;  %v3611_v62 = vrot.slane %v3602_v48, 3  ;;  %v11020_v16 = vld [vmem:[#allocation276_spill] sm:$0xff]  ;;  %v11024_v43 = vrot.slane %v11023_v28, 1  ;;  %v8252_v28 = vmul.f32 %v7889_v17, %v2549_v59 }
 0x1ef   : > { %11010 = vst [vmem:[#allocation274_spill] sm:$0xff] %v8203_v3  ;;  %v8215_v2 = vsel %vm794_vm3, %v11016_v60, %v3291_v23  ;;  %v8220_v7 = vsel %vm461_vm0, %v11019_v40, %v3413_v24  ;;  %v11021_v11 = vrot.slane %v11020_v16, 4  ;;  %v11025_v23 = vld [vmem:[#allocation291_spill] sm:$0xff]  ;;  %v11028_v24 = vld [vmem:[#allocation293_spill] sm:$0xff]  ;;  %11044 = vst [vmem:[#allocation217_spill] sm:$0xff] %v8273_v41  ;;  %v8297_v19 = vmul.f32 %v10987_v22, %v2549_v59 }
 0x1f0   : > { %11017 = vst [vmem:[#allocation20_spill] sm:$0xff] %v8215_v2  ;;  %v8230_v31 = vsel %vm461_vm0, %v11024_v43, %v3431_v1  ;;  %v11026_v13 = vrot.slane %v11025_v23, 2  ;;  %v11029_v37 = vrot.slane %v11028_v24, 3  ;;  %v11031_v40 = vld [vmem:[#allocation297_spill] sm:$0xff]  ;;  %v11035_v43 = vld [vmem:[#allocation215_spill] sm:$0xff]  ;;  %v11053_v25 = vrot.slane %v11052_v21, 4 }
 0x1f1   : > { %v8225_v15 = vsel %vm794_vm3, %v11021_v11, %v3309_v6  ;;  %v11032_v16 = vrot.slane %v11031_v40, 2  ;;  %v8248_v11 = vld [vmem:[%s4538_s20 + $0x14] ss:$0 sm:$0xff]  ;;  %11051 = vst [vmem:[#allocation187_spill] sm:$0xff] %v8297_v19  ;;  %v11059_v41 = vld [vmem:[#allocation282_spill] sm:$0xff]  ;;  %v8326_v21 = vmul.f32 %v8270_v54, %v2559_v63  ;;  %v8351_v19 = vmul.f32 %v10966_v46, %v2559_v63 }
 0x1f2   : > { %11022 = vst [vmem:[#allocation21_spill] sm:$0xff] %v8225_v15  ;;  %v8235_v60 = vsel %vm572_vm1, %v11026_v13, %v3503_v20  ;;  %v8240_v48 = vsel %vm683_vm2, %v11029_v37, %v3593_v36  ;;  %11034 = vst [vmem:[#allocation195_spill] sm:$0xff] %v8248_v11  ;;  %v2577_v1 = vmul.f32 %v8248_v11, %v2549_v59  ;;  %v11036_v23 = vld [vmem:[#allocation295_spill] sm:$0xff]  ;;  %v3701_v36 = vrot.slane %v3692_v32, 4 }
 0x1f3   : > { %11027 = vst [vmem:[#allocation248_spill] sm:$0xff] %v8235_v60  ;;  %11030 = vst [vmem:[#allocation30_spill] sm:$0xff] %v8240_v48  ;;  %v8245_v6 = vsel %vm572_vm1, %v11032_v16, %v3521_v26  ;;  %v2983_v20 = vmul.f32 %v11035_v43, %v2549_v59  ;;  %v11037_v13 = vrot.slane %v11036_v23, 4  ;;  %v8261_v37 = vmul.f32 %v7938_v9, %v2549_v59  ;;  %v11039_v26 = vld [vmem:[#allocation52_spill] sm:$0xff]  ;;  %v11040_v16 = vld [vmem:[#allocation298_spill] sm:$0xff] }
 0x1f4   : > { %11033 = vst [vmem:[#allocation252_spill] sm:$0xff] %v8245_v6  ;;  %v3389_v40 = vmul.f32 %v11039_v26, %v2549_v59  ;;  %v11041_v15 = vrot.slane %v11040_v16, 3  ;;  %v8276_v23 = vmul.f32 %v7519_v58, %v2549_v59  ;;  %v8282_v32 = vmul.f32 %v8057_v39, %v2549_v59  ;;  %v11049_v16 = vld [vmem:[#allocation140_spill] sm:$0xff] }
 0x1f5   : > { %v8258_v24 = vsel %vm794_vm3, %v11037_v13, %v3683_v61  ;;  %v8279_v61 = vmul.f32 %v10922_v8, %v2549_v59  ;;  %v8285_v13 = vmul.f32 %v10957_v53, %v2549_v59  ;;  %v2985_v33 = vadd.f32 %v2983_v20, %v11050_v38  ;;  %v11058_v38 = vld [vmem:[#allocation70_spill] sm:$0xff]  ;;  %v11064_v60 = vld [vmem:[#allocation224_spill] sm:$0xff] }
 0x1f6   : > { %11038 = vst [vmem:[#allocation173_spill] sm:$0xff] %v8258_v24  ;;  %v8267_v2 = vsel %vm683_vm2, %v11041_v15, %v3611_v62  ;;  %11045 = vst [vmem:[#allocation288_spill] sm:$0xff] %v8282_v32  ;;  %v8288_v62 = vmul.f32 %v10966_v46, %v2549_v59  ;;  %v8291_v15 = vmul.f32 %v10977_v50, %v2549_v59 }
 0x1f7   : > { %11042 = vst [vmem:[#allocation176_spill] sm:$0xff] %v8267_v2  ;;  %11046 = vst [vmem:[#allocation88_spill] sm:$0xff] %v8285_v13  ;;  %v2579_v24 = vadd.f32 %v2577_v1, %v11049_v16  ;;  %v8302_v49 = vsel %vm794_vm3, %v11053_v25, %v3701_v36  ;;  %v3391_v48 = vadd.f32 %v3389_v40, %v11055_v27  ;;  %v11056_v40 = vld [vmem:[#allocation82_spill] sm:$0xff]  ;;  %v11057_v1 = vld [vmem:[#allocation95_spill] sm:$0xff] }
 0x1f8   : > { %11047 = vst [vmem:[#allocation290_spill] sm:$0xff] %v8288_v62  ;;  %11048 = vst [vmem:[#allocation292_spill] sm:$0xff] %v8291_v15  ;;  %v2578_v10 = vmul.f32 %v8248_v11, %v2559_v63  ;;  %v8311_v59 = vmul.f32 %v7889_v17, %v2559_v63  ;;  %v2989_v4 = vadd.f32 %v11057_v1, %v2985_v33 }
 0x1f9   : > { %11054 = vst [vmem:[#allocation190_spill] sm:$0xff] %v8302_v49  ;;  %v2597_v2 = vadd.f32 %v11056_v40, %v2579_v24  ;;  %v8321_v16 = vmul.f32 %v7938_v9, %v2559_v63  ;;  %v3395_v49 = vadd.f32 %v11058_v38, %v3391_v48  ;;  %v2984_v20 = vmul.f32 %v11035_v43, %v2559_v63  ;;  %v2550_v40 = vld [vmem:[#allocation2 + $0x98] sm:$0xf] }
 0x1fa   : > { %v2580_v3 = vadd.f32 %v2578_v10, %v11059_v41  ;;  %v2664_v36 = vrot.slane %v8311_v59, 1  ;;  %v8331_v27 = vmul.f32 %v7716_v34, %v2559_v63  ;;  %v8334_v24 = vmul.f32 %v7519_v58, %v2559_v63  ;;  %v11063_v43 = vld [vmem:[#allocation300_spill] sm:$0xff] }
 0x1fb   : > { %v8337_v33 = vmul.f32 %v10922_v8, %v2559_v63  ;;  %v8340_v48 = vmul.f32 %v8057_v39, %v2559_v63  ;;  %v8343_v41 = vmul.f32 %v10937_v55, %v2559_v63  ;;  %v3390_v10 = vmul.f32 %v11039_v26, %v2559_v63 }
 0x1fc   : > { %11060 = vst [vmem:[#allocation294_spill] sm:$0xff] %v8331_v27  ;;  %v8347_v59 = vmul.f32 %v10957_v53, %v2559_v63  ;;  %v8354_v6 = vmul.f32 %v10977_v50, %v2559_v63  ;;  %v8357_v11 = vmul.f32 %v10987_v22, %v2559_v63  ;;  %v2986_v15 = vadd.f32 %v2984_v20, %v11063_v43  ;;  %v11068_v63 = vld [vmem:[#allocation120_spill] sm:$0xff] }
 0x1fd   : > { %11061 = vst [vmem:[#allocation172_spill] sm:$0xff] %v8343_v41  ;;  %v2598_v26 = vadd.f32 %v11064_v60, %v2580_v3  ;;  %v2615_v62 = vadd.f32 %v11065_v29, %v2597_v2  ;;  %v3056_v32 = vrot.slane %v8334_v24, 1  ;;  %v2654_v47 = vmul.f32 %v7889_v17, %v2550_v40  ;;  %v8371_v3 = vld [vmem:[#allocation2 + $0x158] sm:$0xf] }
 0x1fe   : > { %11062 = vst [vmem:[#allocation211_spill] sm:$0xff] %v8357_v11  ;;  %v3392_v13 = vadd.f32 %v3390_v10, %v11066_v45  ;;  %v2744_v20 = vmul.f32 %v7938_v9, %v2550_v40  ;;  %v8378_v24 = vmul.f32 %v8270_v54, %v2550_v40  ;;  %v2990_v25 = vadd.f32 %v11057_v1, %v2986_v15  ;;  %v11067_v45 = vld [vmem:[#allocation74_spill] sm:$0xff] }
 0x1ff   : > { %v2616_v22 = vadd.f32 %v8045_v56, %v2598_v26  ;;  %v2633_v10 = vadd.f32 %v11067_v45, %v2615_v62  ;;  %v3007_v43 = vadd.f32 %v11068_v63, %v2989_v4  ;;  %v3046_v52 = vmul.f32 %v7519_v58, %v2958_v12  ;;  %v11069_v15 = vld [vmem:[#allocation94_spill] sm:$0xff]  ;;  %v3366_v56 = vld [vmem:[#allocation2 + $0x98] sm:$0xf] }
 0x200   : > { %v2656_v2 = vmul.f32 %v7889_v17, %v8371_v3  ;;  %v2662_v29 = vrot.slane %v2654_v47, 1  ;;  %v3136_v60 = vmul.f32 %v10922_v8, %v2958_v12  ;;  %v8389_v11 = vmul.f32 %v8057_v39, %v2958_v12  ;;  %v8400_v45 = vld [vmem:[#allocation2 + $0x158] sm:$0xf] }
 0x201   : > { %v2634_v40 = vadd.f32 %v8050_v30, %v2616_v22  ;;  %v2651_v41 = vadd.f32 %v11069_v15, %v2633_v10  ;;  %v8394_v26 = vmul.f32 %v10937_v55, %v2958_v12  ;;  %v3396_v4 = vadd.f32 %v11058_v38, %v3392_v13  ;;  %v11071_v38 = vld [vmem:[#allocation134_spill] sm:$0xff]  ;;  %v11073_v15 = vld [vmem:[#allocation49_spill] sm:$0xff] }
 0x202   : > { %v11070_v62 = vrot.slane %v8252_v28, 1  ;;  %v2665_v47 = vrot.slane %v2656_v2, 1  ;;  %v3399_v27 = vadd.f32 %v3395_v49, %v11057_v1  ;;  %v2746_v22 = vmul.f32 %v7938_v9, %v8371_v3 }
 0x203   : > { %v2652_v17 = vadd.f32 %v8078_v14, %v2634_v40  ;;  %v2836_v13 = vmul.f32 %v8270_v54, %v8371_v3  ;;  %v3008_v28 = vadd.f32 %v8138_v42, %v2990_v25  ;;  %v3438_v2 = vmul.f32 %v10957_v53, %v3366_v56  ;;  %v11074_v25 = vld [vmem:[#allocation227_spill] sm:$0xff] }
 0x204   : > { %v2663_v63 = vsel %vm461_vm0, %v11070_v62, %v2662_v29  ;;  %v2666_v12 = vsel %vm461_vm0, %v2664_v36, %v2665_v47  ;;  %v3025_v29 = vadd.f32 %v11071_v38, %v3007_v43  ;;  %v8413_v49 = vmul.f32 %v10966_v46, %v3366_v56 }
 0x205   : > { %v2669_v30 = vadd.f32 %v2663_v63, %v2651_v41  ;;  %v2670_v14 = vadd.f32 %v2666_v12, %v2652_v17  ;;  %v11072_v41 = vld [vmem:[#allocation83_spill] sm:$0xff]  ;;  %v3026_v40 = vadd.f32 %v8149_v0, %v3008_v28  ;;  %v3048_v62 = vmul.f32 %v7519_v58, %v8400_v45  ;;  %v8429_v28 = vld [vmem:[%s4538_s20 + $0xe] ss:$0 sm:$0xff] }
 0x206   : > { %v3043_v36 = vadd.f32 %v11073_v15, %v3025_v29  ;;  %v3054_v63 = vrot.slane %v3046_v52, 1  ;;  %v8421_v42 = vmul.f32 %v10977_v50, %v3366_v56  ;;  %v2752_v47 = vrot.slane %v2744_v20, 2  ;;  %v11076_v52 = vld [vmem:[#allocation118_spill] sm:$0xff] }
 0x207   : > { %v2687_v10 = vadd.f32 %v11072_v41, %v2669_v30  ;;  %v2688_v43 = vadd.f32 %v11074_v25, %v2670_v14  ;;  %v2755_v38 = vrot.slane %v2746_v22, 2  ;;  %v2845_v54 = vrot.slane %v2836_v13, 3 }
 0x208   : > { %v3044_v17 = vadd.f32 %v8181_v35, %v3026_v40  ;;  %v11075_v30 = vrot.slane %v8276_v23, 1  ;;  %v3057_v12 = vrot.slane %v3048_v62, 1  ;;  %v8432_v58 = vmul.f32 %v8429_v28, %v3366_v56  ;;  %v11078_v62 = vld [vmem:[#allocation124_spill] sm:$0xff] }
 0x209   : > { %v2705_v29 = vadd.f32 %v11076_v52, %v2687_v10  ;;  %v2706_v41 = vadd.f32 %v8073_v5, %v2688_v43  ;;  %v3138_v35 = vmul.f32 %v10922_v8, %v8400_v45  ;;  %v3144_v23 = vrot.slane %v3136_v60, 2  ;;  %v11081_v60 = vld [vmem:[#allocation106_spill] sm:$0xff]  ;;  %v11082_v43 = vld [vmem:[#allocation96_spill] sm:$0xff] }
 0x20a   : > { %v3055_v0 = vsel %vm461_vm0, %v11075_v30, %v3054_v63  ;;  %v3058_v22 = vsel %vm461_vm0, %v3056_v32, %v3057_v12  ;;  %v11077_v40 = vrot.slane %v8261_v37, 2  ;;  %v11079_v5 = vrot.slane %v8321_v16, 2  ;;  %v8459_v37 = vld [vmem:[#allocation2 + $0x158] sm:$0xf] }
 0x20b   : > { %v3061_v14 = vadd.f32 %v3055_v0, %v3043_v36  ;;  %v2724_v13 = vadd.f32 %v8100_v44, %v2706_v41  ;;  %v3062_v15 = vadd.f32 %v3058_v22, %v3044_v17  ;;  %v11080_v63 = vrot.slane %v8326_v21, 3  ;;  %v11086_v41 = vld [vmem:[#allocation135_spill] sm:$0xff]  ;;  %v11087_v22 = vld [vmem:[#allocation154_spill] sm:$0xff] }
 0x20c   : > { %v2753_v56 = vsel %vm572_vm1, %v11077_v40, %v2752_v47  ;;  %v2756_v36 = vsel %vm572_vm1, %v11079_v5, %v2755_v38  ;;  %v8455_v8 = vmul.f32 %v7716_v34, %v8371_v3  ;;  %v3228_v44 = vmul.f32 %v8057_v39, %v8400_v45  ;;  %v11083_v38 = vld [vmem:[#allocation126_spill] sm:$0xff]  ;;  %v11085_v3 = vld [vmem:[#allocation137_spill] sm:$0xff] }
 0x20d   : > { %v3079_v10 = vadd.f32 %v11078_v62, %v3061_v14  ;;  %v8451_v32 = vsel %vm683_vm2, %v11080_v63, %v2845_v54  ;;  %v2723_v25 = vadd.f32 %v11081_v60, %v2705_v29  ;;  %v2742_v16 = vadd.f32 %v8113_v51, %v2724_v13  ;;  %v11094_v63 = vld [vmem:[#allocation194_spill] sm:$0xff] }
 0x20e   : > { %v3080_v47 = vadd.f32 %v11082_v43, %v3062_v15  ;;  %v11084_v54 = vrot.slane %v8279_v61, 2  ;;  %v3147_v30 = vrot.slane %v3138_v35, 2  ;;  %v3400_v34 = vadd.f32 %v3396_v4, %v11057_v1  ;;  %v11088_v35 = vld [vmem:[#allocation66_spill] sm:$0xff]  ;;  %v11089_v1 = vld [vmem:[#allocation27_spill] sm:$0xff]  ;;  %v11090_v15 = vld [vmem:[#allocation148_spill] sm:$0xff] }
 0x20f   : > { %v3097_v21 = vadd.f32 %v11083_v38, %v3079_v10  ;;  %v3417_v0 = vadd.f32 %v11085_v3, %v3399_v27  ;;  %v2760_v12 = vadd.f32 %v2756_v36, %v2742_v16  ;;  %v3234_v51 = vrot.slane %v8389_v11, 3  ;;  %v11091_v10 = vld [vmem:[#allocation88_spill] sm:$0xff] }
 0x210   : > { %v3145_v17 = vsel %vm572_vm1, %v11084_v54, %v3144_v23  ;;  %v3098_v52 = vadd.f32 %v8156_v18, %v3080_v47  ;;  %v3418_v14 = vadd.f32 %v8220_v7, %v3400_v34  ;;  %v3440_v61 = vmul.f32 %v10957_v53, %v8459_v37  ;;  %v11093_v53 = vld [vmem:[#allocation269_spill] sm:$0xff] }
 0x211   : > { %v3115_v29 = vadd.f32 %v11086_v41, %v3097_v21  ;;  %v3435_v13 = vadd.f32 %v11087_v22, %v3417_v0  ;;  %v3446_v23 = vrot.slane %v3438_v2, 1  ;;  %v2741_v40 = vadd.f32 %v11088_v35, %v2723_v25  ;;  %v11104_v35 = vld [vmem:[#allocation84_spill] sm:$0xff] }
 0x212   : > { %v2778_v4 = vadd.f32 %v11089_v1, %v2760_v12  ;;  %v3116_v27 = vadd.f32 %v8186_v57, %v3098_v52  ;;  %v3436_v62 = vadd.f32 %v8230_v31, %v3418_v14  ;;  %v11092_v11 = vrot.slane %v11091_v10, 1  ;;  %v11105_v1 = vld [vmem:[#allocation99_spill] sm:$0xff] }
 0x213   : > { %v3133_v18 = vadd.f32 %v11090_v15, %v3115_v29  ;;  %v3449_v5 = vrot.slane %v3440_v61, 1  ;;  %v3530_v36 = vmul.f32 %v10966_v46, %v8459_v37  ;;  %v11095_v57 = vrot.slane %v8337_v33, 2  ;;  %v11102_v29 = vld [vmem:[#allocation128_spill] sm:$0xff] }
 0x214   : > { %v3447_v7 = vsel %vm461_vm0, %v11092_v11, %v3446_v23  ;;  %v2796_v2 = vadd.f32 %v11093_v53, %v2778_v4  ;;  %v3134_v60 = vadd.f32 %v11094_v63, %v3116_v27  ;;  %v3237_v47 = vrot.slane %v3228_v44, 3  ;;  %v8520_v23 = vld [vmem:[#allocation2 + $0x20] sm:$0xff] }
 0x215   : > { %v3151_v25 = vadd.f32 %v3145_v17, %v3133_v18  ;;  %v3453_v16 = vadd.f32 %v3447_v7, %v3435_v13  ;;  %v3148_v43 = vsel %vm572_vm1, %v11095_v57, %v3147_v30  ;;  %v8494_v31 = vmul.f32 %v10937_v55, %v8400_v45  ;;  %v11097_v17 = vld [vmem:[#allocation288_spill] sm:$0xff]  ;;  %v11099_v30 = vld [vmem:[#allocation127_spill] sm:$0xff]  ;;  %v4154_v53 = vld [vmem:[%s4538_s20] ss:$0 sm:$0xff] }
 0x216   : > { %v11096_v38 = vrot.slane %v8347_v59, 1  ;;  %v2759_v46 = vadd.f32 %v2753_v56, %v2741_v40  ;;  %v3152_v34 = vadd.f32 %v3148_v43, %v3134_v60  ;;  %v11098_v0 = vrot.slane %v11097_v17, 3  ;;  %v11100_v45 = vld [vmem:[#allocation203_spill] sm:$0xff]  ;;  %v11101_v59 = vld [vmem:[#allocation97_spill] sm:$0xff]  ;;  %v11115_v17 = vld [vmem:[#allocation292_spill] sm:$0xff] }
 0x217   : > { %v3471_v44 = vadd.f32 %v11099_v30, %v3453_v16  ;;  %v3536_v12 = vrot.slane %v8413_v49, 2  ;;  %v3539_v55 = vrot.slane %v3530_v36, 2  ;;  %v2814_v52 = vadd.f32 %v11100_v45, %v2796_v2  ;;  %v8528_v18 = vld [vmem:[#allocation2 + $0x30] sm:$0xff]  ;;  %v8538_v36 = vld [vmem:[#allocation2] sm:$0xff] }
 0x218   : > { %v3450_v21 = vsel %vm461_vm0, %v11096_v38, %v3449_v5  ;;  %v8503_v33 = vsel %vm683_vm2, %v11098_v0, %v3234_v51  ;;  %v3169_v41 = vadd.f32 %v11101_v59, %v3151_v25  ;;  %v3620_v14 = vmul.f32 %v10977_v50, %v8459_v37  ;;  %v11106_v50 = vld [vmem:[#allocation101_spill] sm:$0xff]  ;;  %v8536_v5 = vld [vmem:[#allocation2 + $0x8] sm:$0xf]  ;;  %v11111_v25 = vld [vmem:[#allocation271_spill] sm:$0xff] }
 0x219   : > { %v3454_v3 = vadd.f32 %v3450_v21, %v3436_v62  ;;  %v11103_v22 = vrot.slane %v8340_v48, 3  ;;  %v3626_v61 = vrot.slane %v8421_v42, 3  ;;  %v8523_v40 = vadd.f32 %v11104_v35, %v2759_v46  ;;  %v11107_v48 = vld [vmem:[#allocation102_spill] sm:$0xff]  ;;  %v4155_v63 = vld [vmem:[%s4538_s20 + $0x5] ss:$0 sm:$0xff]  ;;  %v11113_v21 = vld [vmem:[#allocation52_spill] sm:$0xff] }
 0x21a   : > { %v3170_v4 = vadd.f32 %v11105_v1, %v3152_v34  ;;  %v3489_v27 = vadd.f32 %v11106_v50, %v3471_v44  ;;  %v11108_v62 = vld [vmem:[#allocation290_spill] sm:$0xff]  ;;  %v11110_v7 = vrot.slane %v8351_v19, 2  ;;  %v413_v2 = vmul.f32 %v4154_v53, %v8538_v36  ;;  %v11112_v57 = vld [vmem:[#allocation121_spill] sm:$0xff]  ;;  %v11114_v34 = vld [vmem:[#allocation248_spill] sm:$0xff] }
 0x21b   : > { %v3472_v56 = vadd.f32 %v11102_v29, %v3454_v3  ;;  %v8515_v51 = vsel %vm683_vm2, %v11103_v22, %v3237_v47  ;;  %v11109_v10 = vrot.slane %v11108_v62, 2  ;;  %v421_v60 = vmul.f32 %v4155_v63, %v8538_v36  ;;  %v8548_v47 = vld [vmem:[#allocation2 + $0x18] sm:$0xf]  ;;  %v8550_v38 = vld [vmem:[#allocation2 + $0x40] sm:$0xff]  ;;  %v11120_v35 = vld [vmem:[#allocation195_spill] sm:$0xff] }
 0x21c   : > { %v3540_v42 = vsel %vm572_vm1, %v11110_v7, %v3539_v55  ;;  %v2832_v16 = vadd.f32 %v11111_v25, %v2814_v52  ;;  %v8546_v43 = vadd.f32 %v11112_v57, %v3169_v41  ;;  %v3629_v19 = vrot.slane %v3620_v14, 3  ;;  %v11118_v45 = vld [vmem:[#allocation273_spill] sm:$0xff]  ;;  %v8581_v62 = vld [vmem:[#allocation2 + $0x28] sm:$0xf]  ;;  %v11122_v53 = vld [vmem:[#allocation252_spill] sm:$0xff] }
 0x21d   : > { %v3490_v15 = vadd.f32 %v11107_v48, %v3472_v56  ;;  %v3537_v11 = vsel %vm572_vm1, %v11109_v10, %v3536_v12  ;;  %v429_v46 = vmul.f32 %v11113_v21, %v8520_v23  ;;  %v11116_v0 = vrot.slane %v11115_v17, 3  ;;  %v11117_v12 = vld [vmem:[#allocation215_spill] sm:$0xff]  ;;  %v11119_v59 = vld [vmem:[#allocation141_spill] sm:$0xff]  ;;  %v11124_v17 = vld [vmem:[#allocation156_spill] sm:$0xff] }
 0x21e   : > { %v423_v44 = vadd.f32 %v421_v60, %v413_v2  ;;  %v437_v55 = vmul.f32 %v11117_v12, %v8528_v18  ;;  %v3188_v52 = vadd.f32 %v11118_v45, %v3170_v4  ;;  %v3507_v41 = vadd.f32 %v11119_v59, %v3489_v27  ;;  %v4156_v29 = vld [vmem:[%s4538_s20 + $0x1] ss:$0 sm:$0xff]  ;;  %v4157_v50 = vld [vmem:[%s4538_s20 + $0x6] ss:$0 sm:$0xff] }
 0x21f   : > { %v3508_v3 = vadd.f32 %v11114_v34, %v3490_v15  ;;  %v8558_v30 = vsel %vm683_vm2, %v11116_v0, %v3626_v61  ;;  %v453_v56 = vmul.f32 %v4156_v29, %v8538_v36  ;;  %v454_v14 = vmul.f32 %v4156_v29, %v8536_v5 }
 0x220   : > { %v431_v22 = vadd.f32 %v429_v46, %v423_v44  ;;  %v445_v1 = vmul.f32 %v11120_v35, %v8550_v38  ;;  %v476_v61 = vmul.f32 %v4157_v50, %v8538_v36  ;;  %v477_v48 = vmul.f32 %v4157_v50, %v8548_v47  ;;  %v11126_v50 = vld [vmem:[#allocation229_spill] sm:$0xff] }
 0x221   : > { %v11121_v15 = vrot.slane %v8354_v6, 3  ;;  %v8579_v27 = vmul.f32 %v8429_v28, %v8459_v37  ;;  %v462_v10 = vrot.slane %v453_v56, 1  ;;  %v463_v7 = vrot.slane %v454_v14, 1  ;;  %v11123_v6 = vld [vmem:[#allocation274_spill] sm:$0xff] }
 0x222   : > { %v3526_v2 = vadd.f32 %v11122_v53, %v3508_v3  ;;  %v439_v63 = vadd.f32 %v437_v55, %v431_v22  ;;  %v484_v60 = vrot.slane %v476_v61, 1  ;;  %v485_v25 = vrot.slane %v477_v48, 1  ;;  %v4158_v37 = vld [vmem:[%s4538_s20 + $0xb] ss:$0 sm:$0xff] }
 0x223   : > { %v8575_v4 = vsel %vm683_vm2, %v11121_v15, %v3629_v19  ;;  %v2850_v57 = vadd.f32 %v8451_v32, %v2832_v16  ;;  %v3206_v21 = vadd.f32 %v11123_v6, %v3188_v52  ;;  %v8586_v19 = vld [vmem:[#allocation2 + $0x38] sm:$0xf]  ;;  %v464_v46 = vsel %vm461_vm0, %v462_v10, %v463_v7  ;;  %v8593_v3 = vld [vmem:[#allocation2 + $0x48] sm:$0xf]  ;;  %v8599_v52 = vld [vmem:[%s4538_s20 + $0x10] ss:$0 sm:$0xff] }
 0x224   : > { %v498_v34 = vmul.f32 %v4158_v37, %v8520_v23  ;;  %v3525_v0 = vadd.f32 %v11124_v17, %v3507_v41  ;;  %v447_v12 = vadd.f32 %v445_v1, %v439_v63  ;;  %v499_v55 = vmul.f32 %v4158_v37, %v8581_v62  ;;  %v11125_v22 = vld [vmem:[#allocation238_spill] sm:$0xff]  ;;  %v11127_v15 = vld [vmem:[#allocation228_spill] sm:$0xff]  ;;  %v4161_v17 = vld [vmem:[%s4538_s20 + $0x7] ss:$0 sm:$0xff] }
 0x225   : > { %v486_v16 = vsel %vm461_vm0, %v484_v60, %v485_v25  ;;  %v520_v59 = vmul.f32 %v8599_v52, %v8528_v18  ;;  %v3544_v29 = vadd.f32 %v3540_v42, %v3526_v2  ;;  %v521_v14 = vmul.f32 %v8599_v52, %v8586_v19  ;;  %v4160_v25 = vld [vmem:[%s4538_s20 + $0x2] ss:$0 sm:$0xff] }
 0x226   : > { %v506_v45 = vrot.slane %v498_v34, 1  ;;  %v470_v41 = vadd.f32 %v464_v46, %v447_v12  ;;  %v507_v56 = vrot.slane %v499_v55, 1  ;;  %v3224_v35 = vadd.f32 %v11125_v22, %v3206_v21  ;;  %v11128_v21 = vld [vmem:[#allocation72_spill] sm:$0xff] }
 0x227   : > { %v528_v1 = vrot.slane %v520_v59, 1  ;;  %v542_v61 = vmul.f32 %v11126_v50, %v8550_v38  ;;  %v543_v48 = vmul.f32 %v11126_v50, %v8593_v3  ;;  %v8611_v10 = vadd.f32 %v11127_v15, %v2850_v57 }
 0x228   : > { %v3543_v7 = vadd.f32 %v3537_v11, %v3525_v0  ;;  %v492_v42 = vadd.f32 %v486_v16, %v470_v41  ;;  %v529_v53 = vrot.slane %v521_v14, 1  ;;  %v508_v2 = vsel %vm461_vm0, %v506_v45, %v507_v56  ;;  %v4162_v41 = vld [vmem:[%s4538_s20 + $0xc] ss:$0 sm:$0xff] }
 0x229   : > { %v550_v63 = vrot.slane %v542_v61, 1  ;;  %v551_v60 = vrot.slane %v543_v48, 1  ;;  %v564_v6 = vmul.f32 %v4160_v25, %v8538_v36  ;;  %v3562_v46 = vadd.f32 %v11128_v21, %v3544_v29  ;;  %v8628_v61 = vld [vmem:[%s4538_s20 + $0x11] ss:$0 sm:$0xff] }
 0x22a   : > { %v514_v37 = vadd.f32 %v508_v2, %v492_v42  ;;  %v565_v34 = vmul.f32 %v4160_v25, %v8536_v5  ;;  %v587_v57 = vmul.f32 %v4161_v17, %v8538_v36  ;;  %v3242_v11 = vadd.f32 %v8515_v51, %v3224_v35  ;;  %v11129_v35 = vld [vmem:[#allocation145_spill] sm:$0xff] }
 0x22b   : > { %v530_v0 = vsel %vm461_vm0, %v528_v1, %v529_v53  ;;  %v573_v12 = vrot.slane %v564_v6, 2  ;;  %v588_v55 = vmul.f32 %v4161_v17, %v8548_v47  ;;  %v609_v29 = vmul.f32 %v4162_v41, %v8520_v23  ;;  %v11130_v53 = vld [vmem:[#allocation98_spill] sm:$0xff]  ;;  %v11131_v25 = vld [vmem:[#allocation73_spill] sm:$0xff] }
 0x22c   : > { %v536_v16 = vadd.f32 %v530_v0, %v514_v37  ;;  %v574_v45 = vrot.slane %v565_v34, 2  ;;  %v595_v59 = vrot.slane %v587_v57, 2  ;;  %v552_v56 = vsel %vm461_vm0, %v550_v63, %v551_v60  ;;  %v4164_v0 = vld [vmem:[%s4538_s20 + $0x3] ss:$0 sm:$0xff] }
 0x22d   : > { %v596_v14 = vrot.slane %v588_v55, 2  ;;  %v610_v22 = vmul.f32 %v4162_v41, %v8581_v62  ;;  %v631_v51 = vmul.f32 %v8628_v61, %v8528_v18  ;;  %v3580_v1 = vadd.f32 %v11129_v35, %v3562_v46  ;;  %v11132_v55 = vld [vmem:[#allocation30_spill] sm:$0xff] }
 0x22e   : > { %v558_v48 = vadd.f32 %v552_v56, %v536_v16  ;;  %v617_v15 = vrot.slane %v609_v29, 2  ;;  %v632_v42 = vmul.f32 %v8628_v61, %v8586_v19  ;;  %v3260_v2 = vadd.f32 %v11130_v53, %v3242_v11 }
 0x22f   : > { %v3561_v63 = vadd.f32 %v11131_v25, %v3543_v7  ;;  %v575_v60 = vsel %vm572_vm1, %v573_v12, %v574_v45  ;;  %v618_v6 = vrot.slane %v610_v22, 2  ;;  %v597_v37 = vsel %vm572_vm1, %v595_v59, %v596_v14  ;;  %v4165_v59 = vld [vmem:[%s4538_s20 + $0x8] ss:$0 sm:$0xff]  ;;  %v11133_v25 = vld [vmem:[#allocation144_spill] sm:$0xff] }
 0x230   : > { %v581_v21 = vadd.f32 %v575_v60, %v558_v48  ;;  %v653_v34 = vmul.f32 %v7938_v9, %v8550_v38  ;;  %v654_v46 = vmul.f32 %v7938_v9, %v8593_v3  ;;  %v639_v17 = vrot.slane %v631_v51, 2  ;;  %v4166_v48 = vld [vmem:[%s4538_s20 + $0xd] ss:$0 sm:$0xff] }
 0x231   : > { %v640_v57 = vrot.slane %v632_v42, 2  ;;  %v675_v11 = vmul.f32 %v4164_v0, %v8538_v36  ;;  %v676_v7 = vmul.f32 %v4164_v0, %v8536_v5  ;;  %v3598_v12 = vadd.f32 %v11132_v55, %v3580_v1 }
 0x232   : > { %v603_v16 = vadd.f32 %v597_v37, %v581_v21  ;;  %v619_v45 = vsel %vm572_vm1, %v617_v15, %v618_v6  ;;  %v698_v41 = vmul.f32 %v4165_v59, %v8538_v36  ;;  %v661_v29 = vrot.slane %v653_v34, 2  ;;  %v11134_v21 = vld [vmem:[#allocation237_spill] sm:$0xff]  ;;  %v11135_v34 = vld [vmem:[#allocation176_spill] sm:$0xff] }
 0x233   : > { %v662_v56 = vrot.slane %v654_v46, 2  ;;  %v684_v14 = vrot.slane %v675_v11, 3  ;;  %v699_v22 = vmul.f32 %v4165_v59, %v8548_v47  ;;  %v685_v35 = vrot.slane %v676_v7, 3  ;;  %v11136_v11 = vld [vmem:[#allocation181_spill] sm:$0xff] }
 0x234   : > { %v625_v51 = vadd.f32 %v619_v45, %v603_v16  ;;  %v720_v42 = vmul.f32 %v4166_v48, %v8520_v23  ;;  %v721_v53 = vmul.f32 %v4166_v48, %v8581_v62  ;;  %v3579_v1 = vadd.f32 %v11133_v25, %v3561_v63 }
 0x235   : > { %v641_v60 = vsel %vm572_vm1, %v639_v17, %v640_v57  ;;  %v742_v15 = vmul.f32 %v8057_v39, %v8528_v18  ;;  %v743_v6 = vmul.f32 %v8057_v39, %v8586_v19  ;;  %v8661_v37 = vadd.f32 %v11134_v21, %v3260_v2 }
 0x236   : > { %v3616_v46 = vadd.f32 %v11135_v34, %v3598_v12  ;;  %v647_v0 = vadd.f32 %v641_v60, %v625_v51  ;;  %v764_v7 = vmul.f32 %v11136_v11, %v8550_v38  ;;  %v663_v63 = vsel %vm572_vm1, %v661_v29, %v662_v56  ;;  %v8671_v51 = vld [vmem:[%s4538_s20 + $0x4] ss:$0 sm:$0xff] }
 0x237   : > { %v706_v17 = vrot.slane %v698_v41, 3  ;;  %v707_v57 = vrot.slane %v699_v22, 3  ;;  %v765_v55 = vmul.f32 %v11136_v11, %v8593_v3  ;;  %v686_v45 = vsel %vm683_vm2, %v684_v14, %v685_v35  ;;  %v8680_v22 = vld [vmem:[%s4538_s20 + $0x9] ss:$0 sm:$0xff] }
 0x238   : > { %v669_v16 = vadd.f32 %v663_v63, %v647_v0  ;;  %v728_v59 = vrot.slane %v720_v42, 3  ;;  %v729_v2 = vrot.slane %v721_v53, 3  ;;  %v750_v48 = vrot.slane %v742_v15, 3  ;;  %v11137_v35 = vld [vmem:[#allocation142_spill] sm:$0xff] }
 0x239   : > { %v751_v25 = vrot.slane %v743_v6, 3  ;;  %v772_v12 = vrot.slane %v764_v7, 3  ;;  %v8675_v60 = vmul.f32 %v8671_v51, %v8538_v36  ;;  %v773_v41 = vrot.slane %v765_v55, 3  ;;  %v8696_v7 = vld [vmem:[#allocation2 + $0x48] sm:$0xf] }
 0x23a   : > { %v692_v29 = vadd.f32 %v686_v45, %v669_v16  ;;  %v787_v56 = vmul.f32 %v8671_v51, %v8536_v5  ;;  %v809_v14 = vmul.f32 %v8680_v22, %v8538_v36  ;;  %v8685_v42 = vadd.f32 %v11137_v35, %v3579_v1  ;;  %v8711_v45 = vld [vmem:[%s4538_s20 + $0x18] ss:$0 sm:$0xff] }
 0x23b   : > { %v3634_v53 = vadd.f32 %v8575_v4, %v3616_v46  ;;  %v708_v15 = vsel %vm683_vm2, %v706_v17, %v707_v57  ;;  %v810_v6 = vmul.f32 %v8680_v22, %v8548_v47  ;;  %v730_v34 = vsel %vm683_vm2, %v728_v59, %v729_v2  ;;  %v8701_v46 = vld [vmem:[%s4538_s20 + $0x13] ss:$0 sm:$0xff]  ;;  %v8707_v17 = vld [vmem:[#allocation2 + $0x58] sm:$0xf] }
 0x23c   : > { %v714_v21 = vadd.f32 %v708_v15, %v692_v29  ;;  %v831_v5 = vmul.f32 %v8429_v28, %v8520_v23  ;;  %v832_v0 = vmul.f32 %v8429_v28, %v8581_v62  ;;  %v752_v1 = vsel %vm683_vm2, %v750_v48, %v751_v25  ;;  %v11138_v35 = vld [vmem:[#allocation108_spill] sm:$0xff] }
 0x23d   : > { %v795_v4 = vrot.slane %v8675_v60, 4  ;;  %v853_v47 = vmul.f32 %v8701_v46, %v8528_v18  ;;  %v854_v63 = vmul.f32 %v8701_v46, %v8586_v19  ;;  %v774_v57 = vsel %vm683_vm2, %v772_v12, %v773_v41 }
 0x23e   : > { %v736_v23 = vadd.f32 %v730_v34, %v714_v21  ;;  %v796_v62 = vrot.slane %v787_v56, 4  ;;  %v817_v55 = vrot.slane %v809_v14, 4  ;;  %v818_v16 = vrot.slane %v810_v6, 4 }
 0x23f   : > { %v875_v59 = vmul.f32 %v8711_v45, %v8550_v38  ;;  %v876_v2 = vmul.f32 %v8711_v45, %v8593_v3  ;;  %v997_v18 = vmul.f32 %v8599_v52, %v8696_v7  ;;  %v839_v48 = vrot.slane %v831_v5, 4 }
 0x240   : > { %v758_v19 = vadd.f32 %v752_v1, %v736_v23  ;;  %v840_v25 = vrot.slane %v832_v0, 4  ;;  %v1015_v12 = vmul.f32 %v11126_v50, %v8707_v17  ;;  %v861_v29 = vrot.slane %v853_v47, 4  ;;  %v11139_v50 = vld [vmem:[#allocation50_spill] sm:$0xff]  ;;  %v11141_v47 = vld [vmem:[#allocation87_spill] sm:$0xff] }
 0x241   : > { %v862_v41 = vrot.slane %v854_v63, 4  ;;  %v1005_v56 = vrot.slane %v997_v18, 1  ;;  %v1087_v14 = vmul.f32 %v8628_v61, %v8696_v7  ;;  %v8724_v38 = vadd.f32 %v11138_v35, %v3634_v53 }
 0x242   : > { %v780_v15 = vadd.f32 %v774_v57, %v758_v19  ;;  %v797_v3 = vsel %vm794_vm3, %v795_v4, %v796_v62  ;;  %v1023_v52 = vrot.slane %v1015_v12, 1  ;;  %v819_v6 = vsel %vm794_vm3, %v817_v55, %v818_v16  ;;  %v11142_v57 = vld [vmem:[#allocation68_spill] sm:$0xff]  ;;  %v11146_v12 = vld [vmem:[#allocation18_spill] sm:$0xff] }
 0x243   : > { %v883_v21 = vrot.slane %v875_v59, 4  ;;  %v884_v34 = vrot.slane %v876_v2, 4  ;;  %v11140_v5 = vrot.slane %v11139_v50, 1  ;;  %v841_v61 = vsel %vm794_vm3, %v839_v48, %v840_v25  ;;  %v8741_v59 = vld [vmem:[#allocation2 + $0x40] sm:$0xff]  ;;  %v11144_v48 = vld [vmem:[#allocation23_spill] sm:$0xff] }
 0x244   : > { %v803_v1 = vadd.f32 %v797_v3, %v780_v15  ;;  %v1105_v63 = vmul.f32 %v7938_v9, %v8707_v17  ;;  %v863_v23 = vsel %vm794_vm3, %v861_v29, %v862_v41  ;;  %v11143_v62 = vrot.slane %v11142_v57, 1  ;;  %v8752_v41 = vld [vmem:[#allocation2 + $0x50] sm:$0xff]  ;;  %v4173_v15 = vld [vmem:[#allocation2 + $0x18] sm:$0xf]  ;;  %v11152_v57 = vld [vmem:[#allocation29_spill] sm:$0xff] }
 0x245   : > { %v1006_v0 = vsel %vm461_vm0, %v11140_v5, %v1005_v56  ;;  %v1095_v16 = vrot.slane %v1087_v14, 2  ;;  %v1176_v2 = vmul.f32 %v8741_v59, %v8057_v39  ;;  %v11145_v25 = vrot.slane %v11144_v48, 3 }
 0x246   : > { %v1012_v53 = vadd.f32 %v1006_v0, %v11141_v47  ;;  %v1024_v55 = vsel %vm461_vm0, %v11143_v62, %v1023_v52  ;;  %v825_v18 = vadd.f32 %v819_v6, %v803_v1  ;;  %v1177_v9 = vmul.f32 %v8057_v39, %v8696_v7  ;;  %v11147_v6 = vld [vmem:[#allocation28_spill] sm:$0xff]  ;;  %v4174_v0 = vld [vmem:[#allocation2 + $0x20] sm:$0xff]  ;;  %v11148_v1 = vld [vmem:[#allocation51_spill] sm:$0xff] }
 0x247   : > { %v1132_v56 = vsel %vm683_vm2, %v11146_v12, %v11145_v25  ;;  %v885_v29 = vsel %vm794_vm3, %v883_v21, %v884_v34  ;;  %v1194_v14 = vmul.f32 %v8752_v41, %v11136_v11  ;;  %v1195_v35 = vmul.f32 %v11136_v11, %v8707_v17  ;;  %v11150_v47 = vld [vmem:[#allocation33_spill] sm:$0xff]  ;;  %v4175_v25 = vld [vmem:[#allocation2 + $0x28] sm:$0xf] }
 0x248   : > { %v1030_v19 = vadd.f32 %v1024_v55, %v1012_v53  ;;  %v1213_v3 = vmul.f32 %v4173_v15, %v8671_v51  ;;  %v847_v52 = vadd.f32 %v841_v61, %v825_v18  ;;  %v1113_v5 = vrot.slane %v1105_v63, 2  ;;  %v8771_v15 = vld [vmem:[#allocation2 + $0x30] sm:$0xff] }
 0x249   : > { %v1230_v39 = vmul.f32 %v4174_v0, %v8680_v22  ;;  %v11149_v21 = vrot.slane %v11148_v1, 2  ;;  %v11151_v53 = vrot.slane %v11150_v47, 3  ;;  %v11153_v62 = vrot.slane %v11152_v57, 3  ;;  %v4177_v47 = vld [vmem:[#allocation2 + $0x38] sm:$0xf] }
 0x24a   : > { %v1048_v50 = vadd.f32 %v11147_v6, %v1030_v19  ;;  %v1184_v48 = vrot.slane %v1176_v2, 3  ;;  %v1231_v61 = vmul.f32 %v4175_v25, %v8680_v22  ;;  %v869_v18 = vadd.f32 %v863_v23, %v847_v52  ;;  %v11154_v19 = vld [vmem:[#allocation38_spill] sm:$0xff] }
 0x24b   : > { %v1096_v34 = vsel %vm572_vm1, %v11149_v21, %v1095_v16  ;;  %v1150_v55 = vsel %vm683_vm2, %v11153_v62, %v11151_v53  ;;  %v1185_v12 = vrot.slane %v1177_v9, 3  ;;  %v1248_v6 = vmul.f32 %v8771_v15, %v8429_v28  ;;  %v11155_v53 = vld [vmem:[#allocation37_spill] sm:$0xff] }
 0x24c   : > { %v1066_v63 = vadd.f32 %v11154_v19, %v1048_v50  ;;  %v1202_v16 = vrot.slane %v1194_v14, 3  ;;  %v1203_v1 = vrot.slane %v1195_v35, 3  ;;  %v1221_v21 = vrot.slane %v1213_v3, 4  ;;  %v8787_v3 = vld [vmem:[#allocation2 + $0x68] sm:$0xf] }
 0x24d   : > { %v1249_v57 = vmul.f32 %v4177_v47, %v8429_v28  ;;  %v1238_v62 = vrot.slane %v1230_v39, 4  ;;  %v1239_v44 = vrot.slane %v1231_v61, 4  ;;  %v1266_v23 = vmul.f32 %v8741_v59, %v8701_v46  ;;  %v11156_v39 = vld [vmem:[#allocation62_spill] sm:$0xff]  ;;  %v11158_v61 = vld [vmem:[#allocation40_spill] sm:$0xff]  ;;  %v11160_v47 = vld [vmem:[#allocation69_spill] sm:$0xff] }
 0x24e   : > { %v1084_v2 = vadd.f32 %v11155_v53, %v1066_v63  ;;  %v8779_v52 = vadd.f32 %v885_v29, %v869_v18  ;;  %v1267_v9 = vmul.f32 %v8701_v46, %v8696_v7  ;;  %v1284_v14 = vmul.f32 %v8752_v41, %v8711_v45 }
 0x24f   : > { %v1285_v35 = vmul.f32 %v8711_v45, %v8707_v17  ;;  %v11157_v25 = vrot.slane %v11156_v39, 3  ;;  %v11159_v19 = vrot.slane %v11158_v61, 3  ;;  %v1256_v18 = vrot.slane %v1248_v6, 4  ;;  %v11163_v61 = vld [vmem:[#allocation147_spill] sm:$0xff] }
 0x250   : > { %v1102_v50 = vadd.f32 %v1096_v34, %v1084_v2  ;;  %v1257_v63 = vrot.slane %v1249_v57, 4  ;;  %v11161_v53 = vrot.slane %v11160_v47, 2  ;;  %v1186_v13 = vsel %vm683_vm2, %v1184_v48, %v1185_v12  ;;  %v8820_v47 = vld [vmem:[#allocation2 + $0x60] sm:$0xff] }
 0x251   : > { %v1168_v29 = vsel %vm683_vm2, %v11159_v19, %v11157_v25  ;;  %v1204_v32 = vsel %vm683_vm2, %v1202_v16, %v1203_v1  ;;  %v1222_v17 = vsel %vm794_vm3, %v795_v4, %v1221_v21  ;;  %v1240_v2 = vsel %vm794_vm3, %v1238_v62, %v1239_v44  ;;  %v4178_v25 = vld [vmem:[%s4538_s20 + $0x15] ss:$0 sm:$0xff]  ;;  %v11164_v44 = vld [vmem:[#allocation113_spill] sm:$0xff] }
 0x252   : > { %v1114_v7 = vsel %vm572_vm1, %v11161_v53, %v1113_v5  ;;  %v1274_v39 = vrot.slane %v1266_v23, 4  ;;  %v1424_v6 = vmul.f32 %v4178_v25, %v8787_v3  ;;  %v8807_v57 = vmul.f32 %v8779_v52, %v8779_v52  ;;  %v11162_v1 = vld [vmem:[#allocation231_spill] sm:$0xff]  ;;  %v11165_v62 = vld [vmem:[#allocation233_spill] sm:$0xff] }
 0x253   : > { %v1120_v34 = vadd.f32 %v1114_v7, %v1102_v50  ;;  %v1275_v5 = vrot.slane %v1267_v9, 4  ;;  %v1292_v48 = vrot.slane %v1284_v14, 4  ;;  %v1293_v12 = vrot.slane %v1285_v35, 4  ;;  %v4179_v50 = vld [vmem:[%s4538_s20 + $0x16] ss:$0 sm:$0xff]  ;;  %s4262_s20 = sshll.u32 %s4336_s14, 4  ;;  %s4263_s20 = int_to_ptr.vmem [resolvable:$false] %s4262_s20 }
 0x254   : > { %v1258_v60 = vsel %vm794_vm3, %v1256_v18, %v1257_v63  ;;  %v8812_v4 = vadd.f32 %v11163_v61, %v11162_v1  ;;  %v1432_v21 = vrot.slane %v1424_v6, 1  ;;  %v8816_v23 = vadd.f32 %v11165_v62, %v11164_v44  ;;  %v11166_v35 = vld [vmem:[#allocation103_spill] sm:$0xff]  ;;  %v4181_v7 = vld [vmem:[#allocation2 + $0x28] sm:$0xf]  ;;  %v11168_v44 = vld [vmem:[#allocation180_spill] sm:$0xff]  ;;  %s4264_s26 = scalar_lea.vmem %s4263_s20, 4096  ;;  %p4265_p8 = scmp.lt.s32.totalorder %s9222_s19, %s4263_s20 }
 0x255   : > { %v1138_v16 = vadd.f32 %v1132_v56, %v1120_v34  ;;  %v1514_v19 = vmul.f32 %v4179_v50, %v8787_v3  ;;  %v1603_v9 = vmul.f32 %v8820_v47, %v11136_v11  ;;  %v1604_v56 = vmul.f32 %v11136_v11, %v8787_v3  ;;  %p4266_p9 = scmp.lt.s32.totalorder %s4264_s26, %s4258_s29 }
 0x256   : > { %v11167_v18 = vrot.slane %v11166_v35, 1  ;;  %v1621_v53 = vmul.f32 %v4174_v0, %v8671_v51  ;;  %v1622_v34 = vmul.f32 %v4181_v7, %v8671_v51  ;;  %v1276_v25 = vsel %vm794_vm3, %v1274_v39, %v1275_v5  ;;  %v11171_v35 = vld [vmem:[#allocation34_spill] sm:$0xff]  ;;  %v11175_v7 = vld [vmem:[#allocation44_spill] sm:$0xff] }
 0x257   : > { %v1156_v14 = vadd.f32 %v1150_v55, %v1138_v16  ;;  %v8833_v6 = vsel %vm794_vm3, %v1292_v48, %v1293_v12  ;;  %v1639_v11 = vmul.f32 %v8771_v15, %v8680_v22  ;;  %v11169_v16 = vld [vmem:[#allocation35_spill] sm:$0xff]  ;;  %v11176_v54 = vrot.slane %v11175_v7, 3  ;;  %v4182_v5 = vld [vmem:[#allocation2 + $0x38] sm:$0xf]  ;;  %v11177_v12 = vld [vmem:[#allocation46_spill] sm:$0xff]  ;;  %p4267_p11 = por %p4266_p9, %p4265_p8 }
 0x258   : > { %v1433_v63 = vsel %vm461_vm0, %v11167_v18, %v1432_v21  ;;  %v11170_v50 = vrot.slane %v11169_v16, 3  ;;  %v11172_v21 = vrot.slane %v11171_v35, 3  ;;  %v11173_v18 = vld [vmem:[#allocation63_spill] sm:$0xff]  ;;  %v1640_v48 = vmul.f32 %v4182_v5, %v8680_v22 }
 0x259   : > { %v1439_v62 = vadd.f32 %v1433_v63, %v11168_v44  ;;  %v1174_v55 = vadd.f32 %v1168_v29, %v1156_v14  ;;  %v11174_v49 = vrot.slane %v11173_v18, 3  ;;  %v1522_v44 = vrot.slane %v1514_v19, 2  ;;  %v11178_v35 = vld [vmem:[#allocation39_spill] sm:$0xff]  ;;  %p4268_p0 = pnand %p4267_p11, %p4261_p7 }
 0x25a   : > { %v1541_v0 = vsel %vm683_vm2, %v11172_v21, %v11170_v50  ;;  %v1611_v20 = vrot.slane %v1603_v9, 3  ;;  %v1612_v29 = vrot.slane %v1604_v56, 3  ;;  %v1629_v16 = vrot.slane %v1621_v53, 4  ;;  %v11181_v9 = vld [vmem:[#allocation54_spill] sm:$0xff] }
 0x25b   : > { %v1559_v39 = vsel %vm683_vm2, %v11176_v54, %v11174_v49  ;;  %v1457_v63 = vadd.f32 %v11177_v12, %v1439_v62  ;;  %v1192_v14 = vadd.f32 %v1186_v13, %v1174_v55  ;;  %v1630_v61 = vrot.slane %v1622_v34, 4  ;;  %v4183_v54 = vld [vmem:[#allocation2 + $0x48] sm:$0xf]  ;;  %v4184_v34 = vld [vmem:[#allocation2 + $0x58] sm:$0xf] }
 0x25c   : > { %v8852_v50 = vmul.f32 %v8741_v59, %v8429_v28  ;;  %v1647_v18 = vrot.slane %v1639_v11, 4  ;;  %v1648_v7 = vrot.slane %v1640_v48, 4  ;;  %v8856_v49 = vmul.f32 %v4183_v54, %v8429_v28  ;;  %v11179_v62 = vld [vmem:[#allocation90_spill] sm:$0xff]  ;;  %v11183_v11 = vld [vmem:[#allocation43_spill] sm:$0xff]  ;;  %v11184_v12 = vld [vmem:[#allocation104_spill] sm:$0xff] }
 0x25d   : > { %v1475_v21 = vadd.f32 %v11178_v35, %v1457_v63  ;;  %v1210_v5 = vadd.f32 %v1204_v32, %v1192_v14  ;;  %v11180_v19 = vrot.slane %v11179_v62, 3  ;;  %v11182_v56 = vrot.slane %v11181_v9, 3  ;;  %v11186_v14 = vld [vmem:[#allocation41_spill] sm:$0xff]  ;;  %v11188_v54 = vld [vmem:[#allocation76_spill] sm:$0xff] }
 0x25e   : > { %v8865_v53 = vmul.f32 %v8752_v41, %v8701_v46  ;;  %v8868_v55 = vmul.f32 %v4184_v34, %v8701_v46  ;;  %v11185_v63 = vrot.slane %v11184_v12, 2  ;;  %v11187_v35 = vrot.slane %v11186_v14, 3  ;;  %v11191_v14 = vld [vmem:[#allocation230_spill] sm:$0xff] }
 0x25f   : > { %v1577_v13 = vsel %vm683_vm2, %v11182_v56, %v11180_v19  ;;  %v1493_v48 = vadd.f32 %v11183_v11, %v1475_v21  ;;  %v11189_v62 = vrot.slane %v11188_v54, 3  ;;  %v8881_v9 = vmul.f32 %v8820_v47, %v8711_v45  ;;  %v11190_v11 = vld [vmem:[#allocation71_spill] sm:$0xff] }
 0x260   : > { %v1523_v32 = vsel %vm572_vm1, %v11185_v63, %v1522_v44  ;;  %v1228_v56 = vadd.f32 %v1222_v17, %v1210_v5  ;;  %v1613_v34 = vsel %vm683_vm2, %v1611_v20, %v1612_v29  ;;  %v8885_v1 = vsel %vm794_vm3, %v1629_v16, %v1630_v61  ;;  %v11193_v29 = vld [vmem:[#allocation91_spill] sm:$0xff]  ;;  %v11195_v16 = vld [vmem:[#allocation57_spill] sm:$0xff] }
 0x261   : > { %v1595_v19 = vsel %vm683_vm2, %v11189_v62, %v11187_v35  ;;  %v1665_v21 = vrot.slane %v8852_v50, 4  ;;  %v1511_v44 = vadd.f32 %v11190_v11, %v1493_v48  ;;  %v8890_v12 = vsel %vm794_vm3, %v1647_v18, %v1648_v7  ;;  %v11192_v35 = vld [vmem:[#allocation45_spill] sm:$0xff] }
 0x262   : > { %v1666_v63 = vrot.slane %v8856_v49, 4  ;;  %v1957_v54 = vadd.f32 %v11192_v35, %v11191_v14  ;;  %v1246_v62 = vadd.f32 %v1240_v2, %v1228_v56  ;;  %v1683_v17 = vrot.slane %v8865_v53, 4  ;;  %v11197_v14 = vld [vmem:[#allocation47_spill] sm:$0xff] }
 0x263   : > { %v1684_v20 = vrot.slane %v8868_v55, 4  ;;  %v11194_v61 = vrot.slane %v11193_v29, 3  ;;  %v11196_v5 = vrot.slane %v11195_v16, 3  ;;  %v1529_v48 = vadd.f32 %v1523_v32, %v1511_v44  ;;  %v11199_v56 = vld [vmem:[#allocation79_spill] sm:$0xff]  ;;  %v11203_v16 = vld [vmem:[#allocation112_spill] sm:$0xff] }
 0x264   : > { %v1694_v18 = vmul.f32 %v8711_v45, %v8787_v3  ;;  %v1701_v7 = vrot.slane %v8881_v9, 4  ;;  %v1264_v11 = vadd.f32 %v1258_v60, %v1246_v62  ;;  %v11198_v2 = vrot.slane %v11197_v14, 3 }
 0x265   : > { %v1969_v50 = vsel %vm683_vm2, %v11196_v5, %v11194_v61  ;;  %v11200_v53 = vrot.slane %v11199_v56, 3  ;;  %v2031_v35 = vmul.f32 %v8771_v15, %v8671_v51  ;;  %v2049_v29 = vmul.f32 %v8741_v59, %v8680_v22  ;;  %v4185_v61 = vld [vmem:[#allocation2 + $0x48] sm:$0xf]  ;;  %v4186_v51 = vld [vmem:[#allocation2 + $0x58] sm:$0xf]  ;;  %v11206_v56 = vld [vmem:[#allocation77_spill] sm:$0xff] }
 0x266   : > { %v1975_v49 = vadd.f32 %v1969_v50, %v1957_v54  ;;  %v1547_v32 = vadd.f32 %v1541_v0, %v1529_v48  ;;  %v2050_v3 = vmul.f32 %v4185_v61, %v8680_v22  ;;  %v2067_v60 = vmul.f32 %v8752_v41, %v8429_v28  ;;  %v11201_v54 = vld [vmem:[#allocation53_spill] sm:$0xff] }
 0x267   : > { %v1987_v55 = vsel %vm683_vm2, %v11200_v53, %v11198_v2  ;;  %v1282_v9 = vadd.f32 %v1276_v25, %v1264_v11  ;;  %v11202_v62 = vrot.slane %v11201_v54, 3  ;;  %v11204_v5 = vrot.slane %v11203_v16, 3  ;;  %v11205_v48 = vld [vmem:[#allocation193_spill] sm:$0xff] }
 0x268   : > { %v1993_v44 = vadd.f32 %v1987_v55, %v1975_v49  ;;  %v2039_v14 = vrot.slane %v2031_v35, 4  ;;  %v2068_v15 = vmul.f32 %v4186_v51, %v8429_v28  ;;  %v1565_v59 = vadd.f32 %v1559_v39, %v1547_v32  ;;  %v11208_v55 = vld [vmem:[#allocation132_spill] sm:$0xff]  ;;  %v4187_v39 = vld [vmem:[#allocation2 + $0x68] sm:$0xf] }
 0x269   : > { %v2005_v50 = vsel %vm683_vm2, %v11204_v5, %v11202_v62  ;;  %v1702_v0 = vrot.slane %v1694_v18, 4  ;;  %v1714_v49 = vmul.f32 %v11205_v48, %v11205_v48  ;;  %v11207_v53 = vrot.slane %v11206_v56, 3 }
 0x26a   : > { %v2011_v2 = vadd.f32 %v2005_v50, %v1993_v44  ;;  %v11209_v25 = vrot.slane %v11208_v55, 3  ;;  %v2057_v61 = vrot.slane %v2049_v29, 4  ;;  %v2058_v54 = vrot.slane %v2050_v3, 4  ;;  %v11210_v44 = vld [vmem:[#allocation67_spill] sm:$0xff] }
 0x26b   : > { %v2085_v35 = vmul.f32 %v8820_v47, %v8701_v46  ;;  %v1583_v62 = vadd.f32 %v1577_v13, %v1565_v59  ;;  %v2075_v5 = vrot.slane %v2067_v60, 4  ;;  %v2086_v18 = vmul.f32 %v4187_v39, %v8701_v46  ;;  %v4189_v59 = vld [vmem:[#allocation2 + $0x78] sm:$0xf] }
 0x26c   : > { %v2023_v11 = vsel %vm683_vm2, %v11209_v25, %v11207_v53  ;;  %v8934_v32 = vadd.f32 %v8833_v6, %v1282_v9  ;;  %v11211_v50 = vrot.slane %v11210_v44, 4  ;;  %v2076_v56 = vrot.slane %v2068_v15, 4  ;;  %v8939_v25 = vld [vmem:[#allocation2 + $0x70] sm:$0xff]  ;;  %v11217_v44 = vld [vmem:[#allocation116_spill] sm:$0xff] }
 0x26d   : > { %v2029_v16 = vadd.f32 %v2023_v11, %v2011_v2  ;;  %v2093_v53 = vrot.slane %v2085_v35, 4  ;;  %v1601_v29 = vadd.f32 %v1595_v19, %v1583_v62  ;;  %v2094_v55 = vrot.slane %v2086_v18, 4 }
 0x26e   : > { %v2041_v51 = vsel %vm794_vm3, %v2039_v14, %v11211_v50  ;;  %v2103_v13 = vmul.f32 %v8939_v25, %v8711_v45  ;;  %v1667_v60 = vsel %vm794_vm3, %v1665_v21, %v1666_v63  ;;  %v1712_v6 = vadd.f32 %v11205_v48, %v8812_v4  ;;  %v11212_v63 = vld [vmem:[#allocation60_spill] sm:$0xff] }
 0x26f   : > { %v2047_v3 = vadd.f32 %v2041_v51, %v2029_v16  ;;  %v2059_v9 = vsel %vm794_vm3, %v2057_v61, %v2058_v54  ;;  %v2104_v14 = vmul.f32 %v4189_v59, %v8711_v45  ;;  %v1619_v15 = vadd.f32 %v1613_v34, %v1601_v29  ;;  %v11213_v4 = vld [vmem:[#allocation56_spill] sm:$0xff] }
 0x270   : > { %v1685_v19 = vsel %vm794_vm3, %v1683_v17, %v1684_v20  ;;  %v1716_v2 = vadd.f32 %v1714_v49, %v8816_v23  ;;  %v1302_v35 = vadd.f32 %v8934_v32, %v8779_v52  ;;  %v1703_v62 = vsel %vm794_vm3, %v1701_v7, %v1702_v0  ;;  %v11214_v20 = vld [vmem:[#allocation80_spill] sm:$0xff]  ;;  %v11215_v49 = vld [vmem:[#allocation58_spill] sm:$0xff] }
 0x271   : > { %v2065_v11 = vadd.f32 %v2059_v9, %v2047_v3  ;;  %v2077_v21 = vsel %vm794_vm3, %v2075_v5, %v2076_v56  ;;  %v2367_v16 = vadd.f32 %v11213_v4, %v11212_v63  ;;  %v1637_v61 = vadd.f32 %v8885_v1, %v1619_v15  ;;  %v4190_v56 = vld [vmem:[#allocation2 + $0x68] sm:$0xf]  ;;  %v11226_v63 = vld [vmem:[#allocation115_spill] sm:$0xff] }
 0x272   : > { %v2095_v34 = vsel %vm794_vm3, %v2093_v53, %v2094_v55  ;;  %v2111_v39 = vrot.slane %v2103_v13, 4  ;;  %v2112_v17 = vrot.slane %v2104_v14, 4  ;;  %v11216_v18 = vrot.slane %v11215_v49, 3  ;;  %v11219_v55 = vld [vmem:[#allocation236_spill] sm:$0xff]  ;;  %v11220_v13 = vld [vmem:[#allocation239_spill] sm:$0xff]  ;;  %v11222_v14 = vld [vmem:[#allocation81_spill] sm:$0xff] }
 0x273   : > { %v2083_v54 = vadd.f32 %v2077_v21, %v2065_v11  ;;  %v2385_v23 = vadd.f32 %v11214_v20, %v2367_v16  ;;  %v11218_v50 = vrot.slane %v11217_v44, 3  ;;  %v2459_v0 = vmul.f32 %v8752_v41, %v8680_v22  ;;  %v11221_v41 = vld [vmem:[#allocation256_spill] sm:$0xff]  ;;  %v11228_v16 = vld [vmem:[#allocation114_spill] sm:$0xff] }
 0x274   : > { %v1655_v5 = vadd.f32 %v8890_v12, %v1637_v61  ;;  %v2477_v1 = vmul.f32 %v8820_v47, %v8429_v28  ;;  %v2478_v53 = vmul.f32 %v4190_v56, %v8429_v28  ;;  %v1304_v29 = vmul.f32 %v8934_v32, %v8934_v32  ;;  %v11224_v47 = vld [vmem:[#allocation107_spill] sm:$0xff]  ;;  %v11230_v56 = vld [vmem:[#allocation93_spill] sm:$0xff] }
 0x275   : > { %v2397_v7 = vsel %vm683_vm2, %v11218_v50, %v11216_v18  ;;  %v2101_v51 = vadd.f32 %v2095_v34, %v2083_v54  ;;  %v2494_v9 = vadd.f32 %v11220_v13, %v11219_v55  ;;  %v2495_v59 = vmul.f32 %v8939_v25, %v8701_v46  ;;  %v11232_v13 = vld [vmem:[#allocation61_spill] sm:$0xff] }
 0x276   : > { %v2403_v3 = vadd.f32 %v2397_v7, %v2385_v23  ;;  %v1673_v22 = vadd.f32 %v1667_v60, %v1655_v5  ;;  %v2124_v12 = vmul.f32 %v11221_v41, %v11221_v41  ;;  %v11223_v15 = vrot.slane %v11222_v14, 3  ;;  %v4191_v60 = vld [vmem:[#allocation2 + $0x78] sm:$0xf] }
 0x277   : > { %v11225_v11 = vrot.slane %v11224_v47, 3  ;;  %v11227_v4 = vrot.slane %v11226_v63, 3  ;;  %v11229_v61 = vrot.slane %v11228_v16, 3  ;;  %v2113_v34 = vsel %vm794_vm3, %v2111_v39, %v2112_v17  ;;  %v11236_v16 = vld [vmem:[#allocation48_spill] sm:$0xff] }
 0x278   : > { %v2467_v23 = vrot.slane %v2459_v0, 4  ;;  %v2496_v49 = vmul.f32 %v4191_v60, %v8701_v46  ;;  %v1691_v18 = vadd.f32 %v1685_v19, %v1673_v22  ;;  %v8990_v44 = vadd.f32 %v2113_v34, %v2101_v51  ;;  %v4192_v0 = vld [vmem:[#allocation2 + $0x80] sm:$0xff]  ;;  %v11235_v51 = vld [vmem:[#allocation119_spill] sm:$0xff]  ;;  %v11238_v60 = vld [vmem:[#allocation210_spill] sm:$0xff] }
 0x279   : > { %v2415_v21 = vsel %vm683_vm2, %v11225_v11, %v11223_v15  ;;  %v2433_v54 = vsel %vm683_vm2, %v11229_v61, %v11227_v4  ;;  %v2485_v50 = vrot.slane %v2477_v1, 4  ;;  %v2486_v7 = vrot.slane %v2478_v53, 4  ;;  %v11234_v11 = vld [vmem:[#allocation232_spill] sm:$0xff] }
 0x27a   : > { %v2421_v20 = vadd.f32 %v2415_v21, %v2403_v3  ;;  %v11231_v55 = vrot.slane %v11230_v56, 4  ;;  %v11233_v14 = vrot.slane %v11232_v13, 4  ;;  %v2503_v47 = vrot.slane %v2495_v59, 4  ;;  %v4193_v21 = vld [vmem:[#allocation2 + $0x88] sm:$0xf] }
 0x27b   : > { %v2512_v39 = vadd.f32 %v11234_v11, %v2494_v9  ;;  %v2504_v17 = vrot.slane %v2496_v49, 4  ;;  %v2513_v3 = vmul.f32 %v4192_v0, %v8711_v45  ;;  %v2514_v19 = vmul.f32 %v4193_v21, %v8711_v45  ;;  %v11244_v13 = vld [vmem:[#allocation234_spill] sm:$0xff]  ;;  %v11246_v11 = vld [vmem:[#allocation217_spill] sm:$0xff] }
 0x27c   : > { %v2439_v5 = vadd.f32 %v2433_v54, %v2421_v20  ;;  %v2451_v15 = vsel %vm794_vm3, %v11233_v14, %v11231_v55  ;;  %v2795_v1 = vadd.f32 %v11235_v51, %v8523_v40  ;;  %v1306_v53 = vadd.f32 %v1304_v29, %v8807_v57  ;;  %v11239_v57 = vld [vmem:[#allocation133_spill] sm:$0xff]  ;;  %v11240_v29 = vld [vmem:[#allocation184_spill] sm:$0xff] }
 0x27d   : > { %v9003_v22 = vadd.f32 %v1703_v62, %v1691_v18  ;;  %v2122_v63 = vadd.f32 %v11221_v41, %v1712_v6  ;;  %v2123_v9 = vmul.f32 %v8990_v44, %v8990_v44  ;;  %v2126_v59 = vadd.f32 %v2124_v12, %v1716_v2  ;;  %v11242_v6 = vld [vmem:[#allocation146_spill] sm:$0xff] }
 0x27e   : > { %v2457_v4 = vadd.f32 %v2451_v15, %v2439_v5  ;;  %v11237_v61 = vrot.slane %v11236_v16, 4  ;;  %v2487_v34 = vsel %vm794_vm3, %v2485_v50, %v2486_v7  ;;  %v9013_v40 = vadd.f32 %v11238_v60, %v2512_v39  ;;  %v4195_v16 = vld [vmem:[#allocation2 + $0x90] sm:$0xff] }
 0x27f   : > { %v2813_v62 = vadd.f32 %v11239_v57, %v2795_v1  ;;  %v11241_v49 = vrot.slane %v11240_v29, 3  ;;  %v11243_v18 = vrot.slane %v11242_v6, 3  ;;  %v1711_v2 = vadd.f32 %v9003_v22, %v1302_v35  ;;  %v11248_v1 = vld [vmem:[#allocation235_spill] sm:$0xff] }
 0x280   : > { %v2469_v54 = vsel %vm794_vm3, %v2467_v23, %v11237_v61  ;;  %v2505_v12 = vsel %vm794_vm3, %v2503_v47, %v2504_v17  ;;  %v2521_v56 = vrot.slane %v2513_v3, 4  ;;  %v2522_v23 = vrot.slane %v2514_v19, 4  ;;  %v4194_v17 = vld [vmem:[#allocation2 + $0x88] sm:$0xf]  ;;  %v11249_v61 = vld [vmem:[#allocation125_spill] sm:$0xff] }
 0x281   : > { %v2475_v20 = vadd.f32 %v2469_v54, %v2457_v4  ;;  %v2825_v5 = vsel %vm683_vm2, %v11243_v18, %v11241_v49  ;;  %v1713_v50 = vmul.f32 %v9003_v22, %v9003_v22  ;;  %v2886_v14 = vadd.f32 %v11244_v13, %v8611_v10  ;;  %v11253_v18 = vld [vmem:[#allocation59_spill] sm:$0xff] }
 0x282   : > { %v2831_v55 = vadd.f32 %v2825_v5, %v2813_v62  ;;  %v11245_v15 = vrot.slane %v8378_v24, 3  ;;  %v11247_v39 = vrot.slane %v11246_v11, 3  ;;  %v2887_v35 = vmul.f32 %v8939_v25, %v8429_v28  ;;  %v11257_v11 = vld [vmem:[#allocation272_spill] sm:$0xff] }
 0x283   : > { %v2493_v7 = vadd.f32 %v2487_v34, %v2475_v20  ;;  %v2905_v47 = vmul.f32 %v4192_v0, %v8701_v46  ;;  %v2906_v3 = vmul.f32 %v4194_v17, %v8701_v46  ;;  %v2904_v4 = vadd.f32 %v11248_v1, %v2886_v14  ;;  %v11251_v34 = vld [vmem:[#allocation86_spill] sm:$0xff]  ;;  %v4196_v0 = vld [vmem:[#allocation2 + $0x98] sm:$0xf] }
 0x284   : > { %v2843_v21 = vsel %vm683_vm2, %v11247_v39, %v11245_v15  ;;  %v2923_v10 = vmul.f32 %v4195_v16, %v8711_v45  ;;  %v2534_v24 = vmul.f32 %v9013_v40, %v9013_v40  ;;  %v11250_v54 = vrot.slane %v11249_v61, 4 }
 0x285   : > { %v2511_v19 = vadd.f32 %v2505_v12, %v2493_v7  ;;  %v2849_v51 = vadd.f32 %v2843_v21, %v2831_v55  ;;  %v11252_v20 = vrot.slane %v11251_v34, 4  ;;  %v2895_v25 = vrot.slane %v2887_v35, 4  ;;  %v11255_v12 = vld [vmem:[#allocation15_spill] sm:$0xff]  ;;  %v11260_v35 = vld [vmem:[#allocation85_spill] sm:$0xff] }
 0x286   : > { %v2924_v60 = vmul.f32 %v4196_v0, %v8711_v45  ;;  %v1715_v57 = vadd.f32 %v1713_v50, %v1306_v53  ;;  %v2121_v62 = vadd.f32 %v8990_v44, %v1711_v2  ;;  %v2523_v29 = vsel %vm794_vm3, %v2521_v56, %v2522_v23  ;;  %v11258_v2 = vld [vmem:[#allocation158_spill] sm:$0xff]  ;;  %v11259_v56 = vld [vmem:[#allocation92_spill] sm:$0xff] }
 0x287   : > { %v2861_v28 = vsel %vm794_vm3, %v11252_v20, %v11250_v54  ;;  %v9048_v6 = vadd.f32 %v2523_v29, %v2511_v19  ;;  %v11254_v5 = vrot.slane %v11253_v18, 4  ;;  %v11256_v7 = vrot.slane %v11255_v12, 4  ;;  %v11266_v20 = vld [vmem:[#allocation149_spill] sm:$0xff] }
 0x288   : > { %v2867_v49 = vadd.f32 %v2861_v28, %v2849_v51  ;;  %v2913_v13 = vrot.slane %v2905_v47, 4  ;;  %v2914_v14 = vrot.slane %v2906_v3, 4  ;;  %v2922_v39 = vadd.f32 %v11257_v11, %v2904_v4  ;;  %v11262_v51 = vld [vmem:[#allocation13_spill] sm:$0xff] }
 0x289   : > { %v2879_v55 = vsel %vm794_vm3, %v11256_v7, %v11254_v5  ;;  %v2931_v21 = vrot.slane %v2923_v10, 4  ;;  %v2932_v53 = vrot.slane %v2924_v60, 4  ;;  %v3615_v50 = vadd.f32 %v11258_v2, %v8685_v42  ;;  %v11264_v42 = vld [vmem:[#allocation294_spill] sm:$0xff]  ;;  %v11268_v60 = vld [vmem:[#allocation64_spill] sm:$0xff]  ;;  %v11270_v29 = vld [vmem:[#allocation129_spill] sm:$0xff] }
 0x28a   : > { %v2885_v15 = vadd.f32 %v2879_v55, %v2867_v49  ;;  %v3670_v23 = vadd.f32 %v11259_v56, %v8724_v38  ;;  %v11261_v17 = vrot.slane %v11260_v35, 4  ;;  %v3205_v1 = vadd.f32 %v11262_v51, %v8546_v43  ;;  %v11271_v18 = vld [vmem:[#allocation21_spill] sm:$0xff]  ;;  %v11274_v7 = vld [vmem:[#allocation123_spill] sm:$0xff]  ;;  %v4197_v56 = vld [vmem:[#allocation2 + $0xa8] sm:$0xf] }
 0x28b   : > { %v2125_v47 = vadd.f32 %v2123_v9, %v1715_v57  ;;  %v2532_v3 = vadd.f32 %v9013_v40, %v2122_v63  ;;  %v2536_v61 = vadd.f32 %v2534_v24, %v2126_v59  ;;  %v2915_v10 = vsel %vm794_vm3, %v2913_v13, %v2914_v14  ;;  %v11272_v12 = vld [vmem:[#allocation89_spill] sm:$0xff]  ;;  %v11280_v51 = vld [vmem:[#allocation164_spill] sm:$0xff] }
 0x28c   : > { %v2897_v19 = vsel %vm794_vm3, %v2895_v25, %v11261_v17  ;;  %v11263_v54 = vrot.slane %v8455_v8, 4  ;;  %v11265_v34 = vrot.slane %v11264_v42, 4  ;;  %v3223_v28 = vadd.f32 %v11266_v20, %v3205_v1  ;;  %v11267_v25 = vld [vmem:[#allocation20_spill] sm:$0xff] }
 0x28d   : > { %v2903_v4 = vadd.f32 %v2897_v19, %v2885_v15  ;;  %v3296_v0 = vadd.f32 %v11267_v25, %v8661_v37  ;;  %v2531_v43 = vadd.f32 %v9048_v6, %v2121_v62  ;;  %v2533_v63 = vmul.f32 %v9048_v6, %v9048_v6 }
 0x28e   : > { %v2936_v38 = vsel %vm794_vm3, %v11265_v34, %v11263_v54  ;;  %v2933_v9 = vsel %vm794_vm3, %v2931_v21, %v2932_v53  ;;  %v3241_v8 = vadd.f32 %v8503_v33, %v3223_v28  ;;  %v11269_v57 = vrot.slane %v11268_v60, 3  ;;  %v11290_v28 = vld [vmem:[#allocation150_spill] sm:$0xff] }
 0x28f   : > { %v9079_v59 = vadd.f32 %v2936_v38, %v2922_v39  ;;  %v2921_v24 = vadd.f32 %v2915_v10, %v2903_v4  ;;  %v3314_v5 = vadd.f32 %v11271_v18, %v3296_v0  ;;  %v2535_v37 = vadd.f32 %v2533_v63, %v2125_v47  ;;  %v11277_v39 = vld [vmem:[#allocation172_spill] sm:$0xff]  ;;  %v11282_v47 = vld [vmem:[#allocation138_spill] sm:$0xff] }
 0x290   : > { %v3253_v49 = vsel %vm683_vm2, %v11270_v29, %v11269_v57  ;;  %v11273_v62 = vrot.slane %v11272_v12, 4  ;;  %v11275_v55 = vrot.slane %v11274_v7, 4  ;;  %v3315_v14 = vmul.f32 %v4195_v16, %v8701_v46  ;;  %v11284_v10 = vld [vmem:[#allocation122_spill] sm:$0xff] }
 0x291   : > { %v3633_v15 = vadd.f32 %v8558_v30, %v3615_v50  ;;  %v3259_v11 = vadd.f32 %v3253_v49, %v3241_v8  ;;  %v11276_v33 = vrot.slane %v8494_v31, 4  ;;  %v11278_v21 = vrot.slane %v11277_v39, 4  ;;  %v11279_v30 = vld [vmem:[#allocation109_spill] sm:$0xff]  ;;  %v11288_v38 = vld [vmem:[#allocation218_spill] sm:$0xff]  ;;  %v11294_v49 = vld [vmem:[#allocation171_spill] sm:$0xff] }
 0x292   : > { %v3271_v13 = vsel %vm794_vm3, %v11275_v55, %v11273_v62  ;;  %v3333_v2 = vmul.f32 %v8711_v45, %v8538_v36  ;;  %v3334_v35 = vmul.f32 %v4197_v56, %v8711_v45  ;;  %v2942_v17 = vadd.f32 %v9079_v59, %v2532_v3  ;;  %v11286_v45 = vld [vmem:[#allocation151_spill] sm:$0xff]  ;;  %v11292_v63 = vld [vmem:[#allocation110_spill] sm:$0xff] }
 0x293   : > { %v3328_v53 = vsel %vm794_vm3, %v11278_v21, %v11276_v33  ;;  %v2944_v46 = vmul.f32 %v9079_v59, %v9079_v59  ;;  %v3651_v50 = vadd.f32 %v11279_v30, %v3633_v15  ;;  %v9106_v19 = vadd.f32 %v2933_v9, %v2921_v24  ;;  %v11293_v24 = vld [vmem:[#allocation173_spill] sm:$0xff]  ;;  %v11299_v39 = vld [vmem:[#allocation186_spill] sm:$0xff]  ;;  %v11301_v21 = vld [vmem:[#allocation159_spill] sm:$0xff] }
 0x294   : > { %v3332_v16 = vadd.f32 %v3328_v53, %v3314_v5  ;;  %v3277_v31 = vadd.f32 %v3271_v13, %v3259_v11  ;;  %v11281_v1 = vrot.slane %v11280_v51, 4  ;;  %v11283_v4 = vrot.slane %v11282_v47, 4  ;;  %v11296_v5 = vld [vmem:[#allocation143_spill] sm:$0xff] }
 0x295   : > { %v11285_v54 = vrot.slane %v11284_v10, 4  ;;  %v11287_v42 = vrot.slane %v11286_v45, 4  ;;  %v3323_v34 = vrot.slane %v3315_v14, 4  ;;  %v11289_v20 = vrot.slane %v11288_v38, 4  ;;  %v11298_v14 = vld [vmem:[#allocation190_spill] sm:$0xff]  ;;  %v11310_v10 = vld [vmem:[#allocation17_spill] sm:$0xff] }
 0x296   : > { %v3289_v36 = vsel %vm794_vm3, %v11283_v4, %v11281_v1  ;;  %v11291_v25 = vrot.slane %v11290_v28, 4  ;;  %v3669_v9 = vadd.f32 %v11292_v63, %v3651_v50  ;;  %v3688_v8 = vadd.f32 %v11293_v24, %v3670_v23  ;;  %v11308_v4 = vld [vmem:[#allocation187_spill] sm:$0xff]  ;;  %v11312_v45 = vld [vmem:[#allocation169_spill] sm:$0xff] }
 0x297   : > { %v3307_v3 = vsel %vm794_vm3, %v11287_v42, %v11285_v54  ;;  %v3295_v60 = vadd.f32 %v3289_v36, %v3277_v31  ;;  %v3341_v57 = vrot.slane %v3333_v2, 4  ;;  %v3342_v29 = vrot.slane %v3334_v35, 4  ;;  %v11304_v35 = vld [vmem:[#allocation211_spill] sm:$0xff] }
 0x298   : > { %v3346_v0 = vsel %vm794_vm3, %v11291_v25, %v11289_v20  ;;  %v11295_v18 = vrot.slane %v11294_v49, 4  ;;  %v11297_v12 = vrot.slane %v11296_v5, 4  ;;  %v2946_v7 = vadd.f32 %v2944_v46, %v2536_v61 }
 0x299   : > { %v9130_v55 = vadd.f32 %v3346_v0, %v3332_v16  ;;  %v3706_v15 = vadd.f32 %v11298_v14, %v3688_v8  ;;  %v2941_v11 = vadd.f32 %v9106_v19, %v2531_v43  ;;  %v3313_v33 = vadd.f32 %v3307_v3, %v3295_v60  ;;  %v11317_v8 = vld [vmem:[#allocation226_spill] sm:$0xff] }
 0x29a   : > { %v3681_v62 = vsel %vm794_vm3, %v11297_v12, %v11295_v18  ;;  %v11300_v23 = vrot.slane %v11299_v39, 4  ;;  %v11302_v53 = vrot.slane %v11301_v21, 4  ;;  %v11303_v56 = vrot.slane %v8579_v27, 4 }
 0x29b   : > { %v3687_v13 = vadd.f32 %v3681_v62, %v3669_v9  ;;  %v11305_v30 = vrot.slane %v11304_v35, 4  ;;  %v2943_v46 = vmul.f32 %v9106_v19, %v9106_v19  ;;  %v11306_v16 = vrot.slane %v8394_v26, 4 }
 0x29c   : > { %v3699_v2 = vsel %vm794_vm3, %v11302_v53, %v11300_v23  ;;  %v3343_v1 = vsel %vm794_vm3, %v3341_v57, %v3342_v29  ;;  %v11307_v47 = vrot.slane %v8432_v58, 4  ;;  %v11309_v27 = vrot.slane %v11308_v4, 4  ;;  %v11314_v58 = vld [vmem:[#allocation100_spill] sm:$0xff] }
 0x29d   : > { %v3720_v61 = vsel %vm794_vm3, %v11305_v30, %v11303_v56  ;;  %v3325_v43 = vsel %vm794_vm3, %v3323_v34, %v11306_v16  ;;  %v3705_v50 = vadd.f32 %v3699_v2, %v3687_v13  ;;  %v11311_v54 = vrot.slane %v11310_v10, 4 }
 0x29e   : > { %v3724_v31 = vadd.f32 %v3720_v61, %v3706_v15  ;;  %v3331_v51 = vadd.f32 %v3325_v43, %v3313_v33  ;;  %v3717_v36 = vsel %vm794_vm3, %v11309_v27, %v11307_v47  ;;  %v11313_v42 = vrot.slane %v11312_v45, 4 }
 0x29f   : > { %v3352_v26 = vadd.f32 %v9130_v55, %v2942_v17  ;;  %v3354_v34 = vmul.f32 %v9130_v55, %v9130_v55  ;;  %v3723_v38 = vadd.f32 %v3717_v36, %v3705_v50  ;;  %v2945_v25 = vadd.f32 %v2943_v46, %v2535_v37  ;;  %v11320_v37 = vld [vmem:[#allocation225_spill] sm:$0xff] }
 0x2a0   : > { %v3738_v3 = vsel %vm794_vm3, %v11313_v42, %v11311_v54  ;;  %v3349_v0 = vadd.f32 %v3343_v1, %v3331_v51  ;;  %v11315_v63 = vrot.slane %v11314_v58, 4  ;;  %v11316_v9 = vmov %v11313_v42 }
 0x2a1   : > { %v3742_v20 = vadd.f32 %v3738_v3, %v3724_v31  ;;  %v11318_v60 = vrot.slane %v11317_v8, 4  ;;  %v11319_v29 = vrot.slane %v11290_v28, 4  ;;  %v3356_v17 = vadd.f32 %v3354_v34, %v2946_v7  ;;  %v3791_v3 = vld [vmem:[%s278_s9] sm:$0x1] }
 0x2a2   : > { %v3735_v24 = vsel %vm794_vm3, %v11316_v9, %v11315_v63  ;;  %v3351_v12 = vadd.f32 %v3349_v0, %v2941_v11  ;;  %v3353_v62 = vmul.f32 %v3349_v0, %v3349_v0  ;;  %v11321_v13 = vrot.slane %v11320_v37, 4 }
 0x2a3   : > { %v3756_v49 = vsel %vm794_vm3, %v11319_v29, %v11318_v60  ;;  %v3741_v18 = vadd.f32 %v3735_v24, %v3723_v38  ;;  %v3814_v45 = vlaneseq }
 0x2a4   : > { %v9173_v5 = vadd.f32 %v3756_v49, %v3742_v20  ;;  %v3753_v14 = vsel %vm794_vm3, %v3341_v57, %v11321_v13  ;;  %v3355_v23 = vadd.f32 %v3353_v62, %v2945_v25  ;;  %v3792_v20 = vld [vmem:[%s281_s7] sm:$0x1] }
 0x2a5   : > { %v3759_v15 = vadd.f32 %v3753_v14, %v3741_v18  ;;  %v3815_v42 = vshrl.u32 %v3814_v45, 7 }
 0x2a6   : > { %v3762_v33 = vadd.f32 %v9173_v5, %v3352_v26  ;;  %v3764_v39 = vmul.f32 %v9173_v5, %v9173_v5 }
 0x2a7   : > { %v3761_v28 = vadd.f32 %v3759_v15, %v3351_v12  ;;  %v3763_v21 = vmul.f32 %v3759_v15, %v3759_v15  ;;  %v3816_v34 = vsub.s32 0, %v3815_v42 }
 0x2a8   : > { %v3766_v53 = vadd.f32 %v3764_v39, %v3356_v17 }
 0x2a9   : > { %v3765_v7 = vadd.f32 %v3763_v21, %v3355_v23  ;;  %v3770_v2 = vadd.f32 %v3762_v33, %v3761_v28 }
 0x2ab   : > { %v3771_v56 = vrot.slane %v3770_v2, 4  ;;  %v3777_v35 = vadd.f32 %v3766_v53, %v3765_v7 }
 0x2ad   : > { %v3772_v11 = vadd.f32 %v3771_v56, %v3770_v2  ;;  %v3778_v30 = vrot.slane %v3777_v35, 4 }
 0x2af   : > { %v3773_v61 = vrot.slane %v3772_v11, 2  ;;  %v3779_v57 = vadd.f32 %v3778_v30, %v3777_v35 }
 0x2b1   : > { %v3774_v46 = vadd.f32 %v3773_v61, %v3772_v11  ;;  %v3780_v16 = vrot.slane %v3779_v57, 2 }
 0x2b3   : > { %v3775_v43 = vrot.slane %v3774_v46, 1  ;;  %v3781_v50 = vadd.f32 %v3780_v16, %v3779_v57 }
 0x2b5   : > { %v3776_v31 = vadd.f32 %v3775_v43, %v3774_v46  ;;  %v3782_v51 = vrot.slane %v3781_v50, 1 }
 0x2b7   : > { %v3783_v1 = vadd.f32 %v3782_v51, %v3781_v50  ;;  %v3784_v47 = vmul.f32 0.0078125, %v3776_v31 }
 0x2b9   : > { %v3785_v4 = vmul.f32 0.0078125, %v3783_v1  ;;  %v3786_v27 = vmul.f32 %v3784_v47, %v3784_v47  ;;  %v3794_v26 = vmul.f32 %v3791_v3, %v3784_v47 }
 0x2bb   : > { %v3787_v36 = vsub.f32 %v3785_v4, %v3786_v27 }
 0x2bd   : > { %v3788_v10 = vmax.f32 %v3787_v36, 0.0 }
 0x2bf   : > { %v3789_v54 = vadd.f32 0.001, %v3788_v10 }
 0x2c1   : > { %4098 = vrsqrt.f32 %v3789_v54 }
 0x2cb   : > { %v4099_v38 = vpop.eup %4098 }
 0x2cc   : > { %v3793_v25 = vmul.f32 %v4099_v38, %v3791_v3  ;;  %v3795_v58 = vmul.f32 %v4099_v38, %v3794_v26 }
 0x2ce   : > { %v3796_v63 = vsub.f32 %v3792_v20, %v3795_v58  ;;  %v3817_v9 = vrot.slane %v3793_v25, %v3816_v34 }
 0x2d0   : > { %v3819_v24 = vmul.f32 %v3817_v9, %v8779_v52  ;;  %v3839_v8 = vrot.slane %v3796_v63, %v3816_v34  ;;  %v3820_v60 = vmul.f32 %v3817_v9, %v8934_v32  ;;  %v3821_v29 = vmul.f32 %v3817_v9, %v9003_v22 }
 0x2d1   : > { %v3822_v49 = vmul.f32 %v3817_v9, %v8990_v44  ;;  %v3823_v17 = vmul.f32 %v3817_v9, %v9048_v6  ;;  %v3824_v18 = vmul.f32 %v3817_v9, %v9106_v19  ;;  %v3825_v12 = vmul.f32 %v3817_v9, %v3349_v0  ;;  %v11322_v44 = vld [vmem:[#allocation231_spill] sm:$0xff] }
 0x2d2   : > { %v3841_v62 = vadd.f32 %v3839_v8, %v3819_v24  ;;  %v3842_v37 = vadd.f32 %v3839_v8, %v3820_v60  ;;  %v3843_v13 = vadd.f32 %v3839_v8, %v3821_v29  ;;  %v3826_v14 = vmul.f32 %v3817_v9, %v3759_v15  ;;  %v11323_v6 = vld [vmem:[#allocation147_spill] sm:$0xff] }
 0x2d3   : > { %v3844_v33 = vadd.f32 %v3839_v8, %v3822_v49  ;;  %v3845_v52 = vadd.f32 %v3839_v8, %v3823_v17  ;;  %v3846_v39 = vadd.f32 %v3839_v8, %v3824_v18  ;;  %v3847_v23 = vadd.f32 %v3839_v8, %v3825_v12 }
 0x2d4   : > { %3857 = vst [vmem:[%s9198_s13] sm:$0xff] %v3841_v62  ;;  %3858 = vst [vmem:[%s9198_s13 + $0x8] sm:$0xff] %v3842_v37  ;;  %v3848_v32 = vadd.f32 %v3839_v8, %v3826_v14  ;;  %v3827_v22 = vmul.f32 %v3817_v9, %v11322_v44  ;;  %v3828_v19 = vmul.f32 %v3817_v9, %v11323_v6 }
 0x2d5   : > { %3859 = vst [vmem:[%s9198_s13 + $0x10] sm:$0xff] %v3843_v13  ;;  %v3829_v0 = vmul.f32 %v3817_v9, %v11205_v48  ;;  %3860 = vst [vmem:[%s9198_s13 + $0x18] sm:$0xff] %v3844_v33  ;;  %v3830_v15 = vmul.f32 %v3817_v9, %v11221_v41  ;;  %v3831_v28 = vmul.f32 %v3817_v9, %v9013_v40 }
 0x2d6   : > { %3861 = vst [vmem:[%s9198_s13 + $0x20] sm:$0xff] %v3845_v52  ;;  %3862 = vst [vmem:[%s9198_s13 + $0x28] sm:$0xff] %v3846_v39  ;;  %v3832_v21 = vmul.f32 %v3817_v9, %v9079_v59  ;;  %v3833_v53 = vmul.f32 %v3817_v9, %v9130_v55  ;;  %v3849_v48 = vadd.f32 %v3839_v8, %v3827_v22 }
 0x2d7   : > { %3863 = vst [vmem:[%s9198_s13 + $0x30] sm:$0xff] %v3847_v23  ;;  %3864 = vst [vmem:[%s9198_s13 + $0x38] sm:$0xff] %v3848_v32  ;;  %v3850_v7 = vadd.f32 %v3839_v8, %v3828_v19  ;;  %v3851_v2 = vadd.f32 %v3839_v8, %v3829_v0  ;;  %v3834_v56 = vmul.f32 %v3817_v9, %v9173_v5 }
 0x2d8   : > { %v3852_v41 = vadd.f32 %v3839_v8, %v3830_v15  ;;  %v3853_v40 = vadd.f32 %v3839_v8, %v3831_v28  ;;  %v3854_v59 = vadd.f32 %v3839_v8, %v3832_v21  ;;  %v3855_v55 = vadd.f32 %v3839_v8, %v3833_v53  ;;  %3865 = vst [vmem:[%s9198_s13 + $0x40] sm:$0xff] %v3849_v48 }
 0x2d9   : > { %3866 = vst [vmem:[%s9198_s13 + $0x48] sm:$0xff] %v3850_v7  ;;  %3867 = vst [vmem:[%s9198_s13 + $0x50] sm:$0xff] %v3851_v2  ;;  %v3856_v5 = vadd.f32 %v3839_v8, %v3834_v56 }
 0x2da   : > { %3868 = vst [vmem:[%s9198_s13 + $0x58] sm:$0xff] %v3852_v41  ;;  %3869 = vst [vmem:[%s9198_s13 + $0x60] sm:$0xff] %v3853_v40 }
 0x2db   : > { %3870 = vst [vmem:[%s9198_s13 + $0x68] sm:$0xff] %v3854_v59  ;;  %3871 = vst [vmem:[%s9198_s13 + $0x70] sm:$0xff] %v3855_v55 }
 0x2dc   : > { %3872 = vst [vmem:[%s9198_s13 + $0x78] sm:$0xff] %v3856_v5 }
 0x2dd   : > { %4271 = shalt.err (!%p4268_p0)
}
 0x2de   : > { %s4272_s5 = scalar_lea.hbm %s9220_s11, 2048  ;;  %s4276_s8 = scalar_lea.hbm %s9278_s4, 4096 }
 0x2df   : > { %p4273_p4 = scmp.ne.s32.totalorder %s9220_s11, %s4272_s5  ;;  %p4277_p5 = scmp.lt.u32.totalorder %s9220_s11, %s9278_s4 }
 0x2e0   : > { %p4278_p6 = scmp.lt.u32.totalorder %s4276_s8, %s4272_s5  ;;  %p4280_p2 = scmp.lt.u32.totalorder %s4272_s5, %s9220_s11 }
 0x2e1   : > { %p4274_p1 = pnand %p4273_p4, %p11324_p12 }
 0x2e2   : > { %p4279_p13 = por %p4278_p6, %p4277_p5 }
 0x2e3   : > { %p4275_p3 = pneg %p4274_p1 }
 0x2e4   : > { %p4281_p10 = por %p4280_p2, %p4279_p13 }
 0x2e6   : > { %p4282_p7 = pnand %p4281_p10, %p4275_p3 }
 0x2e8   : > { %4285 = shalt.err (!%p4282_p7)
}
 0x2e9   : > { %s4337_s30 = smov 128   ;;  %s4338_s13 = smov 256  }
 0x2ea   : > { %s4339_s10 = smov 8  }
 0x2eb   : > { %4044 = dma.vmem_to_hbm [thread:$0]  (%p11324_p12), %s9222_s19, 2048, %s9220_s11, %s3874_s25, %s4337_s30, %s4338_s13, %s4339_s10  }
 0x2ec PF: > { %s3901_s23 = sand.u32 1, %s4316_s15   ;;  %p11325_p8 = scmp.ne.s32.totalorder %s9717_s28, 0 }
 0x2ed   : > { %p11326_p9 = scmp.ge.s32.totalorder %s4328_s18, 2  ;;  %s3902_s29 = scalar_lea.sflag [#allocation6], %s3901_s23 }
 0x2ef   : > { %p4054_p11 = pnand %p11326_p9, %p11325_p8 }
 0x2f1   : > { %4311 = dma.done.wait (!%p4054_p11), %s3902_s29, 2048  }
 0x2f2   : > { %4313 = vsyncadd (!%p4054_p11), %s3902_s29, 4294965248  ;;  %p20_p0 = scmp.ge.s32.totalorder %s4390_s21, 4   ;;  %s11327_s15 = smov %s4320_s16 }
 0x2f3   : > { %s11328_s16 = smov %s4324_s17  ;;  %s11329_s17 = smov %s4402_s24 }
 0x2f4   : > { %s11330_s18 = smov %s4390_s21  ;;  %22 = sbr.rel (!%p20_p0) target bundleno = 7 (0x7), region = 115 }
 0x2fb   :  { %3907 = vsyncpa [#allocation5], 1 }
 0x2fc   :  { %3909 = vsyncpa [#allocation5 + $0x1], 1 }
 0x2fd   :  { %3910 = vsyncpa [#allocation8], 1 }
 0x2fe   :  { %3912 = vsyncpa [#allocation8 + $0x1], 1 }
 0x2ff   :  { %3913 = vsyncpa [#allocation6], 1 }
 0x300   :  { %3915 = vsyncpa [#allocation6 + $0x1], 1 }

</bundles_post_ra>
